<compile_context>
chip_gen: v5e
topology: v5e:2x2
jax: 0.10.0
libtpu: 0.0.40
codegen_flags: <defaults>
</compile_context>

<pallas_src>
import functools

import jax
import jax.numpy as jnp
from jax.experimental import pallas as pl
from jax.experimental.pallas import tpu as pltpu

_BN_EPS = 1e-5


# ----------------------------- Pallas kernel ------------------------------- #

def _generator_kernel(layer_meta, *refs):
    """Fully fused generator forward.

    refs = [latent, wbuf_0..wbuf_{L-1}, gamma_all, beta_all, out].
    Each wbuf stacks rows [dense conv operator (f_in, f_out); 0/1 block-diag
    channel-averaging mask (f_out, f_out)] (mask only present for BN layers).
    layer_meta: static tuple of (f_in, gb_off, inv_count) per layer where
    inv_count = 1 / (N * H_out * W_out) for the BatchNorm reduction.
    """
    n_layers = len(layer_meta)
    latent_ref = refs[0]
    w_refs = refs[1:1 + n_layers]
    gamma_ref = refs[1 + n_layers]        # (1, F_total) f32, lane-broadcast gamma
    beta_ref = refs[2 + n_layers]         # (1, F_total) f32, lane-broadcast beta
    out_ref = refs[3 + n_layers]

    h = latent_ref[...].astype(jnp.bfloat16)              # (N, F_in0)
    for li, (f_in, gb_off, inv_count) in enumerate(layer_meta):
        w_ref = w_refs[li]
        f_out = w_ref.shape[1]
        # Conv / ConvTranspose as one dense MXU matmul; accumulate in f32.
        p = jnp.dot(h, w_ref[:f_in, :], preferred_element_type=jnp.float32)

        if li == n_layers - 1:
            # Final ConvTranspose + Tanh -> lane-dense (N, nc*H*W) store.
            # (Gated on layer index, not on "has no BN".)
            out_ref[...] = jnp.tanh(p)
        else:
            # Training-mode BatchNorm2d (batch statistics, biased variance)
            # + ReLU, with a SINGLE lane-dense bf16 stat matmul:
            #   [sum(x); sum(x^2)] (2,F) @ mask (F,F) -> [mean; E[x^2]] (2,F).
            avg = w_ref[f_in:, :]                          # (f_out, f_out) bf16 0/1
            colsum = jnp.sum(p, axis=0, keepdims=True)     # (1, F)
            sumsq = jnp.sum(p * p, axis=0, keepdims=True)  # (1, F)
            row = jax.lax.broadcasted_iota(jnp.int32, (2, f_out), 0)
            stats = (jnp.where(row == 0, colsum, sumsq) * inv_count
                     ).astype(jnp.bfloat16)                # (2, F)
            me = jnp.dot(stats, avg, preferred_element_type=jnp.float32)  # (2, F)
            mean_l = jnp.sum(jnp.where(row == 0, me, 0.0), axis=0, keepdims=True)
            ex2_l = jnp.sum(jnp.where(row == 1, me, 0.0), axis=0, keepdims=True)
            var_l = ex2_l - mean_l * mean_l                # (1, F)

            # Fold BN into one fused scale*x + shift (rsqrt runs on the EUP);
            # gamma/beta math kept in f32.
            g_l = gamma_ref[:, gb_off:gb_off + f_out]      # (1, F) f32
            b_l = beta_ref[:, gb_off:gb_off + f_out]       # (1, F) f32
            scale_l = g_l * jax.lax.rsqrt(var_l + _BN_EPS)
            shift_l = b_l - mean_l * scale_l
            h = jnp.maximum(p * scale_l + shift_l, 0.0).astype(jnp.bfloat16)


# ---------------- init-time dense operators (exact conv algebra) ----------- #

def _dense_convT_operator(w, hin, win, stride, pad):
    """Exact (Cin*Hin*Win, Cout*Hout*Wout) matrix of ConvTranspose2d(w, stride, pad).

    ConvTranspose == zero-inserted (lhs_dilation) + (k-1-pad)-padded stride-1
    cross-correlation with the spatially flipped, channel-transposed kernel.
    Built by pushing the identity basis through the op (init-time only).
    """
    cin, cout, k, _ = w.shape
    rhs = jnp.flip(w, (2, 3)).transpose(1, 0, 2, 3)              # (Cout, Cin, k, k)
    basis = jnp.eye(cin * hin * win, dtype=jnp.float32).reshape(-1, cin, hin, win)
    out = jax.lax.conv_general_dilated(
        basis, rhs, window_strides=(1, 1),
        padding=[(k - 1 - pad, k - 1 - pad)] * 2,
        lhs_dilation=(stride, stride),
        dimension_numbers=("NCHW", "OIHW", "NCHW"),
        precision=jax.lax.Precision.HIGHEST)
    return out.reshape(cin * hin * win, -1), out.shape[2], out.shape[3]


def _dense_conv_operator(w, hin, win, pad):
    """Exact dense matrix of a stride-1 Conv2d (PyTorch OIHW weight)."""
    cout, cin, k, _ = w.shape
    basis = jnp.eye(cin * hin * win, dtype=jnp.float32).reshape(-1, cin, hin, win)
    out = jax.lax.conv_general_dilated(
        basis, w, window_strides=(1, 1), padding=[(pad, pad)] * 2,
        dimension_numbers=("NCHW", "OIHW", "NCHW"),
        precision=jax.lax.Precision.HIGHEST)
    return out.reshape(cin * hin * win, -1), out.shape[2], out.shape[3]


def init_params(key, i_size, nz, nc, ngf, n_extra_layers):
    """Synthetic params with the nn.Module's shapes + precomputed kernel operands."""
    assert i_size % 16 == 0, "i_size has to be a multiple of 16"
    cngf, tisize = ngf // 2, 4
    while tisize != i_size:
        cngf *= 2
        tisize *= 2

    keys = iter(jax.random.split(key, 64))

    def nrm(shape, scale=0.05):
        return scale * jax.random.normal(next(keys), shape, jnp.float32)

    # Raw layer definitions (same structure as the PyTorch module).
    raw = []
    raw.append(dict(kind="convT", w=nrm((nz, cngf, 4, 4)), k=4, s=1, p=0,
                    gamma=1.0 + nrm((cngf,), 0.1), beta=nrm((cngf,), 0.1)))
    csize, c = 4, cngf
    while csize < i_size // 2:
        raw.append(dict(kind="convT", w=nrm((c, c // 2, 4, 4)), k=4, s=2, p=1,
                        gamma=1.0 + nrm((c // 2,), 0.1), beta=nrm((c // 2,), 0.1)))
        c //= 2
        csize *= 2
    for _ in range(n_extra_layers):
        raw.append(dict(kind="conv", w=nrm((c, c, 3, 3)), k=3, s=1, p=1,
                        gamma=1.0 + nrm((c,), 0.1), beta=nrm((c,), 0.1)))
    raw.append(dict(kind="convT", w=nrm((c, nc, 4, 4)), k=4, s=2, p=1,
                    gamma=None, beta=None))

    # Precompute everything the kernel needs (done once, outside the forward).
    layers = []
    gammas_l, betas_l = [], []
    h = w_sp = 1
    first = True
    for L in raw:
        if L["kind"] == "convT":
            dense, ho, wo = _dense_convT_operator(L["w"], h, w_sp, L["s"], L["p"])
        else:
            dense, ho, wo = _dense_conv_operator(L["w"], h, w_sp, L["p"])
        if first:
            # Pad the tiny latent contraction dim up to a multiple of 128 so the
            # first matmul has a lane-aligned K (extra rows are zero -> exact).
            pad_rows = (-dense.shape[0]) % 128
            if pad_rows:
                dense = jnp.pad(dense, ((0, pad_rows), (0, 0)))
            first = False
        f_in, f_out = int(dense.shape[0]), int(dense.shape[1])
        hw = int(ho * wo)
        has_bn = L["gamma"] is not None

        wbuf = dense.astype(jnp.bfloat16)
        gb_off = 0
        if has_bn:
            # 0/1 block-diagonal channel-averaging mask, appended to the weight
            # buffer so it rides the same DMA (bf16 0/1 is exact).
            chan = jnp.arange(f_out) // hw
            avg = (chan[:, None] == chan[None, :]).astype(jnp.bfloat16)
            wbuf = jnp.concatenate([wbuf, avg], axis=0)
            gb_off = int(sum(g.shape[0] for g in gammas_l))
            gammas_l.append(jnp.repeat(L["gamma"], hw))   # lane-broadcast gamma
            betas_l.append(jnp.repeat(L["beta"], hw))     # lane-broadcast beta

        layers.append(dict(wbuf=wbuf, f_in=f_in, f_out=f_out, hw=hw,
                           has_bn=has_bn, gb_off=gb_off))
        h, w_sp = ho, wo

    gamma_all = jnp.concatenate(gammas_l).reshape(1, -1).astype(jnp.float32)
    beta_all = jnp.concatenate(betas_l).reshape(1, -1).astype(jnp.float32)
    return dict(layers=layers, gamma_all=gamma_all, beta_all=beta_all,
                raw=raw, nc=nc, i_size=i_size)


# ------------------------------ forward ------------------------------------ #

def overcooked_generator_forward(latent, params):
    """latent: (N, nz) float32 -> (N, nc, i_size, i_size) float32 (NCHW)."""
    n = latent.shape[0]
    layers = params["layers"]
    # The kernel gates the tanh/output write on the layer index; this is only
    # valid because exactly the last layer is BN-less (as in the nn.Module).
    assert all(L["has_bn"] for L in layers[:-1]) and not layers[-1]["has_bn"]

    f_in0 = layers[0]["f_in"]
    z = latent.astype(jnp.float32)
    if f_in0 > z.shape[1]:
        z = jnp.pad(z, ((0, 0), (0, f_in0 - z.shape[1])))

    meta = tuple(
        (L["f_in"], L["gb_off"],
         (1.0 / float(n * L["hw"])) if L["has_bn"] else 0.0)
        for L in layers)

    inputs = [z] + [L["wbuf"] for L in layers] + [params["gamma_all"],
                                                  params["beta_all"]]
    f_out_final = layers[-1]["f_out"]

    # Advisory cost hint so XLA schedules surrounding ops around the call.
    flops = 2 * n * sum(L["f_in"] * L["f_out"] for L in layers)
    flops += sum(2 * 2 * L["f_out"] * L["f_out"] for L in layers if L["has_bn"])
    transcendentals = n * f_out_final + sum(
        L["f_out"] for L in layers if L["has_bn"])
    bytes_accessed = sum(int(x.size) * x.dtype.itemsize for x in inputs)
    bytes_accessed += n * f_out_final * 4

    vmem = pl.BlockSpec(memory_space=pltpu.MemorySpace.VMEM)
    out = pl.pallas_call(
        functools.partial(_generator_kernel, meta),
        out_shape=jax.ShapeDtypeStruct((n, f_out_final), jnp.float32),
        in_specs=[vmem] * len(inputs),
        out_specs=vmem,
        cost_estimate=pl.CostEstimate(flops=int(flops),
                                      transcendentals=int(transcendentals),
                                      bytes_accessed=int(bytes_accessed)),
    )(*inputs)

    # (N, C*H*W) is the row-major NCHW flattening -> free reshape, no transpose.
    return out.reshape(n, params["nc"], params["i_size"], params["i_size"])


# --------------------- pure-JAX f32 reference (for checking) --------------- #

def reference_forward(latent, raw):
    """Straightforward NCHW lax-conv reference (f32, training-mode BatchNorm)."""
    x = latent.reshape(latent.shape[0], -1, 1, 1).astype(jnp.float32)
    for L in raw:
        if L["kind"] == "convT":
            k, s, p = L["k"], L["s"], L["p"]
            n, c, hh, ww = x.shape
            if s > 1:
                up = jnp.zeros((n, c, hh * s - (s - 1), ww * s - (s - 1)), x.dtype)
                up = up.at[:, :, ::s, ::s].set(x)
            else:
                up = x
            pp = k - 1 - p
            up = jnp.pad(up, ((0, 0), (0, 0), (pp, pp), (pp, pp)))
            rhs = jnp.flip(L["w"], (2, 3)).transpose(1, 0, 2, 3)
            x = jax.lax.conv_general_dilated(
                up, rhs, (1, 1), [(0, 0), (0, 0)],
                dimension_numbers=("NCHW", "OIHW", "NCHW"),
                precision=jax.lax.Precision.HIGHEST)
        else:
            x = jax.lax.conv_general_dilated(
                x, L["w"], (1, 1), [(L["p"], L["p"])] * 2,
                dimension_numbers=("NCHW", "OIHW", "NCHW"),
                precision=jax.lax.Precision.HIGHEST)
        if L["gamma"] is None:
            x = jnp.tanh(x)
        else:
            mean = jnp.mean(x, axis=(0, 2, 3), keepdims=True)
            var = jnp.mean(jnp.square(x - mean), axis=(0, 2, 3), keepdims=True)
            x = (x - mean) * jax.lax.rsqrt(var + _BN_EPS)
            x = x * L["gamma"].reshape(1, -1, 1, 1) + L["beta"].reshape(1, -1, 1, 1)
            x = jnp.maximum(x, 0.0)
    return x


# ------------------------------- main --------------------------------------- #

if __name__ == "__main__":
    I_SIZE, NZ, NC, NGF, N_EXTRA = 16, 8, 4, 8, 1
    N = 8   # fills sublanes / MXU rows and amortizes fixed weight-DMA + dispatch

    key = jax.random.PRNGKey(0)
    pkey, zkey = jax.random.split(key)
    params = init_params(pkey, I_SIZE, NZ, NC, NGF, N_EXTRA)
    latent = jax.random.normal(zkey, (N, NZ), jnp.float32)

    fwd = jax.jit(functools.partial(overcooked_generator_forward, params=params))
    out = jax.block_until_ready(fwd(latent))

    assert out.shape == (N, NC, I_SIZE, I_SIZE), out.shape
    assert out.dtype == jnp.float32
    assert bool(jnp.all(jnp.isfinite(out)))
    assert bool(jnp.all(jnp.abs(out) <= 1.0 + 1e-6))   # tanh output range

    # Numerical check vs an f32 reference; loose tolerance because the fused
    # kernel intentionally uses bf16 MXU operands (per perf guidance).
    ref = jax.block_until_ready(reference_forward(latent, params["raw"]))
    assert ref.shape == out.shape
    max_err = float(jnp.max(jnp.abs(out - ref)))
    assert max_err < 0.1, f"max abs error vs f32 reference: {max_err}"

    print("KERNEL_OK")
</pallas_src>

<mosaic_0001>
module attributes {stable_mosaic.version = 11 : i64} {
  func.func @_generator_kernel(%arg0: memref<8x128xf32, #tpu.memory_space<vmem>>, %arg1: memref<384x256xbf16, #tpu.memory_space<vmem>>, %arg2: memref<768x512xbf16, #tpu.memory_space<vmem>>, %arg3: memref<1024x512xbf16, #tpu.memory_space<vmem>>, %arg4: memref<512x1024xbf16, #tpu.memory_space<vmem>>, %arg5: memref<1x1280xf32, #tpu.memory_space<vmem>>, %arg6: memref<1x1280xf32, #tpu.memory_space<vmem>>, %arg7: memref<8x1024xf32, #tpu.memory_space<vmem>>) attributes {dimension_semantics = [], scalar_prefetch = 0 : i64, scratch_operands = 0 : i64, tpu.core_type = #tpu.core_type<tc>} {
    %c0 = arith.constant 0 : index
    %c0_0 = arith.constant 0 : index
    %0 = vector.load %arg0[%c0, %c0_0] : memref<8x128xf32, #tpu.memory_space<vmem>>, vector<8x128xf32>
    %1 = arith.truncf %0 : vector<8x128xf32> to vector<8x128xbf16>
    %c0_1 = arith.constant 0 : index
    %c0_2 = arith.constant 0 : index
    %2 = vector.load %arg1[%c0_1, %c0_2] : memref<384x256xbf16, #tpu.memory_space<vmem>>, vector<128x256xbf16>
    %cst = arith.constant dense<0.000000e+00> : vector<8x256xf32>
    %3 = tpu.matmul %1, %2, %cst {dimension_numbers = #tpu.dot_dimension_numbers<[1], [0], [0], [1], [0, 0, 1, 1], [], []>} : vector<8x128xbf16>, vector<128x256xbf16>, vector<8x256xf32> -> vector<8x256xf32>
    %c128 = arith.constant 128 : index
    %c0_3 = arith.constant 0 : index
    %4 = vector.load %arg1[%c128, %c0_3] : memref<384x256xbf16, #tpu.memory_space<vmem>>, vector<256x256xbf16>
    %cst_4 = arith.constant dense<0.000000e+00> : vector<256xf32>
    %5 = vector.multi_reduction <add>, %3, %cst_4 [0] : vector<8x256xf32> to vector<256xf32>
    %6 = vector.shape_cast %5 : vector<256xf32> to vector<1x256xf32>
    %7 = arith.mulf %3, %3 : vector<8x256xf32>
    %cst_5 = arith.constant dense<0.000000e+00> : vector<256xf32>
    %8 = vector.multi_reduction <add>, %7, %cst_5 [0] : vector<8x256xf32> to vector<256xf32>
    %9 = vector.shape_cast %8 : vector<256xf32> to vector<1x256xf32>
    %10 = tpu.iota {dimensions = array<i32: 0>} : vector<2x256xi32>
    %c0_i32 = arith.constant 0 : i32
    %11 = vector.broadcast %c0_i32 : i32 to vector<2x256xi32>
    %12 = arith.cmpi eq, %10, %11 : vector<2x256xi32>
    %13 = vector.shape_cast %6 : vector<1x256xf32> to vector<1x256xf32>
    %14 = vector.broadcast %13 : vector<1x256xf32> to vector<2x256xf32>
    %15 = vector.shape_cast %9 : vector<1x256xf32> to vector<1x256xf32>
    %16 = vector.broadcast %15 : vector<1x256xf32> to vector<2x256xf32>
    %17 = arith.select %12, %14, %16 : vector<2x256xi1>, vector<2x256xf32>
    %cst_6 = arith.constant 7.812500e-03 : f32
    %18 = vector.broadcast %cst_6 : f32 to vector<2x256xf32>
    %19 = arith.mulf %17, %18 : vector<2x256xf32>
    %20 = arith.truncf %19 : vector<2x256xf32> to vector<2x256xbf16>
    %cst_7 = arith.constant dense<0.000000e+00> : vector<2x256xf32>
    %21 = tpu.matmul %20, %4, %cst_7 {dimension_numbers = #tpu.dot_dimension_numbers<[1], [0], [0], [1], [0, 0, 1, 1], [], []>} : vector<2x256xbf16>, vector<256x256xbf16>, vector<2x256xf32> -> vector<2x256xf32>
    %c0_i32_8 = arith.constant 0 : i32
    %22 = vector.broadcast %c0_i32_8 : i32 to vector<2x256xi32>
    %23 = arith.cmpi eq, %10, %22 : vector<2x256xi32>
    %cst_9 = arith.constant 0.000000e+00 : f32
    %24 = vector.broadcast %cst_9 : f32 to vector<2x256xf32>
    %25 = arith.select %23, %21, %24 : vector<2x256xi1>, vector<2x256xf32>
    %cst_10 = arith.constant dense<0.000000e+00> : vector<256xf32>
    %26 = vector.multi_reduction <add>, %25, %cst_10 [0] : vector<2x256xf32> to vector<256xf32>
    %27 = vector.shape_cast %26 : vector<256xf32> to vector<1x256xf32>
    %c1_i32 = arith.constant 1 : i32
    %28 = vector.broadcast %c1_i32 : i32 to vector<2x256xi32>
    %29 = arith.cmpi eq, %10, %28 : vector<2x256xi32>
    %cst_11 = arith.constant 0.000000e+00 : f32
    %30 = vector.broadcast %cst_11 : f32 to vector<2x256xf32>
    %31 = arith.select %29, %21, %30 : vector<2x256xi1>, vector<2x256xf32>
    %cst_12 = arith.constant dense<0.000000e+00> : vector<256xf32>
    %32 = vector.multi_reduction <add>, %31, %cst_12 [0] : vector<2x256xf32> to vector<256xf32>
    %33 = vector.shape_cast %32 : vector<256xf32> to vector<1x256xf32>
    %34 = arith.mulf %27, %27 : vector<1x256xf32>
    %35 = arith.subf %33, %34 : vector<1x256xf32>
    %c0_13 = arith.constant 0 : index
    %c0_14 = arith.constant 0 : index
    %36 = vector.load %arg5[%c0_13, %c0_14] : memref<1x1280xf32, #tpu.memory_space<vmem>>, vector<1x256xf32>
    %c0_15 = arith.constant 0 : index
    %c0_16 = arith.constant 0 : index
    %37 = vector.load %arg6[%c0_15, %c0_16] : memref<1x1280xf32, #tpu.memory_space<vmem>>, vector<1x256xf32>
    %cst_17 = arith.constant 9.99999974E-6 : f32
    %38 = vector.broadcast %cst_17 : f32 to vector<1x256xf32>
    %39 = arith.addf %35, %38 : vector<1x256xf32>
    %40 = math.rsqrt %39 : vector<1x256xf32>
    %41 = arith.mulf %36, %40 : vector<1x256xf32>
    %42 = arith.mulf %27, %41 : vector<1x256xf32>
    %43 = arith.subf %37, %42 : vector<1x256xf32>
    %44 = vector.broadcast %41 : vector<1x256xf32> to vector<8x256xf32>
    %45 = arith.mulf %3, %44 : vector<8x256xf32>
    %46 = vector.broadcast %43 : vector<1x256xf32> to vector<8x256xf32>
    %47 = arith.addf %45, %46 : vector<8x256xf32>
    %cst_18 = arith.constant 0.000000e+00 : f32
    %48 = vector.broadcast %cst_18 : f32 to vector<8x256xf32>
    %49 = arith.maximumf %47, %48 : vector<8x256xf32>
    %50 = arith.truncf %49 : vector<8x256xf32> to vector<8x256xbf16>
    %c0_19 = arith.constant 0 : index
    %c0_20 = arith.constant 0 : index
    %51 = vector.load %arg2[%c0_19, %c0_20] : memref<768x512xbf16, #tpu.memory_space<vmem>>, vector<256x512xbf16>
    %cst_21 = arith.constant dense<0.000000e+00> : vector<8x512xf32>
    %52 = tpu.matmul %50, %51, %cst_21 {dimension_numbers = #tpu.dot_dimension_numbers<[1], [0], [0], [1], [0, 0, 1, 1], [], []>} : vector<8x256xbf16>, vector<256x512xbf16>, vector<8x512xf32> -> vector<8x512xf32>
    %c256 = arith.constant 256 : index
    %c0_22 = arith.constant 0 : index
    %53 = vector.load %arg2[%c256, %c0_22] : memref<768x512xbf16, #tpu.memory_space<vmem>>, vector<512x512xbf16>
    %cst_23 = arith.constant dense<0.000000e+00> : vector<512xf32>
    %54 = vector.multi_reduction <add>, %52, %cst_23 [0] : vector<8x512xf32> to vector<512xf32>
    %55 = vector.shape_cast %54 : vector<512xf32> to vector<1x512xf32>
    %56 = arith.mulf %52, %52 : vector<8x512xf32>
    %cst_24 = arith.constant dense<0.000000e+00> : vector<512xf32>
    %57 = vector.multi_reduction <add>, %56, %cst_24 [0] : vector<8x512xf32> to vector<512xf32>
    %58 = vector.shape_cast %57 : vector<512xf32> to vector<1x512xf32>
    %59 = tpu.iota {dimensions = array<i32: 0>} : vector<2x512xi32>
    %c0_i32_25 = arith.constant 0 : i32
    %60 = vector.broadcast %c0_i32_25 : i32 to vector<2x512xi32>
    %61 = arith.cmpi eq, %59, %60 : vector<2x512xi32>
    %62 = vector.shape_cast %55 : vector<1x512xf32> to vector<1x512xf32>
    %63 = vector.broadcast %62 : vector<1x512xf32> to vector<2x512xf32>
    %64 = vector.shape_cast %58 : vector<1x512xf32> to vector<1x512xf32>
    %65 = vector.broadcast %64 : vector<1x512xf32> to vector<2x512xf32>
    %66 = arith.select %61, %63, %65 : vector<2x512xi1>, vector<2x512xf32>
    %cst_26 = arith.constant 0.001953125 : f32
    %67 = vector.broadcast %cst_26 : f32 to vector<2x512xf32>
    %68 = arith.mulf %66, %67 : vector<2x512xf32>
    %69 = arith.truncf %68 : vector<2x512xf32> to vector<2x512xbf16>
    %cst_27 = arith.constant dense<0.000000e+00> : vector<2x512xf32>
    %70 = tpu.matmul %69, %53, %cst_27 {dimension_numbers = #tpu.dot_dimension_numbers<[1], [0], [0], [1], [0, 0, 1, 1], [], []>} : vector<2x512xbf16>, vector<512x512xbf16>, vector<2x512xf32> -> vector<2x512xf32>
    %c0_i32_28 = arith.constant 0 : i32
    %71 = vector.broadcast %c0_i32_28 : i32 to vector<2x512xi32>
    %72 = arith.cmpi eq, %59, %71 : vector<2x512xi32>
    %cst_29 = arith.constant 0.000000e+00 : f32
    %73 = vector.broadcast %cst_29 : f32 to vector<2x512xf32>
    %74 = arith.select %72, %70, %73 : vector<2x512xi1>, vector<2x512xf32>
    %cst_30 = arith.constant dense<0.000000e+00> : vector<512xf32>
    %75 = vector.multi_reduction <add>, %74, %cst_30 [0] : vector<2x512xf32> to vector<512xf32>
    %76 = vector.shape_cast %75 : vector<512xf32> to vector<1x512xf32>
    %c1_i32_31 = arith.constant 1 : i32
    %77 = vector.broadcast %c1_i32_31 : i32 to vector<2x512xi32>
    %78 = arith.cmpi eq, %59, %77 : vector<2x512xi32>
    %cst_32 = arith.constant 0.000000e+00 : f32
    %79 = vector.broadcast %cst_32 : f32 to vector<2x512xf32>
    %80 = arith.select %78, %70, %79 : vector<2x512xi1>, vector<2x512xf32>
    %cst_33 = arith.constant dense<0.000000e+00> : vector<512xf32>
    %81 = vector.multi_reduction <add>, %80, %cst_33 [0] : vector<2x512xf32> to vector<512xf32>
    %82 = vector.shape_cast %81 : vector<512xf32> to vector<1x512xf32>
    %83 = arith.mulf %76, %76 : vector<1x512xf32>
    %84 = arith.subf %82, %83 : vector<1x512xf32>
    %c0_34 = arith.constant 0 : index
    %c256_35 = arith.constant 256 : index
    %85 = vector.load %arg5[%c0_34, %c256_35] : memref<1x1280xf32, #tpu.memory_space<vmem>>, vector<1x512xf32>
    %c0_36 = arith.constant 0 : index
    %c256_37 = arith.constant 256 : index
    %86 = vector.load %arg6[%c0_36, %c256_37] : memref<1x1280xf32, #tpu.memory_space<vmem>>, vector<1x512xf32>
    %cst_38 = arith.constant 9.99999974E-6 : f32
    %87 = vector.broadcast %cst_38 : f32 to vector<1x512xf32>
    %88 = arith.addf %84, %87 : vector<1x512xf32>
    %89 = math.rsqrt %88 : vector<1x512xf32>
    %90 = arith.mulf %85, %89 : vector<1x512xf32>
    %91 = arith.mulf %76, %90 : vector<1x512xf32>
    %92 = arith.subf %86, %91 : vector<1x512xf32>
    %93 = vector.broadcast %90 : vector<1x512xf32> to vector<8x512xf32>
    %94 = arith.mulf %52, %93 : vector<8x512xf32>
    %95 = vector.broadcast %92 : vector<1x512xf32> to vector<8x512xf32>
    %96 = arith.addf %94, %95 : vector<8x512xf32>
    %cst_39 = arith.constant 0.000000e+00 : f32
    %97 = vector.broadcast %cst_39 : f32 to vector<8x512xf32>
    %98 = arith.maximumf %96, %97 : vector<8x512xf32>
    %99 = arith.truncf %98 : vector<8x512xf32> to vector<8x512xbf16>
    %c0_40 = arith.constant 0 : index
    %c0_41 = arith.constant 0 : index
    %100 = vector.load %arg3[%c0_40, %c0_41] : memref<1024x512xbf16, #tpu.memory_space<vmem>>, vector<512x512xbf16>
    %cst_42 = arith.constant dense<0.000000e+00> : vector<8x512xf32>
    %101 = tpu.matmul %99, %100, %cst_42 {dimension_numbers = #tpu.dot_dimension_numbers<[1], [0], [0], [1], [0, 0, 1, 1], [], []>} : vector<8x512xbf16>, vector<512x512xbf16>, vector<8x512xf32> -> vector<8x512xf32>
    %c512 = arith.constant 512 : index
    %c0_43 = arith.constant 0 : index
    %102 = vector.load %arg3[%c512, %c0_43] : memref<1024x512xbf16, #tpu.memory_space<vmem>>, vector<512x512xbf16>
    %cst_44 = arith.constant dense<0.000000e+00> : vector<512xf32>
    %103 = vector.multi_reduction <add>, %101, %cst_44 [0] : vector<8x512xf32> to vector<512xf32>
    %104 = vector.shape_cast %103 : vector<512xf32> to vector<1x512xf32>
    %105 = arith.mulf %101, %101 : vector<8x512xf32>
    %cst_45 = arith.constant dense<0.000000e+00> : vector<512xf32>
    %106 = vector.multi_reduction <add>, %105, %cst_45 [0] : vector<8x512xf32> to vector<512xf32>
    %107 = vector.shape_cast %106 : vector<512xf32> to vector<1x512xf32>
    %108 = tpu.iota {dimensions = array<i32: 0>} : vector<2x512xi32>
    %c0_i32_46 = arith.constant 0 : i32
    %109 = vector.broadcast %c0_i32_46 : i32 to vector<2x512xi32>
    %110 = arith.cmpi eq, %108, %109 : vector<2x512xi32>
    %111 = vector.shape_cast %104 : vector<1x512xf32> to vector<1x512xf32>
    %112 = vector.broadcast %111 : vector<1x512xf32> to vector<2x512xf32>
    %113 = vector.shape_cast %107 : vector<1x512xf32> to vector<1x512xf32>
    %114 = vector.broadcast %113 : vector<1x512xf32> to vector<2x512xf32>
    %115 = arith.select %110, %112, %114 : vector<2x512xi1>, vector<2x512xf32>
    %cst_47 = arith.constant 0.001953125 : f32
    %116 = vector.broadcast %cst_47 : f32 to vector<2x512xf32>
    %117 = arith.mulf %115, %116 : vector<2x512xf32>
    %118 = arith.truncf %117 : vector<2x512xf32> to vector<2x512xbf16>
    %cst_48 = arith.constant dense<0.000000e+00> : vector<2x512xf32>
    %119 = tpu.matmul %118, %102, %cst_48 {dimension_numbers = #tpu.dot_dimension_numbers<[1], [0], [0], [1], [0, 0, 1, 1], [], []>} : vector<2x512xbf16>, vector<512x512xbf16>, vector<2x512xf32> -> vector<2x512xf32>
    %c0_i32_49 = arith.constant 0 : i32
    %120 = vector.broadcast %c0_i32_49 : i32 to vector<2x512xi32>
    %121 = arith.cmpi eq, %108, %120 : vector<2x512xi32>
    %cst_50 = arith.constant 0.000000e+00 : f32
    %122 = vector.broadcast %cst_50 : f32 to vector<2x512xf32>
    %123 = arith.select %121, %119, %122 : vector<2x512xi1>, vector<2x512xf32>
    %cst_51 = arith.constant dense<0.000000e+00> : vector<512xf32>
    %124 = vector.multi_reduction <add>, %123, %cst_51 [0] : vector<2x512xf32> to vector<512xf32>
    %125 = vector.shape_cast %124 : vector<512xf32> to vector<1x512xf32>
    %c1_i32_52 = arith.constant 1 : i32
    %126 = vector.broadcast %c1_i32_52 : i32 to vector<2x512xi32>
    %127 = arith.cmpi eq, %108, %126 : vector<2x512xi32>
    %cst_53 = arith.constant 0.000000e+00 : f32
    %128 = vector.broadcast %cst_53 : f32 to vector<2x512xf32>
    %129 = arith.select %127, %119, %128 : vector<2x512xi1>, vector<2x512xf32>
    %cst_54 = arith.constant dense<0.000000e+00> : vector<512xf32>
    %130 = vector.multi_reduction <add>, %129, %cst_54 [0] : vector<2x512xf32> to vector<512xf32>
    %131 = vector.shape_cast %130 : vector<512xf32> to vector<1x512xf32>
    %132 = arith.mulf %125, %125 : vector<1x512xf32>
    %133 = arith.subf %131, %132 : vector<1x512xf32>
    %c0_55 = arith.constant 0 : index
    %c768 = arith.constant 768 : index
    %134 = vector.load %arg5[%c0_55, %c768] : memref<1x1280xf32, #tpu.memory_space<vmem>>, vector<1x512xf32>
    %c0_56 = arith.constant 0 : index
    %c768_57 = arith.constant 768 : index
    %135 = vector.load %arg6[%c0_56, %c768_57] : memref<1x1280xf32, #tpu.memory_space<vmem>>, vector<1x512xf32>
    %cst_58 = arith.constant 9.99999974E-6 : f32
    %136 = vector.broadcast %cst_58 : f32 to vector<1x512xf32>
    %137 = arith.addf %133, %136 : vector<1x512xf32>
    %138 = math.rsqrt %137 : vector<1x512xf32>
    %139 = arith.mulf %134, %138 : vector<1x512xf32>
    %140 = arith.mulf %125, %139 : vector<1x512xf32>
    %141 = arith.subf %135, %140 : vector<1x512xf32>
    %142 = vector.broadcast %139 : vector<1x512xf32> to vector<8x512xf32>
    %143 = arith.mulf %101, %142 : vector<8x512xf32>
    %144 = vector.broadcast %141 : vector<1x512xf32> to vector<8x512xf32>
    %145 = arith.addf %143, %144 : vector<8x512xf32>
    %cst_59 = arith.constant 0.000000e+00 : f32
    %146 = vector.broadcast %cst_59 : f32 to vector<8x512xf32>
    %147 = arith.maximumf %145, %146 : vector<8x512xf32>
    %148 = arith.truncf %147 : vector<8x512xf32> to vector<8x512xbf16>
    %c0_60 = arith.constant 0 : index
    %c0_61 = arith.constant 0 : index
    %149 = vector.load %arg4[%c0_60, %c0_61] : memref<512x1024xbf16, #tpu.memory_space<vmem>>, vector<512x1024xbf16>
    %cst_62 = arith.constant dense<0.000000e+00> : vector<8x1024xf32>
    %150 = tpu.matmul %148, %149, %cst_62 {dimension_numbers = #tpu.dot_dimension_numbers<[1], [0], [0], [1], [0, 0, 1, 1], [], []>} : vector<8x512xbf16>, vector<512x1024xbf16>, vector<8x1024xf32> -> vector<8x1024xf32>
    %151 = math.tanh %150 : vector<8x1024xf32>
    %c0_63 = arith.constant 0 : index
    %c0_64 = arith.constant 0 : index
    %152 = vector.load %arg7[%c0_63, %c0_64] : memref<8x1024xf32, #tpu.memory_space<vmem>>, vector<8x1024xf32>
    tpu.vector_store %arg7[%c0_63, %c0_64], %151 {strides = array<i32>} : memref<8x1024xf32, #tpu.memory_space<vmem>>, vector<8x1024xf32>,
    return
  }
}

</mosaic_0001>

<bundles_post_ra>
// kernel: overcooked_generator_forward.1
= control target key start
LH: loop header
LB: loop body
LE: loop exit
PB: predicated region body
PF: predicated region fallthrough
CT: control target
= control target key end

     0   :  { %12 = vsyncpa [#allocation3], 0  ;;  %s10975_s0 = inlined_call_operand.vmem [shape: f32[8,128], index: 0, kind: input, shape index: {}]   ;;  %s10976_s1 = inlined_call_operand.hbm [shape: bf16[384,256], index: 1, kind: input, shape index: {}]   ;;  %s10977_s2 = inlined_call_operand.hbm [shape: bf16[768,512], index: 2, kind: input, shape index: {}]   ;;  %s10978_s3 = inlined_call_operand.hbm [shape: bf16[1024,512], index: 3, kind: input, shape index: {}]   ;;  %s10979_s4 = inlined_call_operand.hbm [shape: bf16[512,1024], index: 4, kind: input, shape index: {}]   ;;  %s10980_s5 = inlined_call_operand.vmem [shape: f32[1,1280], index: 5, kind: input, shape index: {}]   ;;  %s10981_s6 = inlined_call_operand.vmem [shape: f32[1,1280], index: 6, kind: input, shape index: {}]   ;;  %s10982_s7 = inlined_call_operand.vmem [shape: f32[8,1024], index: 7, kind: output, shape index: {}]  }
   0x1   :  { %13 = vsyncpa [#allocation5], 0  ;;  %s34_s26 = sshll.u32 %s10977_s2, 4  ;;  %s35_s26 = int_to_ptr.hbm [resolvable:$true] %s34_s26 }
   0x2   :  { %14 = vsyncpa [#allocation8], 0  ;;  %s10375_s27 = smov [#allocation4]   ;;  %s21_s8 = sshll.u32 %s10976_s1, 4  ;;  %s22_s8 = int_to_ptr.hbm [resolvable:$true] %s21_s8 }
   0x3   :  { %s36_s28 = sshll.u32 %s10375_s27, 4  ;;  %s10376_s9 = smov 256   ;;  %s37_s28 = int_to_ptr.vmem [resolvable:$true] %s36_s28 }
   0x4   :  { %s10377_s10 = smov 16   ;;  %s10378_s11 = smov [#allocation2]  }
   0x5   :  { %42 = dma.hbm_to_vmem [thread:$0]  %s35_s26, 24576, %s37_s28, [#allocation5], %s10376_s9, %s10376_s9, %s10377_s10  }
   0x6   :  { %s23_s12 = sshll.u32 %s10378_s11, 4  ;;  %s10379_s13 = smov 128   ;;  %s24_s12 = int_to_ptr.vmem [resolvable:$true] %s23_s12 }
   0x7   :  { %s10380_s14 = smov 8   ;;  %s47_s16 = sshll.u32 %s10978_s3, 4  ;;  %s48_s16 = int_to_ptr.hbm [resolvable:$true] %s47_s16 }
   0x8   :  { %29 = dma.hbm_to_vmem [thread:$0]  %s22_s8, 6144, %s24_s12, [#allocation3], %s10379_s13, %s10379_s13, %s10380_s14  }
   0x9   :  { %s10381_s17 = smov [#allocation6]   ;;  %s60_s20 = sshll.u32 %s10979_s4, 4  ;;  %s61_s20 = int_to_ptr.hbm [resolvable:$true] %s60_s20 }
   0xa   :  { %s49_s18 = sshll.u32 %s10381_s17, 4  ;;  %s10382_s21 = smov [#allocation7]   ;;  %s50_s18 = int_to_ptr.vmem [resolvable:$true] %s49_s18 }
   0xb   :  { %55 = dma.hbm_to_vmem [thread:$0]  %s48_s16, 32768, %s50_s18, [#allocation5], %s10376_s9, %s10376_s9, %s10377_s10  }
   0xc   :  { %s62_s22 = sshll.u32 %s10382_s21, 4  ;;  %s10383_s23 = smov 512   ;;  %s63_s22 = int_to_ptr.vmem [resolvable:$true] %s62_s22 }
   0xd   :  { %s10384_s24 = smov 32  }
   0xe   :  { %68 = dma.hbm_to_vmem [thread:$0]  %s61_s20, 32768, %s63_s22, [#allocation8], %s10383_s23, %s10383_s23, %s10384_s24  }
   0xf   :  { %10369 = dma.done.wait [#allocation3], 6144  }
  0x10   :  { %10370 = vsyncadd [#allocation3], 4294961152 }
  0x11   :  { %10371 = dma.done.wait [#allocation5], 57344  }
  0x12   :  { %10372 = vsyncadd [#allocation5], 4294909952 }
  0x13   :  { %10373 = dma.done.wait [#allocation8], 32768  }
  0x14   :  { %10374 = vsyncadd [#allocation8], 4294934528  ;;  %v6525_v0 = vld [vmem:[#allocation2 + $0x70] sm:$0xf]  ;;  %v9490_v1 = vld [vmem:[#allocation2 + $0x74] sm:$0xf0] }
  0x15   :  { %v9489_v2 = vld [vmem:[#allocation2 + $0x74] sm:$0xf]  ;;  %v6526_v3 = vor.u32 %v9490_v1, %v6525_v0  ;;  %v6527_v4 = vld [vmem:[#allocation2 + $0x78] sm:$0xf0]  ;;  %v6517_v5 = vld [vmem:[#allocation2 + $0x60] sm:$0xf] }
  0x16   :  { %v9488_v6 = vld [vmem:[#allocation2 + $0x64] sm:$0xf0]  ;;  %v6530_v7 = vor.u32 %v9489_v2, %v6527_v4  ;;  %v9487_v8 = vld [vmem:[#allocation2 + $0x64] sm:$0xf]  ;;  %v6519_v9 = vld [vmem:[#allocation2 + $0x68] sm:$0xf0] }
  0x17   :  { %187 = vmatpush.bf16.msra.mxu0 %v6526_v3  ;;  %v6518_v10 = vor.u32 %v9488_v6, %v6517_v5  ;;  %v6522_v11 = vor.u32 %v9487_v8, %v6519_v9  ;;  %v6509_v12 = vld [vmem:[#allocation2 + $0x50] sm:$0xf]  ;;  %v9486_v13 = vld [vmem:[#allocation2 + $0x54] sm:$0xf0]  ;;  %v9485_v14 = vld [vmem:[#allocation2 + $0x54] sm:$0xf] }
  0x18   :  { %200 = vmatpush.bf16.msra.mxu1 %v6530_v7  ;;  %v6511_v15 = vld [vmem:[#allocation2 + $0x58] sm:$0xf0]  ;;  %v6510_v16 = vor.u32 %v9486_v13, %v6509_v12  ;;  %v6501_v18 = vld [vmem:[#allocation2 + $0x40] sm:$0xf]  ;;  %v9484_v19 = vld [vmem:[#allocation2 + $0x44] sm:$0xf0] }
  0x19   :  { %v6514_v17 = vor.u32 %v9485_v14, %v6511_v15  ;;  %v9483_v20 = vld [vmem:[#allocation2 + $0x44] sm:$0xf]  ;;  %v6503_v21 = vld [vmem:[#allocation2 + $0x48] sm:$0xf0]  ;;  %v6502_v22 = vor.u32 %v9484_v19, %v6501_v18  ;;  %v6589_v23 = vld [vmem:[#allocation2 + $0xf0] sm:$0xf] }
  0x1a   :  { %v9506_v24 = vld [vmem:[#allocation2 + $0xf4] sm:$0xf0]  ;;  %v6653_v25 = vld [vmem:[#allocation2 + $0x170] sm:$0xf]  ;;  %v6506_v26 = vor.u32 %v9483_v20, %v6503_v21  ;;  %v9481_v31 = vld [vmem:[#allocation2 + $0x34] sm:$0xf] }
  0x1b   :  { %188 = vmatpush.bf16.msra.mxu0 %v6518_v10  ;;  %v6493_v27 = vld [vmem:[#allocation2 + $0x30] sm:$0xf]  ;;  %v9482_v28 = vld [vmem:[#allocation2 + $0x34] sm:$0xf0]  ;;  %v6590_v29 = vor.u32 %v9506_v24, %v6589_v23  ;;  %v6495_v32 = vld [vmem:[#allocation2 + $0x38] sm:$0xf0] }
  0x1c   :  { %201 = vmatpush.bf16.msra.mxu1 %v6522_v11  ;;  %v9522_v30 = vld [vmem:[#allocation2 + $0x174] sm:$0xf0]  ;;  %v6581_v34 = vld [vmem:[#allocation2 + $0xe0] sm:$0xf]  ;;  %v9504_v35 = vld [vmem:[#allocation2 + $0xe4] sm:$0xf0]  ;;  %v6494_v38 = vor.u32 %v9482_v28, %v6493_v27  ;;  %v6498_v43 = vor.u32 %v9481_v31, %v6495_v32 }
  0x1d   :  { %v6654_v33 = vor.u32 %v9522_v30, %v6653_v25  ;;  %440 = vmatpush.bf16.msra.mxu2 %v6590_v29  ;;  %v6645_v36 = vld [vmem:[#allocation2 + $0x160] sm:$0xf]  ;;  %v9520_v37 = vld [vmem:[#allocation2 + $0x164] sm:$0xf0]  ;;  %v6582_v41 = vor.u32 %v9504_v35, %v6581_v34  ;;  %v9479_v44 = vld [vmem:[#allocation2 + $0x24] sm:$0xf] }
  0x1e   :  { %v6485_v39 = vld [vmem:[#allocation2 + $0x20] sm:$0xf]  ;;  %v9480_v40 = vld [vmem:[#allocation2 + $0x24] sm:$0xf0]  ;;  %v6646_v42 = vor.u32 %v9520_v37, %v6645_v36  ;;  %v6573_v45 = vld [vmem:[#allocation2 + $0xd0] sm:$0xf] }
  0x1f   :  { %189 = vmatpush.bf16.msra.mxu0 %v6510_v16  ;;  %453 = vmatpush.bf16.msra.mxu3 %v6654_v33  ;;  %v9502_v46 = vld [vmem:[#allocation2 + $0xd4] sm:$0xf0]  ;;  %v6487_v47 = vld [vmem:[#allocation2 + $0x28] sm:$0xf0]  ;;  %v6637_v48 = vld [vmem:[#allocation2 + $0x150] sm:$0xf]  ;;  %v6486_v51 = vor.u32 %v9480_v40, %v6485_v39 }
  0x20   :  { %202 = vmatpush.bf16.msra.mxu1 %v6514_v17  ;;  %v9518_v49 = vld [vmem:[#allocation2 + $0x154] sm:$0xf0]  ;;  %v6574_v50 = vor.u32 %v9502_v46, %v6573_v45  ;;  %v6490_v53 = vor.u32 %v9479_v44, %v6487_v47  ;;  %v6477_v54 = vld [vmem:[#allocation2 + $0x10] sm:$0xf]  ;;  %v9477_v56 = vld [vmem:[#allocation2 + $0x14] sm:$0xf] }
  0x21   :  { %441 = vmatpush.bf16.msra.mxu2 %v6582_v41  ;;  %v6638_v52 = vor.u32 %v9518_v49, %v6637_v48  ;;  %v9478_v55 = vld [vmem:[#allocation2 + $0x14] sm:$0xf0]  ;;  %v6479_v57 = vld [vmem:[#allocation2 + $0x18] sm:$0xf0]  ;;  %v6469_v60 = vld [vmem:[#allocation2] sm:$0xf] }
  0x22   :  { %v6478_v58 = vor.u32 %v9478_v55, %v6477_v54  ;;  %v6482_v59 = vor.u32 %v9477_v56, %v6479_v57  ;;  %v9476_v61 = vld [vmem:[#allocation2 + $0x4] sm:$0xf0]  ;;  %v9475_v62 = vld [vmem:[#allocation2 + $0x4] sm:$0xf]  ;;  %v6471_v63 = vld [vmem:[#allocation2 + $0x8] sm:$0xf0] }
  0x23   :  { %190 = vmatpush.bf16.msra.mxu0 %v6502_v22  ;;  %454 = vmatpush.bf16.msra.mxu3 %v6646_v42  ;;  %v9505_v0 = vld [vmem:[#allocation2 + $0xf4] sm:$0xf]  ;;  %v6591_v1 = vld [vmem:[#allocation2 + $0xf8] sm:$0xf0]  ;;  %v6470_v4 = vor.u32 %v9476_v61, %v6469_v60  ;;  %v89_v5 = vld [vmem:[%s10975_s0] sm:$0xff]  ;;  %v6474_v6 = vor.u32 %v9475_v62, %v6471_v63  ;;  %vm494_vm1 = vcmask 1041408  }
  0x24   :  { %203 = vmatpush.bf16.msra.mxu1 %v6506_v26  ;;  %v9521_v2 = vld [vmem:[#allocation2 + $0x174] sm:$0xf]  ;;  %v6655_v3 = vld [vmem:[#allocation2 + $0x178] sm:$0xf0]  ;;  %v6594_v7 = vor.u32 %v9505_v0, %v6591_v1  ;;  %v9503_v9 = vld [vmem:[#allocation2 + $0xe4] sm:$0xf]  ;;  %v90_v11 = vpack.c.bf16 %v89_v5, %v89_v5 }
  0x25   :  { %442 = vmatpush.bf16.msra.mxu2 %v6574_v50  ;;  %v6658_v8 = vor.u32 %v9521_v2, %v6655_v3  ;;  %v6583_v10 = vld [vmem:[#allocation2 + $0xe8] sm:$0xf0]  ;;  %v9519_v12 = vld [vmem:[#allocation2 + $0x164] sm:$0xf]  ;;  %v9501_v16 = vld [vmem:[#allocation2 + $0xd4] sm:$0xf] }
  0x26   :  { %v6647_v13 = vld [vmem:[#allocation2 + $0x168] sm:$0xf0]  ;;  %v6586_v14 = vor.u32 %v9503_v9, %v6583_v10  ;;  %v6575_v17 = vld [vmem:[#allocation2 + $0xd8] sm:$0xf0]  ;;  %v9517_v18 = vld [vmem:[#allocation2 + $0x154] sm:$0xf] }
  0x27   :  { %191 = vmatpush.bf16.msra.mxu0 %v6494_v38  ;;  %455 = vmatpush.bf16.msra.mxu3 %v6638_v52  ;;  %v6650_v15 = vor.u32 %v9519_v12, %v6647_v13  ;;  %v6639_v19 = vld [vmem:[#allocation2 + $0x158] sm:$0xf0]  ;;  %v6578_v20 = vor.u32 %v9501_v16, %v6575_v17  ;;  %v6565_v22 = vld [vmem:[#allocation2 + $0xc0] sm:$0xf]  ;;  %v9500_v23 = vld [vmem:[#allocation2 + $0xc4] sm:$0xf0] }
  0x28   :  { %204 = vmatpush.bf16.msra.mxu1 %v6498_v43  ;;  %v6642_v21 = vor.u32 %v9517_v18, %v6639_v19  ;;  %v6629_v24 = vld [vmem:[#allocation2 + $0x140] sm:$0xf]  ;;  %v6566_v25 = vor.u32 %v9500_v23, %v6565_v22  ;;  %v9516_v26 = vld [vmem:[#allocation2 + $0x144] sm:$0xf0]  ;;  %v9499_v27 = vld [vmem:[#allocation2 + $0xc4] sm:$0xf] }
  0x29   :  { %v6567_v28 = vld [vmem:[#allocation2 + $0xc8] sm:$0xf0]  ;;  %v6630_v29 = vor.u32 %v9516_v26, %v6629_v24  ;;  %v9515_v31 = vld [vmem:[#allocation2 + $0x144] sm:$0xf]  ;;  %v6557_v34 = vld [vmem:[#allocation2 + $0xb0] sm:$0xf] }
  0x2a   :  { %v6570_v30 = vor.u32 %v9499_v27, %v6567_v28  ;;  %v6631_v32 = vld [vmem:[#allocation2 + $0x148] sm:$0xf0]  ;;  %443 = vmatpush.bf16.msra.mxu2 %v6566_v25  ;;  %v9498_v35 = vld [vmem:[#allocation2 + $0xb4] sm:$0xf0]  ;;  %v6621_v36 = vld [vmem:[#allocation2 + $0x130] sm:$0xf]  ;;  %v271_v28 = vlaneseq }
  0x2b   :  { %192 = vmatpush.bf16.msra.mxu0 %v6486_v51  ;;  %v6634_v33 = vor.u32 %v9515_v31, %v6631_v32  ;;  %456 = vmatpush.bf16.msra.mxu3 %v6630_v29  ;;  %v6558_v37 = vor.u32 %v9498_v35, %v6557_v34  ;;  %v9514_v38 = vld [vmem:[#allocation2 + $0x134] sm:$0xf0]  ;;  %v9497_v39 = vld [vmem:[#allocation2 + $0xb4] sm:$0xf]  ;;  %v6559_v40 = vld [vmem:[#allocation2 + $0xb8] sm:$0xf0] }
  0x2c   :  { %205 = vmatpush.bf16.msra.mxu1 %v6490_v53  ;;  %v6622_v41 = vor.u32 %v9514_v38, %v6621_v36  ;;  %v6562_v42 = vor.u32 %v9497_v39, %v6559_v40  ;;  %v9513_v43 = vld [vmem:[#allocation2 + $0x134] sm:$0xf]  ;;  %v6623_v44 = vld [vmem:[#allocation2 + $0x138] sm:$0xf0]  ;;  %v6549_v46 = vld [vmem:[#allocation2 + $0xa0] sm:$0xf] }
  0x2d   :  { %v6626_v45 = vor.u32 %v9513_v43, %v6623_v44  ;;  %v9496_v47 = vld [vmem:[#allocation2 + $0xa4] sm:$0xf0]  ;;  %v6613_v48 = vld [vmem:[#allocation2 + $0x120] sm:$0xf]  ;;  %v9495_v51 = vld [vmem:[#allocation2 + $0xa4] sm:$0xf] }
  0x2e   :  { %444 = vmatpush.bf16.msra.mxu2 %v6558_v37  ;;  %v6550_v49 = vor.u32 %v9496_v47, %v6549_v46  ;;  %v9512_v50 = vld [vmem:[#allocation2 + $0x124] sm:$0xf0]  ;;  %v6551_v52 = vld [vmem:[#allocation2 + $0xa8] sm:$0xf0]  ;;  %v9511_v55 = vld [vmem:[#allocation2 + $0x124] sm:$0xf] }
  0x2f   :  { %193 = vmatpush.bf16.msra.mxu0 %v6478_v58  ;;  %457 = vmatpush.bf16.msra.mxu3 %v6622_v41  ;;  %v6614_v53 = vor.u32 %v9512_v50, %v6613_v48  ;;  %v6554_v54 = vor.u32 %v9495_v51, %v6551_v52  ;;  %v6615_v56 = vld [vmem:[#allocation2 + $0x128] sm:$0xf0]  ;;  %v6541_v57 = vld [vmem:[#allocation2 + $0x90] sm:$0xf]  ;;  %v9510_v61 = vld [vmem:[#allocation2 + $0x114] sm:$0xf0] }
  0x30   :  { %206 = vmatpush.bf16.msra.mxu1 %v6482_v59  ;;  %v6618_v58 = vor.u32 %v9511_v55, %v6615_v56  ;;  %v9494_v59 = vld [vmem:[#allocation2 + $0x94] sm:$0xf0]  ;;  %v6605_v60 = vld [vmem:[#allocation2 + $0x110] sm:$0xf]  ;;  %v9493_v0 = vld [vmem:[#allocation2 + $0x94] sm:$0xf] }
  0x31   :  { %v6542_v62 = vor.u32 %v9494_v59, %v6541_v57  ;;  %v6606_v63 = vor.u32 %v9510_v61, %v6605_v60  ;;  %v6543_v1 = vld [vmem:[#allocation2 + $0x98] sm:$0xf0]  ;;  %v9509_v2 = vld [vmem:[#allocation2 + $0x114] sm:$0xf]  ;;  %v6533_v5 = vld [vmem:[#allocation2 + $0x80] sm:$0xf] }
  0x32   :  { %445 = vmatpush.bf16.msra.mxu2 %v6550_v49  ;;  %v6546_v3 = vor.u32 %v9493_v0, %v6543_v1  ;;  %v9508_v9 = vld [vmem:[#allocation2 + $0x104] sm:$0xf0]  ;;  %v9491_v10 = vld [vmem:[#allocation2 + $0x84] sm:$0xf]  ;;  %v6535_v12 = vld [vmem:[#allocation2 + $0x88] sm:$0xf0] }
  0x33   :  { %194 = vmatpush.bf16.msra.mxu0 %v6470_v4  ;;  %458 = vmatpush.bf16.msra.mxu3 %v6614_v53  ;;  %v6607_v4 = vld [vmem:[#allocation2 + $0x118] sm:$0xf0]  ;;  %v9507_v13 = vld [vmem:[#allocation2 + $0x104] sm:$0xf]  ;;  %v6538_v16 = vor.u32 %v9491_v10, %v6535_v12  ;;  %v10452_v38 = vshrl.u32 %v271_v28, 7  ;;  %vm557_vm8 = vcmask 1040384  }
  0x34   :  { %207 = vmatpush.bf16.msra.mxu1 %v6474_v6  ;;  %v9492_v6 = vld [vmem:[#allocation2 + $0x84] sm:$0xf0]  ;;  %v6773_v56 = vld [vmem:[#allocation4 + $0xe0] sm:$0xf]  ;;  %v9553_v57 = vld [vmem:[#allocation4 + $0xec] sm:$0xf0] }
  0x35   :  { %vm273_vm0 = vcmp.eq.s32.totalorder %v10452_v38, 0  ;;  %v6774_v59 = vor.u32 %v9553_v57, %v6773_v56  ;;  %v9585_v60 = vld [vmem:[#allocation4 + $0x1ec] sm:$0xf0]  ;;  %v9551_v61 = vld [vmem:[#allocation4 + $0xe4] sm:$0xf]  ;;  %vm509_vm2 = vcmp.eq.s32.totalorder %v10452_v38, 1 }
  0x36   :  { %195 = vmatmul.bf16.vlgmr.msra.gmra.mxu0 %v90_v11  ;;  %446 = vmatpush.bf16.msra.mxu2 %v6542_v62  ;;  %v6775_v62 = vld [vmem:[#allocation4 + $0xf0] sm:$0xf0]  ;;  %v9583_v1 = vld [vmem:[#allocation4 + $0x1e4] sm:$0xf]  ;;  %v6837_v56 = vld [vmem:[#allocation4 + $0x160] sm:$0xf] }
  0x37   :  { %466 = vmatpush.bf16.msrb.mxu0 %v6594_v7  ;;  %208 = vmatmul.bf16.vlgmr.msra.gmra.mxu1 %v90_v11  ;;  %v6610_v7 = vor.u32 %v9509_v2, %v6607_v4  ;;  %v6534_v11 = vor.u32 %v9492_v6, %v6533_v5  ;;  %v6778_v0 = vor.u32 %v9551_v61, %v6775_v62  ;;  %v6903_v2 = vld [vmem:[#allocation4 + $0x1f0] sm:$0xf0]  ;;  %v6757_v4 = vld [vmem:[#allocation4 + $0xc0] sm:$0xf]  ;;  %v9549_v5 = vld [vmem:[#allocation4 + $0xcc] sm:$0xf0] }
  0x38   :  { %479 = vmatpush.bf16.msrb.mxu1 %v6658_v8  ;;  %v6597_v8 = vld [vmem:[#allocation2 + $0x100] sm:$0xf]  ;;  %459 = vmatpush.bf16.msra.mxu3 %v6606_v63  ;;  %v6759_v10 = vld [vmem:[#allocation4 + $0xd0] sm:$0xf0]  ;;  %v9569_v57 = vld [vmem:[#allocation4 + $0x16c] sm:$0xf0] }
  0x39   :  { %v6885_v6 = vld [vmem:[#allocation4 + $0x1c0] sm:$0xf]  ;;  %v6871_v28 = vld [vmem:[#allocation4 + $0x1b0] sm:$0xf0]  ;;  %v9567_v62 = vld [vmem:[#allocation4 + $0x164] sm:$0xf] }
  0x3a   :  { %447 = vmatpush.bf16.msra.mxu2 %v6534_v11  ;;  %v6711_v61 = vld [vmem:[#allocation4 + $0x70] sm:$0xf0] }
  0x3b   :  { %467 = vmatpush.bf16.msrb.mxu0 %v6586_v14  ;;  %v6599_v14 = vld [vmem:[#allocation2 + $0x108] sm:$0xf0] }
  0x3c   :  { %480 = vmatpush.bf16.msrb.mxu1 %v6650_v15  ;;  %v6598_v15 = vor.u32 %v9508_v9, %v6597_v8  ;;  %v6602_v17 = vor.u32 %v9507_v13, %v6599_v14  ;;  %v9581_v8 = vld [vmem:[#allocation4 + $0x1cc] sm:$0xf0]  ;;  %v9547_v9 = vld [vmem:[#allocation4 + $0xc4] sm:$0xf]  ;;  %v6887_v14 = vld [vmem:[#allocation4 + $0x1d0] sm:$0xf0] }
  0x3d   :  { %v6886_v11 = vor.u32 %v9581_v8, %v6885_v6  ;;  %v6762_v12 = vor.u32 %v9547_v9, %v6759_v10  ;;  %v9579_v13 = vld [vmem:[#allocation4 + $0x1c4] sm:$0xf]  ;;  %v9533_v8 = vld [vmem:[#allocation4 + $0x4c] sm:$0xf0] }
  0x3e   :  { %460 = vmatpush.bf16.msra.mxu3 %v6598_v15  ;;  %971 = vmatpush.bf16.msrb.mxu2 %v6774_v59  ;;  %v6890_v15 = vor.u32 %v9579_v13, %v6887_v14  ;;  %v6838_v59 = vor.u32 %v9569_v57, %v6837_v56  ;;  %v6821_v13 = vld [vmem:[#allocation4 + $0x140] sm:$0xf] }
  0x3f   :  { %468 = vmatpush.bf16.msrb.mxu0 %v6578_v20  ;;  %v6789_v56 = vld [vmem:[#allocation4 + $0x100] sm:$0xf] }
  0x40   :  { %481 = vmatpush.bf16.msrb.mxu1 %v6642_v21 }
  0x43   :  { %469 = vmatpush.bf16.msrb.mxu0 %v6570_v30 }
  0x44   :  { %482 = vmatpush.bf16.msrb.mxu1 %v6634_v33 }
  0x47   :  { %470 = vmatpush.bf16.msrb.mxu0 %v6562_v42 }
  0x48   :  { %483 = vmatpush.bf16.msrb.mxu1 %v6626_v45 }
  0x4b   :  { %471 = vmatpush.bf16.msrb.mxu0 %v6554_v54 }
  0x4c   :  { %484 = vmatpush.bf16.msrb.mxu1 %v6618_v58  ;;  %v6901_v58 = vld [vmem:[#allocation4 + $0x1e0] sm:$0xf] }
  0x4d   :  { %v6902_v63 = vor.u32 %v9585_v60, %v6901_v58  ;;  %v9535_v60 = vld [vmem:[#allocation4 + $0x64] sm:$0xf] }
  0x4f   :  { %472 = vmatpush.bf16.msrb.mxu0 %v6546_v3  ;;  %v6906_v3 = vor.u32 %v9583_v1, %v6903_v2  ;;  %984 = vmatpush.bf16.msrb.mxu3 %v6902_v63 }
  0x50   :  { %485 = vmatpush.bf16.msrb.mxu1 %v6610_v7  ;;  %v6758_v7 = vor.u32 %v9549_v5, %v6757_v4  ;;  %v6839_v4 = vld [vmem:[#allocation4 + $0x170] sm:$0xf0] }
  0x51   :  { %v6842_v6 = vor.u32 %v9567_v62, %v6839_v4  ;;  %v9523_v62 = vld [vmem:[#allocation4 + $0x4] sm:$0xf]  ;;  %v6781_v4 = vld [vmem:[#allocation4 + $0xe8] sm:$0xf] }
  0x52   :  { %972 = vmatpush.bf16.msrb.mxu2 %v6758_v7  ;;  %v6693_v7 = vld [vmem:[#allocation4 + $0x40] sm:$0xf] }
  0x53   :  { %473 = vmatpush.bf16.msrb.mxu0 %v6538_v16  ;;  %985 = vmatpush.bf16.msrb.mxu3 %v6886_v11  ;;  %v6741_v16 = vld [vmem:[#allocation4 + $0xa0] sm:$0xf] }
  0x54   :  { %486 = vmatpush.bf16.msrb.mxu1 %v6602_v17  ;;  %v9545_v17 = vld [vmem:[#allocation4 + $0xac] sm:$0xf0] }
  0x57   :  { %997 = vmatpush.bf16.msra.mxu0 %v6778_v0 }
  0x58   :  { %1010 = vmatpush.bf16.msra.mxu1 %v6906_v3  ;;  %v6714_v3 = vor.u32 %v9535_v60, %v6711_v61  ;;  %v9557_v61 = vld [vmem:[#allocation4 + $0x10c] sm:$0xf0] }
  0x5b   :  { %998 = vmatpush.bf16.msra.mxu0 %v6762_v12 }
  0x5c   :  { %1011 = vmatpush.bf16.msra.mxu1 %v6890_v15 }
  0xb3   :  { %v10440_v18 = vpop.f32.mrf.mxu0 }
  0xb4   :  { %v245_v19 = vrot.slane %v10440_v18, 4  ;;  %v257_v20 = vmul.f32 %v10440_v18, %v10440_v18  ;;  %v10445_v21 = vpop.f32.mrf.mxu1 }
  0xb5   :  { %v251_v22 = vrot.slane %v10445_v21, 4  ;;  %v258_v23 = vmul.f32 %v10445_v21, %v10445_v21 }
  0xb6   :  { %v246_v24 = vadd.f32 %v245_v19, %v10440_v18  ;;  %v259_v25 = vrot.slane %v257_v20, 4  ;;  %v6869_v19 = vld [vmem:[#allocation4 + $0x1a0] sm:$0xf] }
  0xb7   :  { %v252_v26 = vadd.f32 %v251_v22, %v10445_v21  ;;  %v265_v27 = vrot.slane %v258_v23, 4  ;;  %v9577_v22 = vld [vmem:[#allocation4 + $0x1ac] sm:$0xf0] }
  0xb8   :  { %v247_v29 = vrot.slane %v246_v24, 2  ;;  %v260_v30 = vadd.f32 %v259_v25, %v257_v20  ;;  %v6742_v20 = vor.u32 %v9545_v17, %v6741_v16  ;;  %v6870_v25 = vor.u32 %v9577_v22, %v6869_v19  ;;  %v9565_v17 = vld [vmem:[#allocation4 + $0x14c] sm:$0xf0]  ;;  %v9531_v19 = vld [vmem:[#allocation4 + $0x44] sm:$0xf] }
  0xb9   :  { %v253_v31 = vrot.slane %v252_v26, 2  ;;  %v266_v32 = vadd.f32 %v265_v27, %v258_v23  ;;  %v9543_v23 = vld [vmem:[#allocation4 + $0xa4] sm:$0xf]  ;;  %v6694_v16 = vor.u32 %v9533_v8, %v6693_v7  ;;  %v9554_v8 = vld [vmem:[#allocation4 + $0xf4] sm:$0xf0] }
  0xba   :  { %v248_v33 = vadd.f32 %v247_v29, %v246_v24  ;;  %v261_v34 = vrot.slane %v260_v30, 2  ;;  %v6743_v24 = vld [vmem:[#allocation4 + $0xb0] sm:$0xf0]  ;;  %v9575_v27 = vld [vmem:[#allocation4 + $0x1a4] sm:$0xf]  ;;  %973 = vmatpush.bf16.msrb.mxu2 %v6742_v20  ;;  %986 = vmatpush.bf16.msrb.mxu3 %v6870_v25 }
  0xbb   :  { %v254_v35 = vadd.f32 %v253_v31, %v252_v26  ;;  %v267_v36 = vrot.slane %v266_v32, 2  ;;  %v198_v37 = vpop.f32.mrf.mxu0  ;;  %v6746_v26 = vor.u32 %v9543_v23, %v6743_v24  ;;  %v6695_v25 = vld [vmem:[#allocation4 + $0x50] sm:$0xf0] }
  0xbc   :  { %v211_v39 = vpop.f32.mrf.mxu1  ;;  %v249_v40 = vrot.slane %v248_v33, 1  ;;  %v262_v41 = vadd.f32 %v261_v34, %v260_v30  ;;  %v6874_v30 = vor.u32 %v9575_v27, %v6871_v28  ;;  %v6853_v34 = vld [vmem:[#allocation4 + $0x180] sm:$0xf]  ;;  %v9573_v37 = vld [vmem:[#allocation4 + $0x18c] sm:$0xf0]  ;;  %v6822_v27 = vor.u32 %v9565_v17, %v6821_v13 }
  0xbd   :  { %v255_v42 = vrot.slane %v254_v35, 1  ;;  %v268_v43 = vadd.f32 %v267_v36, %v266_v32  ;;  %999 = vmatpush.bf16.msra.mxu0 %v6746_v26  ;;  %v6725_v32 = vld [vmem:[#allocation4 + $0x80] sm:$0xf]  ;;  %v9539_v39 = vld [vmem:[#allocation4 + $0x84] sm:$0xf]  ;;  %v6698_v28 = vor.u32 %v9531_v19, %v6695_v25 }
  0xbe   :  { %v263_v44 = vrot.slane %v262_v41, 1  ;;  %v250_v46 = vadd.f32 %v249_v40, %v248_v33  ;;  %v9541_v33 = vld [vmem:[#allocation4 + $0x8c] sm:$0xf0]  ;;  %1012 = vmatpush.bf16.msra.mxu1 %v6874_v30  ;;  %v6727_v40 = vld [vmem:[#allocation4 + $0x90] sm:$0xf0] }
  0xbf   :  { %v269_v45 = vrot.slane %v268_v43, 1  ;;  %v256_v48 = vadd.f32 %v255_v42, %v254_v35  ;;  %v6726_v36 = vor.u32 %v9541_v33, %v6725_v32  ;;  %v6730_v42 = vor.u32 %v9539_v39, %v6727_v40  ;;  %v9563_v26 = vld [vmem:[#allocation4 + $0x144] sm:$0xf]  ;;  %v6677_v30 = vld [vmem:[#allocation4 + $0x20] sm:$0xf] }
  0xc0   :  { %v264_v47 = vadd.f32 %v263_v44, %v262_v41  ;;  %v6854_v41 = vor.u32 %v9573_v37, %v6853_v34  ;;  %v6855_v44 = vld [vmem:[#allocation4 + $0x190] sm:$0xf0]  ;;  %v6805_v37 = vld [vmem:[#allocation4 + $0x120] sm:$0xf]  ;;  %v9561_v39 = vld [vmem:[#allocation4 + $0x12c] sm:$0xf0] }
  0xc1   :  { %v270_v49 = vadd.f32 %v269_v45, %v268_v43  ;;  %v9571_v43 = vld [vmem:[#allocation4 + $0x184] sm:$0xf]  ;;  %974 = vmatpush.bf16.msrb.mxu2 %v6726_v36  ;;  %1000 = vmatpush.bf16.msra.mxu0 %v6730_v42  ;;  %v9552_v13 = vld [vmem:[#allocation4 + $0xec] sm:$0xf]  ;;  %v9550_v25 = vld [vmem:[#allocation4 + $0xd4] sm:$0xf0] }
  0xc2   :  { %v274_v50 = vsel %vm273_vm0, %v250_v46, %v264_v47  ;;  %v6858_v47 = vor.u32 %v9571_v43, %v6855_v44  ;;  %987 = vmatpush.bf16.msrb.mxu3 %v6854_v41  ;;  %v6806_v43 = vor.u32 %v9561_v39, %v6805_v37  ;;  %v9527_v44 = vld [vmem:[#allocation4 + $0x24] sm:$0xf]  ;;  %v9584_v19 = vld [vmem:[#allocation4 + $0x1ec] sm:$0xf]  ;;  %v6749_v37 = vld [vmem:[#allocation4 + $0xa8] sm:$0xf] }
  0xc3   :  { %v276_v51 = vmul.f32 0.0078125, %v274_v50  ;;  %v275_v52 = vsel %vm273_vm0, %v256_v48, %v270_v49  ;;  %v6709_v50 = vld [vmem:[#allocation4 + $0x60] sm:$0xf] }
  0xc4   :  { %v277_v53 = vmul.f32 0.0078125, %v275_v52  ;;  %1013 = vmatpush.bf16.msra.mxu1 %v6858_v47 }
  0xc5   :  { %v278_v54 = vpack.c.bf16 %v276_v51, %v276_v51  ;;  %v9537_v51 = vld [vmem:[#allocation4 + $0x6c] sm:$0xf0]  ;;  %1001 = vmatpush.bf16.msra.mxu0 %v6714_v3  ;;  %v6791_v3 = vld [vmem:[#allocation4 + $0x110] sm:$0xf0] }
  0xc6   :  { %v279_v55 = vpack.c.bf16 %v277_v53, %v277_v53  ;;  %988 = vmatpush.bf16.msrb.mxu3 %v6838_v59 }
  0xc7   :  { %448 = vmatmul.bf16.vlgmr.msra.gmra.mxu2 %v278_v54  ;;  %474 = vmatmul.bf16.vlgmr.msrb.gmra.mxu0 %v278_v54 }
  0xc8   :  { %461 = vmatmul.bf16.vlgmr.msra.gmra.mxu3 %v279_v55  ;;  %487 = vmatmul.bf16.vlgmr.msrb.gmra.mxu1 %v279_v55  ;;  %v6710_v55 = vor.u32 %v9537_v51, %v6709_v50  ;;  %v6807_v50 = vld [vmem:[#allocation4 + $0x130] sm:$0xf0] }
  0xc9   :  { %1014 = vmatpush.bf16.msra.mxu1 %v6842_v6  ;;  %1002 = vmatpush.bf16.msra.mxu0 %v6698_v28 }
  0xca   :  { %975 = vmatpush.bf16.msrb.mxu2 %v6710_v55  ;;  %989 = vmatpush.bf16.msrb.mxu3 %v6822_v27  ;;  %v9525_v55 = vld [vmem:[#allocation4 + $0xc] sm:$0xf0] }
  0xce   :  { %976 = vmatpush.bf16.msrb.mxu2 %v6694_v16  ;;  %990 = vmatpush.bf16.msrb.mxu3 %v6806_v43  ;;  %v9578_v43 = vld [vmem:[#allocation4 + $0x1b4] sm:$0xf0] }
 0x144   :  { %v475_v29 = vpop.f32.mrf.mxu0 }
 0x145   :  { %v488_v31 = vpop.f32.mrf.mxu1 }
 0x146   :  { %v489_v35 = vadd.f32 %v488_v31, %v475_v29  ;;  %v6823_v29 = vld [vmem:[#allocation4 + $0x150] sm:$0xf0]  ;;  %v9529_v31 = vld [vmem:[#allocation4 + $0x2c] sm:$0xf0] }
 0x147   :  { %v6826_v41 = vor.u32 %v9563_v26, %v6823_v29  ;;  %v6678_v42 = vor.u32 %v9529_v31, %v6677_v30  ;;  %v6893_v26 = vld [vmem:[#allocation4 + $0x1c8] sm:$0xf]  ;;  %v9582_v30 = vld [vmem:[#allocation4 + $0x1d4] sm:$0xf0]  ;;  %v9548_v31 = vld [vmem:[#allocation4 + $0xcc] sm:$0xf] }
 0x148   :  { %v493_v45 = vsel %vm273_vm0, %v489_v35, 0.0  ;;  %v511_v46 = vsel %vm509_vm2, %v489_v35, 0.0 }
 0x149   :  { %v502_v48 = vsel %vm494_vm1, %v493_v45, 0.0  ;;  %v519_v49 = vsel %vm494_vm1, %v511_v46, 0.0  ;;  %v6679_v45 = vld [vmem:[#allocation4 + $0x30] sm:$0xf0]  ;;  %1015 = vmatpush.bf16.msra.mxu1 %v6826_v41  ;;  %977 = vmatpush.bf16.msrb.mxu2 %v6678_v42  ;;  %v9546_v41 = vld [vmem:[#allocation4 + $0xb4] sm:$0xf0] }
 0x14a   :  { %v503_v52 = vrot.slane %v502_v48, 4  ;;  %v520_v53 = vrot.slane %v519_v49, 4  ;;  %v449_v54 = vpop.f32.mrf.mxu2  ;;  %v6877_v42 = vld [vmem:[#allocation4 + $0x1a8] sm:$0xf] }
 0x14b   :  { %v462_v58 = vpop.f32.mrf.mxu3 }
 0x14c   :  { %v504_v63 = vadd.f32 %v503_v52, %v502_v48  ;;  %v521_v0 = vadd.f32 %v520_v53, %v519_v49  ;;  %v463_v1 = vadd.f32 %v462_v58, %v449_v54  ;;  %v477_v2 = vpop.f32.mrf.mxu0  ;;  %v9559_v49 = vld [vmem:[#allocation4 + $0x124] sm:$0xf]  ;;  %v6682_v52 = vor.u32 %v9527_v44, %v6679_v45  ;;  %v6661_v54 = vld [vmem:[#allocation4] sm:$0xf]  ;;  %v9544_v44 = vld [vmem:[#allocation4 + $0xac] sm:$0xf] }
 0x14d   :  { %v490_v5 = vpop.f32.mrf.mxu1  ;;  %v6810_v53 = vor.u32 %v9559_v49, %v6807_v50  ;;  %v6662_v60 = vor.u32 %v9525_v55, %v6661_v54  ;;  %v9555_v2 = vld [vmem:[#allocation4 + $0x104] sm:$0xf]  ;;  %v6751_v45 = vld [vmem:[#allocation4 + $0xb8] sm:$0xf0]  ;;  %v6750_v49 = vor.u32 %v9546_v41, %v6749_v37  ;;  %v6878_v50 = vor.u32 %v9578_v43, %v6877_v42  ;;  %v9542_v54 = vld [vmem:[#allocation4 + $0x94] sm:$0xf0] }
 0x14e   :  { %v505_v9 = vrot.slane %v504_v63, 2  ;;  %v522_v10 = vrot.slane %v521_v0, 2  ;;  %v492_v11 = vsel %vm273_vm0, %v463_v1, 0.0  ;;  %v510_v12 = vsel %vm509_vm2, %v463_v1, 0.0  ;;  %1003 = vmatpush.bf16.msra.mxu0 %v6682_v52  ;;  %v6733_v52 = vld [vmem:[#allocation4 + $0x88] sm:$0xf] }
 0x14f   :  { %v495_v14 = vsel %vm494_vm1, %v492_v11, 0.0  ;;  %v512_v15 = vsel %vm494_vm1, %v510_v12, 0.0  ;;  %1016 = vmatpush.bf16.msra.mxu1 %v6810_v53  ;;  %978 = vmatpush.bf16.msrb.mxu2 %v6662_v60  ;;  %v6782_v11 = vor.u32 %v9554_v8, %v6781_v4  ;;  %v9586_v12 = vld [vmem:[#allocation4 + $0x1f4] sm:$0xf0]  ;;  %v6754_v53 = vor.u32 %v9544_v44, %v6751_v45  ;;  %v6861_v55 = vld [vmem:[#allocation4 + $0x188] sm:$0xf] }
 0x150   :  { %v506_v20 = vadd.f32 %v505_v9, %v504_v63  ;;  %v523_v22 = vadd.f32 %v522_v10, %v521_v0  ;;  %v496_v23 = vrot.slane %v495_v14, 4  ;;  %v513_v24 = vrot.slane %v512_v15, 4  ;;  %v6663_v63 = vld [vmem:[#allocation4 + $0x10] sm:$0xf0]  ;;  %v6909_v9 = vld [vmem:[#allocation4 + $0x1e8] sm:$0xf] }
 0x151   :  { %v6790_v0 = vor.u32 %v9557_v61, %v6789_v56  ;;  %v6666_v1 = vor.u32 %v9523_v62, %v6663_v63  ;;  %v6794_v10 = vor.u32 %v9555_v2, %v6791_v3  ;;  %v6910_v17 = vor.u32 %v9586_v12, %v6909_v9  ;;  %v9574_v56 = vld [vmem:[#allocation4 + $0x194] sm:$0xf0]  ;;  %v6735_v60 = vld [vmem:[#allocation4 + $0x98] sm:$0xf0]  ;;  %v9572_v62 = vld [vmem:[#allocation4 + $0x18c] sm:$0xf] }
 0x152   :  { %v507_v32 = vrot.slane %v506_v20, 1  ;;  %v524_v33 = vrot.slane %v523_v22, 1  ;;  %v497_v34 = vadd.f32 %v496_v23, %v495_v14  ;;  %v514_v35 = vadd.f32 %v513_v24, %v512_v15  ;;  %v451_v36 = vpop.f32.mrf.mxu2  ;;  %v6783_v14 = vld [vmem:[#allocation4 + $0xf8] sm:$0xf0]  ;;  %v6765_v24 = vld [vmem:[#allocation4 + $0xc8] sm:$0xf] }
 0x153   :  { %v464_v40 = vpop.f32.mrf.mxu3  ;;  %991 = vmatpush.bf16.msrb.mxu3 %v6790_v0  ;;  %1004 = vmatpush.bf16.msra.mxu0 %v6666_v1  ;;  %v6766_v29 = vor.u32 %v9550_v25, %v6765_v24  ;;  %v6895_v36 = vld [vmem:[#allocation4 + $0x1d8] sm:$0xf0]  ;;  %v6734_v0 = vor.u32 %v9542_v54, %v6733_v52  ;;  %v6862_v1 = vor.u32 %v9574_v56, %v6861_v55  ;;  %v9536_v12 = vld [vmem:[#allocation4 + $0x6c] sm:$0xf]  ;;  %v6701_v25 = vld [vmem:[#allocation4 + $0x48] sm:$0xf] }
 0x154   :  { %v10472_v46 = vadd.f32 %v507_v32, %v506_v20  ;;  %v498_v47 = vrot.slane %v497_v34, 2  ;;  %v515_v48 = vrot.slane %v514_v35, 2  ;;  %v525_v51 = vadd.f32 %v524_v33, %v523_v22  ;;  %v6911_v20 = vld [vmem:[#allocation4 + $0x1f8] sm:$0xf0]  ;;  %1023 = vmatpush.bf16.msra.mxu2 %v6782_v11  ;;  %1017 = vmatpush.bf16.msra.mxu1 %v6794_v10  ;;  %v6845_v10 = vld [vmem:[#allocation4 + $0x168] sm:$0xf] }
 0x155   :  { %v6786_v22 = vor.u32 %v9552_v13, %v6783_v14  ;;  %v6914_v23 = vor.u32 %v9584_v19, %v6911_v20  ;;  %v6767_v32 = vld [vmem:[#allocation4 + $0xd8] sm:$0xf0]  ;;  %v6894_v33 = vor.u32 %v9582_v30, %v6893_v26  ;;  %v9570_v11 = vld [vmem:[#allocation4 + $0x174] sm:$0xf0]  ;;  %v9568_v20 = vld [vmem:[#allocation4 + $0x16c] sm:$0xf] }
 0x156   :  { %v527_v57 = vmul.f32 %v10472_v46, %v10472_v46  ;;  %v499_v58 = vadd.f32 %v498_v47, %v497_v34  ;;  %v516_v59 = vadd.f32 %v515_v48, %v514_v35  ;;  %v6770_v34 = vor.u32 %v9548_v31, %v6767_v32  ;;  %v9580_v35 = vld [vmem:[#allocation4 + $0x1cc] sm:$0xf]  ;;  %v6863_v63 = vld [vmem:[#allocation4 + $0x198] sm:$0xf0]  ;;  %v9566_v30 = vld [vmem:[#allocation4 + $0x154] sm:$0xf0] }
 0x157   :  { %1036 = vmatpush.bf16.msra.mxu3 %v6910_v17  ;;  %1049 = vmatpush.bf16.msrb.mxu0 %v6786_v22  ;;  %v6898_v40 = vor.u32 %v9580_v35, %v6895_v36  ;;  %v9576_v47 = vld [vmem:[#allocation4 + $0x1ac] sm:$0xf]  ;;  %v6866_v4 = vor.u32 %v9572_v62, %v6863_v63  ;;  %v6846_v17 = vor.u32 %v9570_v11, %v6845_v10  ;;  %v6719_v19 = vld [vmem:[#allocation4 + $0x78] sm:$0xf0]  ;;  %v6685_v41 = vld [vmem:[#allocation4 + $0x28] sm:$0xf] }
 0x158   :  { %v529_v5 = vsub.f32 %v525_v51, %v527_v57  ;;  %v500_v6 = vrot.slane %v499_v58, 1  ;;  %v517_v7 = vrot.slane %v516_v59, 1  ;;  %1062 = vmatpush.bf16.msrb.mxu1 %v6914_v23  ;;  %1024 = vmatpush.bf16.msra.mxu2 %v6766_v29  ;;  %v6879_v51 = vld [vmem:[#allocation4 + $0x1b8] sm:$0xf0]  ;;  %v6722_v23 = vor.u32 %v9536_v12, %v6719_v19  ;;  %v6829_v29 = vld [vmem:[#allocation4 + $0x148] sm:$0xf] }
 0x159   :  { %v6847_v24 = vld [vmem:[#allocation4 + $0x178] sm:$0xf0]  ;;  %v6830_v32 = vor.u32 %v9566_v30, %v6829_v29  ;;  %v9564_v35 = vld [vmem:[#allocation4 + $0x14c] sm:$0xf]  ;;  %v9530_v43 = vld [vmem:[#allocation4 + $0x34] sm:$0xf0] }
 0x15a   :  { %v10476_v15 = vadd.f32 1e-05, %v529_v5  ;;  %v10478_v16 = vadd.f32 %v500_v6, %v499_v58  ;;  %v518_v27 = vadd.f32 %v517_v7, %v516_v59  ;;  %v6882_v58 = vor.u32 %v9576_v47, %v6879_v51  ;;  %v9540_v59 = vld [vmem:[#allocation4 + $0x8c] sm:$0xf]  ;;  %v6717_v6 = vld [vmem:[#allocation4 + $0x68] sm:$0xf] }
 0x15b   :  { %1037 = vmatpush.bf16.msra.mxu3 %v6894_v33  ;;  %1050 = vmatpush.bf16.msrb.mxu0 %v6770_v34  ;;  %v6738_v3 = vor.u32 %v9540_v59, %v6735_v60  ;;  %v9538_v7 = vld [vmem:[#allocation4 + $0x74] sm:$0xf0]  ;;  %v9532_v33 = vld [vmem:[#allocation4 + $0x4c] sm:$0xf]  ;;  %v6703_v34 = vld [vmem:[#allocation4 + $0x58] sm:$0xf0] }
 0x15c   :  { %10237 = vrsqrt.f32 %v10476_v15  ;;  %v526_v28 = vmul.f32 %v10478_v16, %v10478_v16  ;;  %1063 = vmatpush.bf16.msrb.mxu1 %v6898_v40  ;;  %1025 = vmatpush.bf16.msra.mxu2 %v6750_v49  ;;  %v6718_v9 = vor.u32 %v9538_v7, %v6717_v6  ;;  %vm550_vm4 = vweird.f32 %v10476_v15  ;;  %v6831_v40 = vld [vmem:[#allocation4 + $0x158] sm:$0xf0]  ;;  %v6813_v44 = vld [vmem:[#allocation4 + $0x128] sm:$0xf]  ;;  %v9528_v51 = vld [vmem:[#allocation4 + $0x2c] sm:$0xf] }
 0x15d   :  { %v6834_v42 = vor.u32 %v9564_v35, %v6831_v40  ;;  %v530_v52 = vld [vmem:[%s10980_s5] sm:$0x3]  ;;  %v6687_v54 = vld [vmem:[#allocation4 + $0x38] sm:$0xf0]  ;;  %v9560_v55 = vld [vmem:[#allocation4 + $0x12c] sm:$0xf] }
 0x15e   :  { %v528_v39 = vsub.f32 %v518_v27, %v526_v28  ;;  %v6850_v27 = vor.u32 %v9568_v20, %v6847_v24  ;;  %v9534_v28 = vld [vmem:[#allocation4 + $0x54] sm:$0xf0]  ;;  %v6815_v56 = vld [vmem:[#allocation4 + $0x138] sm:$0xf0]  ;;  %v6669_v59 = vld [vmem:[#allocation4 + $0x8] sm:$0xf] }
 0x15f   :  { %1038 = vmatpush.bf16.msra.mxu3 %v6878_v50  ;;  %1051 = vmatpush.bf16.msrb.mxu0 %v6754_v53  ;;  %v6702_v31 = vor.u32 %v9534_v28, %v6701_v25  ;;  %v9562_v50 = vld [vmem:[#allocation4 + $0x134] sm:$0xf0]  ;;  %v6818_v62 = vor.u32 %v9560_v55, %v6815_v56  ;;  %v9649_v28 = vld [vmem:[#allocation4 + $0x3ec] sm:$0xf0]  ;;  %v7029_v29 = vld [vmem:[#allocation4 + $0x2e0] sm:$0xf] }
 0x160   :  { %v10483_v48 = vadd.f32 1e-05, %v528_v39  ;;  %1064 = vmatpush.bf16.msrb.mxu1 %v6882_v58  ;;  %1026 = vmatpush.bf16.msra.mxu2 %v6734_v0  ;;  %v6706_v39 = vor.u32 %v9532_v33, %v6703_v34  ;;  %v6814_v53 = vor.u32 %v9562_v50, %v6813_v44  ;;  %v6690_v58 = vor.u32 %v9528_v51, %v6687_v54  ;;  %v9526_v60 = vld [vmem:[#allocation4 + $0x14] sm:$0xf0]  ;;  %v9524_v0 = vld [vmem:[#allocation4 + $0xc] sm:$0xf] }
 0x161   :  { %v9558_v63 = vld [vmem:[#allocation4 + $0x114] sm:$0xf0]  ;;  %v6670_v6 = vor.u32 %v9526_v60, %v6669_v59  ;;  %v7413_v30 = vld [vmem:[#allocation4 + $0x5e0] sm:$0xf]  ;;  %v9681_v35 = vld [vmem:[#allocation4 + $0x4ec] sm:$0xf0] }
 0x162   :  { %v10485_v57 = vpop.eup %10237  ;;  %10239 = vrsqrt.f32 %v10483_v48  ;;  %vm540_vm7 = vweird.f32 %v10483_v48  ;;  %v7285_v34 = vld [vmem:[#allocation4 + $0x4e0] sm:$0xf]  ;;  %v9677_v50 = vld [vmem:[#allocation4 + $0x4cc] sm:$0xf0] }
 0x163   :  { %v545_v61 = vmul.f32 %v10485_v57, %v10476_v15  ;;  %vm551_vm3 = vweird.f32 %v10485_v57  ;;  %1039 = vmatpush.bf16.msra.mxu3 %v6862_v1  ;;  %1052 = vmatpush.bf16.msrb.mxu0 %v6738_v3  ;;  %v6671_v1 = vld [vmem:[#allocation4 + $0x18] sm:$0xf0]  ;;  %v9556_v3 = vld [vmem:[#allocation4 + $0x10c] sm:$0xf]  ;;  %v7397_v44 = vld [vmem:[#allocation4 + $0x5c0] sm:$0xf] }
 0x164   :  { %vm10499_vm5 = vmor %vm550_vm4, %vm551_vm3  ;;  %1065 = vmatpush.bf16.msrb.mxu1 %v6866_v4  ;;  %1027 = vmatpush.bf16.msra.mxu2 %v6718_v9  ;;  %v6799_v4 = vld [vmem:[#allocation4 + $0x118] sm:$0xf0]  ;;  %v6674_v10 = vor.u32 %v9524_v0, %v6671_v1  ;;  %v7269_v49 = vld [vmem:[#allocation4 + $0x4c0] sm:$0xf] }
 0x165   :  { %v546_v2 = vmul.f32 %v10485_v57, %v545_v61  ;;  %v6797_v61 = vld [vmem:[#allocation4 + $0x108] sm:$0xf]  ;;  %v6802_v11 = vor.u32 %v9556_v3, %v6799_v4  ;;  %v6997_v54 = vld [vmem:[#allocation4 + $0x2a0] sm:$0xf]  ;;  %v9609_v55 = vld [vmem:[#allocation4 + $0x2ac] sm:$0xf0] }
 0x166   :  { %v6798_v7 = vor.u32 %v9558_v63, %v6797_v61  ;;  %v9705_v59 = vld [vmem:[#allocation4 + $0x5ac] sm:$0xf0]  ;;  %v7253_v60 = vld [vmem:[#allocation4 + $0x4a0] sm:$0xf]  ;;  %v6998_v1 = vor.u32 %v9609_v55, %v6997_v54  ;;  %v9639_v54 = vld [vmem:[#allocation4 + $0x3a4] sm:$0xf] }
 0x167   :  { %v547_v5 = vmul.f32 0.5, %v546_v2  ;;  %1040 = vmatpush.bf16.msra.mxu3 %v6846_v17  ;;  %1053 = vmatpush.bf16.msrb.mxu0 %v6722_v23  ;;  %v531_v17 = vld [vmem:[%s10981_s6] sm:$0x3]  ;;  %v9673_v61 = vld [vmem:[#allocation4 + $0x4ac] sm:$0xf0] }
 0x168   :  { %v10492_v8 = vpop.eup %10239  ;;  %1066 = vmatpush.bf16.msrb.mxu1 %v6850_v27  ;;  %1028 = vmatpush.bf16.msra.mxu2 %v6702_v31  ;;  %v7157_v27 = vld [vmem:[#allocation4 + $0x3e0] sm:$0xf]  ;;  %v9713_v31 = vld [vmem:[#allocation4 + $0x5ec] sm:$0xf0]  ;;  %v7127_v55 = vld [vmem:[#allocation4 + $0x3b0] sm:$0xf0] }
 0x169   :  { %v548_v13 = vsub.f32 1.5, %v547_v5  ;;  %v535_v14 = vmul.f32 %v10492_v8, %v10483_v48  ;;  %vm541_vm6 = vweird.f32 %v10492_v8  ;;  %v6686_v48 = vor.u32 %v9530_v43, %v6685_v41  ;;  %v7013_v41 = vld [vmem:[#allocation4 + $0x2c0] sm:$0xf]  ;;  %v9637_v0 = vld [vmem:[#allocation4 + $0x38c] sm:$0xf0] }
 0x16a   :  { %vm10512_vm9 = vmor %vm540_vm7, %vm541_vm6  ;;  %v7414_v43 = vor.u32 %v9713_v31, %v7413_v30  ;;  %v7109_v63 = vld [vmem:[#allocation4 + $0x380] sm:$0xf]  ;;  %v9605_v3 = vld [vmem:[#allocation4 + $0x28c] sm:$0xf0] }
 0x16b   :  { %v549_v26 = vmul.f32 %v10485_v57, %v548_v13  ;;  %v536_v15 = vmul.f32 %v10492_v8, %v535_v14  ;;  %1041 = vmatpush.bf16.msra.mxu3 %v6830_v32  ;;  %1054 = vmatpush.bf16.msrb.mxu0 %v6706_v39  ;;  %v7141_v39 = vld [vmem:[#allocation4 + $0x3c0] sm:$0xf]  ;;  %v9625_v31 = vld [vmem:[#allocation4 + $0x32c] sm:$0xf0] }
 0x16c   :  { %1067 = vmatpush.bf16.msrb.mxu1 %v6834_v42  ;;  %1029 = vmatpush.bf16.msra.mxu2 %v6686_v48  ;;  %v9613_v42 = vld [vmem:[#allocation4 + $0x2cc] sm:$0xf0] }
 0x16d   :  { %v553_v36 = vsel %vm10499_vm5, %v10485_v57, %v549_v26  ;;  %v537_v37 = vmul.f32 0.5, %v536_v15  ;;  %v9641_v48 = vld [vmem:[#allocation4 + $0x3ac] sm:$0xf0] }
 0x16e   :  { %v556_v45 = vrot.slane %v553_v36, 7 }
 0x16f   :  { %v538_v47 = vsub.f32 1.5, %v537_v37  ;;  %1042 = vmatpush.bf16.msra.mxu3 %v6814_v53  ;;  %1055 = vmatpush.bf16.msrb.mxu0 %v6690_v58  ;;  %v7014_v53 = vor.u32 %v9613_v42, %v7013_v41  ;;  %v7270_v58 = vor.u32 %v9677_v50, %v7269_v49  ;;  %v7159_v41 = vld [vmem:[#allocation4 + $0x3f0] sm:$0xf0]  ;;  %v9643_v49 = vld [vmem:[#allocation4 + $0x3c4] sm:$0xf] }
 0x170   :  { %1068 = vmatpush.bf16.msrb.mxu1 %v6818_v62  ;;  %1030 = vmatpush.bf16.msra.mxu2 %v6670_v6  ;;  %v7254_v6 = vor.u32 %v9673_v61, %v7253_v60  ;;  %v7031_v42 = vld [vmem:[#allocation4 + $0x2f0] sm:$0xf0]  ;;  %v9611_v60 = vld [vmem:[#allocation4 + $0x2c4] sm:$0xf] }
 0x171   :  { %v539_v57 = vmul.f32 %v10492_v8, %v538_v47  ;;  %v9709_v47 = vld [vmem:[#allocation4 + $0x5cc] sm:$0xf0]  ;;  %v7143_v50 = vld [vmem:[#allocation4 + $0x3d0] sm:$0xf0] }
 0x172   :  { %v7398_v56 = vor.u32 %v9709_v47, %v7397_v44  ;;  %v7015_v61 = vld [vmem:[#allocation4 + $0x2d0] sm:$0xf0] }
 0x173   :  { %v543_v2 = vsel %vm10512_vm9, %v10492_v8, %v539_v57  ;;  %1043 = vmatpush.bf16.msra.mxu3 %v6798_v7  ;;  %1056 = vmatpush.bf16.msrb.mxu0 %v6674_v10  ;;  %v7381_v57 = vld [vmem:[#allocation4 + $0x5a0] sm:$0xf]  ;;  %v9701_v7 = vld [vmem:[#allocation4 + $0x58c] sm:$0xf0]  ;;  %vm2241_vm9 = vcmask 1042434  }
 0x174   :  { %v558_v5 = vsel %vm557_vm8, %v543_v2, %v556_v45  ;;  %1069 = vmatpush.bf16.msrb.mxu1 %v6802_v11  ;;  %v7286_v45 = vor.u32 %v9681_v35, %v7285_v34  ;;  %v6981_v2 = vld [vmem:[#allocation4 + $0x280] sm:$0xf]  ;;  %v7382_v4 = vor.u32 %v9705_v59, %v7381_v57  ;;  %v9669_v10 = vld [vmem:[#allocation4 + $0x48c] sm:$0xf0]  ;;  %v7110_v11 = vor.u32 %v9637_v0, %v7109_v63 }
 0x175   :  { %v560_v9 = vmul.f32 %v558_v5, %v530_v52  ;;  %v7125_v52 = vld [vmem:[#allocation4 + $0x3a0] sm:$0xf]  ;;  %v9689_v0 = vld [vmem:[#allocation4 + $0x52c] sm:$0xf0] }
 0x176   :  { %v7126_v62 = vor.u32 %v9641_v48, %v7125_v52  ;;  %v7365_v5 = vld [vmem:[#allocation4 + $0x580] sm:$0xf]  ;;  %v9693_v48 = vld [vmem:[#allocation4 + $0x54c] sm:$0xf0] }
 0x177   :  { %v562_v12 = vperm.slane %v560_v9, 0  ;;  %v563_v13 = vperm.slane %v560_v9, 1  ;;  %v7237_v9 = vld [vmem:[#allocation4 + $0x480] sm:$0xf] }
 0x178   :  { %v7045_v35 = vld [vmem:[#allocation4 + $0x300] sm:$0xf] }
 0x179   :  { %v567_v14 = vmul.f32 %v563_v13, %v10472_v46  ;;  %v566_v8 = vmul.f32 %v562_v12, %v10478_v16  ;;  %v574_v23 = vmul.f32 %v562_v12, %v10440_v18  ;;  %v575_v25 = vmul.f32 %v563_v13, %v10445_v21  ;;  %v9617_v16 = vld [vmem:[#allocation4 + $0x2ec] sm:$0xf0]  ;;  %v7093_v12 = vld [vmem:[#allocation4 + $0x360] sm:$0xf] }
 0x17a   :  { %v7158_v18 = vor.u32 %v9649_v28, %v7157_v27  ;;  %v9645_v21 = vld [vmem:[#allocation4 + $0x3cc] sm:$0xf0]  ;;  %v7030_v40 = vor.u32 %v9617_v16, %v7029_v29  ;;  %v6982_v13 = vor.u32 %v9605_v3, %v6981_v2  ;;  %v7061_v16 = vld [vmem:[#allocation4 + $0x320] sm:$0xf]  ;;  %v9635_v2 = vld [vmem:[#allocation4 + $0x384] sm:$0xf] }
 0x17b   :  { %v570_v19 = vrot.slane %v567_v14, 7  ;;  %v7142_v51 = vor.u32 %v9645_v21, %v7141_v39  ;;  %v9633_v14 = vld [vmem:[#allocation4 + $0x36c] sm:$0xf0]  ;;  %v7062_v34 = vor.u32 %v9625_v31, %v7061_v16  ;;  %v9647_v21 = vld [vmem:[#allocation4 + $0x3e4] sm:$0xf] }
 0x17c   :  { %v9597_v27 = vld [vmem:[#allocation4 + $0x24c] sm:$0xf0]  ;;  %v7333_v52 = vld [vmem:[#allocation4 + $0x540] sm:$0xf]  ;;  %v7111_v3 = vld [vmem:[#allocation4 + $0x390] sm:$0xf0] }
 0x17d   :  { %v571_v20 = vsel %vm557_vm8, %v566_v8, %v570_v19  ;;  %v6965_v8 = vld [vmem:[#allocation4 + $0x260] sm:$0xf]  ;;  %v7366_v19 = vor.u32 %v9701_v7, %v7365_v5  ;;  %v9707_v16 = vld [vmem:[#allocation4 + $0x5c4] sm:$0xf]  ;;  %v7399_v31 = vld [vmem:[#allocation4 + $0x5d0] sm:$0xf0] }
 0x17e   :  { %v573_v22 = vsub.f32 %v531_v17, %v571_v20  ;;  %v9601_v17 = vld [vmem:[#allocation4 + $0x26c] sm:$0xf0]  ;;  %v7238_v20 = vor.u32 %v9669_v10, %v7237_v9  ;;  %v7221_v57 = vld [vmem:[#allocation4 + $0x460] sm:$0xf]  ;;  %v9607_v9 = vld [vmem:[#allocation4 + $0x2a4] sm:$0xf] }
 0x17f   :  { %v7317_v63 = vld [vmem:[#allocation4 + $0x520] sm:$0xf]  ;;  %v6999_v10 = vld [vmem:[#allocation4 + $0x2b0] sm:$0xf0] }
 0x180   :  { %v577_v24 = vperm.slane %v573_v22, 0  ;;  %v578_v26 = vperm.slane %v573_v22, 1  ;;  %v7349_v22 = vld [vmem:[#allocation4 + $0x560] sm:$0xf] }
 0x181   :  { %v7205_v5 = vld [vmem:[#allocation4 + $0x440] sm:$0xf] }
 0x182   :  { %v581_v15 = vadd.f32 %v577_v24, %v574_v23  ;;  %v582_v46 = vadd.f32 %v578_v26, %v575_v25  ;;  %v9697_v23 = vld [vmem:[#allocation4 + $0x56c] sm:$0xf0]  ;;  %v7094_v24 = vor.u32 %v9633_v14, %v7093_v12  ;;  %v7077_v25 = vld [vmem:[#allocation4 + $0x340] sm:$0xf]  ;;  %v6966_v26 = vor.u32 %v9601_v17, %v6965_v8  ;;  %v9631_v8 = vld [vmem:[#allocation4 + $0x364] sm:$0xf] }
 0x183   :  { %v7350_v28 = vor.u32 %v9697_v23, %v7349_v22  ;;  %v7301_v12 = vld [vmem:[#allocation4 + $0x500] sm:$0xf]  ;;  %v7095_v17 = vld [vmem:[#allocation4 + $0x370] sm:$0xf0] }
 0x184   :  { %v583_v32 = vmax.f32 %v581_v15, 0.0  ;;  %v584_v33 = vmax.f32 %v582_v46, 0.0  ;;  %v9629_v15 = vld [vmem:[#allocation4 + $0x34c] sm:$0xf0]  ;;  %v6949_v46 = vld [vmem:[#allocation4 + $0x240] sm:$0xf] }
 0x185   :  { %v7078_v29 = vor.u32 %v9629_v15, %v7077_v25  ;;  %v6950_v30 = vor.u32 %v9597_v27, %v6949_v46  ;;  %v7415_v22 = vld [vmem:[#allocation4 + $0x5f0] sm:$0xf0]  ;;  %v7189_v23 = vld [vmem:[#allocation4 + $0x420] sm:$0xf]  ;;  %v9603_v15 = vld [vmem:[#allocation4 + $0x284] sm:$0xf] }
 0x186   :  { %v10532_v36 = vpack.c.bf16 %v583_v32, %v583_v32  ;;  %v10534_v37 = vpack.c.bf16 %v584_v33, %v584_v33  ;;  %v6933_v32 = vld [vmem:[#allocation4 + $0x220] sm:$0xf]  ;;  %v9593_v33 = vld [vmem:[#allocation4 + $0x22c] sm:$0xf0]  ;;  %v6983_v46 = vld [vmem:[#allocation4 + $0x290] sm:$0xf0] }
 0x187   :  { %v6934_v39 = vor.u32 %v9593_v33, %v6933_v32  ;;  %v6986_v27 = vor.u32 %v9603_v15, %v6983_v46  ;;  %v7173_v32 = vld [vmem:[#allocation4 + $0x400] sm:$0xf]  ;;  %v9653_v33 = vld [vmem:[#allocation4 + $0x40c] sm:$0xf0]  ;;  %v9659_v15 = vld [vmem:[#allocation4 + $0x444] sm:$0xf] }
 0x188   :  { %979 = vmatmul.bf16.vlgmr.msrb.gmra.mxu2 %v10532_v36  ;;  %992 = vmatmul.bf16.vlgmr.msrb.gmra.mxu3 %v10534_v37  ;;  %v7207_v46 = vld [vmem:[#allocation4 + $0x450] sm:$0xf0] }
 0x189   :  { %1005 = vmatmul.bf16.vlgmr.msra.gmra.mxu0 %v10532_v36  ;;  %1018 = vmatmul.bf16.vlgmr.msra.gmra.mxu1 %v10534_v37 }
 0x18a   :  { %1920 = vmatpush.bf16.msrb.mxu3 %v7158_v18  ;;  %1907 = vmatpush.bf16.msrb.mxu2 %v7030_v40  ;;  %v9621_v18 = vld [vmem:[#allocation4 + $0x30c] sm:$0xf0]  ;;  %v6917_v40 = vld [vmem:[#allocation4 + $0x200] sm:$0xf] }
 0x18b   :  { %1946 = vmatpush.bf16.msra.mxu1 %v7414_v43  ;;  %1933 = vmatpush.bf16.msra.mxu0 %v7286_v45  ;;  %v7046_v43 = vor.u32 %v9621_v18, %v7045_v35  ;;  %v7162_v45 = vor.u32 %v9647_v21, %v7159_v41  ;;  %v7174_v35 = vor.u32 %v9653_v33, %v7173_v32  ;;  %v9599_v18 = vld [vmem:[#allocation4 + $0x264] sm:$0xf] }
 0x18c   :  { %v9679_v21 = vld [vmem:[#allocation4 + $0x4e4] sm:$0xf] }
 0x18e   :  { %1921 = vmatpush.bf16.msrb.mxu3 %v7142_v51  ;;  %1908 = vmatpush.bf16.msrb.mxu2 %v7014_v53  ;;  %v7146_v51 = vor.u32 %v9643_v49, %v7143_v50  ;;  %v7334_v53 = vor.u32 %v9693_v48, %v7333_v52  ;;  %v9595_v49 = vld [vmem:[#allocation4 + $0x244] sm:$0xf]  ;;  %v6951_v50 = vld [vmem:[#allocation4 + $0x250] sm:$0xf0] }
 0x18f   :  { %1947 = vmatpush.bf16.msra.mxu1 %v7398_v56  ;;  %1934 = vmatpush.bf16.msra.mxu0 %v7270_v58  ;;  %v7130_v56 = vor.u32 %v9639_v54, %v7127_v55  ;;  %v9665_v58 = vld [vmem:[#allocation4 + $0x46c] sm:$0xf0]  ;;  %v6954_v52 = vor.u32 %v9595_v49, %v6951_v50  ;;  %v7271_v48 = vld [vmem:[#allocation4 + $0x4d0] sm:$0xf0]  ;;  %v9619_v54 = vld [vmem:[#allocation4 + $0x304] sm:$0xf] }
 0x190   :  { %v7222_v59 = vor.u32 %v9665_v58, %v7221_v57  ;;  %v7047_v55 = vld [vmem:[#allocation4 + $0x310] sm:$0xf0] }
 0x191   :  { %v7050_v57 = vor.u32 %v9619_v54, %v7047_v55  ;;  %v7367_v58 = vld [vmem:[#allocation4 + $0x590] sm:$0xf0] }
 0x192   :  { %1922 = vmatpush.bf16.msrb.mxu3 %v7126_v62  ;;  %1909 = vmatpush.bf16.msrb.mxu2 %v6998_v1  ;;  %v7018_v62 = vor.u32 %v9611_v60, %v7015_v61  ;;  %v7318_v1 = vor.u32 %v9689_v0, %v7317_v63  ;;  %v9591_v60 = vld [vmem:[#allocation4 + $0x224] sm:$0xf]  ;;  %v6935_v61 = vld [vmem:[#allocation4 + $0x230] sm:$0xf0] }
 0x193   :  { %1948 = vmatpush.bf16.msra.mxu1 %v7382_v4  ;;  %1935 = vmatpush.bf16.msra.mxu0 %v7254_v6  ;;  %v7114_v4 = vor.u32 %v9635_v2, %v7111_v3  ;;  %v9661_v6 = vld [vmem:[#allocation4 + $0x44c] sm:$0xf0]  ;;  %v6938_v63 = vor.u32 %v9591_v60, %v6935_v61  ;;  %v7255_v0 = vld [vmem:[#allocation4 + $0x4b0] sm:$0xf0]  ;;  %v9695_v2 = vld [vmem:[#allocation4 + $0x564] sm:$0xf] }
 0x194   :  { %v7206_v7 = vor.u32 %v9661_v6, %v7205_v5  ;;  %v7351_v3 = vld [vmem:[#allocation4 + $0x570] sm:$0xf0]  ;;  %v9587_v5 = vld [vmem:[#allocation4 + $0x204] sm:$0xf] }
 0x195   :  { %v6919_v6 = vld [vmem:[#allocation4 + $0x210] sm:$0xf0] }
 0x196   :  { %1923 = vmatpush.bf16.msrb.mxu3 %v7110_v11  ;;  %1910 = vmatpush.bf16.msrb.mxu2 %v6982_v13  ;;  %v7002_v11 = vor.u32 %v9607_v9, %v6999_v10  ;;  %v9685_v13 = vld [vmem:[#allocation4 + $0x50c] sm:$0xf0]  ;;  %v6922_v9 = vor.u32 %v9587_v5, %v6919_v6  ;;  %v7239_v10 = vld [vmem:[#allocation4 + $0x490] sm:$0xf0]  ;;  %v9650_v5 = vld [vmem:[#allocation4 + $0x3f4] sm:$0xf0] }
 0x197   :  { %1949 = vmatpush.bf16.msra.mxu1 %v7366_v19  ;;  %1936 = vmatpush.bf16.msra.mxu0 %v7238_v20  ;;  %v7302_v14 = vor.u32 %v9685_v13, %v7301_v12  ;;  %v9711_v19 = vld [vmem:[#allocation4 + $0x5e4] sm:$0xf]  ;;  %v7098_v20 = vor.u32 %v9631_v8, %v7095_v17  ;;  %v7335_v13 = vld [vmem:[#allocation4 + $0x550] sm:$0xf0] }
 0x198   :  { %1031 = vmatmul.bf16.vlgmr.msra.gmra.mxu2 %v10532_v36  ;;  %1044 = vmatmul.bf16.vlgmr.msra.gmra.mxu3 %v10534_v37  ;;  %v7418_v25 = vor.u32 %v9711_v19, %v7415_v22  ;;  %v9691_v12 = vld [vmem:[#allocation4 + $0x544] sm:$0xf]  ;;  %v7223_v17 = vld [vmem:[#allocation4 + $0x470] sm:$0xf0] }
 0x199   :  { %1057 = vmatmul.bf16.vlgmr.msrb.gmra.mxu0 %v10532_v36  ;;  %1070 = vmatmul.bf16.vlgmr.msrb.gmra.mxu1 %v10534_v37  ;;  %v9589_v36 = vld [vmem:[#allocation4 + $0x20c] sm:$0xf0]  ;;  %v9615_v37 = vld [vmem:[#allocation4 + $0x2e4] sm:$0xf]  ;;  %v7319_v22 = vld [vmem:[#allocation4 + $0x530] sm:$0xf0] }
 0x19a   :  { %1924 = vmatpush.bf16.msrb.mxu3 %v7094_v24  ;;  %1911 = vmatpush.bf16.msrb.mxu2 %v6966_v26  ;;  %v6918_v44 = vor.u32 %v9589_v36, %v6917_v40  ;;  %v7034_v47 = vor.u32 %v9615_v37, %v7031_v42  ;;  %v9657_v24 = vld [vmem:[#allocation4 + $0x42c] sm:$0xf0]  ;;  %v7287_v36 = vld [vmem:[#allocation4 + $0x4f0] sm:$0xf0]  ;;  %v9623_v37 = vld [vmem:[#allocation4 + $0x324] sm:$0xf] }
 0x19b   :  { %1950 = vmatpush.bf16.msra.mxu1 %v7350_v28  ;;  %1937 = vmatpush.bf16.msra.mxu0 %v7222_v59  ;;  %v7190_v26 = vor.u32 %v9657_v24, %v7189_v23  ;;  %v9627_v28 = vld [vmem:[#allocation4 + $0x344] sm:$0xf]  ;;  %v7290_v41 = vor.u32 %v9679_v21, %v7287_v36  ;;  %v7063_v42 = vld [vmem:[#allocation4 + $0x330] sm:$0xf0] }
 0x19c   :  { %v9663_v8 = vld [vmem:[#allocation4 + $0x464] sm:$0xf]  ;;  %v7191_v21 = vld [vmem:[#allocation4 + $0x430] sm:$0xf0] }
 0x19d   :  { %v7226_v19 = vor.u32 %v9663_v8, %v7223_v17  ;;  %v7149_v17 = vld [vmem:[#allocation4 + $0x3c8] sm:$0xf] }
 0x19e   :  { %1925 = vmatpush.bf16.msrb.mxu3 %v7078_v29  ;;  %1912 = vmatpush.bf16.msrb.mxu2 %v6950_v30  ;;  %v7079_v29 = vld [vmem:[#allocation4 + $0x350] sm:$0xf0] }
 0x19f   :  { %1951 = vmatpush.bf16.msra.mxu1 %v7334_v53  ;;  %1938 = vmatpush.bf16.msra.mxu0 %v7206_v7  ;;  %v7082_v30 = vor.u32 %v9627_v28, %v7079_v29  ;;  %v9667_v7 = vld [vmem:[#allocation4 + $0x484] sm:$0xf] }
 0x1a2   :  { %1926 = vmatpush.bf16.msrb.mxu3 %v7062_v34  ;;  %1913 = vmatpush.bf16.msrb.mxu2 %v6934_v39  ;;  %v7402_v34 = vor.u32 %v9707_v16, %v7399_v31  ;;  %v6967_v39 = vld [vmem:[#allocation4 + $0x270] sm:$0xf0]  ;;  %v9683_v16 = vld [vmem:[#allocation4 + $0x504] sm:$0xf] }
 0x1a3   :  { %1952 = vmatpush.bf16.msra.mxu1 %v7318_v1  ;;  %1939 = vmatpush.bf16.msra.mxu0 %v7190_v26  ;;  %v6970_v40 = vor.u32 %v9599_v18, %v6967_v39  ;;  %v9655_v18 = vld [vmem:[#allocation4 + $0x424] sm:$0xf] }
 0x1a6   :  { %1927 = vmatpush.bf16.msrb.mxu3 %v7046_v43  ;;  %1914 = vmatpush.bf16.msrb.mxu2 %v6918_v44  ;;  %v9703_v43 = vld [vmem:[#allocation4 + $0x5a4] sm:$0xf]  ;;  %v7066_v44 = vor.u32 %v9623_v37, %v7063_v42 }
 0x1a7   :  { %1953 = vmatpush.bf16.msra.mxu1 %v7302_v14  ;;  %1940 = vmatpush.bf16.msra.mxu0 %v7174_v35  ;;  %v7338_v14 = vor.u32 %v9691_v12, %v7335_v13 }
 0x1aa   :  { %1972 = vmatpush.bf16.msra.mxu3 %v7162_v45  ;;  %1959 = vmatpush.bf16.msra.mxu2 %v7034_v47  ;;  %v7383_v45 = vld [vmem:[#allocation4 + $0x5b0] sm:$0xf0] }
 0x1ab   :  { %1998 = vmatpush.bf16.msrb.mxu1 %v7418_v25  ;;  %1985 = vmatpush.bf16.msrb.mxu0 %v7290_v41  ;;  %v7386_v47 = vor.u32 %v9703_v43, %v7383_v45  ;;  %v7194_v41 = vor.u32 %v9655_v18, %v7191_v21  ;;  %v7133_v21 = vld [vmem:[#allocation4 + $0x3a8] sm:$0xf] }
 0x1ae   :  { %1973 = vmatpush.bf16.msra.mxu3 %v7146_v51  ;;  %1960 = vmatpush.bf16.msra.mxu2 %v7018_v62  ;;  %v9675_v51 = vld [vmem:[#allocation4 + $0x4c4] sm:$0xf] }
 0x1af   :  { %1999 = vmatpush.bf16.msrb.mxu1 %v7402_v34  ;;  %v7274_v53 = vor.u32 %v9675_v51, %v7271_v48  ;;  %v9671_v62 = vld [vmem:[#allocation4 + $0x4a4] sm:$0xf] }
 0x1b0   :  { %v7258_v1 = vor.u32 %v9671_v62, %v7255_v0  ;;  %v9651_v51 = vld [vmem:[#allocation4 + $0x404] sm:$0xf] }
 0x1b1   :  { %1986 = vmatpush.bf16.msrb.mxu0 %v7274_v53 }
 0x1b2   :  { %1974 = vmatpush.bf16.msra.mxu3 %v7130_v56  ;;  %1961 = vmatpush.bf16.msra.mxu2 %v7002_v11  ;;  %v9699_v56 = vld [vmem:[#allocation4 + $0x584] sm:$0xf]  ;;  %v7242_v11 = vor.u32 %v9667_v7, %v7239_v10 }
 0x1b3   :  { %2000 = vmatpush.bf16.msrb.mxu1 %v7386_v47  ;;  %v7370_v59 = vor.u32 %v9699_v56, %v7367_v58 }
 0x1b5   :  { %1987 = vmatpush.bf16.msrb.mxu0 %v7258_v1 }
 0x1b6   :  { %1975 = vmatpush.bf16.msra.mxu3 %v7114_v4  ;;  %1962 = vmatpush.bf16.msra.mxu2 %v6986_v27  ;;  %v7354_v4 = vor.u32 %v9695_v2, %v7351_v3  ;;  %v7210_v27 = vor.u32 %v9659_v15, %v7207_v46  ;;  %v7037_v15 = vld [vmem:[#allocation4 + $0x2e8] sm:$0xf]  ;;  %v9618_v46 = vld [vmem:[#allocation4 + $0x2f4] sm:$0xf0] }
 0x1b7   :  { %2001 = vmatpush.bf16.msrb.mxu1 %v7370_v59  ;;  %v7038_v18 = vor.u32 %v9618_v46, %v7037_v15  ;;  %v7405_v15 = vld [vmem:[#allocation4 + $0x5c8] sm:$0xf]  ;;  %v9710_v46 = vld [vmem:[#allocation4 + $0x5d4] sm:$0xf0] }
 0x1b9   :  { %1988 = vmatpush.bf16.msrb.mxu0 %v7242_v11 }
 0x1ba   :  { %1976 = vmatpush.bf16.msra.mxu3 %v7098_v20  ;;  %1963 = vmatpush.bf16.msra.mxu2 %v6970_v40  ;;  %v9687_v20 = vld [vmem:[#allocation4 + $0x524] sm:$0xf] }
 0x1bb   :  { %2002 = vmatpush.bf16.msrb.mxu1 %v7354_v4  ;;  %v7322_v25 = vor.u32 %v9687_v20, %v7319_v22  ;;  %v7165_v4 = vld [vmem:[#allocation4 + $0x3e8] sm:$0xf] }
 0x1bc   :  { %v7166_v13 = vor.u32 %v9650_v5, %v7165_v4 }
 0x1bd   :  { %1989 = vmatpush.bf16.msrb.mxu0 %v7226_v19  ;;  %v9646_v19 = vld [vmem:[#allocation4 + $0x3d4] sm:$0xf0] }
 0x1be   :  { %1977 = vmatpush.bf16.msra.mxu3 %v7082_v30  ;;  %1964 = vmatpush.bf16.msra.mxu2 %v6954_v52  ;;  %v7303_v30 = vld [vmem:[#allocation4 + $0x510] sm:$0xf0] }
 0x1bf   :  { %2003 = vmatpush.bf16.msrb.mxu1 %v7338_v14  ;;  %v7306_v31 = vor.u32 %v9683_v16, %v7303_v30  ;;  %v7175_v52 = vld [vmem:[#allocation4 + $0x410] sm:$0xf0]  ;;  %v7150_v30 = vor.u32 %v9646_v19, %v7149_v17 }
 0x1c0   :  { %v7178_v54 = vor.u32 %v9651_v51, %v7175_v52 }
 0x1c1   :  { %1990 = vmatpush.bf16.msrb.mxu0 %v7210_v27 }
 0x1c2   :  { %1978 = vmatpush.bf16.msra.mxu3 %v7066_v44  ;;  %1965 = vmatpush.bf16.msra.mxu2 %v6938_v63 }
 0x1c3   :  { %2004 = vmatpush.bf16.msrb.mxu1 %v7322_v25 }
 0x1c5   :  { %1991 = vmatpush.bf16.msrb.mxu0 %v7194_v41 }
 0x1c6   :  { %1979 = vmatpush.bf16.msra.mxu3 %v7050_v57  ;;  %1966 = vmatpush.bf16.msra.mxu2 %v6922_v9 }
 0x1c7   :  { %2005 = vmatpush.bf16.msrb.mxu1 %v7306_v31 }
 0x1c9   :  { %1992 = vmatpush.bf16.msrb.mxu0 %v7178_v54  ;;  %v9638_v54 = vld [vmem:[#allocation4 + $0x394] sm:$0xf0] }
 0x206   :  { %v1006_v23 = vpop.f32.mrf.mxu0  ;;  %v1019_v24 = vpop.f32.mrf.mxu1 }
 0x207   :  { %v10544_v26 = vadd.f32 %v1019_v24, %v1006_v23 }
 0x209   :  { %v1209_v28 = vrot.slane %v10544_v26, 4  ;;  %v1228_v29 = vmul.f32 %v10544_v26, %v10544_v26 }
 0x20b   :  { %v1210_v32 = vadd.f32 %v1209_v28, %v10544_v26  ;;  %v1237_v33 = vrot.slane %v1228_v29, 4  ;;  %v980_v34 = vpop.f32.mrf.mxu2  ;;  %v993_v35 = vpop.f32.mrf.mxu3 }
 0x20c   :  { %v10550_v39 = vadd.f32 %v993_v35, %v980_v34 }
 0x20d   :  { %v1211_v40 = vrot.slane %v1210_v32, 2  ;;  %v1238_v36 = vadd.f32 %v1237_v33, %v1228_v29 }
 0x20e   :  { %v1203_v37 = vrot.slane %v10550_v39, 4  ;;  %v1227_v42 = vmul.f32 %v10550_v39, %v10550_v39  ;;  %v1008_v43 = vpop.f32.mrf.mxu0  ;;  %v1021_v44 = vpop.f32.mrf.mxu1 }
 0x20f   :  { %v1212_v45 = vadd.f32 %v1211_v40, %v1210_v32  ;;  %v1239_v47 = vrot.slane %v1238_v36, 2  ;;  %v9642_v40 = vld [vmem:[#allocation4 + $0x3b4] sm:$0xf0] }
 0x210   :  { %v1204_v49 = vadd.f32 %v1203_v37, %v10550_v39  ;;  %v1231_v50 = vrot.slane %v1227_v42, 4  ;;  %v9614_v43 = vld [vmem:[#allocation4 + $0x2d4] sm:$0xf0] }
 0x211   :  { %v1213_v48 = vrot.slane %v1212_v45, 1  ;;  %v1240_v53 = vadd.f32 %v1239_v47, %v1238_v36 }
 0x212   :  { %v1205_v55 = vrot.slane %v1204_v49, 2  ;;  %v1232_v56 = vadd.f32 %v1231_v50, %v1227_v42  ;;  %v7021_v42 = vld [vmem:[#allocation4 + $0x2c8] sm:$0xf]  ;;  %v7134_v50 = vor.u32 %v9642_v40, %v7133_v21  ;;  %v9626_v21 = vld [vmem:[#allocation4 + $0x334] sm:$0xf0] }
 0x213   :  { %v1241_v57 = vrot.slane %v1240_v53, 1  ;;  %v982_v58 = vpop.f32.mrf.mxu2  ;;  %v995_v59 = vpop.f32.mrf.mxu3  ;;  %v1214_v62 = vadd.f32 %v1213_v48, %v1212_v45  ;;  %v7022_v48 = vor.u32 %v9614_v43, %v7021_v42  ;;  %v7389_v40 = vld [vmem:[#allocation4 + $0x5a8] sm:$0xf] }
 0x214   :  { %v1206_v60 = vadd.f32 %v1205_v55, %v1204_v49  ;;  %v1233_v61 = vrot.slane %v1232_v56, 2  ;;  %v7005_v58 = vld [vmem:[#allocation4 + $0x2a8] sm:$0xf]  ;;  %v9610_v59 = vld [vmem:[#allocation4 + $0x2b4] sm:$0xf0] }
 0x215   :  { %v1242_v63 = vadd.f32 %v1241_v57, %v1240_v53  ;;  %v7117_v53 = vld [vmem:[#allocation4 + $0x388] sm:$0xf]  ;;  %v7006_v5 = vor.u32 %v9610_v59, %v7005_v58  ;;  %v7167_v58 = vld [vmem:[#allocation4 + $0x3f8] sm:$0xf0] }
 0x216   :  { %v1207_v0 = vrot.slane %v1206_v60, 1  ;;  %v1234_v1 = vadd.f32 %v1233_v61, %v1232_v56  ;;  %v1058_v2 = vpop.f32.mrf.mxu0  ;;  %v1071_v3 = vpop.f32.mrf.mxu1  ;;  %v6941_v59 = vld [vmem:[#allocation4 + $0x228] sm:$0xf] }
 0x217   :  { %v10556_v6 = vadd.f32 %v1071_v3, %v1058_v2  ;;  %v1256_v7 = vsel %vm273_vm0, %v1214_v62, %v1242_v63  ;;  %v7118_v63 = vor.u32 %v9638_v54, %v7117_v53  ;;  %v9634_v2 = vld [vmem:[#allocation4 + $0x374] sm:$0xf0]  ;;  %v7373_v53 = vld [vmem:[#allocation4 + $0x588] sm:$0xf] }
 0x218   :  { %v1235_v9 = vrot.slane %v1234_v1, 1  ;;  %v1260_v10 = vmul.f32 0.001953125, %v1256_v7  ;;  %v1208_v14 = vadd.f32 %v1207_v0, %v1206_v60  ;;  %v7421_v7 = vld [vmem:[#allocation4 + $0x5e8] sm:$0xf]  ;;  %v9702_v54 = vld [vmem:[#allocation4 + $0x594] sm:$0xf0] }
 0x219   :  { %v1221_v11 = vrot.slane %v10556_v6, 4  ;;  %v1230_v12 = vmul.f32 %v10556_v6, %v10556_v6 }
 0x21a   :  { %v10563_v8 = vpack.c.bf16 %v1260_v10, %v1260_v10  ;;  %v1236_v20 = vadd.f32 %v1235_v9, %v1234_v1  ;;  %v7101_v1 = vld [vmem:[#allocation4 + $0x368] sm:$0xf]  ;;  %v9714_v9 = vld [vmem:[#allocation4 + $0x5f4] sm:$0xf0] }
 0x21b   :  { %v1222_v22 = vadd.f32 %v1221_v11, %v10556_v6  ;;  %v1249_v23 = vrot.slane %v1230_v12, 4  ;;  %v1032_v24 = vpop.f32.mrf.mxu2  ;;  %v1045_v25 = vpop.f32.mrf.mxu3  ;;  %v6989_v11 = vld [vmem:[#allocation4 + $0x288] sm:$0xf]  ;;  %v7102_v17 = vor.u32 %v9634_v2, %v7101_v1  ;;  %v7422_v19 = vor.u32 %v9714_v9, %v7421_v7  ;;  %v9644_v7 = vld [vmem:[#allocation4 + $0x3cc] sm:$0xf] }
 0x21c   :  { %v10566_v27 = vadd.f32 %v1045_v25, %v1032_v24  ;;  %1928 = vmatmul.bf16.vlgmr.msrb.gmra.mxu3 %v10563_v8  ;;  %v1255_v28 = vsel %vm273_vm0, %v1208_v14, %v1236_v20  ;;  %v7085_v20 = vld [vmem:[#allocation4 + $0x348] sm:$0xf]  ;;  %v9630_v25 = vld [vmem:[#allocation4 + $0x354] sm:$0xf0]  ;;  %v7151_v9 = vld [vmem:[#allocation4 + $0x3d8] sm:$0xf0] }
 0x21d   :  { %v1223_v29 = vrot.slane %v1222_v22, 2  ;;  %v1250_v16 = vadd.f32 %v1249_v23, %v1230_v12  ;;  %2024 = vmatpush.bf16.msrb.mxu3 %v7166_v13  ;;  %v1259_v31 = vmul.f32 0.001953125, %v1255_v28  ;;  %v9606_v12 = vld [vmem:[#allocation4 + $0x294] sm:$0xf0]  ;;  %v7357_v2 = vld [vmem:[#allocation4 + $0x568] sm:$0xf] }
 0x21e   :  { %v1215_v32 = vrot.slane %v10566_v27, 4  ;;  %v1229_v33 = vmul.f32 %v10566_v27, %v10566_v27  ;;  %v1060_v34 = vpop.f32.mrf.mxu0  ;;  %v1073_v35 = vpop.f32.mrf.mxu1  ;;  %v6990_v24 = vor.u32 %v9606_v12, %v6989_v11  ;;  %v9590_v11 = vld [vmem:[#allocation4 + $0x214] sm:$0xf0]  ;;  %v7245_v12 = vld [vmem:[#allocation4 + $0x488] sm:$0xf] }
 0x21f   :  { %v1224_v36 = vadd.f32 %v1223_v29, %v1222_v22  ;;  %v1251_v41 = vrot.slane %v1250_v16, 2  ;;  %v10574_v37 = vpack.c.bf16 %v1259_v31, %v1259_v31  ;;  %v6973_v29 = vld [vmem:[#allocation4 + $0x268] sm:$0xf]  ;;  %v7406_v34 = vor.u32 %v9710_v46, %v7405_v15  ;;  %v9640_v46 = vld [vmem:[#allocation4 + $0x3ac] sm:$0xf] }
 0x220   :  { %v1216_v44 = vadd.f32 %v1215_v32, %v10566_v27  ;;  %v1243_v45 = vrot.slane %v1229_v33, 4  ;;  %v7293_v31 = vld [vmem:[#allocation4 + $0x4e8] sm:$0xf]  ;;  %v9682_v32 = vld [vmem:[#allocation4 + $0x4f4] sm:$0xf0] }
 0x221   :  { %v1225_v47 = vrot.slane %v1224_v36, 1  ;;  %v1252_v49 = vadd.f32 %v1251_v41, %v1250_v16  ;;  %2025 = vmatpush.bf16.msrb.mxu3 %v7150_v30  ;;  %1915 = vmatmul.bf16.vlgmr.msrb.gmra.mxu2 %v10574_v37  ;;  %v9602_v30 = vld [vmem:[#allocation4 + $0x274] sm:$0xf0]  ;;  %v7294_v43 = vor.u32 %v9682_v32, %v7293_v31  ;;  %v9612_v32 = vld [vmem:[#allocation4 + $0x2cc] sm:$0xf] }
 0x222   :  { %v1217_v51 = vrot.slane %v1216_v44, 2  ;;  %v1244_v52 = vadd.f32 %v1243_v45, %v1229_v33  ;;  %2011 = vmatpush.bf16.msrb.mxu2 %v7038_v18  ;;  %v7086_v33 = vor.u32 %v9630_v25, %v7085_v20  ;;  %v7069_v18 = vld [vmem:[#allocation4 + $0x328] sm:$0xf]  ;;  %v6974_v42 = vor.u32 %v9602_v30, %v6973_v29  ;;  %v9598_v45 = vld [vmem:[#allocation4 + $0x254] sm:$0xf0] }
 0x223   :  { %v1253_v55 = vrot.slane %v1252_v49, 1  ;;  %v1034_v56 = vpop.f32.mrf.mxu2  ;;  %v1047_v57 = vpop.f32.mrf.mxu3  ;;  %v1226_v62 = vadd.f32 %v1225_v47, %v1224_v36  ;;  %v9706_v36 = vld [vmem:[#allocation4 + $0x5b4] sm:$0xf0]  ;;  %v7277_v47 = vld [vmem:[#allocation4 + $0x4c8] sm:$0xf]  ;;  %v7154_v20 = vor.u32 %v9644_v7, %v7151_v9 }
 0x224   :  { %v1218_v60 = vadd.f32 %v1217_v51, %v1216_v44  ;;  %v1245_v61 = vrot.slane %v1244_v52, 2  ;;  %v6957_v44 = vld [vmem:[#allocation4 + $0x248] sm:$0xf]  ;;  %v7390_v51 = vor.u32 %v9706_v36, %v7389_v40  ;;  %v9648_v57 = vld [vmem:[#allocation4 + $0x3ec] sm:$0xf] }
 0x225   :  { %2026 = vmatpush.bf16.msrb.mxu3 %v7134_v50  ;;  %v1254_v0 = vadd.f32 %v1253_v55, %v1252_v49  ;;  %v9678_v49 = vld [vmem:[#allocation4 + $0x4d4] sm:$0xf0]  ;;  %v7070_v50 = vor.u32 %v9626_v21, %v7069_v18  ;;  %v6958_v55 = vor.u32 %v9598_v45, %v6957_v44  ;;  %v7170_v1 = vor.u32 %v9648_v57, %v7167_v58  ;;  %v9636_v40 = vld [vmem:[#allocation4 + $0x38c] sm:$0xf]  ;;  %v7119_v36 = vld [vmem:[#allocation4 + $0x398] sm:$0xf0] }
 0x226   :  { %v1219_v3 = vrot.slane %v1218_v60, 1  ;;  %v1246_v4 = vadd.f32 %v1245_v61, %v1244_v52  ;;  %2012 = vmatpush.bf16.msrb.mxu2 %v7022_v48  ;;  %v7053_v52 = vld [vmem:[#allocation4 + $0x308] sm:$0xf]  ;;  %v9622_v48 = vld [vmem:[#allocation4 + $0x314] sm:$0xf0]  ;;  %v7278_v56 = vor.u32 %v9678_v49, %v7277_v47 }
 0x227   :  { %v1258_v10 = vsel %vm273_vm0, %v1226_v62, %v1254_v0  ;;  %v7261_v61 = vld [vmem:[#allocation4 + $0x4a8] sm:$0xf]  ;;  %v9674_v62 = vld [vmem:[#allocation4 + $0x4b4] sm:$0xf0]  ;;  %v7374_v0 = vor.u32 %v9702_v54, %v7373_v53  ;;  %v9608_v47 = vld [vmem:[#allocation4 + $0x2ac] sm:$0xf] }
 0x228   :  { %v1247_v13 = vrot.slane %v1246_v4, 1  ;;  %v1262_v14 = vmul.f32 0.001953125, %v1258_v10  ;;  %v1220_v22 = vadd.f32 %v1219_v3, %v1218_v60  ;;  %v9594_v60 = vld [vmem:[#allocation4 + $0x234] sm:$0xf0]  ;;  %v6925_v10 = vld [vmem:[#allocation4 + $0x208] sm:$0xf] }
 0x229   :  { %2027 = vmatpush.bf16.msrb.mxu3 %v7118_v63  ;;  %v7054_v63 = vor.u32 %v9622_v48, %v7053_v52  ;;  %v9698_v3 = vld [vmem:[#allocation4 + $0x574] sm:$0xf0]  ;;  %v6926_v25 = vor.u32 %v9590_v11, %v6925_v10  ;;  %v7007_v49 = vld [vmem:[#allocation4 + $0x2b8] sm:$0xf0]  ;;  %v9632_v48 = vld [vmem:[#allocation4 + $0x36c] sm:$0xf] }
 0x22a   :  { %2013 = vmatpush.bf16.msrb.mxu2 %v7006_v5  ;;  %v10580_v23 = vpack.c.bf16 %v1262_v14, %v1262_v14  ;;  %v1248_v28 = vadd.f32 %v1247_v13, %v1246_v4  ;;  %v6942_v4 = vor.u32 %v9594_v60, %v6941_v59  ;;  %v7262_v5 = vor.u32 %v9674_v62, %v7261_v61  ;;  %v9670_v13 = vld [vmem:[#allocation4 + $0x494] sm:$0xf0]  ;;  %v7103_v54 = vld [vmem:[#allocation4 + $0x378] sm:$0xf0]  ;;  %v7197_v58 = vld [vmem:[#allocation4 + $0x428] sm:$0xf] }
 0x22b   :  { %v7358_v14 = vor.u32 %v9698_v3, %v7357_v2  ;;  %v7246_v15 = vor.u32 %v9670_v13, %v7245_v12  ;;  %v9666_v30 = vld [vmem:[#allocation4 + $0x474] sm:$0xf0]  ;;  %v7010_v57 = vor.u32 %v9608_v47, %v7007_v49  ;;  %v9604_v61 = vld [vmem:[#allocation4 + $0x28c] sm:$0xf]  ;;  %v6991_v62 = vld [vmem:[#allocation4 + $0x298] sm:$0xf0] }
 0x22c   :  { %1954 = vmatmul.bf16.vlgmr.msra.gmra.mxu1 %v10580_v23  ;;  %1980 = vmatmul.bf16.vlgmr.msra.gmra.mxu3 %v10563_v8  ;;  %v1257_v16 = vsel %vm273_vm0, %v1220_v22, %v1248_v28  ;;  %v7341_v22 = vld [vmem:[#allocation4 + $0x548] sm:$0xf]  ;;  %v7135_v28 = vld [vmem:[#allocation4 + $0x3b8] sm:$0xf0]  ;;  %v9690_v18 = vld [vmem:[#allocation4 + $0x534] sm:$0xf0]  ;;  %v6994_v7 = vor.u32 %v9604_v61, %v6991_v62 }
 0x22d   :  { %2028 = vmatpush.bf16.msrb.mxu3 %v7102_v17  ;;  %2050 = vmatpush.bf16.msra.mxu1 %v7422_v19  ;;  %v1261_v35 = vmul.f32 0.001953125, %v1257_v16  ;;  %v9616_v17 = vld [vmem:[#allocation4 + $0x2ec] sm:$0xf]  ;;  %v7039_v19 = vld [vmem:[#allocation4 + $0x2f8] sm:$0xf0] }
 0x22e   :  { %2014 = vmatpush.bf16.msrb.mxu2 %v6990_v24  ;;  %v9694_v24 = vld [vmem:[#allocation4 + $0x554] sm:$0xf0]  ;;  %v7042_v29 = vor.u32 %v9616_v17, %v7039_v19  ;;  %v7229_v16 = vld [vmem:[#allocation4 + $0x468] sm:$0xf]  ;;  %v7087_v3 = vld [vmem:[#allocation4 + $0x358] sm:$0xf0] }
 0x22f   :  { %v10586_v41 = vpack.c.bf16 %v1261_v35, %v1261_v35  ;;  %v7342_v31 = vor.u32 %v9694_v24, %v7341_v22  ;;  %v7325_v35 = vld [vmem:[#allocation4 + $0x528] sm:$0xf]  ;;  %v7230_v21 = vor.u32 %v9666_v30, %v7229_v16  ;;  %v9662_v44 = vld [vmem:[#allocation4 + $0x454] sm:$0xf0]  ;;  %v9600_v11 = vld [vmem:[#allocation4 + $0x26c] sm:$0xf] }
 0x230   :  { %v7326_v45 = vor.u32 %v9690_v18, %v7325_v35  ;;  %v9686_v52 = vld [vmem:[#allocation4 + $0x514] sm:$0xf0]  ;;  %v7181_v9 = vld [vmem:[#allocation4 + $0x408] sm:$0xf]  ;;  %v6975_v12 = vld [vmem:[#allocation4 + $0x278] sm:$0xf0] }
 0x231   :  { %2029 = vmatpush.bf16.msrb.mxu3 %v7086_v33  ;;  %2051 = vmatpush.bf16.msra.mxu1 %v7406_v34  ;;  %v7023_v33 = vld [vmem:[#allocation4 + $0x2d8] sm:$0xf0]  ;;  %v7138_v34 = vor.u32 %v9640_v46, %v7135_v28  ;;  %v9658_v59 = vld [vmem:[#allocation4 + $0x434] sm:$0xf0]  ;;  %v9680_v13 = vld [vmem:[#allocation4 + $0x4ec] sm:$0xf]  ;;  %v6978_v46 = vor.u32 %v9600_v11, %v6975_v12 }
 0x232   :  { %1941 = vmatmul.bf16.vlgmr.msra.gmra.mxu0 %v10586_v41  ;;  %1967 = vmatmul.bf16.vlgmr.msra.gmra.mxu2 %v10574_v37  ;;  %v7198_v2 = vor.u32 %v9658_v59, %v7197_v58  ;;  %v9654_v10 = vld [vmem:[#allocation4 + $0x414] sm:$0xf0]  ;;  %v7071_v24 = vld [vmem:[#allocation4 + $0x338] sm:$0xf0]  ;;  %v9676_v30 = vld [vmem:[#allocation4 + $0x4cc] sm:$0xf] }
 0x233   :  { %2015 = vmatpush.bf16.msrb.mxu2 %v6974_v42  ;;  %2037 = vmatpush.bf16.msra.mxu0 %v7294_v43  ;;  %v7026_v42 = vor.u32 %v9612_v32, %v7023_v33  ;;  %v7213_v43 = vld [vmem:[#allocation4 + $0x448] sm:$0xf]  ;;  %v7182_v22 = vor.u32 %v9654_v10, %v7181_v9  ;;  %v6959_v16 = vld [vmem:[#allocation4 + $0x258] sm:$0xf0]  ;;  %v9700_v18 = vld [vmem:[#allocation4 + $0x58c] sm:$0xf] }
 0x234   :  { %v7214_v53 = vor.u32 %v9662_v44, %v7213_v43  ;;  %v7055_v35 = vld [vmem:[#allocation4 + $0x318] sm:$0xf0]  ;;  %v9672_v44 = vld [vmem:[#allocation4 + $0x4ac] sm:$0xf] }
 0x235   :  { %2030 = vmatpush.bf16.msrb.mxu3 %v7070_v50  ;;  %2052 = vmatpush.bf16.msra.mxu1 %v7390_v51  ;;  %v7122_v50 = vor.u32 %v9636_v40, %v7119_v36  ;;  %v7309_v51 = vld [vmem:[#allocation4 + $0x508] sm:$0xf]  ;;  %v6943_v43 = vld [vmem:[#allocation4 + $0x238] sm:$0xf0]  ;;  %v9692_v58 = vld [vmem:[#allocation4 + $0x54c] sm:$0xf] }
 0x236   :  { %v7310_v60 = vor.u32 %v9686_v52, %v7309_v51  ;;  %v7359_v51 = vld [vmem:[#allocation4 + $0x578] sm:$0xf0]  ;;  %v9664_v62 = vld [vmem:[#allocation4 + $0x46c] sm:$0xf] }
 0x237   :  { %2016 = vmatpush.bf16.msrb.mxu2 %v6958_v55  ;;  %2038 = vmatpush.bf16.msra.mxu0 %v7278_v56  ;;  %v9712_v55 = vld [vmem:[#allocation4 + $0x5ec] sm:$0xf]  ;;  %v7423_v56 = vld [vmem:[#allocation4 + $0x5f8] sm:$0xf0] }
 0x238   :  { %v7343_v59 = vld [vmem:[#allocation4 + $0x558] sm:$0xf0]  ;;  %v9684_v9 = vld [vmem:[#allocation4 + $0x50c] sm:$0xf] }
 0x239   :  { %2031 = vmatpush.bf16.msrb.mxu3 %v7054_v63  ;;  %2053 = vmatpush.bf16.msra.mxu1 %v7374_v0  ;;  %v7106_v63 = vor.u32 %v9632_v48, %v7103_v54  ;;  %v7426_v0 = vor.u32 %v9712_v55, %v7423_v56  ;;  %v6927_v54 = vld [vmem:[#allocation4 + $0x218] sm:$0xf0]  ;;  %v9668_v55 = vld [vmem:[#allocation4 + $0x48c] sm:$0xf] }
 0x23a   :  { %v7247_v56 = vld [vmem:[#allocation4 + $0x498] sm:$0xf0] }
 0x23b   :  { %2017 = vmatpush.bf16.msrb.mxu2 %v6942_v4  ;;  %2039 = vmatpush.bf16.msra.mxu0 %v7262_v5  ;;  %v9708_v4 = vld [vmem:[#allocation4 + $0x5cc] sm:$0xf]  ;;  %v7407_v5 = vld [vmem:[#allocation4 + $0x5d8] sm:$0xf0]  ;;  %v7250_v61 = vor.u32 %v9668_v55, %v7247_v56 }
 0x23c   :  { %2006 = vmatmul.bf16.vlgmr.msrb.gmra.mxu1 %v10580_v23  ;;  %2032 = vmatmul.bf16.vlgmr.msrb.gmra.mxu3 %v10563_v8  ;;  %v7410_v19 = vor.u32 %v9708_v4, %v7407_v5  ;;  %v9660_v4 = vld [vmem:[#allocation4 + $0x44c] sm:$0xf]  ;;  %v7215_v5 = vld [vmem:[#allocation4 + $0x458] sm:$0xf0] }
 0x23d   :  { %2076 = vmatpush.bf16.msra.mxu3 %v7170_v1  ;;  %2054 = vmatpush.bf16.msra.mxu1 %v7358_v14  ;;  %v9628_v1 = vld [vmem:[#allocation4 + $0x34c] sm:$0xf]  ;;  %v7295_v14 = vld [vmem:[#allocation4 + $0x4f8] sm:$0xf0]  ;;  %v7218_v11 = vor.u32 %v9660_v4, %v7215_v5  ;;  %v7669_v4 = vld [vmem:[#allocation6 + $0x1e0] sm:$0xf] }
 0x23e   :  { %v7090_v17 = vor.u32 %v9628_v1, %v7087_v3  ;;  %v7298_v28 = vor.u32 %v9680_v13, %v7295_v14  ;;  %v9688_v1 = vld [vmem:[#allocation4 + $0x52c] sm:$0xf]  ;;  %v7311_v10 = vld [vmem:[#allocation4 + $0x518] sm:$0xf0] }
 0x23f   :  { %2018 = vmatpush.bf16.msrb.mxu2 %v6926_v25  ;;  %2040 = vmatpush.bf16.msra.mxu0 %v7246_v15  ;;  %v9704_v25 = vld [vmem:[#allocation4 + $0x5ac] sm:$0xf]  ;;  %v7391_v15 = vld [vmem:[#allocation4 + $0x5b8] sm:$0xf0]  ;;  %v7314_v13 = vor.u32 %v9684_v9, %v7311_v10 }
 0x240   :  { %v7394_v33 = vor.u32 %v9704_v25, %v7391_v15  ;;  %v7199_v12 = vld [vmem:[#allocation4 + $0x438] sm:$0xf0] }
 0x241   :  { %2077 = vmatpush.bf16.msra.mxu3 %v7154_v20  ;;  %2055 = vmatpush.bf16.msra.mxu1 %v7342_v31  ;;  %v9624_v20 = vld [vmem:[#allocation4 + $0x32c] sm:$0xf]  ;;  %v7279_v31 = vld [vmem:[#allocation4 + $0x4d8] sm:$0xf0] }
 0x242   :  { %1993 = vmatmul.bf16.vlgmr.msrb.gmra.mxu0 %v10586_v41  ;;  %2019 = vmatmul.bf16.vlgmr.msrb.gmra.mxu2 %v10574_v37  ;;  %v7074_v32 = vor.u32 %v9624_v20, %v7071_v24  ;;  %v7282_v36 = vor.u32 %v9676_v30, %v7279_v31 }
 0x243   :  { %2063 = vmatpush.bf16.msra.mxu2 %v7042_v29  ;;  %2041 = vmatpush.bf16.msra.mxu0 %v7230_v21  ;;  %v9596_v29 = vld [vmem:[#allocation4 + $0x24c] sm:$0xf]  ;;  %v7375_v21 = vld [vmem:[#allocation4 + $0x598] sm:$0xf0] }
 0x244   :  { %v6962_v40 = vor.u32 %v9596_v29, %v6959_v16  ;;  %v7378_v49 = vor.u32 %v9700_v18, %v7375_v21 }
 0x245   :  { %2078 = vmatpush.bf16.msra.mxu3 %v7138_v34  ;;  %2056 = vmatpush.bf16.msra.mxu1 %v7326_v45  ;;  %v9620_v34 = vld [vmem:[#allocation4 + $0x30c] sm:$0xf]  ;;  %v7263_v45 = vld [vmem:[#allocation4 + $0x4b8] sm:$0xf0] }
 0x246   :  { %v7058_v47 = vor.u32 %v9620_v34, %v7055_v35  ;;  %v7266_v48 = vor.u32 %v9672_v44, %v7263_v45 }
 0x247   :  { %2064 = vmatpush.bf16.msra.mxu2 %v7026_v42  ;;  %2042 = vmatpush.bf16.msra.mxu0 %v7214_v53  ;;  %v9592_v42 = vld [vmem:[#allocation4 + $0x22c] sm:$0xf] }
 0x248   :  { %v6946_v52 = vor.u32 %v9592_v42, %v6943_v43  ;;  %v9588_v53 = vld [vmem:[#allocation4 + $0x20c] sm:$0xf] }
 0x249   :  { %2079 = vmatpush.bf16.msra.mxu3 %v7122_v50  ;;  %2057 = vmatpush.bf16.msra.mxu1 %v7310_v60  ;;  %v9696_v50 = vld [vmem:[#allocation4 + $0x56c] sm:$0xf]  ;;  %v6930_v60 = vor.u32 %v9588_v53, %v6927_v54 }
 0x24b   :  { %2065 = vmatpush.bf16.msra.mxu2 %v7010_v57  ;;  %2043 = vmatpush.bf16.msra.mxu0 %v7198_v2  ;;  %v7362_v57 = vor.u32 %v9696_v50, %v7359_v51  ;;  %v7327_v2 = vld [vmem:[#allocation4 + $0x538] sm:$0xf0] }
 0x24c   :  { %2058 = vmatmul.bf16.vlgmr.msra.gmra.mxu1 %v10580_v23 }
 0x24d   :  { %2080 = vmatpush.bf16.msra.mxu3 %v7106_v63  ;;  %2102 = vmatpush.bf16.msrb.mxu1 %v7426_v0  ;;  %v7231_v63 = vld [vmem:[#allocation4 + $0x478] sm:$0xf0]  ;;  %v7346_v0 = vor.u32 %v9692_v58, %v7343_v59 }
 0x24e   :  { %v7234_v3 = vor.u32 %v9664_v62, %v7231_v63 }
 0x24f   :  { %2066 = vmatpush.bf16.msra.mxu2 %v6994_v7  ;;  %2044 = vmatpush.bf16.msra.mxu0 %v7182_v22  ;;  %v7330_v7 = vor.u32 %v9688_v1, %v7327_v2  ;;  %v7541_v2 = vld [vmem:[#allocation6 + $0xe0] sm:$0xf] }
 0x251   :  { %2081 = vmatpush.bf16.msra.mxu3 %v7090_v17  ;;  %2103 = vmatpush.bf16.msrb.mxu1 %v7410_v19  ;;  %v9652_v17 = vld [vmem:[#allocation4 + $0x40c] sm:$0xf]  ;;  %v7183_v19 = vld [vmem:[#allocation4 + $0x418] sm:$0xf0] }
 0x252   :  { %2045 = vmatmul.bf16.vlgmr.msra.gmra.mxu0 %v10586_v41  ;;  %v7186_v20 = vor.u32 %v9652_v17, %v7183_v19  ;;  %v9841_v17 = vld [vmem:[#allocation6 + $0x3ec] sm:$0xf0] }
 0x253   :  { %2067 = vmatpush.bf16.msra.mxu2 %v6978_v46  ;;  %2089 = vmatpush.bf16.msrb.mxu0 %v7298_v28 }
 0x255   :  { %2082 = vmatpush.bf16.msra.mxu3 %v7074_v32  ;;  %2104 = vmatpush.bf16.msrb.mxu1 %v7394_v33 }
 0x257   :  { %2068 = vmatpush.bf16.msra.mxu2 %v6962_v40  ;;  %2090 = vmatpush.bf16.msrb.mxu0 %v7282_v36 }
 0x259   :  { %2083 = vmatpush.bf16.msra.mxu3 %v7058_v47  ;;  %2105 = vmatpush.bf16.msrb.mxu1 %v7378_v49 }
 0x25b   :  { %2069 = vmatpush.bf16.msra.mxu2 %v6946_v52  ;;  %2091 = vmatpush.bf16.msrb.mxu0 %v7266_v48 }
 0x25c   :  { %2084 = vmatmul.bf16.vlgmr.msra.gmra.mxu3 %v10563_v8  ;;  %v9656_v8 = vld [vmem:[#allocation4 + $0x42c] sm:$0xf] }
 0x25d   :  { %2106 = vmatpush.bf16.msrb.mxu1 %v7362_v57  ;;  %v7202_v14 = vor.u32 %v9656_v8, %v7199_v12  ;;  %v7797_v8 = vld [vmem:[#allocation6 + $0x2e0] sm:$0xf] }
 0x25f   :  { %2070 = vmatpush.bf16.msra.mxu2 %v6930_v60  ;;  %2092 = vmatpush.bf16.msrb.mxu0 %v7250_v61 }
 0x261   :  { %2107 = vmatpush.bf16.msrb.mxu1 %v7346_v0 }
 0x262   :  { %2071 = vmatmul.bf16.vlgmr.msra.gmra.mxu2 %v10574_v37 }
 0x263   :  { %2093 = vmatpush.bf16.msrb.mxu0 %v7234_v3  ;;  %v9745_v3 = vld [vmem:[#allocation6 + $0xec] sm:$0xf0] }
 0x264   :  { %v7542_v10 = vor.u32 %v9745_v3, %v7541_v2 }
 0x265   :  { %2108 = vmatpush.bf16.msrb.mxu1 %v7330_v7 }
 0x266   :  { %3064 = vmatpush.bf16.msrb.mxu2 %v7542_v10  ;;  %v7621_v10 = vld [vmem:[#allocation6 + $0x180] sm:$0xf] }
 0x267   :  { %2094 = vmatpush.bf16.msrb.mxu0 %v7218_v11  ;;  %v9777_v11 = vld [vmem:[#allocation6 + $0x1ec] sm:$0xf0] }
 0x268   :  { %v7670_v12 = vor.u32 %v9777_v11, %v7669_v4  ;;  %v7749_v11 = vld [vmem:[#allocation6 + $0x280] sm:$0xf] }
 0x269   :  { %2109 = vmatpush.bf16.msrb.mxu1 %v7314_v13  ;;  %v9809_v13 = vld [vmem:[#allocation6 + $0x2ec] sm:$0xf0] }
 0x26a   :  { %3077 = vmatpush.bf16.msrb.mxu3 %v7670_v12 }
 0x26b   :  { %2095 = vmatpush.bf16.msrb.mxu0 %v7202_v14  ;;  %v7925_v14 = vld [vmem:[#allocation6 + $0x3e0] sm:$0xf] }
 0x26c   :  { %2110 = vmatmul.bf16.vlgmr.msrb.gmra.mxu1 %v10580_v23 }
 0x26f   :  { %2096 = vmatpush.bf16.msrb.mxu0 %v7186_v20 }
 0x272   :  { %2097 = vmatmul.bf16.vlgmr.msrb.gmra.mxu0 %v10586_v41 }
 0x29f   :  { %v1929_v37 = vpop.f32.mrf.mxu3 }
 0x2a4   :  { %v1916_v22 = vpop.f32.mrf.mxu2 }
 0x2a5   :  { %v1930_v24 = vadd.f32 %v1929_v37, %v1916_v22  ;;  %v7798_v22 = vor.u32 %v9809_v13, %v7797_v8 }
 0x2a7   :  { %v1931_v25 = vpop.f32.mrf.mxu3  ;;  %3090 = vmatpush.bf16.msra.mxu0 %v7798_v22 }
 0x2a9   :  { %v1955_v15 = vpop.f32.mrf.mxu1 }
 0x2ac   :  { %v1918_v46 = vpop.f32.mrf.mxu2 }
 0x2ad   :  { %v7926_v46 = vor.u32 %v9841_v17, %v7925_v14  ;;  %v9797_v17 = vld [vmem:[#allocation6 + $0x28c] sm:$0xf0] }
 0x2ae   :  { %v7750_v22 = vor.u32 %v9797_v17, %v7749_v11  ;;  %v9753_v11 = vld [vmem:[#allocation6 + $0x12c] sm:$0xf0]  ;;  %v7829_v17 = vld [vmem:[#allocation6 + $0x320] sm:$0xf] }
 0x2af   :  { %v1942_v28 = vpop.f32.mrf.mxu0  ;;  %v1981_v29 = vpop.f32.mrf.mxu3  ;;  %3103 = vmatpush.bf16.msra.mxu1 %v7926_v46 }
 0x2b0   :  { %v1943_v16 = vadd.f32 %v1942_v28, %v1930_v24  ;;  %v7525_v28 = vld [vmem:[#allocation6 + $0xc0] sm:$0xf] }
 0x2b1   :  { %v1957_v30 = vpop.f32.mrf.mxu1 }
 0x2b2   :  { %v1956_v31 = vadd.f32 %v1955_v15, %v1943_v16  ;;  %v9741_v30 = vld [vmem:[#allocation6 + $0xcc] sm:$0xf0] }
 0x2b4   :  { %v2115_v53 = vsel %vm273_vm0, %v1956_v31, 0.0  ;;  %v2147_v54 = vsel %vm509_vm2, %v1956_v31, 0.0  ;;  %v7653_v31 = vld [vmem:[#allocation6 + $0x1c0] sm:$0xf] }
 0x2b5   :  { %v1968_v32 = vpop.f32.mrf.mxu2  ;;  %v2119_v59 = vsel %vm494_vm1, %v2115_v53, 0.0  ;;  %v2151_v60 = vsel %vm494_vm1, %v2147_v54, 0.0  ;;  %v9769_v53 = vld [vmem:[#allocation6 + $0x1ac] sm:$0xf0]  ;;  %v7765_v54 = vld [vmem:[#allocation6 + $0x2a0] sm:$0xf] }
 0x2b6   :  { %v1982_v23 = vadd.f32 %v1981_v29, %v1968_v32  ;;  %v2120_v5 = vrot.slane %v2119_v59, 4  ;;  %v2152_v7 = vrot.slane %v2151_v60, 4 }
 0x2b7   :  { %v1944_v33 = vpop.f32.mrf.mxu0  ;;  %v1983_v34 = vpop.f32.mrf.mxu3 }
 0x2b8   :  { %v2121_v32 = vadd.f32 %v2120_v5, %v2119_v59  ;;  %v7526_v34 = vor.u32 %v9741_v30, %v7525_v28  ;;  %v9801_v59 = vld [vmem:[#allocation6 + $0x2ac] sm:$0xf0]  ;;  %v7493_v5 = vld [vmem:[#allocation6 + $0x80] sm:$0xf] }
 0x2b9   :  { %v2007_v35 = vpop.f32.mrf.mxu1  ;;  %v7766_v2 = vor.u32 %v9801_v59, %v7765_v54  ;;  %v7477_v28 = vld [vmem:[#allocation6 + $0x60] sm:$0xf]  ;;  %v9821_v59 = vld [vmem:[#allocation6 + $0x34c] sm:$0xf0] }
 0x2ba   :  { %3065 = vmatpush.bf16.msrb.mxu2 %v7526_v34  ;;  %v7733_v34 = vld [vmem:[#allocation6 + $0x260] sm:$0xf] }
 0x2bb   :  { %v7717_v54 = vld [vmem:[#allocation6 + $0x240] sm:$0xf] }
 0x2bd   :  { %v1970_v18 = vpop.f32.mrf.mxu2 }
 0x2be   :  { %v7781_v18 = vld [vmem:[#allocation6 + $0x2c0] sm:$0xf] }
 0x2bf   :  { %v1994_v21 = vpop.f32.mrf.mxu0  ;;  %v2033_v40 = vpop.f32.mrf.mxu3 }
 0x2c0   :  { %v1995_v41 = vadd.f32 %v1994_v21, %v1982_v23  ;;  %v9805_v23 = vld [vmem:[#allocation6 + $0x2cc] sm:$0xf0] }
 0x2c1   :  { %v2009_v36 = vpop.f32.mrf.mxu1 }
 0x2c2   :  { %v2008_v42 = vadd.f32 %v2007_v35, %v1995_v41  ;;  %v9773_v35 = vld [vmem:[#allocation6 + $0x1cc] sm:$0xf0] }
 0x2c3   :  { %v7654_v36 = vor.u32 %v9773_v35, %v7653_v31 }
 0x2c4   :  { %v2116_v43 = vsel %vm273_vm0, %v2008_v42, 0.0  ;;  %v2148_v50 = vsel %vm509_vm2, %v2008_v42, 0.0  ;;  %v7909_v42 = vld [vmem:[#allocation6 + $0x3c0] sm:$0xf] }
 0x2c5   :  { %v2126_v44 = vsel %vm494_vm1, %v2116_v43, 0.0  ;;  %v2020_v45 = vpop.f32.mrf.mxu2  ;;  %v2158_v48 = vsel %vm494_vm1, %v2148_v50, 0.0  ;;  %v9837_v43 = vld [vmem:[#allocation6 + $0x3cc] sm:$0xf0]  ;;  %v7637_v50 = vld [vmem:[#allocation6 + $0x1a0] sm:$0xf]  ;;  %3078 = vmatpush.bf16.msrb.mxu3 %v7654_v36 }
 0x2c6   :  { %v2127_v51 = vrot.slane %v2126_v44, 4  ;;  %v2159_v56 = vrot.slane %v2158_v48, 4  ;;  %v2034_v58 = vadd.f32 %v2033_v40, %v2020_v45  ;;  %v7910_v45 = vor.u32 %v9837_v43, %v7909_v42 }
 0x2c7   :  { %v1996_v47 = vpop.f32.mrf.mxu0  ;;  %v2035_v49 = vpop.f32.mrf.mxu3 }
 0x2c8   :  { %v2128_v55 = vadd.f32 %v2127_v51, %v2126_v44  ;;  %v2160_v1 = vadd.f32 %v2159_v56, %v2158_v48  ;;  %v7782_v44 = vor.u32 %v9805_v23, %v7781_v18  ;;  %v7509_v47 = vld [vmem:[#allocation6 + $0xa0] sm:$0xf]  ;;  %v9737_v49 = vld [vmem:[#allocation6 + $0xac] sm:$0xf0]  ;;  %3104 = vmatpush.bf16.msra.mxu1 %v7910_v45 }
 0x2c9   :  { %v2059_v52 = vpop.f32.mrf.mxu1  ;;  %v7510_v48 = vor.u32 %v9737_v49, %v7509_v47  ;;  %v7461_v49 = vld [vmem:[#allocation6 + $0x40] sm:$0xf] }
 0x2ca   :  { %v2129_v62 = vrot.slane %v2128_v55, 2  ;;  %v2161_v24 = vrot.slane %v2160_v1, 2  ;;  %3091 = vmatpush.bf16.msra.mxu0 %v7782_v44 }
 0x2cb   :  { %3066 = vmatpush.bf16.msrb.mxu2 %v7510_v48 }
 0x2cc   :  { %v2130_v19 = vadd.f32 %v2129_v62, %v2128_v55  ;;  %v2153_v55 = vadd.f32 %v2152_v7, %v2151_v60  ;;  %v2162_v56 = vadd.f32 %v2161_v24, %v2160_v1  ;;  %v9833_v62 = vld [vmem:[#allocation6 + $0x3ac] sm:$0xf0] }
 0x2cd   :  { %v2022_v57 = vpop.f32.mrf.mxu2  ;;  %v9765_v7 = vld [vmem:[#allocation6 + $0x18c] sm:$0xf0] }
 0x2ce   :  { %v2131_v21 = vrot.slane %v2130_v19, 1  ;;  %v2154_v8 = vrot.slane %v2153_v55, 2  ;;  %v2163_v12 = vrot.slane %v2162_v56, 1  ;;  %3092 = vmatpush.bf16.msra.mxu0 %v7766_v2  ;;  %v7622_v14 = vor.u32 %v9765_v7, %v7621_v10  ;;  %v9829_v24 = vld [vmem:[#allocation6 + $0x38c] sm:$0xf0] }
 0x2cf   :  { %v2046_v61 = vpop.f32.mrf.mxu0  ;;  %v9721_v10 = vld [vmem:[#allocation6 + $0x2c] sm:$0xf0]  ;;  %v7573_v7 = vld [vmem:[#allocation6 + $0x120] sm:$0xf] }
 0x2d0   :  { %v2047_v63 = vadd.f32 %v2046_v61, %v2034_v58  ;;  %v7638_v58 = vor.u32 %v9769_v53, %v7637_v50  ;;  %v7893_v61 = vld [vmem:[#allocation6 + $0x3a0] sm:$0xf]  ;;  %v10620_v4 = vadd.f32 %v2131_v21, %v2130_v19  ;;  %v10626_v35 = vadd.f32 %v2154_v8, %v2153_v55  ;;  %v9793_v21 = vld [vmem:[#allocation6 + $0x26c] sm:$0xf0] }
 0x2d1   :  { %v2061_v0 = vpop.f32.mrf.mxu1  ;;  %v7894_v3 = vor.u32 %v9833_v62, %v7893_v61  ;;  %v7734_v43 = vor.u32 %v9793_v21, %v7733_v34  ;;  %v9725_v50 = vld [vmem:[#allocation6 + $0x4c] sm:$0xf0]  ;;  %v7701_v8 = vld [vmem:[#allocation6 + $0x220] sm:$0xf] }
 0x2d2   :  { %v2060_v9 = vadd.f32 %v2059_v52, %v2047_v63  ;;  %v2122_v63 = vrot.slane %v2121_v32, 2  ;;  %3079 = vmatpush.bf16.msrb.mxu3 %v7638_v58  ;;  %3093 = vmatpush.bf16.msra.mxu0 %v7750_v22  ;;  %v7462_v48 = vor.u32 %v9725_v50, %v7461_v49  ;;  %v9757_v53 = vld [vmem:[#allocation6 + $0x14c] sm:$0xf0]  ;;  %v7845_v58 = vld [vmem:[#allocation6 + $0x340] sm:$0xf]  ;;  %v2156_v61 = vrot.slane %v10626_v35, 1 }
 0x2d3   :  { %3105 = vmatpush.bf16.msra.mxu1 %v7894_v3  ;;  %v9781_v34 = vld [vmem:[#allocation6 + $0x20c] sm:$0xf0]  ;;  %v7813_v21 = vld [vmem:[#allocation6 + $0x300] sm:$0xf] }
 0x2d4   :  { %v2117_v20 = vsel %vm273_vm0, %v2060_v9, 0.0  ;;  %v2149_v37 = vsel %vm509_vm2, %v2060_v9, 0.0  ;;  %v9733_v9 = vld [vmem:[#allocation6 + $0x8c] sm:$0xf0] }
 0x2d5   :  { %v2133_v25 = vsel %vm494_vm1, %v2117_v20, 0.0  ;;  %v2165_v15 = vsel %vm494_vm1, %v2149_v37, 0.0  ;;  %v7494_v13 = vor.u32 %v9733_v9, %v7493_v5  ;;  %v7877_v20 = vld [vmem:[#allocation6 + $0x380] sm:$0xf]  ;;  %v2123_v37 = vadd.f32 %v2122_v63, %v2121_v32 }
 0x2d6   :  { %v2134_v29 = vrot.slane %v2133_v25, 4  ;;  %v2166_v16 = vrot.slane %v2165_v15, 4  ;;  %v7878_v46 = vor.u32 %v9829_v24, %v7877_v20  ;;  %3080 = vmatpush.bf16.msrb.mxu3 %v7622_v14  ;;  %v2164_v32 = vadd.f32 %v2163_v12, %v2162_v56  ;;  %3094 = vmatpush.bf16.msra.mxu0 %v7734_v43  ;;  %v9789_v56 = vld [vmem:[#allocation6 + $0x24c] sm:$0xf0]  ;;  %v7445_v9 = vld [vmem:[#allocation6 + $0x20] sm:$0xf] }
 0x2d7   :  { %v2048_v33 = vpop.f32.mrf.mxu0  ;;  %3067 = vmatpush.bf16.msrb.mxu2 %v7494_v13  ;;  %v2124_v36 = vrot.slane %v2123_v37, 1  ;;  %v7718_v63 = vor.u32 %v9789_v56, %v7717_v54  ;;  %v7846_v5 = vor.u32 %v9821_v59, %v7845_v58  ;;  %v7574_v13 = vor.u32 %v9753_v11, %v7573_v7  ;;  %v9785_v14 = vld [vmem:[#allocation6 + $0x22c] sm:$0xf0]  ;;  %v9839_v56 = vld [vmem:[#allocation6 + $0x3e4] sm:$0xf] }
 0x2d8   :  { %v2135_v40 = vadd.f32 %v2134_v29, %v2133_v25  ;;  %v2167_v41 = vadd.f32 %v2166_v16, %v2165_v15  ;;  %v2180_v25 = vmul.f32 %v10620_v4, %v10620_v4  ;;  %v9729_v29 = vld [vmem:[#allocation6 + $0x6c] sm:$0xf0]  ;;  %v7605_v16 = vld [vmem:[#allocation6 + $0x160] sm:$0xf]  ;;  %3106 = vmatpush.bf16.msra.mxu1 %v7878_v46  ;;  %v7702_v24 = vor.u32 %v9785_v14, %v7701_v8  ;;  %v9803_v8 = vld [vmem:[#allocation6 + $0x2c4] sm:$0xf] }
 0x2d9   :  { %v7478_v31 = vor.u32 %v9729_v29, %v7477_v28  ;;  %v9761_v33 = vld [vmem:[#allocation6 + $0x16c] sm:$0xf0]  ;;  %v7429_v46 = vld [vmem:[#allocation6] sm:$0xf] }
 0x2da   :  { %v2136_v51 = vrot.slane %v2135_v40, 2  ;;  %v2168_v52 = vrot.slane %v2167_v41, 2  ;;  %v7606_v23 = vor.u32 %v9761_v33, %v7605_v16  ;;  %v2184_v45 = vsub.f32 %v2164_v32, %v2180_v25  ;;  %3095 = vmatpush.bf16.msra.mxu0 %v7718_v63  ;;  %v9817_v20 = vld [vmem:[#allocation6 + $0x32c] sm:$0xf0]  ;;  %v7557_v29 = vld [vmem:[#allocation6 + $0x100] sm:$0xf] }
 0x2db   :  { %3068 = vmatpush.bf16.msrb.mxu2 %v7478_v31  ;;  %v7830_v25 = vor.u32 %v9817_v20, %v7829_v17  ;;  %v9717_v28 = vld [vmem:[#allocation6 + $0xc] sm:$0xf0]  ;;  %v7685_v33 = vld [vmem:[#allocation6 + $0x200] sm:$0xf]  ;;  %v2157_v32 = vadd.f32 %v2156_v61, %v10626_v35  ;;  %v7927_v61 = vld [vmem:[#allocation6 + $0x3f0] sm:$0xf0] }
 0x2dc   :  { %v2137_v0 = vadd.f32 %v2136_v51, %v2135_v40  ;;  %v2169_v1 = vadd.f32 %v2168_v52, %v2167_v41  ;;  %v7861_v40 = vld [vmem:[#allocation6 + $0x360] sm:$0xf]  ;;  %v9825_v41 = vld [vmem:[#allocation6 + $0x36c] sm:$0xf0]  ;;  %3081 = vmatpush.bf16.msrb.mxu3 %v7606_v23  ;;  %v10633_v2 = vadd.f32 1e-05, %v2184_v45  ;;  %v7686_v23 = vor.u32 %v9781_v34, %v7685_v33 }
 0x2dd   :  { %v7862_v44 = vor.u32 %v9825_v41, %v7861_v40  ;;  %v7589_v51 = vld [vmem:[#allocation6 + $0x140] sm:$0xf]  ;;  %v9749_v31 = vld [vmem:[#allocation6 + $0x10c] sm:$0xf0]  ;;  %v9743_v41 = vld [vmem:[#allocation6 + $0xe4] sm:$0xf] }
 0x2de   :  { %v2138_v60 = vrot.slane %v2137_v0, 1  ;;  %v2170_v30 = vrot.slane %v2169_v1, 1  ;;  %v7590_v55 = vor.u32 %v9757_v53, %v7589_v51  ;;  %3096 = vmatpush.bf16.msra.mxu0 %v7702_v24  ;;  %v9813_v40 = vld [vmem:[#allocation6 + $0x30c] sm:$0xf0]  ;;  %10241 = vrsqrt.f32 %v10633_v2  ;;  %v9775_v45 = vld [vmem:[#allocation6 + $0x1e4] sm:$0xf] }
 0x2df   :  { %v10618_v57 = vpop.f32.mrf.mxu3  ;;  %3107 = vmatpush.bf16.msra.mxu1 %v7862_v44  ;;  %3069 = vmatpush.bf16.msrb.mxu2 %v7462_v48  ;;  %v7814_v43 = vor.u32 %v9813_v40, %v7813_v21  ;;  %v7543_v44 = vld [vmem:[#allocation6 + $0xf0] sm:$0xf0]  ;;  %vm2209_vm11 = vweird.f32 %v10633_v2 }
 0x2e0   :  { %v10622_v19 = vadd.f32 %v2138_v60, %v2137_v0  ;;  %v2171_v52 = vadd.f32 %v2170_v30, %v2169_v1  ;;  %v10631_v0 = vadd.f32 %v2124_v36, %v2123_v37  ;;  %3082 = vmatpush.bf16.msrb.mxu3 %v7590_v55  ;;  %v7446_v1 = vor.u32 %v9721_v10, %v7445_v9  ;;  %v7671_v51 = vld [vmem:[#allocation6 + $0x1f0] sm:$0xf0]  ;;  %v9771_v10 = vld [vmem:[#allocation6 + $0x1c4] sm:$0xf] }
 0x2e1   :  { %v7430_v30 = vor.u32 %v9717_v28, %v7429_v46  ;;  %v7546_v50 = vor.u32 %v9743_v41, %v7543_v44  ;;  %v7674_v54 = vor.u32 %v9775_v45, %v7671_v51  ;;  %v7799_v55 = vld [vmem:[#allocation6 + $0x2f0] sm:$0xf0]  ;;  %v9763_v44 = vld [vmem:[#allocation6 + $0x184] sm:$0xf] }
 0x2e2   :  { %v2181_v42 = vmul.f32 %v10622_v19, %v10622_v19  ;;  %3097 = vmatpush.bf16.msra.mxu0 %v7686_v23  ;;  %v7527_v9 = vld [vmem:[#allocation6 + $0xd0] sm:$0xf0] }
 0x2e3   :  { %3108 = vmatpush.bf16.msra.mxu1 %v7846_v5  ;;  %3070 = vmatpush.bf16.msrb.mxu2 %v7446_v1  ;;  %v7930_v5 = vor.u32 %v9839_v56, %v7927_v61  ;;  %v7911_v24 = vld [vmem:[#allocation6 + $0x3d0] sm:$0xf0]  ;;  %v9727_v61 = vld [vmem:[#allocation6 + $0x64] sm:$0xf] }
 0x2e4   :  { %v2185_v62 = vsub.f32 %v2171_v52, %v2181_v42  ;;  %3083 = vmatpush.bf16.msrb.mxu3 %v7574_v13  ;;  %v9807_v52 = vld [vmem:[#allocation6 + $0x2e4] sm:$0xf]  ;;  %v10650_v13 = vpop.eup %10241  ;;  %v7895_v23 = vld [vmem:[#allocation6 + $0x3b0] sm:$0xf0] }
 0x2e5   :  { %v2072_v15 = vpop.f32.mrf.mxu2  ;;  %v7802_v59 = vor.u32 %v9807_v52, %v7799_v55  ;;  %v7623_v45 = vld [vmem:[#allocation6 + $0x190] sm:$0xf0]  ;;  %v9827_v52 = vld [vmem:[#allocation6 + $0x384] sm:$0xf]  ;;  %vm2210_vm10 = vweird.f32 %v10650_v13 }
 0x2e6   :  { %v2086_v60 = vadd.f32 %v10618_v57, %v2072_v15  ;;  %v10636_v37 = vadd.f32 1e-05, %v2185_v62  ;;  %v2179_v57 = vmul.f32 %v10631_v0, %v10631_v0  ;;  %v9739_v62 = vld [vmem:[#allocation6 + $0xc4] sm:$0xf]  ;;  %v7751_v51 = vld [vmem:[#allocation6 + $0x290] sm:$0xf0]  ;;  %vm2211_vm13 = vmor %vm2209_vm11, %vm2210_vm10 }
 0x2e7   :  { %v2087_v18 = vpop.f32.mrf.mxu3  ;;  %3109 = vmatpush.bf16.msra.mxu1 %v7830_v25  ;;  %3071 = vmatpush.bf16.msrb.mxu2 %v7430_v30  ;;  %v7530_v7 = vor.u32 %v9739_v62, %v7527_v9  ;;  %v9735_v25 = vld [vmem:[#allocation6 + $0xa4] sm:$0xf]  ;;  %v7879_v55 = vld [vmem:[#allocation6 + $0x390] sm:$0xf0] }
 0x2e8   :  { %v7558_v18 = vor.u32 %v9749_v31, %v7557_v29  ;;  %3142 = vmatpush.bf16.msrb.mxu0 %v7802_v59  ;;  %10243 = vrsqrt.f32 %v10636_v37  ;;  %v9767_v29 = vld [vmem:[#allocation6 + $0x1a4] sm:$0xf]  ;;  %v2204_v31 = vmul.f32 %v10650_v13, %v10633_v2  ;;  %v7882_v59 = vor.u32 %v9827_v52, %v7879_v55  ;;  %v7479_v62 = vld [vmem:[#allocation6 + $0x70] sm:$0xf0] }
 0x2e9   :  { %v2111_v47 = vpop.f32.mrf.mxu1  ;;  %v9799_v30 = vld [vmem:[#allocation6 + $0x2a4] sm:$0xf]  ;;  %v7607_v9 = vld [vmem:[#allocation6 + $0x170] sm:$0xf0]  ;;  %vm2219_vm14 = vweird.f32 %v10636_v37 }
 0x2ea   :  { %3084 = vmatpush.bf16.msrb.mxu3 %v7558_v18  ;;  %v9831_v18 = vld [vmem:[#allocation6 + $0x3a4] sm:$0xf]  ;;  %v7431_v55 = vld [vmem:[#allocation6 + $0x10] sm:$0xf0] }
 0x2eb   :  { %3110 = vmatpush.bf16.msra.mxu1 %v7814_v43  ;;  %3116 = vmatpush.bf16.msra.mxu2 %v7546_v50  ;;  %v7495_v43 = vld [vmem:[#allocation6 + $0x90] sm:$0xf0]  ;;  %v9795_v50 = vld [vmem:[#allocation6 + $0x284] sm:$0xf] }
 0x2ed   :  { %v2074_v3 = vpop.f32.mrf.mxu2 }
 0x2ee   :  { %3129 = vmatpush.bf16.msra.mxu3 %v7674_v54  ;;  %v7754_v54 = vor.u32 %v9795_v50, %v7751_v51  ;;  %v7831_v50 = vld [vmem:[#allocation6 + $0x330] sm:$0xf0] }
 0x2ef   :  { %v2098_v12 = vpop.f32.mrf.mxu0  ;;  %3155 = vmatpush.bf16.msrb.mxu1 %v7930_v5  ;;  %3117 = vmatpush.bf16.msra.mxu2 %v7530_v7 }
 0x2f0   :  { %v2099_v22 = vadd.f32 %v2098_v12, %v2086_v60  ;;  %v7655_v60 = vld [vmem:[#allocation6 + $0x1d0] sm:$0xf0] }
 0x2f1   :  { %v2113_v15 = vpop.f32.mrf.mxu1  ;;  %v7658_v11 = vor.u32 %v9771_v10, %v7655_v60  ;;  %v7783_v12 = vld [vmem:[#allocation6 + $0x2d0] sm:$0xf0]  ;;  %v9791_v10 = vld [vmem:[#allocation6 + $0x264] sm:$0xf] }
 0x2f2   :  { %v2112_v16 = vadd.f32 %v2111_v47, %v2099_v22  ;;  %v2183_v47 = vsub.f32 %v2157_v32, %v2179_v57  ;;  %v7786_v20 = vor.u32 %v9803_v8, %v7783_v12  ;;  %v9835_v22 = vld [vmem:[#allocation6 + $0x3c4] sm:$0xf]  ;;  %v7511_v57 = vld [vmem:[#allocation6 + $0xb0] sm:$0xf0] }
 0x2f3   :  { %3130 = vmatpush.bf16.msra.mxu3 %v7658_v11  ;;  %v7914_v28 = vor.u32 %v9835_v22, %v7911_v24  ;;  %v7514_v33 = vor.u32 %v9735_v25, %v7511_v57  ;;  %v7767_v32 = vld [vmem:[#allocation6 + $0x2b0] sm:$0xf0]  ;;  %v7482_v11 = vor.u32 %v9727_v61, %v7479_v62  ;;  %v9823_v12 = vld [vmem:[#allocation6 + $0x364] sm:$0xf] }
 0x2f4   :  { %v2118_v36 = vsel %vm273_vm0, %v2112_v16, 0.0  ;;  %v2150_v42 = vsel %vm509_vm2, %v2112_v16, 0.0  ;;  %v10648_v1 = vadd.f32 1e-05, %v2183_v47  ;;  %v7639_v16 = vld [vmem:[#allocation6 + $0x1b0] sm:$0xf0]  ;;  %3143 = vmatpush.bf16.msrb.mxu0 %v7786_v20  ;;  %v7770_v41 = vor.u32 %v9799_v30, %v7767_v32  ;;  %v10656_v47 = vpop.eup %10243 }
 0x2f5   :  { %v2140_v35 = vsel %vm494_vm1, %v2118_v36, 0.0  ;;  %v2172_v49 = vsel %vm494_vm1, %v2150_v42, 0.0  ;;  %v7642_v34 = vor.u32 %v9767_v29, %v7639_v16  ;;  %3156 = vmatpush.bf16.msrb.mxu1 %v7914_v28  ;;  %v9731_v36 = vld [vmem:[#allocation6 + $0x84] sm:$0xf]  ;;  %v7898_v42 = vor.u32 %v9831_v18, %v7895_v23  ;;  %3118 = vmatpush.bf16.msra.mxu2 %v7514_v33  ;;  %v7735_v60 = vld [vmem:[#allocation6 + $0x270] sm:$0xf0] }
 0x2f6   :  { %v2141_v48 = vrot.slane %v2140_v35, 4  ;;  %v2173_v53 = vrot.slane %v2172_v49, 4  ;;  %10245 = vrsqrt.f32 %v10648_v1  ;;  %v2214_v5 = vmul.f32 %v10656_v47, %v10636_v37  ;;  %v9723_v57 = vld [vmem:[#allocation6 + $0x44] sm:$0xf]  ;;  %v7591_v29 = vld [vmem:[#allocation6 + $0x150] sm:$0xf0] }
 0x2f7   :  { %v2100_v58 = vpop.f32.mrf.mxu0  ;;  %3131 = vmatpush.bf16.msra.mxu3 %v7642_v34  ;;  %v7738_v20 = vor.u32 %v9791_v10, %v7735_v60  ;;  %v9755_v28 = vld [vmem:[#allocation6 + $0x144] sm:$0xf]  ;;  %v7719_v33 = vld [vmem:[#allocation6 + $0x250] sm:$0xf0]  ;;  %vm2220_vm12 = vweird.f32 %v10656_v47  ;;  %vm2199_vm7 = vweird.f32 %v10648_v1 }
 0x2f8   :  { %v2142_v63 = vadd.f32 %v2141_v48, %v2140_v35  ;;  %v2174_v3 = vadd.f32 %v2173_v53, %v2172_v49  ;;  %v7498_v49 = vor.u32 %v9731_v36, %v7495_v43  ;;  %v2205_v48 = vmul.f32 %v10650_v13, %v2204_v31  ;;  %3144 = vmatpush.bf16.msrb.mxu0 %v7770_v41  ;;  %v9787_v16 = vld [vmem:[#allocation6 + $0x244] sm:$0xf]  ;;  %v7847_v32 = vld [vmem:[#allocation6 + $0x350] sm:$0xf0]  ;;  %vm2221_vm4 = vmor %vm2219_vm14, %vm2220_vm12 }
 0x2f9   :  { %v7626_v53 = vor.u32 %v9763_v44, %v7623_v45  ;;  %3157 = vmatpush.bf16.msrb.mxu1 %v7898_v42  ;;  %v7594_v31 = vor.u32 %v9755_v28, %v7591_v29  ;;  %v9819_v34 = vld [vmem:[#allocation6 + $0x344] sm:$0xf]  ;;  %v7722_v18 = vor.u32 %v9787_v16, %v7719_v33  ;;  %v7575_v42 = vld [vmem:[#allocation6 + $0x130] sm:$0xf0] }
 0x2fa   :  { %v2143_v14 = vrot.slane %v2142_v63, 2  ;;  %v2175_v17 = vrot.slane %v2174_v3, 2  ;;  %3119 = vmatpush.bf16.msra.mxu2 %v7498_v49  ;;  %v9719_v23 = vld [vmem:[#allocation6 + $0x24] sm:$0xf]  ;;  %v7850_v36 = vor.u32 %v9819_v34, %v7847_v32  ;;  %v7703_v44 = vld [vmem:[#allocation6 + $0x230] sm:$0xf0] }
 0x2fb   :  { %3132 = vmatpush.bf16.msra.mxu3 %v7626_v53  ;;  %v9783_v43 = vld [vmem:[#allocation6 + $0x224] sm:$0xf] }
 0x2fc   :  { %v2144_v15 = vadd.f32 %v2143_v14, %v2142_v63  ;;  %v2176_v46 = vadd.f32 %v2175_v17, %v2174_v3  ;;  %v9759_v63 = vld [vmem:[#allocation6 + $0x164] sm:$0xf]  ;;  %v10663_v3 = vpop.eup %10245  ;;  %v7863_v14 = vld [vmem:[#allocation6 + $0x370] sm:$0xf0]  ;;  %v2206_v17 = vmul.f32 0.5, %v2205_v48  ;;  %3145 = vmatpush.bf16.msrb.mxu0 %v7754_v54  ;;  %v7706_v54 = vor.u32 %v9783_v43, %v7703_v44 }
 0x2fd   :  { %v7610_v8 = vor.u32 %v9759_v63, %v7607_v9  ;;  %v2194_v22 = vmul.f32 %v10663_v3, %v10648_v1  ;;  %3158 = vmatpush.bf16.msrb.mxu1 %v7882_v59  ;;  %v7866_v25 = vor.u32 %v9823_v12, %v7863_v14  ;;  %v9815_v49 = vld [vmem:[#allocation6 + $0x324] sm:$0xf]  ;;  %vm2200_vm3 = vweird.f32 %v10663_v3 }
 0x2fe   :  { %v2145_v21 = vrot.slane %v2144_v15, 1  ;;  %v2177_v40 = vrot.slane %v2176_v46, 1  ;;  %3120 = vmatpush.bf16.msra.mxu2 %v7482_v11  ;;  %v2207_v51 = vsub.f32 1.5, %v2206_v17  ;;  %v9715_v53 = vld [vmem:[#allocation6 + $0x4] sm:$0xf]  ;;  %v7834_v62 = vor.u32 %v9815_v49, %v7831_v50  ;;  %vm2201_vm10 = vmor %vm2199_vm7, %vm2200_vm3 }
 0x2ff   :  { %3133 = vmatpush.bf16.msra.mxu3 %v7610_v8  ;;  %v2195_v41 = vmul.f32 %v10663_v3, %v2194_v22  ;;  %v9779_v63 = vld [vmem:[#allocation6 + $0x204] sm:$0xf]  ;;  %v7434_v11 = vor.u32 %v9715_v53, %v7431_v55 }
 0x300   :  { %v10658_v35 = vadd.f32 %v2145_v21, %v2144_v15  ;;  %v2178_v56 = vadd.f32 %v2177_v40, %v2176_v46  ;;  %v7463_v15 = vld [vmem:[#allocation6 + $0x50] sm:$0xf0]  ;;  %v2215_v46 = vmul.f32 %v10656_v47, %v2214_v5  ;;  %3146 = vmatpush.bf16.msrb.mxu0 %v7738_v20  ;;  %v9751_v40 = vld [vmem:[#allocation6 + $0x124] sm:$0xf]  ;;  %v2208_v12 = vmul.f32 %v10650_v13, %v2207_v51 }
 0x301   :  { %v7466_v30 = vor.u32 %v9723_v57, %v7463_v15  ;;  %v7447_v21 = vld [vmem:[#allocation6 + $0x30] sm:$0xf0]  ;;  %3159 = vmatpush.bf16.msrb.mxu1 %v7866_v25  ;;  %v7578_v48 = vor.u32 %v9751_v40, %v7575_v42  ;;  %v2196_v61 = vmul.f32 0.5, %v2195_v41  ;;  %v9811_v60 = vld [vmem:[#allocation6 + $0x304] sm:$0xf] }
 0x302   :  { %v2182_v58 = vmul.f32 %v10658_v35, %v10658_v35  ;;  %v2216_v45 = vmul.f32 0.5, %v2215_v46  ;;  %v7450_v52 = vor.u32 %v9719_v23, %v7447_v21  ;;  %v7687_v5 = vld [vmem:[#allocation6 + $0x210] sm:$0xf0]  ;;  %v2212_v15 = vsel %vm2211_vm13, %v10650_v13, %v2208_v12  ;;  %v2187_v33 = vld [vmem:[%s10980_s5 + $0x2] sm:$0xf] }
 0x303   :  { %3121 = vmatpush.bf16.msra.mxu2 %v7466_v30  ;;  %3134 = vmatpush.bf16.msra.mxu3 %v7594_v31  ;;  %v7690_v17 = vor.u32 %v9779_v63, %v7687_v5  ;;  %v2197_v20 = vsub.f32 1.5, %v2196_v61  ;;  %v2237_v16 = vrot.slane %v2212_v15, 7  ;;  %v9746_v63 = vld [vmem:[#allocation6 + $0xf4] sm:$0xf0]  ;;  %v7677_v5 = vld [vmem:[#allocation6 + $0x1e8] sm:$0xf] }
 0x304   :  { %v2186_v7 = vsub.f32 %v2178_v56, %v2182_v58  ;;  %3147 = vmatpush.bf16.msrb.mxu0 %v7722_v18  ;;  %v9747_v56 = vld [vmem:[#allocation6 + $0x104] sm:$0xf]  ;;  %v7559_v58 = vld [vmem:[#allocation6 + $0x110] sm:$0xf0]  ;;  %v2217_v9 = vsub.f32 1.5, %v2216_v45 }
 0x305   :  { %3160 = vmatpush.bf16.msrb.mxu1 %v7850_v36  ;;  %v7562_v8 = vor.u32 %v9747_v56, %v7559_v58  ;;  %v2198_v2 = vmul.f32 %v10663_v3, %v2197_v20  ;;  %v2188_v45 = vld [vmem:[%s10981_s6 + $0x2] sm:$0xf]  ;;  %v7549_v56 = vld [vmem:[#allocation6 + $0xe8] sm:$0xf] }
 0x306   :  { %v10669_v24 = vadd.f32 1e-05, %v2186_v7  ;;  %v7815_v7 = vld [vmem:[#allocation6 + $0x310] sm:$0xf0]  ;;  %v2218_v25 = vmul.f32 %v10656_v47, %v2217_v9  ;;  %v9778_v9 = vld [vmem:[#allocation6 + $0x1f4] sm:$0xf0] }
 0x307   :  { %3122 = vmatpush.bf16.msra.mxu2 %v7450_v52  ;;  %3135 = vmatpush.bf16.msra.mxu3 %v7578_v48  ;;  %v7818_v22 = vor.u32 %v9811_v60, %v7815_v7  ;;  %v2202_v31 = vsel %vm2201_vm10, %v10663_v3, %v2198_v2  ;;  %v7933_v60 = vld [vmem:[#allocation6 + $0x3e8] sm:$0xf]  ;;  %v7678_v12 = vor.u32 %v9778_v9, %v7677_v5 }
 0x308   :  { %10247 = vrsqrt.f32 %v10669_v24  ;;  %3148 = vmatpush.bf16.msrb.mxu0 %v7706_v54  ;;  %v2222_v28 = vsel %vm2221_vm4, %v10656_v47, %v2218_v25  ;;  %vm2229_vm5 = vweird.f32 %v10669_v24  ;;  %v2240_v47 = vsel %vm557_vm8, %v2202_v31, %v2237_v16  ;;  %v7533_v25 = vld [vmem:[#allocation6 + $0xc8] sm:$0xf]  ;;  %v9806_v16 = vld [vmem:[#allocation6 + $0x2d4] sm:$0xf0] }
 0x309   :  { %3161 = vmatpush.bf16.msrb.mxu1 %v7834_v62  ;;  %v2238_v37 = vrot.slane %v2222_v28, 6  ;;  %v7661_v2 = vld [vmem:[#allocation6 + $0x1c8] sm:$0xf]  ;;  %v9774_v28 = vld [vmem:[#allocation6 + $0x1d4] sm:$0xf0] }
 0x30a   :  { %v7662_v31 = vor.u32 %v9774_v28, %v7661_v2  ;;  %v7469_v9 = vld [vmem:[#allocation6 + $0x48] sm:$0xf] }
 0x30b   :  { %3123 = vmatpush.bf16.msra.mxu2 %v7434_v11  ;;  %3136 = vmatpush.bf16.msra.mxu3 %v7562_v8  ;;  %v7550_v8 = vor.u32 %v9746_v63, %v7549_v56  ;;  %v9762_v56 = vld [vmem:[#allocation6 + $0x174] sm:$0xf0]  ;;  %v7581_v28 = vld [vmem:[#allocation6 + $0x128] sm:$0xf] }
 0x30c   :  { %3149 = vmatpush.bf16.msrb.mxu0 %v7690_v17 }
 0x30d   :  { %3162 = vmatpush.bf16.msrb.mxu1 %v7818_v22 }
 0x30e   :  { %v10248_v59 = vpop.eup %10247 }
 0x30f   :  { %v2224_v10 = vmul.f32 %v10248_v59, %v10669_v24  ;;  %vm2230_vm15 = vweird.f32 %v10248_v59 }
 0x310   :  { %vm2231_vm6 = vmor %vm2229_vm5, %vm2230_vm15 }
 0x311   :  { %v2225_v14 = vmul.f32 %v10248_v59, %v2224_v10  ;;  %v7805_v10 = vld [vmem:[#allocation6 + $0x2e8] sm:$0xf] }
 0x313   :  { %v2226_v57 = vmul.f32 0.5, %v2225_v14 }
 0x315   :  { %v2227_v46 = vsub.f32 1.5, %v2226_v57  ;;  %v9742_v57 = vld [vmem:[#allocation6 + $0xd4] sm:$0xf0] }
 0x317   :  { %v2228_v29 = vmul.f32 %v10248_v59, %v2227_v46 }
 0x319   :  { %v2232_v13 = vsel %vm2231_vm6, %v10248_v59, %v2228_v29  ;;  %v7789_v29 = vld [vmem:[#allocation6 + $0x2c8] sm:$0xf] }
 0x31a   :  { %v2239_v30 = vrot.slane %v2232_v13, 5  ;;  %v7917_v13 = vld [vmem:[#allocation6 + $0x3c8] sm:$0xf] }
 0x31c   :  { %v2242_v34 = vsel %vm2241_vm9, %v2238_v37, %v2239_v30  ;;  %v9838_v37 = vld [vmem:[#allocation6 + $0x3d4] sm:$0xf0]  ;;  %v7534_v30 = vor.u32 %v9742_v57, %v7533_v25  ;;  %v7453_v57 = vld [vmem:[#allocation6 + $0x28] sm:$0xf] }
 0x31d   :  { %v2243_v24 = vsel %vm494_vm1, %v2240_v47, %v2242_v34  ;;  %v9738_v47 = vld [vmem:[#allocation6 + $0xb4] sm:$0xf0]  ;;  %v7790_v34 = vor.u32 %v9806_v16, %v7789_v29  ;;  %v7709_v16 = vld [vmem:[#allocation6 + $0x228] sm:$0xf] }
 0x31e   :  { %v2245_v32 = vmul.f32 %v2243_v24, %v2187_v33  ;;  %v7517_v33 = vld [vmem:[#allocation6 + $0xa8] sm:$0xf]  ;;  %v7918_v24 = vor.u32 %v9838_v37, %v7917_v13  ;;  %v9754_v29 = vld [vmem:[#allocation6 + $0x134] sm:$0xf0] }
 0x31f   :  { %v9786_v13 = vld [vmem:[#allocation6 + $0x234] sm:$0xf0]  ;;  %v7837_v37 = vld [vmem:[#allocation6 + $0x328] sm:$0xf] }
 0x320   :  { %v2249_v18 = vperm.slane %v2245_v32, 2  ;;  %v2250_v1 = vperm.slane %v2245_v32, 3  ;;  %v2247_v23 = vperm.slane %v2245_v32, 0  ;;  %v2248_v21 = vperm.slane %v2245_v32, 1  ;;  %v7645_v32 = vld [vmem:[#allocation6 + $0x1a8] sm:$0xf] }
 0x322   :  { %v2257_v40 = vmul.f32 %v2249_v18, %v10622_v19  ;;  %v2258_v41 = vmul.f32 %v2250_v1, %v10658_v35  ;;  %v2256_v3 = vmul.f32 %v2248_v21, %v10620_v4  ;;  %v2255_v43 = vmul.f32 %v2247_v23, %v10631_v0 }
 0x323   :  { %v2271_v35 = vmul.f32 %v2247_v23, %v10550_v39  ;;  %v2272_v4 = vmul.f32 %v2248_v21, %v10544_v26  ;;  %v2273_v52 = vmul.f32 %v2249_v18, %v10566_v27  ;;  %v2274_v0 = vmul.f32 %v2250_v1, %v10556_v6  ;;  %v9810_v39 = vld [vmem:[#allocation6 + $0x2f4] sm:$0xf0]  ;;  %v7773_v1 = vld [vmem:[#allocation6 + $0x2a8] sm:$0xf] }
 0x324   :  { %v2264_v36 = vrot.slane %v2257_v40, 6  ;;  %v2265_v42 = vrot.slane %v2258_v41, 5  ;;  %v2263_v44 = vrot.slane %v2256_v3, 7  ;;  %v9842_v6 = vld [vmem:[#allocation6 + $0x3f4] sm:$0xf0]  ;;  %v7806_v15 = vor.u32 %v9810_v39, %v7805_v10 }
 0x325   :  { %v7934_v46 = vor.u32 %v9842_v6, %v7933_v60  ;;  %v9770_v18 = vld [vmem:[#allocation6 + $0x1b4] sm:$0xf0]  ;;  %v7901_v21 = vld [vmem:[#allocation6 + $0x3a8] sm:$0xf]  ;;  %v7518_v41 = vor.u32 %v9738_v47, %v7517_v33  ;;  %v7582_v47 = vor.u32 %v9754_v29, %v7581_v28  ;;  %v9764_v29 = vld [vmem:[#allocation6 + $0x18c] sm:$0xf] }
 0x326   :  { %v2267_v49 = vsel %vm2241_vm9, %v2264_v36, %v2265_v42  ;;  %v2266_v50 = vsel %vm557_vm8, %v2255_v43, %v2263_v44  ;;  %v9802_v23 = vld [vmem:[#allocation6 + $0x2b4] sm:$0xf0]  ;;  %v7646_v3 = vor.u32 %v9770_v18, %v7645_v32  ;;  %v7501_v36 = vld [vmem:[#allocation6 + $0x88] sm:$0xf]  ;;  %v7710_v18 = vor.u32 %v9786_v13, %v7709_v16  ;;  %v7631_v16 = vld [vmem:[#allocation6 + $0x198] sm:$0xf0] }
 0x327   :  { %v2268_v51 = vsel %vm494_vm1, %v2266_v50, %v2267_v49  ;;  %v9834_v40 = vld [vmem:[#allocation6 + $0x3b4] sm:$0xf0]  ;;  %v7774_v43 = vor.u32 %v9802_v23, %v7773_v1  ;;  %v7757_v50 = vld [vmem:[#allocation6 + $0x288] sm:$0xf]  ;;  %v9796_v13 = vld [vmem:[#allocation6 + $0x28c] sm:$0xf] }
 0x328   :  { %v2270_v19 = vsub.f32 %v2188_v45, %v2268_v51  ;;  %v9734_v42 = vld [vmem:[#allocation6 + $0x94] sm:$0xf0]  ;;  %v7902_v44 = vor.u32 %v9834_v40, %v7901_v21  ;;  %v7629_v45 = vld [vmem:[#allocation6 + $0x188] sm:$0xf] }
 0x329   :  { %v9766_v49 = vld [vmem:[#allocation6 + $0x194] sm:$0xf0]  ;;  %v7853_v6 = vld [vmem:[#allocation6 + $0x348] sm:$0xf] }
 0x32a   :  { %v2276_v48 = vperm.slane %v2270_v19, 0  ;;  %v2277_v53 = vperm.slane %v2270_v19, 1  ;;  %v2278_v54 = vperm.slane %v2270_v19, 2  ;;  %v2279_v55 = vperm.slane %v2270_v19, 3  ;;  %v9798_v51 = vld [vmem:[#allocation6 + $0x294] sm:$0xf0] }
 0x32b   :  { %v7885_v19 = vld [vmem:[#allocation6 + $0x388] sm:$0xf]  ;;  %v9726_v10 = vld [vmem:[#allocation6 + $0x54] sm:$0xf0] }
 0x32c   :  { %v2284_v58 = vadd.f32 %v2276_v48, %v2271_v35  ;;  %v2285_v59 = vadd.f32 %v2277_v53, %v2272_v4  ;;  %v2286_v61 = vadd.f32 %v2278_v54, %v2273_v52  ;;  %v2287_v62 = vadd.f32 %v2279_v55, %v2274_v0  ;;  %v9830_v35 = vld [vmem:[#allocation6 + $0x394] sm:$0xf0]  ;;  %v7485_v0 = vld [vmem:[#allocation6 + $0x68] sm:$0xf] }
 0x32d   :  { %v7502_v4 = vor.u32 %v9734_v42, %v7501_v36  ;;  %v7630_v52 = vor.u32 %v9766_v49, %v7629_v45  ;;  %v9730_v48 = vld [vmem:[#allocation6 + $0x74] sm:$0xf0]  ;;  %v7758_v53 = vor.u32 %v9798_v51, %v7757_v50  ;;  %v7886_v54 = vor.u32 %v9830_v35, %v7885_v19  ;;  %v7613_v55 = vld [vmem:[#allocation6 + $0x168] sm:$0xf]  ;;  %v7551_v36 = vld [vmem:[#allocation6 + $0xf8] sm:$0xf0] }
 0x32e   :  { %v2288_v26 = vmax.f32 %v2284_v58, 0.0  ;;  %v2289_v7 = vmax.f32 %v2285_v59, 0.0  ;;  %v2290_v27 = vmax.f32 %v2286_v61, 0.0  ;;  %v2291_v11 = vmax.f32 %v2287_v62, 0.0  ;;  %v7741_v58 = vld [vmem:[#allocation6 + $0x268] sm:$0xf] }
 0x32f   :  { %v9794_v59 = vld [vmem:[#allocation6 + $0x274] sm:$0xf0]  ;;  %v7869_v61 = vld [vmem:[#allocation6 + $0x368] sm:$0xf]  ;;  %v7486_v63 = vor.u32 %v9730_v48, %v7485_v0  ;;  %v7614_v5 = vor.u32 %v9762_v56, %v7613_v55  ;;  %v9776_v42 = vld [vmem:[#allocation6 + $0x1ec] sm:$0xf] }
 0x330   :  { %v10708_v14 = vpack.c.bf16 %v2288_v26, %v2288_v26  ;;  %v10710_v17 = vpack.c.bf16 %v2289_v7, %v2289_v7  ;;  %v10712_v20 = vpack.c.bf16 %v2290_v27, %v2290_v27  ;;  %v10714_v22 = vpack.c.bf16 %v2291_v11, %v2291_v11  ;;  %v9826_v62 = vld [vmem:[#allocation6 + $0x374] sm:$0xf0]  ;;  %v7597_v26 = vld [vmem:[#allocation6 + $0x148] sm:$0xf]  ;;  %v7807_v50 = vld [vmem:[#allocation6 + $0x2f8] sm:$0xf0] }
 0x331   :  { %v7742_v39 = vor.u32 %v9794_v59, %v7741_v58  ;;  %v7870_v60 = vor.u32 %v9826_v62, %v7869_v61  ;;  %v9758_v7 = vld [vmem:[#allocation6 + $0x154] sm:$0xf0]  ;;  %v7725_v27 = vld [vmem:[#allocation6 + $0x248] sm:$0xf]  ;;  %v9840_v51 = vld [vmem:[#allocation6 + $0x3ec] sm:$0xf] }
 0x332   :  { %3072 = vmatmul.bf16.vlgmr.msrb.gmra.mxu2 %v10708_v14  ;;  %3085 = vmatmul.bf16.vlgmr.msrb.gmra.mxu3 %v10710_v17  ;;  %v9790_v11 = vld [vmem:[#allocation6 + $0x254] sm:$0xf0]  ;;  %v7598_v25 = vor.u32 %v9758_v7, %v7597_v26  ;;  %v7693_v23 = vld [vmem:[#allocation6 + $0x208] sm:$0xf]  ;;  %v7935_v19 = vld [vmem:[#allocation6 + $0x3f8] sm:$0xf0] }
 0x333   :  { %3098 = vmatmul.bf16.vlgmr.msra.gmra.mxu0 %v10712_v20  ;;  %3111 = vmatmul.bf16.vlgmr.msra.gmra.mxu1 %v10714_v22  ;;  %v9750_v32 = vld [vmem:[#allocation6 + $0x114] sm:$0xf0]  ;;  %v7821_v40 = vld [vmem:[#allocation6 + $0x308] sm:$0xf]  ;;  %v9740_v48 = vld [vmem:[#allocation6 + $0xcc] sm:$0xf]  ;;  %v7938_v55 = vor.u32 %v9840_v51, %v7935_v19 }
 0x334   :  { %3168 = vmatpush.bf16.msrb.mxu2 %v7550_v8  ;;  %3181 = vmatpush.bf16.msrb.mxu3 %v7678_v12  ;;  %v9822_v8 = vld [vmem:[#allocation6 + $0x354] sm:$0xf0]  ;;  %v7470_v12 = vor.u32 %v9726_v10, %v7469_v9  ;;  %v9772_v56 = vld [vmem:[#allocation6 + $0x1cc] sm:$0xf]  ;;  %v7663_v58 = vld [vmem:[#allocation6 + $0x1d8] sm:$0xf0] }
 0x335   :  { %3194 = vmatpush.bf16.msra.mxu0 %v7806_v15  ;;  %3207 = vmatpush.bf16.msra.mxu1 %v7934_v46  ;;  %v9722_v15 = vld [vmem:[#allocation6 + $0x34] sm:$0xf0]  ;;  %v7726_v46 = vor.u32 %v9790_v11, %v7725_v27  ;;  %v7854_v2 = vor.u32 %v9822_v8, %v7853_v6  ;;  %v9804_v59 = vld [vmem:[#allocation6 + $0x2cc] sm:$0xf]  ;;  %v7791_v61 = vld [vmem:[#allocation6 + $0x2d8] sm:$0xf0]  ;;  %v7666_v9 = vor.u32 %v9772_v56, %v7663_v58 }
 0x336   :  { %v7454_v33 = vor.u32 %v9722_v15, %v7453_v57  ;;  %v9782_v21 = vld [vmem:[#allocation6 + $0x214] sm:$0xf0]  ;;  %v9836_v62 = vld [vmem:[#allocation6 + $0x3cc] sm:$0xf]  ;;  %v7647_v27 = vld [vmem:[#allocation6 + $0x1b8] sm:$0xf0] }
 0x337   :  { %v7694_v35 = vor.u32 %v9782_v21, %v7693_v23  ;;  %v9736_v10 = vld [vmem:[#allocation6 + $0xac] sm:$0xf]  ;;  %v7775_v6 = vld [vmem:[#allocation6 + $0x2b8] sm:$0xf0] }
 0x338   :  { %3169 = vmatpush.bf16.msrb.mxu2 %v7534_v30  ;;  %3182 = vmatpush.bf16.msrb.mxu3 %v7662_v31  ;;  %v9818_v30 = vld [vmem:[#allocation6 + $0x334] sm:$0xf0]  ;;  %v7437_v31 = vld [vmem:[#allocation6 + $0x8] sm:$0xf]  ;;  %v9768_v7 = vld [vmem:[#allocation6 + $0x1ac] sm:$0xf] }
 0x339   :  { %3195 = vmatpush.bf16.msra.mxu0 %v7790_v34  ;;  %3208 = vmatpush.bf16.msra.mxu1 %v7918_v24  ;;  %v9718_v34 = vld [vmem:[#allocation6 + $0x14] sm:$0xf0]  ;;  %v7565_v24 = vld [vmem:[#allocation6 + $0x108] sm:$0xf]  ;;  %v7838_v1 = vor.u32 %v9818_v30, %v7837_v37  ;;  %v9800_v11 = vld [vmem:[#allocation6 + $0x2ac] sm:$0xf]  ;;  %v7650_v57 = vor.u32 %v9768_v7, %v7647_v27 }
 0x33a   :  { %v7438_v45 = vor.u32 %v9718_v34, %v7437_v31  ;;  %v7566_v49 = vor.u32 %v9750_v32, %v7565_v24  ;;  %v9832_v8 = vld [vmem:[#allocation6 + $0x3ac] sm:$0xf]  ;;  %v7759_v37 = vld [vmem:[#allocation6 + $0x298] sm:$0xf0] }
 0x33b   :  { %v9732_v15 = vld [vmem:[#allocation6 + $0x8c] sm:$0xf]  ;;  %v7887_v31 = vld [vmem:[#allocation6 + $0x398] sm:$0xf0]  ;;  %v7762_v32 = vor.u32 %v9796_v13, %v7759_v37 }
 0x33c   :  { %3170 = vmatpush.bf16.msrb.mxu2 %v7518_v41  ;;  %3183 = vmatpush.bf16.msrb.mxu3 %v7646_v3  ;;  %v9814_v41 = vld [vmem:[#allocation6 + $0x314] sm:$0xf0]  ;;  %v9744_v3 = vld [vmem:[#allocation6 + $0xec] sm:$0xf]  ;;  %v7487_v24 = vld [vmem:[#allocation6 + $0x78] sm:$0xf0] }
 0x33d   :  { %3196 = vmatpush.bf16.msra.mxu0 %v7774_v43  ;;  %3209 = vmatpush.bf16.msra.mxu1 %v7902_v44  ;;  %v7679_v43 = vld [vmem:[#allocation6 + $0x1f8] sm:$0xf0]  ;;  %v9808_v44 = vld [vmem:[#allocation6 + $0x2ec] sm:$0xf] }
 0x33e   :  { %v7682_v0 = vor.u32 %v9776_v42, %v7679_v43  ;;  %v9828_v30 = vld [vmem:[#allocation6 + $0x38c] sm:$0xf]  ;;  %v7615_v23 = vld [vmem:[#allocation6 + $0x178] sm:$0xf0] }
 0x33f   :  { %v9728_v34 = vld [vmem:[#allocation6 + $0x6c] sm:$0xf]  ;;  %v7599_v51 = vld [vmem:[#allocation6 + $0x158] sm:$0xf0] }
 0x340   :  { %3171 = vmatpush.bf16.msrb.mxu2 %v7502_v4  ;;  %3184 = vmatpush.bf16.msrb.mxu3 %v7630_v52  ;;  %v7822_v4 = vor.u32 %v9814_v41, %v7821_v40  ;;  %v7554_v52 = vor.u32 %v9744_v3, %v7551_v36  ;;  %v9792_v21 = vld [vmem:[#allocation6 + $0x26c] sm:$0xf]  ;;  %v7743_v40 = vld [vmem:[#allocation6 + $0x278] sm:$0xf0]  ;;  %v7490_v36 = vor.u32 %v9728_v34, %v7487_v24  ;;  %v9901_v34 = vld [vmem:[#allocation6 + $0x5cc] sm:$0xf0] }
 0x341   :  { %3197 = vmatpush.bf16.msra.mxu0 %v7758_v53  ;;  %3210 = vmatpush.bf16.msra.mxu1 %v7886_v54  ;;  %v7535_v53 = vld [vmem:[#allocation6 + $0xd8] sm:$0xf0]  ;;  %v7810_v54 = vor.u32 %v9808_v44, %v7807_v50  ;;  %v9824_v41 = vld [vmem:[#allocation6 + $0x36c] sm:$0xf] }
 0x342   :  { %3124 = vmatmul.bf16.vlgmr.msra.gmra.mxu2 %v10708_v14  ;;  %3137 = vmatmul.bf16.vlgmr.msra.gmra.mxu3 %v10710_v17  ;;  %v7871_v3 = vld [vmem:[#allocation6 + $0x378] sm:$0xf0]  ;;  %v9724_v43 = vld [vmem:[#allocation6 + $0x4c] sm:$0xf] }
 0x343   :  { %3150 = vmatmul.bf16.vlgmr.msrb.gmra.mxu0 %v10712_v20  ;;  %3163 = vmatmul.bf16.vlgmr.msrb.gmra.mxu1 %v10714_v22  ;;  %v7471_v44 = vld [vmem:[#allocation6 + $0x58] sm:$0xf0]  ;;  %v9756_v50 = vld [vmem:[#allocation6 + $0x14c] sm:$0xf] }
 0x344   :  { %3172 = vmatpush.bf16.msrb.mxu2 %v7486_v63  ;;  %3185 = vmatpush.bf16.msrb.mxu3 %v7614_v5  ;;  %v7919_v63 = vld [vmem:[#allocation6 + $0x3d8] sm:$0xf0]  ;;  %v7538_v5 = vor.u32 %v9740_v48, %v7535_v53  ;;  %v9788_v19 = vld [vmem:[#allocation6 + $0x24c] sm:$0xf]  ;;  %v7602_v48 = vor.u32 %v9756_v50, %v7599_v51  ;;  %v9849_v50 = vld [vmem:[#allocation6 + $0x42c] sm:$0xf0] }
 0x345   :  { %3198 = vmatpush.bf16.msra.mxu0 %v7742_v39  ;;  %3211 = vmatpush.bf16.msra.mxu1 %v7870_v60  ;;  %v7519_v39 = vld [vmem:[#allocation6 + $0xb8] sm:$0xf0]  ;;  %v7794_v60 = vor.u32 %v9804_v59, %v7791_v61  ;;  %v7922_v26 = vor.u32 %v9836_v62, %v7919_v63  ;;  %v9720_v53 = vld [vmem:[#allocation6 + $0x2c] sm:$0xf]  ;;  %v7941_v51 = vld [vmem:[#allocation6 + $0x400] sm:$0xf] }
 0x346   :  { %v9752_v58 = vld [vmem:[#allocation6 + $0x12c] sm:$0xf]  ;;  %v7583_v59 = vld [vmem:[#allocation6 + $0x138] sm:$0xf0] }
 0x347   :  { %v9784_v61 = vld [vmem:[#allocation6 + $0x22c] sm:$0xf]  ;;  %v7711_v62 = vld [vmem:[#allocation6 + $0x238] sm:$0xf0] }
 0x348   :  { %3173 = vmatpush.bf16.msrb.mxu2 %v7470_v12  ;;  %3186 = vmatpush.bf16.msrb.mxu3 %v7598_v25  ;;  %v7903_v12 = vld [vmem:[#allocation6 + $0x3b8] sm:$0xf0]  ;;  %v7522_v25 = vor.u32 %v9736_v10, %v7519_v39  ;;  %v9816_v63 = vld [vmem:[#allocation6 + $0x32c] sm:$0xf]  ;;  %v7586_v10 = vor.u32 %v9752_v58, %v7583_v59  ;;  %v7714_v7 = vor.u32 %v9784_v61, %v7711_v62  ;;  %v8309_v58 = vld [vmem:[#allocation6 + $0x6e0] sm:$0xf] }
 0x349   :  { %3199 = vmatpush.bf16.msra.mxu0 %v7726_v46  ;;  %3212 = vmatpush.bf16.msra.mxu1 %v7854_v2  ;;  %v7503_v46 = vld [vmem:[#allocation6 + $0x98] sm:$0xf0]  ;;  %v7778_v2 = vor.u32 %v9800_v11, %v7775_v6  ;;  %v7906_v28 = vor.u32 %v9832_v8, %v7903_v12  ;;  %v9716_v39 = vld [vmem:[#allocation6 + $0xc] sm:$0xf]  ;;  %v9937_v61 = vld [vmem:[#allocation6 + $0x6ec] sm:$0xf0] }
 0x34a   :  { %v7567_v11 = vld [vmem:[#allocation6 + $0x118] sm:$0xf0]  ;;  %v9780_v6 = vld [vmem:[#allocation6 + $0x20c] sm:$0xf]  ;;  %v9867_v62 = vld [vmem:[#allocation6 + $0x4c4] sm:$0xf] }
 0x34b   :  { %v7695_v8 = vld [vmem:[#allocation6 + $0x218] sm:$0xf0]  ;;  %v9812_v12 = vld [vmem:[#allocation6 + $0x30c] sm:$0xf] }
 0x34c   :  { %3174 = vmatpush.bf16.msrb.mxu2 %v7454_v33  ;;  %3187 = vmatpush.bf16.msrb.mxu3 %v7582_v47  ;;  %v7506_v33 = vor.u32 %v9732_v15, %v7503_v46  ;;  %v7634_v47 = vor.u32 %v9764_v29, %v7631_v16  ;;  %v9873_v15 = vld [vmem:[#allocation6 + $0x4ec] sm:$0xf0]  ;;  %v8181_v46 = vld [vmem:[#allocation6 + $0x5e0] sm:$0xf]  ;;  %v7698_v16 = vor.u32 %v9780_v6, %v7695_v8 }
 0x34d   :  { %3200 = vmatpush.bf16.msra.mxu0 %v7710_v18  ;;  %3213 = vmatpush.bf16.msra.mxu1 %v7838_v1  ;;  %v7890_v18 = vor.u32 %v9828_v30, %v7887_v31  ;;  %v9760_v1 = vld [vmem:[#allocation6 + $0x16c] sm:$0xf]  ;;  %v8037_v30 = vld [vmem:[#allocation6 + $0x4c0] sm:$0xf] }
 0x34e   :  { %v7618_v42 = vor.u32 %v9760_v1, %v7615_v23  ;;  %v9865_v1 = vld [vmem:[#allocation6 + $0x4ac] sm:$0xf0]  ;;  %v8149_v23 = vld [vmem:[#allocation6 + $0x5a0] sm:$0xf] }
 0x350   :  { %3175 = vmatpush.bf16.msrb.mxu2 %v7438_v45  ;;  %3188 = vmatpush.bf16.msrb.mxu3 %v7566_v49  ;;  %v7746_v45 = vor.u32 %v9792_v21, %v7743_v40  ;;  %v7874_v49 = vor.u32 %v9824_v41, %v7871_v3  ;;  %v9897_v21 = vld [vmem:[#allocation6 + $0x5ac] sm:$0xf0]  ;;  %v8005_v3 = vld [vmem:[#allocation6 + $0x480] sm:$0xf] }
 0x351   :  { %3201 = vmatpush.bf16.msra.mxu0 %v7694_v35  ;;  %3214 = vmatpush.bf16.msra.mxu1 %v7822_v4  ;;  %v7727_v35 = vld [vmem:[#allocation6 + $0x258] sm:$0xf0]  ;;  %v9820_v4 = vld [vmem:[#allocation6 + $0x34c] sm:$0xf]  ;;  %v8150_v41 = vor.u32 %v9897_v21, %v8149_v23  ;;  %v8245_v21 = vld [vmem:[#allocation6 + $0x660] sm:$0xf] }
 0x353   :  { %3176 = vmatmul.bf16.vlgmr.msrb.gmra.mxu2 %v10708_v14  ;;  %3189 = vmatmul.bf16.vlgmr.msrb.gmra.mxu3 %v10710_v17 }
 0x354   :  { %3220 = vmatpush.bf16.msra.mxu2 %v7554_v52  ;;  %3233 = vmatpush.bf16.msra.mxu3 %v7682_v0  ;;  %v7855_v52 = vld [vmem:[#allocation6 + $0x358] sm:$0xf0]  ;;  %v7474_v0 = vor.u32 %v9724_v43, %v7471_v44  ;;  %v7989_v43 = vld [vmem:[#allocation6 + $0x460] sm:$0xf] }
 0x355   :  { %3246 = vmatpush.bf16.msrb.mxu0 %v7810_v54  ;;  %3259 = vmatpush.bf16.msrb.mxu1 %v7938_v55  ;;  %v7455_v54 = vld [vmem:[#allocation6 + $0x38] sm:$0xf0]  ;;  %v7730_v55 = vor.u32 %v9788_v19, %v7727_v35  ;;  %v7858_v56 = vor.u32 %v9820_v4, %v7855_v52  ;;  %v7973_v44 = vld [vmem:[#allocation6 + $0x440] sm:$0xf]  ;;  %v9845_v19 = vld [vmem:[#allocation6 + $0x40c] sm:$0xf0] }
 0x356   :  { %3202 = vmatmul.bf16.vlgmr.msra.gmra.mxu0 %v10712_v20  ;;  %3215 = vmatmul.bf16.vlgmr.msra.gmra.mxu1 %v10714_v22  ;;  %v8133_v35 = vld [vmem:[#allocation6 + $0x580] sm:$0xf]  ;;  %v7942_v4 = vor.u32 %v9845_v19, %v7941_v51  ;;  %v9893_v52 = vld [vmem:[#allocation6 + $0x58c] sm:$0xf0]  ;;  %v8151_v19 = vld [vmem:[#allocation6 + $0x5b0] sm:$0xf0] }
 0x358   :  { %3221 = vmatpush.bf16.msra.mxu2 %v7538_v5  ;;  %3234 = vmatpush.bf16.msra.mxu3 %v7666_v9  ;;  %v7839_v5 = vld [vmem:[#allocation6 + $0x338] sm:$0xf0]  ;;  %v7458_v9 = vor.u32 %v9720_v53, %v7455_v54  ;;  %v8134_v53 = vor.u32 %v9893_v52, %v8133_v35  ;;  %v9913_v52 = vld [vmem:[#allocation6 + $0x62c] sm:$0xf0] }
 0x359   :  { %3247 = vmatpush.bf16.msrb.mxu0 %v7794_v60  ;;  %3260 = vmatpush.bf16.msrb.mxu1 %v7922_v26  ;;  %v7439_v60 = vld [vmem:[#allocation6 + $0x18] sm:$0xf0]  ;;  %v9748_v26 = vld [vmem:[#allocation6 + $0x10c] sm:$0xf]  ;;  %v7842_v27 = vor.u32 %v9816_v63, %v7839_v5  ;;  %v8039_v63 = vld [vmem:[#allocation6 + $0x4d0] sm:$0xf0]  ;;  %v8310_v5 = vor.u32 %v9937_v61, %v8309_v58 }
 0x35a   :  { %v7570_v29 = vor.u32 %v9748_v26, %v7567_v11  ;;  %v8023_v11 = vld [vmem:[#allocation6 + $0x4b0] sm:$0xf0] }
 0x35c   :  { %3222 = vmatpush.bf16.msra.mxu2 %v7522_v25  ;;  %3235 = vmatpush.bf16.msra.mxu3 %v7650_v57  ;;  %v7823_v25 = vld [vmem:[#allocation6 + $0x318] sm:$0xf0]  ;;  %v8053_v57 = vld [vmem:[#allocation6 + $0x4e0] sm:$0xf] }
 0x35d   :  { %3248 = vmatpush.bf16.msrb.mxu0 %v7778_v2  ;;  %3261 = vmatpush.bf16.msrb.mxu1 %v7906_v28  ;;  %v9905_v2 = vld [vmem:[#allocation6 + $0x5ec] sm:$0xf0]  ;;  %v7442_v28 = vor.u32 %v9716_v39, %v7439_v60  ;;  %v7826_v13 = vor.u32 %v9812_v12, %v7823_v25  ;;  %v8054_v37 = vor.u32 %v9873_v15, %v8053_v57  ;;  %v8293_v60 = vld [vmem:[#allocation6 + $0x6c0] sm:$0xf] }
 0x35e   :  { %v8182_v31 = vor.u32 %v9905_v2, %v8181_v46  ;;  %v9885_v39 = vld [vmem:[#allocation6 + $0x54c] sm:$0xf0]  ;;  %v8085_v12 = vld [vmem:[#allocation6 + $0x520] sm:$0xf]  ;;  %v9859_v2 = vld [vmem:[#allocation6 + $0x484] sm:$0xf] }
 0x35f   :  { %v9881_v25 = vld [vmem:[#allocation6 + $0x52c] sm:$0xf0]  ;;  %v8277_v57 = vld [vmem:[#allocation6 + $0x6a0] sm:$0xf] }
 0x360   :  { %3223 = vmatpush.bf16.msra.mxu2 %v7506_v33  ;;  %3236 = vmatpush.bf16.msra.mxu3 %v7634_v47  ;;  %v9869_v33 = vld [vmem:[#allocation6 + $0x4cc] sm:$0xf0]  ;;  %v8165_v47 = vld [vmem:[#allocation6 + $0x5c0] sm:$0xf]  ;;  %v8086_v15 = vor.u32 %v9881_v25, %v8085_v12 }
 0x361   :  { %3249 = vmatpush.bf16.msrb.mxu0 %v7762_v32  ;;  %3262 = vmatpush.bf16.msrb.mxu1 %v7890_v18  ;;  %v8038_v24 = vor.u32 %v9869_v33, %v8037_v30  ;;  %v8021_v32 = vld [vmem:[#allocation6 + $0x4a0] sm:$0xf]  ;;  %v8166_v18 = vor.u32 %v9901_v34, %v8165_v47  ;;  %v9929_v46 = vld [vmem:[#allocation6 + $0x6ac] sm:$0xf0]  ;;  %v9855_v47 = vld [vmem:[#allocation6 + $0x464] sm:$0xf] }
 0x362   :  { %v8022_v40 = vor.u32 %v9865_v1, %v8021_v32  ;;  %v8261_v30 = vld [vmem:[#allocation6 + $0x680] sm:$0xf]  ;;  %v9925_v33 = vld [vmem:[#allocation6 + $0x68c] sm:$0xf0]  ;;  %v7991_v34 = vld [vmem:[#allocation6 + $0x470] sm:$0xf0] }
 0x363   :  { %v7994_v32 = vor.u32 %v9855_v47, %v7991_v34  ;;  %v8183_v1 = vld [vmem:[#allocation6 + $0x5f0] sm:$0xf0]  ;;  %v8405_v34 = vld [vmem:[#allocation6 + $0x7a0] sm:$0xf] }
 0x364   :  { %3224 = vmatpush.bf16.msra.mxu2 %v7490_v36  ;;  %3237 = vmatpush.bf16.msra.mxu3 %v7618_v42  ;;  %v9861_v36 = vld [vmem:[#allocation6 + $0x48c] sm:$0xf0] }
 0x365   :  { %3250 = vmatpush.bf16.msrb.mxu0 %v7746_v45  ;;  %3263 = vmatpush.bf16.msrb.mxu1 %v7874_v49  ;;  %v8006_v42 = vor.u32 %v9861_v36, %v8005_v3  ;;  %v9853_v45 = vld [vmem:[#allocation6 + $0x44c] sm:$0xf0]  ;;  %v9851_v3 = vld [vmem:[#allocation6 + $0x444] sm:$0xf]  ;;  %v7975_v36 = vld [vmem:[#allocation6 + $0x450] sm:$0xf0] }
 0x366   :  { %v7974_v49 = vor.u32 %v9853_v45, %v7973_v44  ;;  %v8229_v44 = vld [vmem:[#allocation6 + $0x640] sm:$0xf]  ;;  %v9917_v45 = vld [vmem:[#allocation6 + $0x64c] sm:$0xf0] }
 0x368   :  { %3225 = vmatpush.bf16.msra.mxu2 %v7474_v0  ;;  %3238 = vmatpush.bf16.msra.mxu3 %v7602_v48  ;;  %v9871_v0 = vld [vmem:[#allocation6 + $0x4e4] sm:$0xf]  ;;  %v8055_v48 = vld [vmem:[#allocation6 + $0x4f0] sm:$0xf0] }
 0x369   :  { %3251 = vmatpush.bf16.msrb.mxu0 %v7730_v55  ;;  %3264 = vmatpush.bf16.msrb.mxu1 %v7858_v56  ;;  %v8058_v54 = vor.u32 %v9871_v0, %v8055_v48  ;;  %v8117_v55 = vld [vmem:[#allocation6 + $0x560] sm:$0xf]  ;;  %v9889_v56 = vld [vmem:[#allocation6 + $0x56c] sm:$0xf0]  ;;  %v9843_v48 = vld [vmem:[#allocation6 + $0x404] sm:$0xf] }
 0x36a   :  { %v8118_v59 = vor.u32 %v9889_v56, %v8117_v55 }
 0x36c   :  { %3226 = vmatpush.bf16.msra.mxu2 %v7458_v9  ;;  %3239 = vmatpush.bf16.msra.mxu3 %v7586_v10  ;;  %v8042_v9 = vor.u32 %v9867_v62, %v8039_v63  ;;  %v8101_v10 = vld [vmem:[#allocation6 + $0x540] sm:$0xf]  ;;  %v9909_v63 = vld [vmem:[#allocation6 + $0x60c] sm:$0xf0] }
 0x36d   :  { %3252 = vmatpush.bf16.msrb.mxu0 %v7714_v7  ;;  %3265 = vmatpush.bf16.msrb.mxu1 %v7842_v27  ;;  %v8102_v26 = vor.u32 %v9885_v39, %v8101_v10  ;;  %v9933_v7 = vld [vmem:[#allocation6 + $0x6cc] sm:$0xf0]  ;;  %v9863_v27 = vld [vmem:[#allocation6 + $0x4a4] sm:$0xf]  ;;  %v8197_v62 = vld [vmem:[#allocation6 + $0x600] sm:$0xf] }
 0x36e   :  { %v8294_v6 = vor.u32 %v9933_v7, %v8293_v60  ;;  %v8026_v8 = vor.u32 %v9863_v27, %v8023_v11  ;;  %v9969_v10 = vld [vmem:[#allocation6 + $0x7ec] sm:$0xf0]  ;;  %v9887_v39 = vld [vmem:[#allocation6 + $0x564] sm:$0xf]  ;;  %v8119_v60 = vld [vmem:[#allocation6 + $0x570] sm:$0xf0] }
 0x36f   :  { %v8122_v7 = vor.u32 %v9887_v39, %v8119_v60  ;;  %v9935_v27 = vld [vmem:[#allocation6 + $0x6e4] sm:$0xf]  ;;  %v8311_v11 = vld [vmem:[#allocation6 + $0x6f0] sm:$0xf0] }
 0x370   :  { %3227 = vmatpush.bf16.msra.mxu2 %v7442_v28  ;;  %3240 = vmatpush.bf16.msra.mxu3 %v7570_v29  ;;  %v8007_v28 = vld [vmem:[#allocation6 + $0x490] sm:$0xf0]  ;;  %v8278_v29 = vor.u32 %v9929_v46, %v8277_v57  ;;  %v8314_v12 = vor.u32 %v9935_v27, %v8311_v11  ;;  %v8421_v57 = vld [vmem:[#allocation6 + $0x7c0] sm:$0xf]  ;;  %v9915_v11 = vld [vmem:[#allocation6 + $0x644] sm:$0xf] }
 0x371   :  { %3253 = vmatpush.bf16.msrb.mxu0 %v7698_v16  ;;  %3266 = vmatpush.bf16.msrb.mxu1 %v7826_v13  ;;  %v8010_v16 = vor.u32 %v9859_v2, %v8007_v28  ;;  %v8069_v13 = vld [vmem:[#allocation6 + $0x500] sm:$0xf]  ;;  %v9883_v2 = vld [vmem:[#allocation6 + $0x544] sm:$0xf]  ;;  %v8103_v28 = vld [vmem:[#allocation6 + $0x550] sm:$0xf0] }
 0x373   :  { %3228 = vmatmul.bf16.vlgmr.msra.gmra.mxu2 %v10708_v14  ;;  %3241 = vmatmul.bf16.vlgmr.msra.gmra.mxu3 %v10710_v17  ;;  %v9857_v14 = vld [vmem:[#allocation6 + $0x46c] sm:$0xf0] }
 0x374   :  { %4104 = vmatpush.bf16.msrb.mxu2 %v8054_v37  ;;  %4117 = vmatpush.bf16.msrb.mxu3 %v8182_v31  ;;  %v7990_v17 = vor.u32 %v9857_v14, %v7989_v43  ;;  %v9877_v37 = vld [vmem:[#allocation6 + $0x50c] sm:$0xf0]  ;;  %v7978_v43 = vor.u32 %v9851_v3, %v7975_v36  ;;  %v8167_v14 = vld [vmem:[#allocation6 + $0x5d0] sm:$0xf0] }
 0x375   :  { %3254 = vmatmul.bf16.vlgmr.msrb.gmra.mxu0 %v10712_v20  ;;  %3267 = vmatmul.bf16.vlgmr.msrb.gmra.mxu1 %v10714_v22  ;;  %v7957_v20 = vld [vmem:[#allocation6 + $0x420] sm:$0xf]  ;;  %v8070_v31 = vor.u32 %v9877_v37, %v8069_v13  ;;  %v8279_v3 = vld [vmem:[#allocation6 + $0x6b0] sm:$0xf0] }
 0x376   :  { %v7958_v22 = vor.u32 %v9849_v50, %v7957_v20  ;;  %4130 = vmatpush.bf16.msra.mxu0 %v8310_v5  ;;  %v9847_v20 = vld [vmem:[#allocation6 + $0x424] sm:$0xf]  ;;  %v7959_v50 = vld [vmem:[#allocation6 + $0x430] sm:$0xf0]  ;;  %v8437_v5 = vld [vmem:[#allocation6 + $0x7e0] sm:$0xf] }
 0x377   :  { %v7962_v51 = vor.u32 %v9847_v20, %v7959_v50  ;;  %v9875_v20 = vld [vmem:[#allocation6 + $0x504] sm:$0xf]  ;;  %v8071_v50 = vld [vmem:[#allocation6 + $0x510] sm:$0xf0] }
 0x378   :  { %4105 = vmatpush.bf16.msrb.mxu2 %v8038_v24  ;;  %4118 = vmatpush.bf16.msrb.mxu3 %v8166_v18  ;;  %v8262_v24 = vor.u32 %v9925_v33, %v8261_v30  ;;  %v9903_v18 = vld [vmem:[#allocation6 + $0x5e4] sm:$0xf]  ;;  %v8106_v30 = vor.u32 %v9883_v2, %v8103_v28  ;;  %v9874_v28 = vld [vmem:[#allocation6 + $0x4f4] sm:$0xf0] }
 0x379   :  { %v8186_v23 = vor.u32 %v9903_v18, %v8183_v1  ;;  %v9879_v18 = vld [vmem:[#allocation6 + $0x524] sm:$0xf]  ;;  %v8087_v1 = vld [vmem:[#allocation6 + $0x530] sm:$0xf0] }
 0x37a   :  { %4131 = vmatpush.bf16.msra.mxu0 %v8294_v6 }
 0x37c   :  { %4106 = vmatpush.bf16.msrb.mxu2 %v8022_v40  ;;  %4119 = vmatpush.bf16.msrb.mxu3 %v8150_v41  ;;  %v9921_v40 = vld [vmem:[#allocation6 + $0x66c] sm:$0xf0] }
 0x37d   :  { %v8246_v41 = vor.u32 %v9921_v40, %v8245_v21 }
 0x37e   :  { %4132 = vmatpush.bf16.msra.mxu0 %v8278_v29  ;;  %v9931_v29 = vld [vmem:[#allocation6 + $0x6c4] sm:$0xf] }
 0x380   :  { %4107 = vmatpush.bf16.msrb.mxu2 %v8006_v42  ;;  %4120 = vmatpush.bf16.msrb.mxu3 %v8134_v53  ;;  %v9899_v42 = vld [vmem:[#allocation6 + $0x5c4] sm:$0xf]  ;;  %v7943_v53 = vld [vmem:[#allocation6 + $0x410] sm:$0xf0] }
 0x381   :  { %v7946_v58 = vor.u32 %v9843_v48, %v7943_v53 }
 0x382   :  { %4133 = vmatpush.bf16.msra.mxu0 %v8262_v24  ;;  %v9961_v24 = vld [vmem:[#allocation6 + $0x7ac] sm:$0xf0] }
 0x384   :  { %4108 = vmatpush.bf16.msrb.mxu2 %v7990_v17  ;;  %4121 = vmatpush.bf16.msrb.mxu3 %v8118_v59  ;;  %v8170_v17 = vor.u32 %v9899_v42, %v8167_v14  ;;  %v8135_v59 = vld [vmem:[#allocation6 + $0x590] sm:$0xf0] }
 0x386   :  { %4134 = vmatpush.bf16.msra.mxu0 %v8246_v41  ;;  %v8090_v41 = vor.u32 %v9879_v18, %v8087_v1 }
 0x388   :  { %4109 = vmatpush.bf16.msrb.mxu2 %v7974_v49  ;;  %4122 = vmatpush.bf16.msrb.mxu3 %v8102_v26  ;;  %v8230_v49 = vor.u32 %v9917_v45, %v8229_v44  ;;  %v8438_v26 = vor.u32 %v9969_v10, %v8437_v5  ;;  %v8389_v44 = vld [vmem:[#allocation6 + $0x780] sm:$0xf]  ;;  %v9957_v45 = vld [vmem:[#allocation6 + $0x78c] sm:$0xf0] }
 0x38a   :  { %4135 = vmatpush.bf16.msra.mxu0 %v8230_v49  ;;  %4143 = vmatpush.bf16.msra.mxu1 %v8438_v26  ;;  %v8390_v49 = vor.u32 %v9957_v45, %v8389_v44  ;;  %v8357_v26 = vld [vmem:[#allocation6 + $0x740] sm:$0xf]  ;;  %v9907_v44 = vld [vmem:[#allocation6 + $0x604] sm:$0xf]  ;;  %v8199_v45 = vld [vmem:[#allocation6 + $0x610] sm:$0xf0] }
 0x38c   :  { %4110 = vmatpush.bf16.msrb.mxu2 %v7958_v22  ;;  %4123 = vmatpush.bf16.msrb.mxu3 %v8086_v15  ;;  %v9895_v22 = vld [vmem:[#allocation6 + $0x5a4] sm:$0xf]  ;;  %v9965_v15 = vld [vmem:[#allocation6 + $0x7cc] sm:$0xf0] }
 0x38d   :  { %v8154_v35 = vor.u32 %v9895_v22, %v8151_v19  ;;  %v8422_v46 = vor.u32 %v9965_v15, %v8421_v57  ;;  %v9923_v22 = vld [vmem:[#allocation6 + $0x684] sm:$0xf] }
 0x38f   :  { %4144 = vmatpush.bf16.msra.mxu1 %v8422_v46  ;;  %v8061_v46 = vld [vmem:[#allocation6 + $0x4e8] sm:$0xf] }
 0x390   :  { %4111 = vmatpush.bf16.msrb.mxu2 %v7942_v4  ;;  %4124 = vmatpush.bf16.msrb.mxu3 %v8070_v31  ;;  %v8213_v4 = vld [vmem:[#allocation6 + $0x620] sm:$0xf]  ;;  %v8295_v31 = vld [vmem:[#allocation6 + $0x6d0] sm:$0xf0]  ;;  %v8062_v1 = vor.u32 %v9874_v28, %v8061_v46 }
 0x391   :  { %v8214_v0 = vor.u32 %v9913_v52, %v8213_v4  ;;  %v8298_v33 = vor.u32 %v9931_v29, %v8295_v31  ;;  %v8074_v52 = vor.u32 %v9875_v20, %v8071_v50  ;;  %v8341_v29 = vld [vmem:[#allocation6 + $0x720] sm:$0xf]  ;;  %v9911_v31 = vld [vmem:[#allocation6 + $0x624] sm:$0xf] }
 0x393   :  { %4136 = vmatpush.bf16.msra.mxu0 %v8214_v0  ;;  %v8263_v0 = vld [vmem:[#allocation6 + $0x690] sm:$0xf0] }
 0x394   :  { %4156 = vmatpush.bf16.msra.mxu2 %v8058_v54  ;;  %4169 = vmatpush.bf16.msra.mxu3 %v8186_v23  ;;  %v9891_v54 = vld [vmem:[#allocation6 + $0x584] sm:$0xf]  ;;  %v8266_v48 = vor.u32 %v9923_v22, %v8263_v0  ;;  %v8202_v22 = vor.u32 %v9907_v44, %v8199_v45 }
 0x395   :  { %v8138_v61 = vor.u32 %v9891_v54, %v8135_v59  ;;  %v9927_v23 = vld [vmem:[#allocation6 + $0x6a4] sm:$0xf] }
 0x396   :  { %v9919_v59 = vld [vmem:[#allocation6 + $0x664] sm:$0xf] }
 0x398   :  { %4157 = vmatpush.bf16.msra.mxu2 %v8042_v9  ;;  %4170 = vmatpush.bf16.msra.mxu3 %v8170_v17  ;;  %v8198_v9 = vor.u32 %v9909_v63, %v8197_v62 }
 0x39a   :  { %4137 = vmatpush.bf16.msra.mxu0 %v8198_v9 }
 0x39c   :  { %4158 = vmatpush.bf16.msra.mxu2 %v8026_v8  ;;  %4171 = vmatpush.bf16.msra.mxu3 %v8154_v35 }
 0x39e   :  { %4182 = vmatpush.bf16.msrb.mxu0 %v8314_v12 }
 0x3a0   :  { %4159 = vmatpush.bf16.msra.mxu2 %v8010_v16  ;;  %4172 = vmatpush.bf16.msra.mxu3 %v8138_v61  ;;  %v8247_v61 = vld [vmem:[#allocation6 + $0x670] sm:$0xf0] }
 0x3a1   :  { %v8250_v5 = vor.u32 %v9919_v59, %v8247_v61  ;;  %v8013_v59 = vld [vmem:[#allocation6 + $0x488] sm:$0xf]  ;;  %v9862_v61 = vld [vmem:[#allocation6 + $0x494] sm:$0xf0] }
 0x3a2   :  { %4183 = vmatpush.bf16.msrb.mxu0 %v8298_v33  ;;  %v8215_v33 = vld [vmem:[#allocation6 + $0x630] sm:$0xf0] }
 0x3a4   :  { %4160 = vmatpush.bf16.msra.mxu2 %v7994_v32  ;;  %4173 = vmatpush.bf16.msra.mxu3 %v8122_v7  ;;  %v8406_v32 = vor.u32 %v9961_v24, %v8405_v34  ;;  %v9949_v7 = vld [vmem:[#allocation6 + $0x74c] sm:$0xf0]  ;;  %v8218_v24 = vor.u32 %v9911_v31, %v8215_v33 }
 0x3a5   :  { %v8358_v27 = vor.u32 %v9949_v7, %v8357_v26  ;;  %v9959_v26 = vld [vmem:[#allocation6 + $0x7a4] sm:$0xf]  ;;  %v8407_v7 = vld [vmem:[#allocation6 + $0x7b0] sm:$0xf0] }
 0x3a6   :  { %4145 = vmatpush.bf16.msra.mxu1 %v8406_v32 }
 0x3a8   :  { %4161 = vmatpush.bf16.msra.mxu2 %v7978_v43  ;;  %4174 = vmatpush.bf16.msra.mxu3 %v8106_v30  ;;  %v8282_v43 = vor.u32 %v9927_v23, %v8279_v3  ;;  %v8045_v23 = vld [vmem:[#allocation6 + $0x4c8] sm:$0xf] }
 0x3aa   :  { %4184 = vmatpush.bf16.msrb.mxu0 %v8282_v43  ;;  %4146 = vmatpush.bf16.msra.mxu1 %v8390_v49  ;;  %v8325_v43 = vld [vmem:[#allocation6 + $0x700] sm:$0xf] }
 0x3ac   :  { %4162 = vmatpush.bf16.msra.mxu2 %v7962_v51  ;;  %4175 = vmatpush.bf16.msra.mxu3 %v8090_v41 }
 0x3ae   :  { %4185 = vmatpush.bf16.msrb.mxu0 %v8266_v48 }
 0x3b0   :  { %v3099_v55 = vpop.f32.mrf.mxu0  ;;  %v3112_v56 = vpop.f32.mrf.mxu1  ;;  %4163 = vmatpush.bf16.msra.mxu2 %v7946_v58  ;;  %4176 = vmatpush.bf16.msra.mxu3 %v8074_v52 }
 0x3b2   :  { %4186 = vmatpush.bf16.msrb.mxu0 %v8250_v5 }
 0x3b5   :  { %v3073_v6 = vpop.f32.mrf.mxu2  ;;  %v3086_v8 = vpop.f32.mrf.mxu3 }
 0x3b6   :  { %v3087_v25 = vadd.f32 %v3086_v8, %v3073_v6  ;;  %v8231_v6 = vld [vmem:[#allocation6 + $0x650] sm:$0xf0] }
 0x3b7   :  { %v8234_v2 = vor.u32 %v9915_v11, %v8231_v6 }
 0x3b8   :  { %v3100_v16 = vadd.f32 %v3099_v55, %v3087_v25  ;;  %v3101_v13 = vpop.f32.mrf.mxu0  ;;  %v3114_v37 = vpop.f32.mrf.mxu1  ;;  %v8373_v55 = vld [vmem:[#allocation6 + $0x760] sm:$0xf] }
 0x3b9   :  { %4187 = vmatpush.bf16.msrb.mxu0 %v8234_v2 }
 0x3ba   :  { %v10732_v47 = vadd.f32 %v3112_v56, %v3100_v16  ;;  %v9953_v56 = vld [vmem:[#allocation6 + $0x76c] sm:$0xf0] }
 0x3bb   :  { %v8374_v58 = vor.u32 %v9953_v56, %v8373_v55  ;;  %v9945_v16 = vld [vmem:[#allocation6 + $0x72c] sm:$0xf0]  ;;  %v9963_v55 = vld [vmem:[#allocation6 + $0x7c4] sm:$0xf]  ;;  %v8423_v56 = vld [vmem:[#allocation6 + $0x7d0] sm:$0xf0] }
 0x3bc   :  { %v3400_v21 = vrot.slane %v10732_v47, 4  ;;  %v3424_v40 = vmul.f32 %v10732_v47, %v10732_v47  ;;  %v8342_v30 = vor.u32 %v9945_v16, %v8341_v29  ;;  %v8426_v5 = vor.u32 %v9963_v55, %v8423_v56  ;;  %v7949_v56 = vld [vmem:[#allocation6 + $0x408] sm:$0xf] }
 0x3bd   :  { %v3075_v36 = vpop.f32.mrf.mxu2  ;;  %v3088_v42 = vpop.f32.mrf.mxu3  ;;  %4147 = vmatpush.bf16.msra.mxu1 %v8374_v58  ;;  %4188 = vmatpush.bf16.msrb.mxu0 %v8218_v24  ;;  %v7981_v24 = vld [vmem:[#allocation6 + $0x448] sm:$0xf] }
 0x3be   :  { %v3401_v14 = vadd.f32 %v3400_v21, %v10732_v47  ;;  %v3428_v17 = vrot.slane %v3424_v40, 4  ;;  %v9870_v21 = vld [vmem:[#allocation6 + $0x4d4] sm:$0xf0] }
 0x3c0   :  { %v3402_v51 = vrot.slane %v3401_v14, 2  ;;  %v3429_v19 = vadd.f32 %v3428_v17, %v3424_v40  ;;  %v3151_v35 = vpop.f32.mrf.mxu0  ;;  %v3164_v4 = vpop.f32.mrf.mxu1  ;;  %v9941_v17 = vld [vmem:[#allocation6 + $0x70c] sm:$0xf0] }
 0x3c1   :  { %4148 = vmatpush.bf16.msra.mxu1 %v8358_v27  ;;  %v8326_v50 = vor.u32 %v9941_v17, %v8325_v43  ;;  %4189 = vmatpush.bf16.msrb.mxu0 %v8202_v22  ;;  %v9951_v43 = vld [vmem:[#allocation6 + $0x764] sm:$0xf]  ;;  %v8157_v22 = vld [vmem:[#allocation6 + $0x5a8] sm:$0xf] }
 0x3c2   :  { %v3403_v53 = vadd.f32 %v3402_v51, %v3401_v14  ;;  %v3430_v54 = vrot.slane %v3429_v19, 2  ;;  %v8046_v14 = vor.u32 %v9870_v21, %v8045_v23  ;;  %v9967_v51 = vld [vmem:[#allocation6 + $0x7e4] sm:$0xf]  ;;  %v9902_v23 = vld [vmem:[#allocation6 + $0x5d4] sm:$0xf0] }
 0x3c4   :  { %v3404_v62 = vrot.slane %v3403_v53, 1  ;;  %v3431_v63 = vadd.f32 %v3430_v54, %v3429_v19  ;;  %v8439_v19 = vld [vmem:[#allocation6 + $0x7f0] sm:$0xf0] }
 0x3c5   :  { %v3125_v9 = vpop.f32.mrf.mxu2  ;;  %v3138_v10 = vpop.f32.mrf.mxu3  ;;  %4149 = vmatpush.bf16.msra.mxu1 %v8342_v30  ;;  %v8442_v52 = vor.u32 %v9967_v51, %v8439_v19  ;;  %v8391_v30 = vld [vmem:[#allocation6 + $0x790] sm:$0xf0]  ;;  %v9898_v51 = vld [vmem:[#allocation6 + $0x5b4] sm:$0xf0] }
 0x3c6   :  { %v3139_v39 = vadd.f32 %v3138_v10, %v3125_v9  ;;  %v3432_v60 = vrot.slane %v3431_v63, 1  ;;  %v3405_v57 = vadd.f32 %v3404_v62, %v3403_v53  ;;  %v8158_v55 = vor.u32 %v9898_v51, %v8157_v22  ;;  %v8015_v22 = vld [vmem:[#allocation6 + $0x498] sm:$0xf0]  ;;  %v8285_v51 = vld [vmem:[#allocation6 + $0x6a8] sm:$0xf] }
 0x3c8   :  { %v3152_v8 = vadd.f32 %v3151_v35, %v3139_v39  ;;  %v3153_v12 = vpop.f32.mrf.mxu0  ;;  %v3166_v25 = vpop.f32.mrf.mxu1  ;;  %v3433_v15 = vadd.f32 %v3432_v60, %v3431_v63  ;;  %v8029_v35 = vld [vmem:[#allocation6 + $0x4a8] sm:$0xf]  ;;  %v8014_v60 = vor.u32 %v9862_v61, %v8013_v59  ;;  %v9894_v61 = vld [vmem:[#allocation6 + $0x594] sm:$0xf0] }
 0x3c9   :  { %4150 = vmatpush.bf16.msra.mxu1 %v8326_v50  ;;  %v8410_v12 = vor.u32 %v9959_v26, %v8407_v7  ;;  %v9858_v25 = vld [vmem:[#allocation6 + $0x474] sm:$0xf0]  ;;  %v8141_v59 = vld [vmem:[#allocation6 + $0x588] sm:$0xf] }
 0x3ca   :  { %v10738_v13 = vadd.f32 %v3164_v4, %v3152_v8  ;;  %v3452_v37 = vsel %vm273_vm0, %v3405_v57, %v3433_v15  ;;  %v9866_v4 = vld [vmem:[#allocation6 + $0x4b4] sm:$0xf0]  ;;  %v7997_v8 = vld [vmem:[#allocation6 + $0x468] sm:$0xf] }
 0x3cb   :  { %v3456_v34 = vmul.f32 0.001953125, %v3452_v37  ;;  %v8030_v58 = vor.u32 %v9866_v4, %v8029_v35  ;;  %v8189_v57 = vld [vmem:[#allocation6 + $0x5e8] sm:$0xf]  ;;  %v9906_v15 = vld [vmem:[#allocation6 + $0x5f4] sm:$0xf0]  ;;  %v7998_v33 = vor.u32 %v9858_v25, %v7997_v8 }
 0x3cc   :  { %v3406_v32 = vrot.slane %v10738_v13, 4  ;;  %v3425_v18 = vmul.f32 %v10738_v13, %v10738_v13  ;;  %v9955_v37 = vld [vmem:[#allocation6 + $0x784] sm:$0xf]  ;;  %v9850_v50 = vld [vmem:[#allocation6 + $0x434] sm:$0xf0] }
 0x3cd   :  { %v3127_v40 = vpop.f32.mrf.mxu2  ;;  %v3140_v41 = vpop.f32.mrf.mxu3  ;;  %v10745_v3 = vpack.c.bf16 %v3456_v34, %v3456_v34  ;;  %4195 = vmatpush.bf16.msrb.mxu1 %v8442_v52  ;;  %v8190_v34 = vor.u32 %v9906_v15, %v8189_v57  ;;  %v8394_v21 = vor.u32 %v9955_v37, %v8391_v30  ;;  %v9947_v52 = vld [vmem:[#allocation6 + $0x744] sm:$0xf]  ;;  %v9890_v8 = vld [vmem:[#allocation6 + $0x574] sm:$0xf0]  ;;  %v8317_v15 = vld [vmem:[#allocation6 + $0x6e8] sm:$0xf] }
 0x3ce   :  { %v3407_v36 = vadd.f32 %v3406_v32, %v10738_v13  ;;  %v3434_v42 = vrot.slane %v3425_v18, 4 }
 0x3cf   :  { %4112 = vmatmul.bf16.vlgmr.msrb.gmra.mxu2 %v10745_v3 }
 0x3d0   :  { %v3408_v49 = vrot.slane %v3407_v36, 2  ;;  %v3435_v20 = vadd.f32 %v3434_v42, %v3425_v18  ;;  %4208 = vmatpush.bf16.msrb.mxu2 %v8062_v1  ;;  %v9854_v18 = vld [vmem:[#allocation6 + $0x454] sm:$0xf0]  ;;  %v8173_v1 = vld [vmem:[#allocation6 + $0x5c8] sm:$0xf] }
 0x3d1   :  { %4196 = vmatpush.bf16.msrb.mxu1 %v8426_v5  ;;  %v7982_v45 = vor.u32 %v9854_v18, %v7981_v24  ;;  %v8109_v24 = vld [vmem:[#allocation6 + $0x548] sm:$0xf]  ;;  %v9886_v18 = vld [vmem:[#allocation6 + $0x554] sm:$0xf0] }
 0x3d2   :  { %v3409_v0 = vadd.f32 %v3408_v49, %v3407_v36  ;;  %v3436_v48 = vrot.slane %v3435_v20, 2  ;;  %v8174_v49 = vor.u32 %v9902_v23, %v8173_v1  ;;  %v9864_v23 = vld [vmem:[#allocation6 + $0x4ac] sm:$0xf] }
 0x3d3   :  { %v3203_v53 = vpop.f32.mrf.mxu0  ;;  %v3216_v54 = vpop.f32.mrf.mxu1 }
 0x3d4   :  { %4209 = vmatpush.bf16.msrb.mxu2 %v8046_v14  ;;  %v3410_v62 = vrot.slane %v3409_v0, 1  ;;  %v3437_v63 = vadd.f32 %v3436_v48, %v3435_v20  ;;  %v8375_v14 = vld [vmem:[#allocation6 + $0x770] sm:$0xf0]  ;;  %v7965_v20 = vld [vmem:[#allocation6 + $0x428] sm:$0xf] }
 0x3d5   :  { %4197 = vmatpush.bf16.msrb.mxu1 %v8410_v12  ;;  %v8378_v19 = vor.u32 %v9951_v43, %v8375_v14  ;;  %v8301_v43 = vld [vmem:[#allocation6 + $0x6c8] sm:$0xf]  ;;  %v9934_v14 = vld [vmem:[#allocation6 + $0x6d4] sm:$0xf0] }
 0x3d6   :  { %v3438_v9 = vrot.slane %v3437_v63, 1  ;;  %v3177_v10 = vpop.f32.mrf.mxu2  ;;  %v3190_v39 = vpop.f32.mrf.mxu3  ;;  %v3411_v11 = vadd.f32 %v3410_v62, %v3409_v0  ;;  %v8359_v0 = vld [vmem:[#allocation6 + $0x750] sm:$0xf0]  ;;  %v9872_v62 = vld [vmem:[#allocation6 + $0x4ec] sm:$0xf] }
 0x3d7   :  { %v3191_v27 = vadd.f32 %v3190_v39, %v3177_v10  ;;  %v8063_v10 = vld [vmem:[#allocation6 + $0x4f8] sm:$0xf0]  ;;  %v9943_v39 = vld [vmem:[#allocation6 + $0x724] sm:$0xf] }
 0x3d8   :  { %4210 = vmatpush.bf16.msrb.mxu2 %v8030_v58  ;;  %v3439_v6 = vadd.f32 %v3438_v9, %v3437_v63  ;;  %v9846_v58 = vld [vmem:[#allocation6 + $0x414] sm:$0xf0]  ;;  %v8362_v63 = vor.u32 %v9947_v52, %v8359_v0 }
 0x3d9   :  { %v3204_v46 = vadd.f32 %v3203_v53, %v3191_v27  ;;  %4198 = vmatpush.bf16.msrb.mxu1 %v8394_v21  ;;  %v7950_v7 = vor.u32 %v9846_v58, %v7949_v56  ;;  %v8142_v27 = vor.u32 %v9894_v61, %v8141_v59  ;;  %v8031_v21 = vld [vmem:[#allocation6 + $0x4b8] sm:$0xf0]  ;;  %v9904_v59 = vld [vmem:[#allocation6 + $0x5ec] sm:$0xf] }
 0x3da   :  { %v3453_v29 = vsel %vm273_vm0, %v3411_v11, %v3439_v6  ;;  %v8066_v11 = vor.u32 %v9872_v62, %v8063_v10  ;;  %v8125_v6 = vld [vmem:[#allocation6 + $0x568] sm:$0xf]  ;;  %v7999_v58 = vld [vmem:[#allocation6 + $0x478] sm:$0xf0]  ;;  %v9926_v10 = vld [vmem:[#allocation6 + $0x694] sm:$0xf0] }
 0x3db   :  { %v3205_v2 = vpop.f32.mrf.mxu0  ;;  %v3218_v28 = vpop.f32.mrf.mxu1  ;;  %v3457_v16 = vmul.f32 0.001953125, %v3453_v29  ;;  %v10751_v31 = vadd.f32 %v3216_v54, %v3204_v46  ;;  %v7966_v54 = vor.u32 %v9850_v50, %v7965_v20  ;;  %v9868_v46 = vld [vmem:[#allocation6 + $0x4cc] sm:$0xf]  ;;  %v9939_v29 = vld [vmem:[#allocation6 + $0x704] sm:$0xf]  ;;  %v8126_v30 = vor.u32 %v9890_v8, %v8125_v6 }
 0x3dc   :  { %4211 = vmatpush.bf16.msrb.mxu2 %v8014_v60  ;;  %v8343_v60 = vld [vmem:[#allocation6 + $0x730] sm:$0xf0]  ;;  %v8047_v2 = vld [vmem:[#allocation6 + $0x4d8] sm:$0xf0]  ;;  %v9938_v28 = vld [vmem:[#allocation6 + $0x6f4] sm:$0xf0]  ;;  %v8302_v20 = vor.u32 %v9934_v14, %v8301_v43 }
 0x3dd   :  { %v10753_v32 = vpack.c.bf16 %v3457_v16, %v3457_v16  ;;  %v3412_v40 = vrot.slane %v10751_v31, 4  ;;  %v3426_v41 = vmul.f32 %v10751_v31, %v10751_v31  ;;  %4199 = vmatpush.bf16.msrb.mxu1 %v8378_v19  ;;  %v8346_v12 = vor.u32 %v9943_v39, %v8343_v60  ;;  %v8327_v16 = vld [vmem:[#allocation6 + $0x710] sm:$0xf0]  ;;  %v9860_v50 = vld [vmem:[#allocation6 + $0x48c] sm:$0xf] }
 0x3de   :  { %v3179_v36 = vpop.f32.mrf.mxu2  ;;  %v3192_v42 = vpop.f32.mrf.mxu3  ;;  %v8318_v1 = vor.u32 %v9938_v28, %v8317_v15  ;;  %v9930_v19 = vld [vmem:[#allocation6 + $0x6b4] sm:$0xf0]  ;;  %v8191_v61 = vld [vmem:[#allocation6 + $0x5f8] sm:$0xf0]  ;;  %v9852_v8 = vld [vmem:[#allocation6 + $0x44c] sm:$0xf] }
 0x3df   :  { %4125 = vmatmul.bf16.vlgmr.msrb.gmra.mxu3 %v10753_v32  ;;  %4164 = vmatmul.bf16.vlgmr.msra.gmra.mxu2 %v10745_v3  ;;  %v3413_v17 = vadd.f32 %v3412_v40, %v10751_v31  ;;  %v3440_v44 = vrot.slane %v3426_v41, 4  ;;  %v8330_v40 = vor.u32 %v9939_v29, %v8327_v16  ;;  %v8286_v56 = vor.u32 %v9930_v19, %v8285_v51  ;;  %v9922_v6 = vld [vmem:[#allocation6 + $0x674] sm:$0xf0]  ;;  %v9900_v15 = vld [vmem:[#allocation6 + $0x5cc] sm:$0xf] }
 0x3e0   :  { %4212 = vmatpush.bf16.msrb.mxu2 %v7998_v33  ;;  %4221 = vmatpush.bf16.msrb.mxu3 %v8190_v34  ;;  %v8050_v34 = vor.u32 %v9868_v46, %v8047_v2  ;;  %v8175_v46 = vld [vmem:[#allocation6 + $0x5d8] sm:$0xf0]  ;;  %v9892_v19 = vld [vmem:[#allocation6 + $0x58c] sm:$0xf] }
 0x3e1   :  { %v3414_v35 = vrot.slane %v3413_v17, 2  ;;  %v3441_v4 = vadd.f32 %v3440_v44, %v3426_v41  ;;  %4200 = vmatpush.bf16.msrb.mxu1 %v8362_v63  ;;  %v8034_v44 = vor.u32 %v9864_v23, %v8031_v21 }
 0x3e3   :  { %v3415_v48 = vadd.f32 %v3414_v35, %v3413_v17  ;;  %v3442_v53 = vrot.slane %v3441_v4, 2  ;;  %v8110_v17 = vor.u32 %v9886_v18, %v8109_v24  ;;  %v9918_v24 = vld [vmem:[#allocation6 + $0x654] sm:$0xf0]  ;;  %v9848_v18 = vld [vmem:[#allocation6 + $0x42c] sm:$0xf] }
 0x3e4   :  { %4213 = vmatpush.bf16.msrb.mxu2 %v7982_v45  ;;  %4222 = vmatpush.bf16.msrb.mxu3 %v8174_v49  ;;  %v8093_v45 = vld [vmem:[#allocation6 + $0x528] sm:$0xf]  ;;  %v9882_v49 = vld [vmem:[#allocation6 + $0x534] sm:$0xf0] }
 0x3e5   :  { %v3416_v5 = vrot.slane %v3415_v48, 1  ;;  %v3443_v9 = vadd.f32 %v3442_v53, %v3441_v4  ;;  %4201 = vmatpush.bf16.msrb.mxu1 %v8346_v12  ;;  %v8094_v52 = vor.u32 %v9882_v49, %v8093_v45  ;;  %v8077_v53 = vld [vmem:[#allocation6 + $0x508] sm:$0xf]  ;;  %v7983_v12 = vld [vmem:[#allocation6 + $0x458] sm:$0xf0] }
 0x3e6   :  { %v9914_v49 = vld [vmem:[#allocation6 + $0x634] sm:$0xf0] }
 0x3e7   :  { %v3444_v26 = vrot.slane %v3443_v9, 1  ;;  %v3417_v25 = vadd.f32 %v3416_v5, %v3415_v48  ;;  %v8018_v48 = vor.u32 %v9860_v50, %v8015_v22  ;;  %v7951_v50 = vld [vmem:[#allocation6 + $0x418] sm:$0xf0] }
 0x3e8   :  { %4214 = vmatpush.bf16.msrb.mxu2 %v7966_v54  ;;  %4223 = vmatpush.bf16.msrb.mxu3 %v8158_v55  ;;  %v9878_v54 = vld [vmem:[#allocation6 + $0x514] sm:$0xf0]  ;;  %v9856_v55 = vld [vmem:[#allocation6 + $0x46c] sm:$0xf] }
 0x3e9   :  { %v3445_v57 = vadd.f32 %v3444_v26, %v3443_v9  ;;  %4202 = vmatpush.bf16.msrb.mxu1 %v8330_v40  ;;  %v8269_v9 = vld [vmem:[#allocation6 + $0x688] sm:$0xf]  ;;  %v8078_v39 = vor.u32 %v9878_v54, %v8077_v53  ;;  %v8002_v26 = vor.u32 %v9856_v55, %v7999_v58  ;;  %v9896_v40 = vld [vmem:[#allocation6 + $0x5ac] sm:$0xf] }
 0x3ea   :  { %v8205_v55 = vld [vmem:[#allocation6 + $0x608] sm:$0xf] }
 0x3eb   :  { %v3454_v37 = vsel %vm273_vm0, %v3417_v25, %v3445_v57  ;;  %v8445_v58 = vld [vmem:[#allocation6 + $0x7e8] sm:$0xf] }
 0x3ec   :  { %4215 = vmatpush.bf16.msrb.mxu2 %v7950_v7  ;;  %4224 = vmatpush.bf16.msrb.mxu3 %v8142_v27  ;;  %v3458_v33 = vmul.f32 0.001953125, %v3454_v37  ;;  %v8194_v7 = vor.u32 %v9904_v59, %v8191_v61  ;;  %v8253_v27 = vld [vmem:[#allocation6 + $0x668] sm:$0xf]  ;;  %v7986_v37 = vor.u32 %v9852_v8, %v7983_v12  ;;  %v9970_v59 = vld [vmem:[#allocation6 + $0x7f4] sm:$0xf0] }
 0x3ed   :  { %v9888_v61 = vld [vmem:[#allocation6 + $0x56c] sm:$0xf]  ;;  %v9966_v8 = vld [vmem:[#allocation6 + $0x7d4] sm:$0xf0] }
 0x3ee   :  { %v10763_v42 = vpack.c.bf16 %v3458_v33, %v3458_v33  ;;  %v8254_v33 = vor.u32 %v9922_v6, %v8253_v27  ;;  %v8429_v27 = vld [vmem:[#allocation6 + $0x7c8] sm:$0xf]  ;;  %v9884_v12 = vld [vmem:[#allocation6 + $0x54c] sm:$0xf] }
 0x3ef   :  { %4177 = vmatmul.bf16.vlgmr.msra.gmra.mxu3 %v10753_v32  ;;  %4216 = vmatmul.bf16.vlgmr.msrb.gmra.mxu2 %v10745_v3 }
 0x3f0   :  { %4260 = vmatpush.bf16.msra.mxu2 %v8066_v11  ;;  %4225 = vmatpush.bf16.msrb.mxu3 %v8126_v30  ;;  %v8270_v11 = vor.u32 %v9926_v10, %v8269_v9  ;;  %v8237_v30 = vld [vmem:[#allocation6 + $0x648] sm:$0xf]  ;;  %v8319_v9 = vld [vmem:[#allocation6 + $0x6f8] sm:$0xf0] }
 0x3f1   :  { %4138 = vmatmul.bf16.vlgmr.msra.gmra.mxu0 %v10763_v42 }
 0x3f2   :  { %v3255_v41 = vpop.f32.mrf.mxu0  ;;  %v3268_v36 = vpop.f32.mrf.mxu1  ;;  %4234 = vmatpush.bf16.msra.mxu0 %v8318_v1  ;;  %v7967_v1 = vld [vmem:[#allocation6 + $0x438] sm:$0xf0] }
 0x3f3   :  { %v7970_v14 = vor.u32 %v9848_v18, %v7967_v1  ;;  %v8397_v18 = vld [vmem:[#allocation6 + $0x788] sm:$0xf] }
 0x3f4   :  { %4261 = vmatpush.bf16.msra.mxu2 %v8050_v34  ;;  %4226 = vmatpush.bf16.msrb.mxu3 %v8110_v17  ;;  %v8178_v34 = vor.u32 %v9900_v15, %v8175_v46  ;;  %v8221_v17 = vld [vmem:[#allocation6 + $0x628] sm:$0xf]  ;;  %v8303_v15 = vld [vmem:[#allocation6 + $0x6d8] sm:$0xf0]  ;;  %v8430_v46 = vor.u32 %v9966_v8, %v8429_v27 }
 0x3f5   :  { %v8415_v8 = vld [vmem:[#allocation6 + $0x7b8] sm:$0xf0] }
 0x3f6   :  { %v3229_v35 = vpop.f32.mrf.mxu2  ;;  %v3242_v4 = vpop.f32.mrf.mxu3  ;;  %4235 = vmatpush.bf16.msra.mxu0 %v8302_v20  ;;  %v9844_v20 = vld [vmem:[#allocation6 + $0x40c] sm:$0xf] }
 0x3f7   :  { %v3243_v0 = vadd.f32 %v3242_v4, %v3229_v35  ;;  %v8143_v35 = vld [vmem:[#allocation6 + $0x598] sm:$0xf0] }
 0x3f8   :  { %4262 = vmatpush.bf16.msra.mxu2 %v8034_v44  ;;  %4227 = vmatpush.bf16.msrb.mxu3 %v8094_v52  ;;  %v8238_v44 = vor.u32 %v9918_v24, %v8237_v30  ;;  %v7954_v52 = vor.u32 %v9844_v20, %v7951_v50  ;;  %v8095_v30 = vld [vmem:[#allocation6 + $0x538] sm:$0xf0] }
 0x3f9   :  { %v3256_v62 = vadd.f32 %v3255_v41, %v3243_v0  ;;  %v8159_v41 = vld [vmem:[#allocation6 + $0x5b8] sm:$0xf0]  ;;  %v8222_v0 = vor.u32 %v9914_v49, %v8221_v17  ;;  %v9920_v49 = vld [vmem:[#allocation6 + $0x66c] sm:$0xf] }
 0x3fa   :  { %v3257_v63 = vpop.f32.mrf.mxu0  ;;  %v3270_v5 = vpop.f32.mrf.mxu1  ;;  %4236 = vmatpush.bf16.msra.mxu0 %v8286_v56  ;;  %v8162_v45 = vor.u32 %v9896_v40, %v8159_v41  ;;  %v9910_v56 = vld [vmem:[#allocation6 + $0x614] sm:$0xf0]  ;;  %v8079_v40 = vld [vmem:[#allocation6 + $0x518] sm:$0xf0]  ;;  %v9924_v41 = vld [vmem:[#allocation6 + $0x68c] sm:$0xf] }
 0x3fb   :  { %v10768_v60 = vadd.f32 %v3268_v36, %v3256_v62  ;;  %v8127_v62 = vld [vmem:[#allocation6 + $0x578] sm:$0xf0]  ;;  %v9936_v5 = vld [vmem:[#allocation6 + $0x6ec] sm:$0xf] }
 0x3fc   :  { %4263 = vmatpush.bf16.msra.mxu2 %v8018_v48  ;;  %4228 = vmatpush.bf16.msrb.mxu3 %v8078_v39  ;;  %v8146_v48 = vor.u32 %v9892_v19, %v8143_v35  ;;  %v8206_v39 = vor.u32 %v9910_v56, %v8205_v55  ;;  %v8322_v6 = vor.u32 %v9936_v5, %v8319_v9  ;;  %v8255_v20 = vld [vmem:[#allocation6 + $0x678] sm:$0xf0]  ;;  %v9950_v19 = vld [vmem:[#allocation6 + $0x754] sm:$0xf0]  ;;  %v9916_v35 = vld [vmem:[#allocation6 + $0x64c] sm:$0xf] }
 0x3fd   :  { %v3418_v25 = vrot.slane %v10768_v60, 4  ;;  %v3427_v57 = vmul.f32 %v10768_v60, %v10768_v60  ;;  %v8223_v55 = vld [vmem:[#allocation6 + $0x638] sm:$0xf0]  ;;  %v9968_v5 = vld [vmem:[#allocation6 + $0x7ec] sm:$0xf] }
 0x3fe   :  { %v3231_v2 = vpop.f32.mrf.mxu2  ;;  %v3244_v28 = vpop.f32.mrf.mxu3  ;;  %4237 = vmatpush.bf16.msra.mxu0 %v8270_v11  ;;  %v8447_v9 = vld [vmem:[#allocation6 + $0x7f8] sm:$0xf0] }
 0x3ff   :  { %v3419_v29 = vadd.f32 %v3418_v25, %v10768_v60  ;;  %v3446_v16 = vrot.slane %v3427_v57, 4  ;;  %4229 = vmatmul.bf16.vlgmr.msrb.gmra.mxu3 %v10753_v32  ;;  %v8111_v25 = vld [vmem:[#allocation6 + $0x558] sm:$0xf0]  ;;  %v8413_v28 = vld [vmem:[#allocation6 + $0x7a8] sm:$0xf] }
 0x400   :  { %4264 = vmatpush.bf16.msra.mxu2 %v8002_v26  ;;  %4273 = vmatpush.bf16.msra.mxu3 %v8194_v7  ;;  %v8446_v26 = vor.u32 %v9970_v59, %v8445_v58  ;;  %v8130_v7 = vor.u32 %v9888_v61, %v8127_v62  ;;  %v8114_v2 = vor.u32 %v9884_v12, %v8111_v25  ;;  %v8333_v59 = vld [vmem:[#allocation6 + $0x708] sm:$0xf]  ;;  %v9942_v61 = vld [vmem:[#allocation6 + $0x714] sm:$0xf0]  ;;  %v9908_v62 = vld [vmem:[#allocation6 + $0x60c] sm:$0xf] }
 0x401   :  { %v3420_v23 = vrot.slane %v3419_v29, 2  ;;  %v3447_v21 = vadd.f32 %v3446_v16, %v3427_v57  ;;  %4190 = vmatmul.bf16.vlgmr.msrb.gmra.mxu0 %v10763_v42  ;;  %v9932_v57 = vld [vmem:[#allocation6 + $0x6cc] sm:$0xf]  ;;  %v9962_v16 = vld [vmem:[#allocation6 + $0x7b4] sm:$0xf0] }
 0x402   :  { %4238 = vmatpush.bf16.msra.mxu0 %v8254_v33  ;;  %v8287_v33 = vld [vmem:[#allocation6 + $0x6b8] sm:$0xf0]  ;;  %v9956_v25 = vld [vmem:[#allocation6 + $0x78c] sm:$0xf] }
 0x403   :  { %v3421_v36 = vadd.f32 %v3420_v23, %v3419_v29  ;;  %v3448_v43 = vrot.slane %v3447_v21, 2  ;;  %v8306_v29 = vor.u32 %v9932_v57, %v8303_v15  ;;  %v9958_v23 = vld [vmem:[#allocation6 + $0x794] sm:$0xf0]  ;;  %v8399_v57 = vld [vmem:[#allocation6 + $0x798] sm:$0xf0] }
 0x404   :  { %4265 = vmatpush.bf16.msra.mxu2 %v7986_v37  ;;  %4274 = vmatpush.bf16.msra.mxu3 %v8178_v34  ;;  %v9880_v37 = vld [vmem:[#allocation6 + $0x52c] sm:$0xf]  ;;  %v8414_v34 = vor.u32 %v9962_v16, %v8413_v28  ;;  %v8402_v15 = vor.u32 %v9956_v25, %v8399_v57  ;;  %v8367_v16 = vld [vmem:[#allocation6 + $0x758] sm:$0xf0] }
 0x405   :  { %v3422_v22 = vrot.slane %v3421_v36, 1  ;;  %v3449_v51 = vadd.f32 %v3448_v43, %v3447_v21  ;;  %v8098_v24 = vor.u32 %v9880_v37, %v8095_v30  ;;  %v9876_v21 = vld [vmem:[#allocation6 + $0x50c] sm:$0xf]  ;;  %v8398_v43 = vor.u32 %v9958_v23, %v8397_v18 }
 0x406   :  { %4239 = vmatpush.bf16.msra.mxu0 %v8238_v44  ;;  %v8381_v44 = vld [vmem:[#allocation6 + $0x768] sm:$0xf]  ;;  %v9944_v30 = vld [vmem:[#allocation6 + $0x72c] sm:$0xf] }
 0x407   :  { %v3450_v4 = vrot.slane %v3449_v51, 1  ;;  %v3423_v53 = vadd.f32 %v3422_v22, %v3421_v36  ;;  %v8271_v36 = vld [vmem:[#allocation6 + $0x698] sm:$0xf0]  ;;  %v8258_v22 = vor.u32 %v9920_v49, %v8255_v20 }
 0x408   :  { %4266 = vmatpush.bf16.msra.mxu2 %v7970_v14  ;;  %4275 = vmatpush.bf16.msra.mxu3 %v8162_v45  ;;  %v8082_v14 = vor.u32 %v9876_v21, %v8079_v40  ;;  %v8274_v17 = vor.u32 %v9924_v41, %v8271_v36  ;;  %v9954_v45 = vld [vmem:[#allocation6 + $0x774] sm:$0xf0] }
 0x409   :  { %v3451_v54 = vadd.f32 %v3450_v4, %v3449_v51  ;;  %v8382_v50 = vor.u32 %v9954_v45, %v8381_v44  ;;  %v8365_v51 = vld [vmem:[#allocation6 + $0x748] sm:$0xf]  ;;  %v8239_v4 = vld [vmem:[#allocation6 + $0x658] sm:$0xf0] }
 0x40a   :  { %4240 = vmatpush.bf16.msra.mxu0 %v8222_v0  ;;  %v8242_v0 = vor.u32 %v9916_v35, %v8239_v4 }
 0x40b   :  { %v3455_v63 = vsel %vm273_vm0, %v3423_v53, %v3451_v54  ;;  %v9946_v53 = vld [vmem:[#allocation6 + $0x734] sm:$0xf0]  ;;  %v9912_v54 = vld [vmem:[#allocation6 + $0x62c] sm:$0xf] }
 0x40c   :  { %4267 = vmatpush.bf16.msra.mxu2 %v7954_v52  ;;  %4276 = vmatpush.bf16.msra.mxu3 %v8146_v48  ;;  %v3459_v10 = vmul.f32 0.001953125, %v3455_v63  ;;  %v8366_v52 = vor.u32 %v9950_v19, %v8365_v51  ;;  %v8349_v48 = vld [vmem:[#allocation6 + $0x728] sm:$0xf]  ;;  %v8226_v58 = vor.u32 %v9912_v54, %v8223_v55  ;;  %v8207_v63 = vld [vmem:[#allocation6 + $0x618] sm:$0xf0] }
 0x40d   :  { %v8350_v56 = vor.u32 %v9946_v53, %v8349_v48 }
 0x40e   :  { %v10778_v11 = vpack.c.bf16 %v3459_v10, %v3459_v10  ;;  %4241 = vmatpush.bf16.msra.mxu0 %v8206_v39  ;;  %v8210_v10 = vor.u32 %v9908_v62, %v8207_v63  ;;  %v8450_v39 = vor.u32 %v9968_v5, %v8447_v9 }
 0x40f   :  { %4268 = vmatmul.bf16.vlgmr.msra.gmra.mxu2 %v10745_v3  ;;  %v9928_v3 = vld [vmem:[#allocation6 + $0x6ac] sm:$0xf] }
 0x410   :  { %4151 = vmatmul.bf16.vlgmr.msra.gmra.mxu1 %v10778_v11  ;;  %4277 = vmatpush.bf16.msra.mxu3 %v8130_v7  ;;  %v8290_v1 = vor.u32 %v9928_v3, %v8287_v33  ;;  %v8431_v7 = vld [vmem:[#allocation6 + $0x7d8] sm:$0xf0] }
 0x411   :  { %4247 = vmatpush.bf16.msra.mxu1 %v8446_v26  ;;  %4242 = vmatmul.bf16.vlgmr.msra.gmra.mxu0 %v10763_v42  ;;  %v9964_v26 = vld [vmem:[#allocation6 + $0x7cc] sm:$0xf]  ;;  %v8351_v3 = vld [vmem:[#allocation6 + $0x738] sm:$0xf0] }
 0x412   :  { %4286 = vmatpush.bf16.msrb.mxu0 %v8322_v6  ;;  %v8434_v27 = vor.u32 %v9964_v26, %v8431_v7  ;;  %v9960_v6 = vld [vmem:[#allocation6 + $0x7ac] sm:$0xf]  ;;  %v8354_v33 = vor.u32 %v9944_v30, %v8351_v3 }
 0x413   :  { %v8418_v12 = vor.u32 %v9960_v6, %v8415_v8 }
 0x414   :  { %4278 = vmatpush.bf16.msra.mxu3 %v8114_v2  ;;  %v8383_v2 = vld [vmem:[#allocation6 + $0x778] sm:$0xf0] }
 0x415   :  { %4248 = vmatpush.bf16.msra.mxu1 %v8430_v46  ;;  %v9952_v46 = vld [vmem:[#allocation6 + $0x76c] sm:$0xf] }
 0x416   :  { %4287 = vmatpush.bf16.msrb.mxu0 %v8306_v29  ;;  %v8386_v28 = vor.u32 %v9952_v46, %v8383_v2  ;;  %v9948_v29 = vld [vmem:[#allocation6 + $0x74c] sm:$0xf] }
 0x417   :  { %v8370_v37 = vor.u32 %v9948_v29, %v8367_v16 }
 0x418   :  { %4279 = vmatpush.bf16.msra.mxu3 %v8098_v24 }
 0x419   :  { %4249 = vmatpush.bf16.msra.mxu1 %v8414_v34  ;;  %v9940_v34 = vld [vmem:[#allocation6 + $0x70c] sm:$0xf] }
 0x41a   :  { %4288 = vmatpush.bf16.msrb.mxu0 %v8290_v1 }
 0x41c   :  { %4280 = vmatpush.bf16.msra.mxu3 %v8082_v14 }
 0x41d   :  { %4250 = vmatpush.bf16.msra.mxu1 %v8398_v43 }
 0x41e   :  { %4289 = vmatpush.bf16.msrb.mxu0 %v8274_v17 }
 0x41f   :  { %4281 = vmatmul.bf16.vlgmr.msra.gmra.mxu3 %v10753_v32  ;;  %v8334_v32 = vor.u32 %v9942_v61, %v8333_v59 }
 0x420   :  { %4203 = vmatmul.bf16.vlgmr.msrb.gmra.mxu1 %v10778_v11 }
 0x421   :  { %4251 = vmatpush.bf16.msra.mxu1 %v8382_v50 }
 0x422   :  { %4290 = vmatpush.bf16.msrb.mxu0 %v8258_v22 }
 0x425   :  { %4252 = vmatpush.bf16.msra.mxu1 %v8366_v52 }
 0x426   :  { %4291 = vmatpush.bf16.msrb.mxu0 %v8242_v0 }
 0x429   :  { %4253 = vmatpush.bf16.msra.mxu1 %v8350_v56 }
 0x42a   :  { %4292 = vmatpush.bf16.msrb.mxu0 %v8226_v58 }
 0x42d   :  { %4254 = vmatpush.bf16.msra.mxu1 %v8334_v32 }
 0x42e   :  { %4293 = vmatpush.bf16.msrb.mxu0 %v8210_v10 }
 0x430   :  { %4255 = vmatmul.bf16.vlgmr.msra.gmra.mxu1 %v10778_v11 }
 0x431   :  { %4299 = vmatpush.bf16.msrb.mxu1 %v8450_v39  ;;  %4294 = vmatmul.bf16.vlgmr.msrb.gmra.mxu0 %v10763_v42  ;;  %v8335_v42 = vld [vmem:[#allocation6 + $0x718] sm:$0xf0] }
 0x432   :  { %v8338_v24 = vor.u32 %v9940_v34, %v8335_v42 }
 0x435   :  { %4300 = vmatpush.bf16.msrb.mxu1 %v8434_v27 }
 0x439   :  { %4301 = vmatpush.bf16.msrb.mxu1 %v8418_v12 }
 0x43d   :  { %4302 = vmatpush.bf16.msrb.mxu1 %v8402_v15 }
 0x441   :  { %4303 = vmatpush.bf16.msrb.mxu1 %v8386_v28 }
 0x445   :  { %4304 = vmatpush.bf16.msrb.mxu1 %v8370_v37 }
 0x449   :  { %4305 = vmatpush.bf16.msrb.mxu1 %v8354_v33 }
 0x44d   :  { %4306 = vmatpush.bf16.msrb.mxu1 %v8338_v24 }
 0x450   :  { %4307 = vmatmul.bf16.vlgmr.msrb.gmra.mxu1 %v10778_v11 }
 0x452   :  { %v4113_v18 = vpop.f32.mrf.mxu2 }
 0x45a   :  { %v4115_v1 = vpop.f32.mrf.mxu2 }
 0x462   :  { %v4126_v23 = vpop.f32.mrf.mxu3  ;;  %v4165_v21 = vpop.f32.mrf.mxu2 }
 0x463   :  { %v4127_v40 = vadd.f32 %v4126_v23, %v4113_v18 }
 0x46a   :  { %v4128_v41 = vpop.f32.mrf.mxu3  ;;  %v4167_v36 = vpop.f32.mrf.mxu2 }
 0x46e   :  { %v4139_v43 = vpop.f32.mrf.mxu0 }
 0x46f   :  { %v4140_v14 = vadd.f32 %v4139_v43, %v4127_v40 }
 0x472   :  { %v4178_v17 = vpop.f32.mrf.mxu3  ;;  %v4217_v44 = vpop.f32.mrf.mxu2 }
 0x473   :  { %v4179_v45 = vadd.f32 %v4178_v17, %v4165_v21 }
 0x476   :  { %v4141_v49 = vpop.f32.mrf.mxu0 }
 0x47a   :  { %v4180_v20 = vpop.f32.mrf.mxu3  ;;  %v4219_v50 = vpop.f32.mrf.mxu2 }
 0x47e   :  { %v4191_v22 = vpop.f32.mrf.mxu0 }
 0x47f   :  { %v4192_v51 = vadd.f32 %v4191_v22, %v4179_v45  ;;  %v8677_v22 = vld [vmem:[#allocation7 + $0x1c0] sm:$0xf] }
 0x482   :  { %v4230_v19 = vpop.f32.mrf.mxu3 }
 0x483   :  { %v4231_v35 = vadd.f32 %v4230_v19, %v4217_v44 }
 0x486   :  { %v4193_v11 = vpop.f32.mrf.mxu0 }
 0x48a   :  { %v4232_v4 = vpop.f32.mrf.mxu3 }
 0x48d   :  { %v4152_v52 = vpop.f32.mrf.mxu1 }
 0x48e   :  { %v4153_v0 = vadd.f32 %v4152_v52, %v4140_v14  ;;  %v4243_v54 = vpop.f32.mrf.mxu0  ;;  %v8933_v52 = vld [vmem:[#allocation7 + $0x3c0] sm:$0xf] }
 0x48f   :  { %v4244_v43 = vadd.f32 %v4243_v54, %v4231_v35 }
 0x490   :  { %v4312_v48 = vsel %vm273_vm0, %v4153_v0, 0.0  ;;  %v4344_v53 = vsel %vm509_vm2, %v4153_v0, 0.0  ;;  %v10095_v0 = vld [vmem:[#allocation7 + $0x3dc] sm:$0xf0] }
 0x491   :  { %v4316_v55 = vsel %vm494_vm1, %v4312_v48, 0.0  ;;  %v4348_v56 = vsel %vm494_vm1, %v4344_v53, 0.0  ;;  %v8934_v54 = vor.u32 %v10095_v0, %v8933_v52  ;;  %v8837_v52 = vld [vmem:[#allocation7 + $0x300] sm:$0xf] }
 0x492   :  { %v10794_v58 = vpop.f32.mrf.mxu2  ;;  %v4317_v59 = vrot.slane %v4316_v55, 4  ;;  %v4349_v61 = vrot.slane %v4348_v56, 4 }
 0x493   :  { %6041 = vmatpush.bf16.msrb.mxu3 %v8934_v54  ;;  %v9093_v54 = vld [vmem:[#allocation7 + $0x500] sm:$0xf] }
 0x494   :  { %v4318_v62 = vadd.f32 %v4317_v59, %v4316_v55  ;;  %v4350_v63 = vadd.f32 %v4349_v61, %v4348_v56  ;;  %v9189_v55 = vld [vmem:[#allocation7 + $0x5c0] sm:$0xf] }
 0x495   :  { %v4154_v5 = vpop.f32.mrf.mxu1 }
 0x496   :  { %v4319_v9 = vrot.slane %v4318_v62, 2  ;;  %v4351_v32 = vrot.slane %v4350_v63, 2  ;;  %v4245_v26 = vpop.f32.mrf.mxu0 }
 0x497   :  { %v10023_v26 = vld [vmem:[#allocation7 + $0x19c] sm:$0xf0] }
 0x498   :  { %v4320_v10 = vadd.f32 %v4319_v9, %v4318_v62  ;;  %v4352_v39 = vadd.f32 %v4351_v32, %v4350_v63  ;;  %v10159_v63 = vld [vmem:[#allocation7 + $0x5dc] sm:$0xf0] }
 0x499   :  { %v9190_v5 = vor.u32 %v10159_v63, %v9189_v55  ;;  %v9445_v9 = vld [vmem:[#allocation7 + $0x7c0] sm:$0xf] }
 0x49a   :  { %v4271_v7 = vpop.f32.mrf.mxu2  ;;  %v4321_v27 = vrot.slane %v4320_v10, 1  ;;  %v4353_v6 = vrot.slane %v4352_v39, 1  ;;  %v10223_v32 = vld [vmem:[#allocation7 + $0x7dc] sm:$0xf0] }
 0x49b   :  { %v8901_v7 = vld [vmem:[#allocation7 + $0x380] sm:$0xf]  ;;  %6054 = vmatpush.bf16.msra.mxu0 %v9190_v5 }
 0x49c   :  { %v10796_v8 = vadd.f32 %v4321_v27, %v4320_v10  ;;  %v4354_v15 = vadd.f32 %v4353_v6, %v4352_v39  ;;  %v8645_v10 = vld [vmem:[#allocation7 + $0x180] sm:$0xf] }
 0x49d   :  { %v4204_v12 = vpop.f32.mrf.mxu1  ;;  %v10087_v27 = vld [vmem:[#allocation7 + $0x39c] sm:$0xf0] }
 0x49e   :  { %v4376_v25 = vmul.f32 %v10796_v8, %v10796_v8  ;;  %v4205_v57 = vadd.f32 %v4204_v12, %v4192_v51  ;;  %v10031_v51 = vld [vmem:[#allocation7 + $0x1dc] sm:$0xf0]  ;;  %v9446_v12 = vor.u32 %v10223_v32, %v9445_v9 }
 0x49f   :  { %v8678_v4 = vor.u32 %v10031_v51, %v8677_v22  ;;  %v9349_v5 = vld [vmem:[#allocation7 + $0x700] sm:$0xf] }
 0x4a0   :  { %v4313_v46 = vsel %vm273_vm0, %v4205_v57, 0.0  ;;  %v4345_v2 = vsel %vm509_vm2, %v4205_v57, 0.0  ;;  %v4380_v28 = vsub.f32 %v4354_v15, %v4376_v25  ;;  %v8646_v25 = vor.u32 %v10023_v26, %v8645_v10  ;;  %v9157_v15 = vld [vmem:[#allocation7 + $0x580] sm:$0xf]  ;;  %6067 = vmatpush.bf16.msra.mxu1 %v9446_v12 }
 0x4a1   :  { %v4323_v29 = vsel %vm494_vm1, %v4313_v46, 0.0  ;;  %v4355_v16 = vsel %vm494_vm1, %v4345_v2, 0.0  ;;  %6028 = vmatpush.bf16.msrb.mxu2 %v8678_v4  ;;  %v8902_v57 = vor.u32 %v10087_v27, %v8901_v7  ;;  %v10151_v46 = vld [vmem:[#allocation7 + $0x59c] sm:$0xf0] }
 0x4a2   :  { %v4324_v37 = vrot.slane %v4323_v29, 4  ;;  %v4356_v30 = vrot.slane %v4355_v16, 4  ;;  %v10806_v3 = vpop.f32.mrf.mxu3  ;;  %v10808_v42 = vadd.f32 1e-05, %v4380_v28  ;;  %v9413_v2 = vld [vmem:[#allocation7 + $0x780] sm:$0xf] }
 0x4a3   :  { %6042 = vmatpush.bf16.msrb.mxu3 %v8902_v57  ;;  %v10007_v4 = vld [vmem:[#allocation7 + $0x11c] sm:$0xf0] }
 0x4a4   :  { %v4325_v33 = vadd.f32 %v4324_v37, %v4323_v29  ;;  %v4357_v34 = vadd.f32 %v4356_v30, %v4355_v16  ;;  %10249 = vrsqrt.f32 %v10808_v42  ;;  %v9158_v30 = vor.u32 %v10151_v46, %v9157_v15  ;;  %v10199_v9 = vld [vmem:[#allocation7 + $0x71c] sm:$0xf0] }
 0x4a5   :  { %v4206_v24 = vpop.f32.mrf.mxu1  ;;  %6029 = vmatpush.bf16.msrb.mxu2 %v8646_v25  ;;  %v8549_v26 = vld [vmem:[#allocation7 + $0xc0] sm:$0xf]  ;;  %vm4396_vm15 = vweird.f32 %v10808_v42 }
 0x4a6   :  { %v4326_v18 = vrot.slane %v4325_v33, 2  ;;  %v4358_v1 = vrot.slane %v4357_v34, 2  ;;  %v8613_v24 = vld [vmem:[#allocation7 + $0x140] sm:$0xf]  ;;  %6055 = vmatpush.bf16.msra.mxu0 %v9158_v30 }
 0x4a7   :  { %v9999_v7 = vld [vmem:[#allocation7 + $0xdc] sm:$0xf0] }
 0x4a8   :  { %v4327_v23 = vadd.f32 %v4326_v18, %v4325_v33  ;;  %v4359_v21 = vadd.f32 %v4358_v1, %v4357_v34  ;;  %v10215_v33 = vld [vmem:[#allocation7 + $0x79c] sm:$0xf0] }
 0x4a9   :  { %v9414_v34 = vor.u32 %v10215_v33, %v9413_v2  ;;  %v10015_v18 = vld [vmem:[#allocation7 + $0x15c] sm:$0xf0] }
 0x4aa   :  { %v4328_v40 = vrot.slane %v4327_v23, 1  ;;  %v4360_v41 = vrot.slane %v4359_v21, 1  ;;  %v4284_v36 = vpop.f32.mrf.mxu3  ;;  %v10817_v50 = vpop.eup %10249  ;;  %v8869_v1 = vld [vmem:[#allocation7 + $0x340] sm:$0xf] }
 0x4ab   :  { %v4391_v56 = vmul.f32 %v10817_v50, %v10808_v42  ;;  %v10143_v36 = vld [vmem:[#allocation7 + $0x55c] sm:$0xf0]  ;;  %6068 = vmatpush.bf16.msra.mxu1 %v9414_v34  ;;  %vm4397_vm14 = vweird.f32 %v10817_v50 }
 0x4ac   :  { %v10811_v14 = vadd.f32 %v4328_v40, %v4327_v23  ;;  %v4361_v44 = vadd.f32 %v4360_v41, %v4359_v21  ;;  %v8614_v21 = vor.u32 %v10015_v18, %v8613_v24  ;;  %v10079_v40 = vld [vmem:[#allocation7 + $0x35c] sm:$0xf0]  ;;  %vm4398_vm3 = vmor %vm4396_vm15, %vm4397_vm14 }
 0x4ad   :  { %v4256_v17 = vpop.f32.mrf.mxu1  ;;  %v4392_v28 = vmul.f32 %v10817_v50, %v4391_v56  ;;  %v9125_v41 = vld [vmem:[#allocation7 + $0x540] sm:$0xf] }
 0x4ae   :  { %v4377_v45 = vmul.f32 %v10811_v14, %v10811_v14  ;;  %v4257_v49 = vadd.f32 %v4256_v17, %v4244_v43  ;;  %v10815_v20 = vpop.f32.mrf.mxu0  ;;  %v8870_v43 = vor.u32 %v10079_v40, %v8869_v1  ;;  %v9126_v17 = vor.u32 %v10143_v36, %v9125_v41  ;;  %6030 = vmatpush.bf16.msrb.mxu2 %v8614_v21  ;;  %v8805_v12 = vld [vmem:[#allocation7 + $0x2c0] sm:$0xf] }
 0x4af   :  { %v4393_v22 = vmul.f32 0.5, %v4392_v28  ;;  %v10063_v25 = vld [vmem:[#allocation7 + $0x2dc] sm:$0xf0] }
 0x4b0   :  { %v4381_v19 = vsub.f32 %v4361_v44, %v4377_v45  ;;  %v4314_v11 = vsel %vm273_vm0, %v4257_v49, 0.0  ;;  %v4346_v35 = vsel %vm509_vm2, %v4257_v49, 0.0  ;;  %v9381_v44 = vld [vmem:[#allocation7 + $0x740] sm:$0xf]  ;;  %6043 = vmatpush.bf16.msrb.mxu3 %v8870_v43  ;;  %6056 = vmatpush.bf16.msra.mxu0 %v9126_v17  ;;  %v8806_v46 = vor.u32 %v10063_v25, %v8805_v12 }
 0x4b1   :  { %v4330_v48 = vsel %vm494_vm1, %v4314_v11, 0.0  ;;  %v4362_v53 = vsel %vm494_vm1, %v4346_v35, 0.0  ;;  %v10207_v45 = vld [vmem:[#allocation7 + $0x75c] sm:$0xf0]  ;;  %v4394_v32 = vsub.f32 1.5, %v4393_v22 }
 0x4b2   :  { %v10827_v59 = vadd.f32 1e-05, %v4381_v19  ;;  %v4331_v61 = vrot.slane %v4330_v48, 4  ;;  %v4363_v62 = vrot.slane %v4362_v53, 4  ;;  %v9382_v11 = vor.u32 %v10207_v45, %v9381_v44  ;;  %v8581_v35 = vld [vmem:[#allocation7 + $0x100] sm:$0xf] }
 0x4b3   :  { %v9061_v57 = vld [vmem:[#allocation7 + $0x4c0] sm:$0xf]  ;;  %v4395_v33 = vmul.f32 %v10817_v50, %v4394_v32 }
 0x4b4   :  { %10251 = vrsqrt.f32 %v10827_v59  ;;  %v4332_v39 = vadd.f32 %v4331_v61, %v4330_v48  ;;  %v4364_v16 = vadd.f32 %v4363_v62, %v4362_v53  ;;  %v8582_v48 = vor.u32 %v10007_v4, %v8581_v35  ;;  %v10071_v53 = vld [vmem:[#allocation7 + $0x31c] sm:$0xf0]  ;;  %6069 = vmatpush.bf16.msra.mxu1 %v9382_v11 }
 0x4b5   :  { %v4258_v6 = vpop.f32.mrf.mxu1  ;;  %v8838_v56 = vor.u32 %v10071_v53, %v8837_v52  ;;  %v10135_v61 = vld [vmem:[#allocation7 + $0x51c] sm:$0xf0]  ;;  %vm4406_vm12 = vweird.f32 %v10827_v59  ;;  %v4399_v11 = vsel %vm4398_vm3, %v10817_v50, %v4395_v33  ;;  %v4283_v35 = vadd.f32 %v10806_v3, %v10794_v58 }
 0x4b6   :  { %v4333_v29 = vrot.slane %v4332_v39, 2  ;;  %v4297_v37 = vpop.f32.mrf.mxu0  ;;  %v4365_v51 = vrot.slane %v4364_v16, 2  ;;  %v9094_v63 = vor.u32 %v10135_v61, %v9093_v54  ;;  %6031 = vmatpush.bf16.msrb.mxu2 %v8582_v48  ;;  %v8550_v6 = vor.u32 %v9999_v7, %v8549_v26  ;;  %v10127_v2 = vld [vmem:[#allocation7 + $0x4dc] sm:$0xf0] }
 0x4b7   :  { %6044 = vmatpush.bf16.msrb.mxu3 %v8838_v56  ;;  %v9317_v28 = vld [vmem:[#allocation7 + $0x6c0] sm:$0xf]  ;;  %v9062_v37 = vor.u32 %v10127_v2, %v9061_v57  ;;  %v4296_v50 = vadd.f32 %v10815_v20, %v4283_v35  ;;  %v10083_v35 = vld [vmem:[#allocation7 + $0x384] sm:$0xf] }
 0x4b8   :  { %v4334_v23 = vadd.f32 %v4333_v29, %v4332_v39  ;;  %v4366_v62 = vadd.f32 %v4365_v51, %v4364_v16  ;;  %v9350_v39 = vor.u32 %v10199_v9, %v9349_v5  ;;  %6057 = vmatpush.bf16.msra.mxu0 %v9094_v63  ;;  %v10191_v30 = vld [vmem:[#allocation7 + $0x6dc] sm:$0xf0] }
 0x4b9   :  { %v8517_v24 = vld [vmem:[#allocation7 + $0x80] sm:$0xf] }
 0x4ba   :  { %v10831_v49 = vpop.eup %10251  ;;  %v4335_v0 = vrot.slane %v4334_v23, 1  ;;  %v4367_v16 = vrot.slane %v4366_v62, 1  ;;  %6070 = vmatpush.bf16.msra.mxu1 %v9350_v39  ;;  %6032 = vmatpush.bf16.msrb.mxu2 %v8550_v6  ;;  %v9991_v18 = vld [vmem:[#allocation7 + $0x9c] sm:$0xf0] }
 0x4bb   :  { %v4401_v19 = vmul.f32 %v10831_v49, %v10827_v59  ;;  %vm4407_vm11 = vweird.f32 %v10831_v49  ;;  %v9318_v59 = vor.u32 %v10191_v30, %v9317_v28  ;;  %v8773_v1 = vld [vmem:[#allocation7 + $0x280] sm:$0xf]  ;;  %6045 = vmatpush.bf16.msrb.mxu3 %v8806_v46  ;;  %v8518_v21 = vor.u32 %v9991_v18, %v8517_v24  ;;  %v10091_v24 = vld [vmem:[#allocation7 + $0x3c4] sm:$0xf] }
 0x4bc   :  { %v10837_v27 = vadd.f32 %v4335_v0, %v4334_v23  ;;  %vm10842_vm13 = vmor %vm4406_vm12, %vm4407_vm11  ;;  %v10055_v40 = vld [vmem:[#allocation7 + $0x29c] sm:$0xf0]  ;;  %6058 = vmatpush.bf16.msra.mxu0 %v9062_v37  ;;  %v10027_v37 = vld [vmem:[#allocation7 + $0x1c4] sm:$0xf] }
 0x4bd   :  { %v4402_v55 = vmul.f32 %v10831_v49, %v4401_v19  ;;  %v9029_v41 = vld [vmem:[#allocation7 + $0x480] sm:$0xf]  ;;  %v8774_v17 = vor.u32 %v10055_v40, %v8773_v1  ;;  %v4368_v19 = vadd.f32 %v4367_v16, %v4366_v62  ;;  %v8935_v18 = vld [vmem:[#allocation7 + $0x3e0] sm:$0xf0] }
 0x4be   :  { %v4378_v23 = vmul.f32 %v10837_v27, %v10837_v27  ;;  %v10119_v36 = vld [vmem:[#allocation7 + $0x49c] sm:$0xf0]  ;;  %6071 = vmatpush.bf16.msra.mxu1 %v9318_v59  ;;  %6033 = vmatpush.bf16.msrb.mxu2 %v8518_v21  ;;  %v8679_v59 = vld [vmem:[#allocation7 + $0x1e0] sm:$0xf0]  ;;  %v8938_v40 = vor.u32 %v10091_v24, %v8935_v18 }
 0x4bf   :  { %v4403_v10 = vmul.f32 0.5, %v4402_v55  ;;  %v9030_v44 = vor.u32 %v10119_v36, %v9029_v41  ;;  %v9285_v45 = vld [vmem:[#allocation7 + $0x680] sm:$0xf]  ;;  %6046 = vmatpush.bf16.msrb.mxu3 %v8774_v17  ;;  %v8682_v38 = vor.u32 %v10027_v37, %v8679_v59  ;;  %v10155_v1 = vld [vmem:[#allocation7 + $0x5c4] sm:$0xf] }
 0x4c0   :  { %v10183_v22 = vld [vmem:[#allocation7 + $0x69c] sm:$0xf0]  ;;  %v4382_v48 = vsub.f32 %v4368_v19, %v4378_v23  ;;  %v9191_v41 = vld [vmem:[#allocation7 + $0x5e0] sm:$0xf0] }
 0x4c1   :  { %v4404_v15 = vsub.f32 1.5, %v4403_v10  ;;  %v9286_v42 = vor.u32 %v10183_v22, %v9285_v45  ;;  %v8485_v4 = vld [vmem:[#allocation7 + $0x40] sm:$0xf]  ;;  %6059 = vmatpush.bf16.msra.mxu0 %v9030_v44  ;;  %v10219_v36 = vld [vmem:[#allocation7 + $0x7c4] sm:$0xf]  ;;  %v9194_v17 = vor.u32 %v10155_v1, %v9191_v41 }
 0x4c2   :  { %v8741_v52 = vld [vmem:[#allocation7 + $0x240] sm:$0xf]  ;;  %v10864_v26 = vadd.f32 1e-05, %v4382_v48  ;;  %v9447_v44 = vld [vmem:[#allocation7 + $0x7e0] sm:$0xf0] }
 0x4c3   :  { %v4405_v34 = vmul.f32 %v10831_v49, %v4404_v15  ;;  %v10047_v54 = vld [vmem:[#allocation7 + $0x25c] sm:$0xf0]  ;;  %6072 = vmatpush.bf16.msra.mxu1 %v9286_v42  ;;  %v10019_v45 = vld [vmem:[#allocation7 + $0x184] sm:$0xf] }
 0x4c4   :  { %v8997_v55 = vld [vmem:[#allocation7 + $0x440] sm:$0xf]  ;;  %v8742_v61 = vor.u32 %v10047_v54, %v8741_v52  ;;  %10253 = vrsqrt.f32 %v10864_v26  ;;  %v8647_v22 = vld [vmem:[#allocation7 + $0x1a0] sm:$0xf0] }
 0x4c5   :  { %v4409_v43 = vsel %vm10842_vm13, %v10831_v49, %v4405_v34  ;;  %v9983_v49 = vld [vmem:[#allocation7 + $0x5c] sm:$0xf0]  ;;  %v8903_v42 = vld [vmem:[#allocation7 + $0x3a0] sm:$0xf0] }
 0x4c6   :  { %v4434_v51 = vrot.slane %v4409_v43, 7  ;;  %v8486_v53 = vor.u32 %v9983_v49, %v8485_v4  ;;  %v10111_v56 = vld [vmem:[#allocation7 + $0x45c] sm:$0xf0]  ;;  %6047 = vmatpush.bf16.msrb.mxu3 %v8742_v61  ;;  %v8650_v4 = vor.u32 %v10019_v45, %v8647_v22  ;;  %v8906_v49 = vor.u32 %v10083_v35, %v8903_v42  ;;  %v10147_v52 = vld [vmem:[#allocation7 + $0x584] sm:$0xf] }
 0x4c7   :  { %v8998_v58 = vor.u32 %v10111_v56, %v8997_v55  ;;  %v9253_v3 = vld [vmem:[#allocation7 + $0x640] sm:$0xf]  ;;  %v9159_v48 = vld [vmem:[#allocation7 + $0x5a0] sm:$0xf0] }
 0x4c8   :  { %v10861_v0 = vsel %vm557_vm8, %v4399_v11, %v4434_v51  ;;  %v10175_v62 = vld [vmem:[#allocation7 + $0x65c] sm:$0xf0]  ;;  %6034 = vmatpush.bf16.msrb.mxu2 %v8486_v53  ;;  %v9450_v11 = vor.u32 %v10219_v36, %v9447_v44  ;;  %v10211_v53 = vld [vmem:[#allocation7 + $0x784] sm:$0xf]  ;;  %v9162_v56 = vor.u32 %v10147_v52, %v9159_v48 }
 0x4c9   :  { %v9254_v9 = vor.u32 %v10175_v62, %v9253_v3  ;;  %v8453_v32 = vld [vmem:[#allocation7] sm:$0xf]  ;;  %6060 = vmatpush.bf16.msra.mxu0 %v8998_v58  ;;  %v10011_v61 = vld [vmem:[#allocation7 + $0x144] sm:$0xf] }
 0x4ca   :  { %v9975_v10 = vld [vmem:[#allocation7 + $0x1c] sm:$0xf0]  ;;  %v8615_v58 = vld [vmem:[#allocation7 + $0x160] sm:$0xf0] }
 0x4cb   :  { %v8709_v39 = vld [vmem:[#allocation7 + $0x200] sm:$0xf]  ;;  %v8454_v7 = vor.u32 %v9975_v10, %v8453_v32  ;;  %6073 = vmatpush.bf16.msra.mxu1 %v9254_v9  ;;  %v8618_v62 = vor.u32 %v10011_v61, %v8615_v58  ;;  %v10131_v37 = vld [vmem:[#allocation7 + $0x504] sm:$0xf] }
 0x4cc   :  { %v10039_v6 = vld [vmem:[#allocation7 + $0x21c] sm:$0xf0]  ;;  %v9351_v18 = vld [vmem:[#allocation7 + $0x720] sm:$0xf0] }
 0x4cd   :  { %v4308_v63 = vpop.f32.mrf.mxu1  ;;  %v8965_v12 = vld [vmem:[#allocation7 + $0x400] sm:$0xf]  ;;  %v8710_v57 = vor.u32 %v10039_v6, %v8709_v39  ;;  %6035 = vmatpush.bf16.msrb.mxu2 %v8454_v7  ;;  %v10139_v39 = vld [vmem:[#allocation7 + $0x544] sm:$0xf]  ;;  %v10873_v6 = vpop.eup %10253 }
 0x4ce   :  { %v4309_v5 = vadd.f32 %v4308_v63, %v4296_v50  ;;  %v10103_v15 = vld [vmem:[#allocation7 + $0x41c] sm:$0xf0]  ;;  %v9415_v50 = vld [vmem:[#allocation7 + $0x7a0] sm:$0xf0] }
 0x4cf   :  { %v9221_v46 = vld [vmem:[#allocation7 + $0x600] sm:$0xf]  ;;  %v8966_v29 = vor.u32 %v10103_v15, %v8965_v12  ;;  %6048 = vmatpush.bf16.msrb.mxu3 %v8710_v57  ;;  %v9418_v3 = vor.u32 %v10211_v53, %v9415_v50  ;;  %v10075_v63 = vld [vmem:[#allocation7 + $0x344] sm:$0xf] }
 0x4d0   :  { %v4315_v20 = vsel %vm273_vm0, %v4309_v5, 0.0  ;;  %v4347_v25 = vsel %vm509_vm2, %v4309_v5, 0.0  ;;  %v10167_v16 = vld [vmem:[#allocation7 + $0x61c] sm:$0xf0]  ;;  %v8871_v5 = vld [vmem:[#allocation7 + $0x360] sm:$0xf0]  ;;  %vm4417_vm0 = vweird.f32 %v10873_v6  ;;  %vm4416_vm2 = vweird.f32 %v10864_v26 }
 0x4d1   :  { %v4337_v2 = vsel %vm494_vm1, %v4315_v20, 0.0  ;;  %v4369_v28 = vsel %vm494_vm1, %v4347_v25, 0.0  ;;  %v9222_v34 = vor.u32 %v10167_v16, %v9221_v46  ;;  %6061 = vmatpush.bf16.msra.mxu0 %v8966_v29  ;;  %6080 = vmatpush.bf16.msra.mxu2 %v8682_v38  ;;  %v8874_v10 = vor.u32 %v10075_v63, %v8871_v5  ;;  %v9127_v7 = vld [vmem:[#allocation7 + $0x560] sm:$0xf0]  ;;  %vm4418_vm5 = vmor %vm4416_vm2, %vm4417_vm0 }
 0x4d2   :  { %v4338_v30 = vrot.slane %v4337_v2, 4  ;;  %v4370_v33 = vrot.slane %v4369_v28, 4  ;;  %v9130_v12 = vor.u32 %v10139_v39, %v9127_v7  ;;  %v10203_v20 = vld [vmem:[#allocation7 + $0x744] sm:$0xf] }
 0x4d3   :  { %6074 = vmatpush.bf16.msra.mxu1 %v9222_v34  ;;  %6093 = vmatpush.bf16.msra.mxu3 %v8938_v40  ;;  %v9383_v25 = vld [vmem:[#allocation7 + $0x760] sm:$0xf0]  ;;  %v4411_v34 = vmul.f32 %v10873_v6, %v10864_v26 }
 0x4d4   :  { %v4339_v23 = vadd.f32 %v4338_v30, %v4337_v2  ;;  %v4371_v21 = vadd.f32 %v4370_v33, %v4369_v28  ;;  %v10003_v57 = vld [vmem:[#allocation7 + $0x104] sm:$0xf]  ;;  %v9386_v46 = vor.u32 %v10203_v20, %v9383_v25 }
 0x4d5   :  { %v4310_v43 = vpop.f32.mrf.mxu1  ;;  %6106 = vmatpush.bf16.msrb.mxu0 %v9194_v17  ;;  %6081 = vmatpush.bf16.msra.mxu2 %v8650_v4  ;;  %v8583_v2 = vld [vmem:[#allocation7 + $0x120] sm:$0xf0] }
 0x4d6   :  { %v4340_v51 = vrot.slane %v4339_v23, 2  ;;  %v4372_v19 = vrot.slane %v4371_v21, 2  ;;  %v10067_v28 = vld [vmem:[#allocation7 + $0x304] sm:$0xf]  ;;  %v8586_v16 = vor.u32 %v10003_v57, %v8583_v2 }
 0x4d7   :  { %6119 = vmatpush.bf16.msrb.mxu1 %v9450_v11  ;;  %6094 = vmatpush.bf16.msra.mxu3 %v8906_v49  ;;  %v8839_v29 = vld [vmem:[#allocation7 + $0x320] sm:$0xf0] }
 0x4d8   :  { %v4341_v54 = vadd.f32 %v4340_v51, %v4339_v23  ;;  %v4373_v55 = vadd.f32 %v4372_v19, %v4371_v21  ;;  %v9095_v30 = vld [vmem:[#allocation7 + $0x520] sm:$0xf0]  ;;  %v8842_v24 = vor.u32 %v10067_v28, %v8839_v29  ;;  %v4412_v19 = vmul.f32 %v10873_v6, %v4411_v34 }
 0x4d9   :  { %6107 = vmatpush.bf16.msrb.mxu0 %v9162_v56  ;;  %6082 = vmatpush.bf16.msra.mxu2 %v8618_v62  ;;  %v10195_v33 = vld [vmem:[#allocation7 + $0x704] sm:$0xf]  ;;  %v9098_v1 = vor.u32 %v10131_v37, %v9095_v30 }
 0x4da   :  { %v4342_v9 = vrot.slane %v4341_v54, 1  ;;  %v4374_v32 = vrot.slane %v4373_v55, 1  ;;  %v9995_v23 = vld [vmem:[#allocation7 + $0xc4] sm:$0xf]  ;;  %v9354_v36 = vor.u32 %v10195_v33, %v9351_v18  ;;  %v4413_v58 = vmul.f32 0.5, %v4412_v19 }
 0x4db   :  { %6120 = vmatpush.bf16.msrb.mxu1 %v9418_v3  ;;  %6095 = vmatpush.bf16.msra.mxu3 %v8874_v10  ;;  %v8551_v21 = vld [vmem:[#allocation7 + $0xe0] sm:$0xf0] }
 0x4dc   :  { %v10875_v15 = vadd.f32 %v4342_v9, %v4341_v54  ;;  %v4375_v59 = vadd.f32 %v4374_v32, %v4373_v55  ;;  %v10059_v40 = vld [vmem:[#allocation7 + $0x2c4] sm:$0xf]  ;;  %v8554_v45 = vor.u32 %v9995_v23, %v8551_v21 }
 0x4dd   :  { %6108 = vmatpush.bf16.msrb.mxu0 %v9130_v12  ;;  %v8807_v43 = vld [vmem:[#allocation7 + $0x2e0] sm:$0xf0]  ;;  %6083 = vmatpush.bf16.msra.mxu2 %v8586_v16 }
 0x4de   :  { %v4379_v38 = vmul.f32 %v10875_v15, %v10875_v15  ;;  %v10123_v17 = vld [vmem:[#allocation7 + $0x4c4] sm:$0xf]  ;;  %v8810_v35 = vor.u32 %v10059_v40, %v8807_v43 }
 0x4df   :  { %6121 = vmatpush.bf16.msrb.mxu1 %v9386_v46  ;;  %v9063_v44 = vld [vmem:[#allocation7 + $0x4e0] sm:$0xf0]  ;;  %6096 = vmatpush.bf16.msra.mxu3 %v8842_v24  ;;  %v4414_v46 = vsub.f32 1.5, %v4413_v58 }
 0x4e0   :  { %v4383_v41 = vsub.f32 %v4375_v59, %v4379_v38  ;;  %v10187_v22 = vld [vmem:[#allocation7 + $0x6c4] sm:$0xf]  ;;  %v9066_v42 = vor.u32 %v10123_v17, %v9063_v44 }
 0x4e1   :  { %v9319_v51 = vld [vmem:[#allocation7 + $0x6e0] sm:$0xf0]  ;;  %6109 = vmatpush.bf16.msrb.mxu0 %v9098_v1  ;;  %6084 = vmatpush.bf16.msra.mxu2 %v8554_v45  ;;  %v4415_v40 = vmul.f32 %v10873_v6, %v4414_v46  ;;  %v8941_v46 = vld [vmem:[#allocation7 + $0x3c8] sm:$0xf] }
 0x4e2   :  { %v10882_v11 = vadd.f32 1e-05, %v4383_v41  ;;  %v9987_v4 = vld [vmem:[#allocation7 + $0x84] sm:$0xf]  ;;  %v9322_v48 = vor.u32 %v10187_v22, %v9319_v51 }
 0x4e3   :  { %v8519_v49 = vld [vmem:[#allocation7 + $0xa0] sm:$0xf0]  ;;  %6122 = vmatpush.bf16.msrb.mxu1 %v9354_v36  ;;  %6097 = vmatpush.bf16.msra.mxu3 %v8810_v35  ;;  %v4419_v44 = vsel %vm4418_vm5, %v10873_v6, %v4415_v40  ;;  %v8909_v40 = vld [vmem:[#allocation7 + $0x388] sm:$0xf] }
 0x4e4   :  { %v10051_v52 = vld [vmem:[#allocation7 + $0x284] sm:$0xf]  ;;  %10255 = vrsqrt.f32 %v10882_v11  ;;  %v8522_v56 = vor.u32 %v9987_v4, %v8519_v49  ;;  %vm4426_vm6 = vweird.f32 %v10882_v11  ;;  %v4435_v51 = vrot.slane %v4419_v44, 6  ;;  %v10216_v44 = vld [vmem:[#allocation7 + $0x7a4] sm:$0xf0] }
 0x4e5   :  { %v8775_v53 = vld [vmem:[#allocation7 + $0x2a0] sm:$0xf0]  ;;  %6110 = vmatpush.bf16.msrb.mxu0 %v9066_v42 }
 0x4e6   :  { %v10115_v54 = vld [vmem:[#allocation7 + $0x484] sm:$0xf]  ;;  %v8778_v3 = vor.u32 %v10051_v52, %v8775_v53  ;;  %6085 = vmatpush.bf16.msra.mxu2 %v8522_v56 }
 0x4e7   :  { %v9031_v55 = vld [vmem:[#allocation7 + $0x4a0] sm:$0xf0]  ;;  %6123 = vmatpush.bf16.msrb.mxu1 %v9322_v48 }
 0x4e8   :  { %v10179_v50 = vld [vmem:[#allocation7 + $0x684] sm:$0xf]  ;;  %v9034_v62 = vor.u32 %v10115_v54, %v9031_v55  ;;  %6098 = vmatpush.bf16.msra.mxu3 %v8778_v3 }
 0x4e9   :  { %v9287_v61 = vld [vmem:[#allocation7 + $0x6a0] sm:$0xf0] }
 0x4ea   :  { %v9979_v63 = vld [vmem:[#allocation7 + $0x44] sm:$0xf]  ;;  %v9290_v32 = vor.u32 %v10179_v50, %v9287_v61  ;;  %v10256_v57 = vpop.eup %10255  ;;  %6111 = vmatpush.bf16.msrb.mxu0 %v9034_v62 }
 0x4eb   :  { %v8487_v5 = vld [vmem:[#allocation7 + $0x60] sm:$0xf0]  ;;  %v4421_v28 = vmul.f32 %v10256_v57, %v10882_v11  ;;  %vm4427_vm4 = vweird.f32 %v10256_v57 }
 0x4ec   :  { %v10043_v9 = vld [vmem:[#allocation7 + $0x244] sm:$0xf]  ;;  %v8490_v12 = vor.u32 %v9979_v63, %v8487_v5  ;;  %6124 = vmatpush.bf16.msrb.mxu1 %v9290_v32  ;;  %vm4428_vm7 = vmor %vm4426_vm6, %vm4427_vm4 }
 0x4ed   :  { %v8743_v10 = vld [vmem:[#allocation7 + $0x260] sm:$0xf0]  ;;  %v4422_v38 = vmul.f32 %v10256_v57, %v4421_v28  ;;  %v9197_v28 = vld [vmem:[#allocation7 + $0x5c8] sm:$0xf] }
 0x4ee   :  { %v10107_v39 = vld [vmem:[#allocation7 + $0x444] sm:$0xf]  ;;  %v8746_v2 = vor.u32 %v10043_v9, %v8743_v10  ;;  %6086 = vmatpush.bf16.msra.mxu2 %v8490_v12 }
 0x4ef   :  { %v8999_v7 = vld [vmem:[#allocation7 + $0x460] sm:$0xf0]  ;;  %v4423_v41 = vmul.f32 0.5, %v4422_v38 }
 0x4f0   :  { %v10171_v20 = vld [vmem:[#allocation7 + $0x644] sm:$0xf]  ;;  %v9002_v29 = vor.u32 %v10107_v39, %v8999_v7  ;;  %6099 = vmatpush.bf16.msra.mxu3 %v8746_v2  ;;  %v8685_v39 = vld [vmem:[#allocation7 + $0x1c8] sm:$0xf] }
 0x4f1   :  { %v9255_v25 = vld [vmem:[#allocation7 + $0x660] sm:$0xf0]  ;;  %v4424_v17 = vsub.f32 1.5, %v4423_v41  ;;  %v10096_v2 = vld [vmem:[#allocation7 + $0x3e4] sm:$0xf0] }
 0x4f2   :  { %v9971_v16 = vld [vmem:[#allocation7 + $0x4] sm:$0xf]  ;;  %v9258_v33 = vor.u32 %v10171_v20, %v9255_v25  ;;  %6112 = vmatpush.bf16.msrb.mxu0 %v9002_v29  ;;  %v9453_v29 = vld [vmem:[#allocation7 + $0x7c8] sm:$0xf] }
 0x4f3   :  { %v8455_v37 = vld [vmem:[#allocation7 + $0x20] sm:$0xf0]  ;;  %v4425_v45 = vmul.f32 %v10256_v57, %v4424_v17  ;;  %v10088_v41 = vld [vmem:[#allocation7 + $0x3a4] sm:$0xf0] }
 0x4f4   :  { %v10035_v30 = vld [vmem:[#allocation7 + $0x204] sm:$0xf]  ;;  %v8458_v24 = vor.u32 %v9971_v16, %v8455_v37  ;;  %6125 = vmatpush.bf16.msrb.mxu1 %v9258_v33  ;;  %v8942_v33 = vor.u32 %v10096_v2, %v8941_v46  ;;  %v9421_v17 = vld [vmem:[#allocation7 + $0x788] sm:$0xf] }
 0x4f5   :  { %v8711_v34 = vld [vmem:[#allocation7 + $0x220] sm:$0xf0]  ;;  %v4429_v22 = vsel %vm4428_vm7, %v10256_v57, %v4425_v45  ;;  %v10032_v57 = vld [vmem:[#allocation7 + $0x1e4] sm:$0xf0] }
 0x4f6   :  { %v10099_v59 = vld [vmem:[#allocation7 + $0x404] sm:$0xf]  ;;  %v8714_v21 = vor.u32 %v10035_v30, %v8711_v34  ;;  %6087 = vmatpush.bf16.msra.mxu2 %v8458_v24  ;;  %v4436_v19 = vrot.slane %v4429_v22, 5  ;;  %v8686_v30 = vor.u32 %v10032_v57, %v8685_v39  ;;  %v8910_v22 = vor.u32 %v10088_v41, %v8909_v40  ;;  %v9069_v39 = vld [vmem:[#allocation7 + $0x4c8] sm:$0xf] }
 0x4f7   :  { %v8967_v18 = vld [vmem:[#allocation7 + $0x420] sm:$0xf0]  ;;  %v8525_v46 = vld [vmem:[#allocation7 + $0x88] sm:$0xf] }
 0x4f8   :  { %v10163_v1 = vld [vmem:[#allocation7 + $0x604] sm:$0xf]  ;;  %v8970_v36 = vor.u32 %v10099_v59, %v8967_v18  ;;  %6100 = vmatpush.bf16.msra.mxu3 %v8714_v21  ;;  %v4438_v35 = vsel %vm2241_vm9, %v4435_v51, %v4436_v19  ;;  %v8653_v18 = vld [vmem:[#allocation7 + $0x188] sm:$0xf] }
 0x4f9   :  { %v9223_v23 = vld [vmem:[#allocation7 + $0x620] sm:$0xf0]  ;;  %v4439_v42 = vsel %vm494_vm1, %v10861_v0, %v4438_v35  ;;  %v8621_v51 = vld [vmem:[#allocation7 + $0x148] sm:$0xf]  ;;  %v9422_v35 = vor.u32 %v10216_v44, %v9421_v17 }
 0x4fa   :  { %v9226_v43 = vor.u32 %v10163_v1, %v9223_v23  ;;  %6113 = vmatpush.bf16.msrb.mxu0 %v8970_v36  ;;  %v4384_v26 = vld [vmem:[%s10980_s5 + $0x6] sm:$0xf] }
 0x4fb   :  { %v4441_v4 = vmul.f32 %v4439_v42, %v4384_v26  ;;  %v4385_v0 = vld [vmem:[%s10981_s6 + $0x6] sm:$0xf] }
 0x4fc   :  { %6126 = vmatpush.bf16.msrb.mxu1 %v9226_v43  ;;  %v10024_v1 = vld [vmem:[#allocation7 + $0x1a4] sm:$0xf0] }
 0x4fd   :  { %v4443_v6 = vperm.slane %v4441_v4, 0  ;;  %v4444_v49 = vperm.slane %v4441_v4, 1  ;;  %v4445_v52 = vperm.slane %v4441_v4, 2  ;;  %v4446_v11 = vperm.slane %v4441_v4, 3  ;;  %v9165_v36 = vld [vmem:[#allocation7 + $0x588] sm:$0xf] }
 0x4fe   :  { %v10152_v43 = vld [vmem:[#allocation7 + $0x5a4] sm:$0xf0]  ;;  %v8654_v45 = vor.u32 %v10024_v1, %v8653_v18 }
 0x4ff   :  { %v4451_v48 = vmul.f32 %v4443_v6, %v10796_v8  ;;  %v4452_v53 = vmul.f32 %v4444_v49, %v10811_v14  ;;  %v4453_v54 = vmul.f32 %v4445_v52, %v10837_v27  ;;  %v4454_v55 = vmul.f32 %v4446_v11, %v10875_v15  ;;  %v10016_v19 = vld [vmem:[#allocation7 + $0x164] sm:$0xf0] }
 0x500   :  { %v4467_v14 = vmul.f32 %v4443_v6, %v10732_v47  ;;  %v4468_v27 = vmul.f32 %v4444_v49, %v10738_v13  ;;  %v4469_v15 = vmul.f32 %v4445_v52, %v10751_v31  ;;  %v4470_v63 = vmul.f32 %v4446_v11, %v10768_v60  ;;  %v10160_v47 = vld [vmem:[#allocation7 + $0x5e4] sm:$0xf0] }
 0x501   :  { %v4459_v56 = vrot.slane %v4452_v53, 7  ;;  %v4460_v50 = vrot.slane %v4453_v54, 6  ;;  %v4461_v61 = vrot.slane %v4454_v55, 5  ;;  %v10224_v60 = vld [vmem:[#allocation7 + $0x7e4] sm:$0xf0]  ;;  %v9198_v23 = vor.u32 %v10160_v47, %v9197_v28 }
 0x502   :  { %v9454_v21 = vor.u32 %v10224_v60, %v9453_v29  ;;  %v9166_v26 = vor.u32 %v10152_v43, %v9165_v36  ;;  %v8877_v42 = vld [vmem:[#allocation7 + $0x348] sm:$0xf] }
 0x503   :  { %v4462_v58 = vsel %vm557_vm8, %v4451_v48, %v4459_v56  ;;  %v4463_v3 = vsel %vm2241_vm9, %v4460_v50, %v4461_v61  ;;  %v10080_v4 = vld [vmem:[#allocation7 + $0x364] sm:$0xf0]  ;;  %v8622_v48 = vor.u32 %v10016_v19, %v8621_v51 }
 0x504   :  { %v4464_v62 = vsel %vm494_vm1, %v4462_v58, %v4463_v3  ;;  %v9133_v6 = vld [vmem:[#allocation7 + $0x548] sm:$0xf]  ;;  %v8878_v53 = vor.u32 %v10080_v4, %v8877_v42 }
 0x505   :  { %v4466_v8 = vsub.f32 %v4385_v0, %v4464_v62  ;;  %v10144_v49 = vld [vmem:[#allocation7 + $0x564] sm:$0xf0] }
 0x506   :  { %v9389_v52 = vld [vmem:[#allocation7 + $0x748] sm:$0xf]  ;;  %v9134_v56 = vor.u32 %v10144_v49, %v9133_v6 }
 0x507   :  { %v4472_v5 = vperm.slane %v4466_v8, 0  ;;  %v4473_v9 = vperm.slane %v4466_v8, 1  ;;  %v4474_v32 = vperm.slane %v4466_v8, 2  ;;  %v4475_v10 = vperm.slane %v4466_v8, 3  ;;  %v10208_v11 = vld [vmem:[#allocation7 + $0x764] sm:$0xf0] }
 0x508   :  { %v8589_v54 = vld [vmem:[#allocation7 + $0x108] sm:$0xf]  ;;  %v9390_v50 = vor.u32 %v10208_v11, %v9389_v52 }
 0x509   :  { %v4480_v7 = vadd.f32 %v4472_v5, %v4467_v14  ;;  %v4481_v12 = vadd.f32 %v4473_v9, %v4468_v27  ;;  %v4482_v20 = vadd.f32 %v4474_v32, %v4469_v15  ;;  %v4483_v25 = vadd.f32 %v4475_v10, %v4470_v63  ;;  %v10008_v55 = vld [vmem:[#allocation7 + $0x124] sm:$0xf0] }
 0x50a   :  { %v8845_v61 = vld [vmem:[#allocation7 + $0x308] sm:$0xf]  ;;  %v8590_v14 = vor.u32 %v10008_v55, %v8589_v54  ;;  %v10092_v54 = vld [vmem:[#allocation7 + $0x3cc] sm:$0xf] }
 0x50b   :  { %v4484_v13 = vmax.f32 %v4480_v7, 0.0  ;;  %v4485_v16 = vmax.f32 %v4481_v12, 0.0  ;;  %v4486_v31 = vmax.f32 %v4482_v20, 0.0  ;;  %v4487_v37 = vmax.f32 %v4483_v25, 0.0  ;;  %v10072_v0 = vld [vmem:[#allocation7 + $0x324] sm:$0xf0] }
 0x50c   :  { %v9101_v58 = vld [vmem:[#allocation7 + $0x508] sm:$0xf]  ;;  %v8846_v27 = vor.u32 %v10072_v0, %v8845_v61  ;;  %v8943_v55 = vld [vmem:[#allocation7 + $0x3e8] sm:$0xf0] }
 0x50d   :  { %v10911_v34 = vpack.c.bf16 %v4484_v13, %v4484_v13  ;;  %v10913_v59 = vpack.c.bf16 %v4485_v16, %v4485_v16  ;;  %v10915_v38 = vpack.c.bf16 %v4486_v31, %v4486_v31  ;;  %v10917_v24 = vpack.c.bf16 %v4487_v37, %v4487_v37  ;;  %v10136_v3 = vld [vmem:[#allocation7 + $0x524] sm:$0xf0]  ;;  %v9199_v0 = vld [vmem:[#allocation7 + $0x5e8] sm:$0xf0] }
 0x50e   :  { %v9357_v62 = vld [vmem:[#allocation7 + $0x708] sm:$0xf]  ;;  %v9102_v5 = vor.u32 %v10136_v3, %v9101_v58  ;;  %v10220_v58 = vld [vmem:[#allocation7 + $0x7cc] sm:$0xf] }
 0x50f   :  { %6036 = vmatmul.bf16.vlgmr.msrb.gmra.mxu2 %v10911_v34  ;;  %6049 = vmatmul.bf16.vlgmr.msrb.gmra.mxu3 %v10913_v59  ;;  %v10200_v8 = vld [vmem:[#allocation7 + $0x724] sm:$0xf0]  ;;  %v9455_v3 = vld [vmem:[#allocation7 + $0x7e8] sm:$0xf0] }
 0x510   :  { %6062 = vmatmul.bf16.vlgmr.msra.gmra.mxu0 %v10915_v38  ;;  %6075 = vmatmul.bf16.vlgmr.msra.gmra.mxu1 %v10917_v24  ;;  %v8557_v15 = vld [vmem:[#allocation7 + $0xc8] sm:$0xf]  ;;  %v9358_v9 = vor.u32 %v10200_v8, %v9357_v62 }
 0x511   :  { %6132 = vmatpush.bf16.msrb.mxu2 %v8686_v30  ;;  %6145 = vmatpush.bf16.msrb.mxu3 %v8942_v33  ;;  %v10000_v63 = vld [vmem:[#allocation7 + $0xe4] sm:$0xf0] }
 0x512   :  { %6158 = vmatpush.bf16.msra.mxu0 %v9198_v23  ;;  %6171 = vmatpush.bf16.msra.mxu1 %v9454_v21  ;;  %v8813_v32 = vld [vmem:[#allocation7 + $0x2c8] sm:$0xf]  ;;  %v8558_v25 = vor.u32 %v10000_v63, %v8557_v15  ;;  %v10020_v15 = vld [vmem:[#allocation7 + $0x18c] sm:$0xf] }
 0x513   :  { %v10064_v10 = vld [vmem:[#allocation7 + $0x2e4] sm:$0xf0]  ;;  %v8655_v63 = vld [vmem:[#allocation7 + $0x1a8] sm:$0xf0] }
 0x514   :  { %v10128_v7 = vld [vmem:[#allocation7 + $0x4e4] sm:$0xf0]  ;;  %v8814_v57 = vor.u32 %v10064_v10, %v8813_v32  ;;  %v10084_v32 = vld [vmem:[#allocation7 + $0x38c] sm:$0xf] }
 0x515   :  { %6133 = vmatpush.bf16.msrb.mxu2 %v8654_v45  ;;  %6146 = vmatpush.bf16.msrb.mxu3 %v8910_v22  ;;  %v9325_v12 = vld [vmem:[#allocation7 + $0x6c8] sm:$0xf]  ;;  %v9070_v28 = vor.u32 %v10128_v7, %v9069_v39  ;;  %v8911_v10 = vld [vmem:[#allocation7 + $0x3a8] sm:$0xf0] }
 0x516   :  { %6159 = vmatpush.bf16.msra.mxu0 %v9166_v26  ;;  %6172 = vmatpush.bf16.msra.mxu1 %v9422_v35  ;;  %v10192_v20 = vld [vmem:[#allocation7 + $0x6e4] sm:$0xf0]  ;;  %v10148_v39 = vld [vmem:[#allocation7 + $0x58c] sm:$0xf] }
 0x517   :  { %v9992_v2 = vld [vmem:[#allocation7 + $0xa4] sm:$0xf0]  ;;  %v9326_v47 = vor.u32 %v10192_v20, %v9325_v12  ;;  %v9167_v7 = vld [vmem:[#allocation7 + $0x5a8] sm:$0xf0] }
 0x518   :  { %v8781_v29 = vld [vmem:[#allocation7 + $0x288] sm:$0xf]  ;;  %v8526_v30 = vor.u32 %v9992_v2, %v8525_v46  ;;  %v10212_v12 = vld [vmem:[#allocation7 + $0x78c] sm:$0xf] }
 0x519   :  { %6134 = vmatpush.bf16.msrb.mxu2 %v8622_v48  ;;  %6147 = vmatpush.bf16.msrb.mxu3 %v8878_v53  ;;  %v10056_v13 = vld [vmem:[#allocation7 + $0x2a4] sm:$0xf0]  ;;  %v10028_v48 = vld [vmem:[#allocation7 + $0x1cc] sm:$0xf] }
 0x51a   :  { %6160 = vmatpush.bf16.msra.mxu0 %v9134_v56  ;;  %6173 = vmatpush.bf16.msra.mxu1 %v9390_v50  ;;  %v9037_v16 = vld [vmem:[#allocation7 + $0x488] sm:$0xf]  ;;  %v8782_v33 = vor.u32 %v10056_v13, %v8781_v29  ;;  %v8687_v53 = vld [vmem:[#allocation7 + $0x1e8] sm:$0xf0] }
 0x51b   :  { %v10120_v31 = vld [vmem:[#allocation7 + $0x4a4] sm:$0xf0]  ;;  %v10156_v56 = vld [vmem:[#allocation7 + $0x5cc] sm:$0xf] }
 0x51c   :  { %v9293_v37 = vld [vmem:[#allocation7 + $0x688] sm:$0xf]  ;;  %v9038_v23 = vor.u32 %v10120_v31, %v9037_v16  ;;  %v9423_v20 = vld [vmem:[#allocation7 + $0x7a8] sm:$0xf0] }
 0x51d   :  { %6135 = vmatpush.bf16.msrb.mxu2 %v8590_v14  ;;  %6148 = vmatpush.bf16.msrb.mxu3 %v8846_v27  ;;  %v10184_v60 = vld [vmem:[#allocation7 + $0x6a4] sm:$0xf0]  ;;  %v8690_v14 = vor.u32 %v10028_v48, %v8687_v53  ;;  %v8946_v27 = vor.u32 %v10092_v54, %v8943_v55  ;;  %v10012_v46 = vld [vmem:[#allocation7 + $0x14c] sm:$0xf] }
 0x51e   :  { %6161 = vmatpush.bf16.msra.mxu0 %v9102_v5  ;;  %6174 = vmatpush.bf16.msra.mxu1 %v9358_v9  ;;  %v8493_v18 = vld [vmem:[#allocation7 + $0x48] sm:$0xf]  ;;  %v9294_v21 = vor.u32 %v10184_v60, %v9293_v37  ;;  %v9202_v5 = vor.u32 %v10156_v56, %v9199_v0  ;;  %v9458_v9 = vor.u32 %v10220_v58, %v9455_v3  ;;  %v8623_v2 = vld [vmem:[#allocation7 + $0x168] sm:$0xf0] }
 0x51f   :  { %6088 = vmatmul.bf16.vlgmr.msra.gmra.mxu2 %v10911_v34  ;;  %6101 = vmatmul.bf16.vlgmr.msra.gmra.mxu3 %v10913_v59  ;;  %v9984_v1 = vld [vmem:[#allocation7 + $0x64] sm:$0xf0]  ;;  %v10076_v29 = vld [vmem:[#allocation7 + $0x34c] sm:$0xf] }
 0x520   :  { %6114 = vmatmul.bf16.vlgmr.msrb.gmra.mxu0 %v10915_v38  ;;  %6127 = vmatmul.bf16.vlgmr.msrb.gmra.mxu1 %v10917_v24  ;;  %v8749_v40 = vld [vmem:[#allocation7 + $0x248] sm:$0xf]  ;;  %v8494_v22 = vor.u32 %v9984_v1, %v8493_v18  ;;  %v8879_v13 = vld [vmem:[#allocation7 + $0x368] sm:$0xf0] }
 0x521   :  { %6136 = vmatpush.bf16.msrb.mxu2 %v8558_v25  ;;  %6149 = vmatpush.bf16.msrb.mxu3 %v8814_v57  ;;  %v10048_v41 = vld [vmem:[#allocation7 + $0x264] sm:$0xf0]  ;;  %v8658_v25 = vor.u32 %v10020_v15, %v8655_v63  ;;  %v8914_v57 = vor.u32 %v10084_v32, %v8911_v10  ;;  %v10140_v16 = vld [vmem:[#allocation7 + $0x54c] sm:$0xf] }
 0x522   :  { %6162 = vmatpush.bf16.msra.mxu0 %v9070_v28  ;;  %6175 = vmatpush.bf16.msra.mxu1 %v9326_v47  ;;  %v9005_v36 = vld [vmem:[#allocation7 + $0x448] sm:$0xf]  ;;  %v8750_v51 = vor.u32 %v10048_v41, %v8749_v40  ;;  %v9170_v28 = vor.u32 %v10148_v39, %v9167_v7  ;;  %v9426_v47 = vor.u32 %v10212_v12, %v9423_v20  ;;  %v9135_v31 = vld [vmem:[#allocation7 + $0x568] sm:$0xf0] }
 0x523   :  { %v10112_v43 = vld [vmem:[#allocation7 + $0x464] sm:$0xf0]  ;;  %v10204_v37 = vld [vmem:[#allocation7 + $0x74c] sm:$0xf] }
 0x524   :  { %v9261_v17 = vld [vmem:[#allocation7 + $0x648] sm:$0xf]  ;;  %v9006_v42 = vor.u32 %v10112_v43, %v9005_v36  ;;  %v9391_v60 = vld [vmem:[#allocation7 + $0x768] sm:$0xf0] }
 0x525   :  { %v10176_v44 = vld [vmem:[#allocation7 + $0x664] sm:$0xf0]  ;;  %6137 = vmatpush.bf16.msrb.mxu2 %v8526_v30  ;;  %6150 = vmatpush.bf16.msrb.mxu3 %v8782_v33  ;;  %v8626_v30 = vor.u32 %v10012_v46, %v8623_v2  ;;  %v8882_v33 = vor.u32 %v10076_v29, %v8879_v13  ;;  %v10004_v18 = vld [vmem:[#allocation7 + $0x10c] sm:$0xf] }
 0x526   :  { %v8461_v45 = vld [vmem:[#allocation7 + $0x8] sm:$0xf]  ;;  %6163 = vmatpush.bf16.msra.mxu0 %v9038_v23  ;;  %6176 = vmatpush.bf16.msra.mxu1 %v9294_v21  ;;  %v9262_v4 = vor.u32 %v10176_v44, %v9261_v17  ;;  %v8591_v1 = vld [vmem:[#allocation7 + $0x128] sm:$0xf0]  ;;  %v9138_v23 = vor.u32 %v10140_v16, %v9135_v31  ;;  %v9394_v21 = vor.u32 %v10204_v37, %v9391_v60 }
 0x527   :  { %v9976_v19 = vld [vmem:[#allocation7 + $0x24] sm:$0xf0]  ;;  %v10068_v40 = vld [vmem:[#allocation7 + $0x30c] sm:$0xf] }
 0x528   :  { %v8717_v26 = vld [vmem:[#allocation7 + $0x208] sm:$0xf]  ;;  %v8462_v50 = vor.u32 %v9976_v19, %v8461_v45  ;;  %v8847_v41 = vld [vmem:[#allocation7 + $0x328] sm:$0xf0]  ;;  %v8594_v45 = vor.u32 %v10004_v18, %v8591_v1  ;;  %v8949_v18 = vld [vmem:[#allocation7 + $0x3d0] sm:$0xf] }
 0x529   :  { %v10040_v35 = vld [vmem:[#allocation7 + $0x224] sm:$0xf0]  ;;  %6138 = vmatpush.bf16.msrb.mxu2 %v8494_v22  ;;  %6151 = vmatpush.bf16.msrb.mxu3 %v8750_v51  ;;  %v10132_v36 = vld [vmem:[#allocation7 + $0x50c] sm:$0xf]  ;;  %v8850_v22 = vor.u32 %v10068_v40, %v8847_v41  ;;  %v10097_v1 = vld [vmem:[#allocation7 + $0x3ec] sm:$0xf0] }
 0x52a   :  { %v8973_v6 = vld [vmem:[#allocation7 + $0x408] sm:$0xf]  ;;  %v8718_v61 = vor.u32 %v10040_v35, %v8717_v26  ;;  %6164 = vmatpush.bf16.msra.mxu0 %v9006_v42  ;;  %6177 = vmatpush.bf16.msra.mxu1 %v9262_v4  ;;  %v9103_v43 = vld [vmem:[#allocation7 + $0x528] sm:$0xf0]  ;;  %v10161_v41 = vld [vmem:[#allocation7 + $0x5ec] sm:$0xf0] }
 0x52b   :  { %v10104_v49 = vld [vmem:[#allocation7 + $0x424] sm:$0xf0]  ;;  %v10196_v17 = vld [vmem:[#allocation7 + $0x70c] sm:$0xf]  ;;  %v9106_v26 = vor.u32 %v10132_v36, %v9103_v43  ;;  %v9461_v36 = vld [vmem:[#allocation7 + $0x7d0] sm:$0xf] }
 0x52c   :  { %v9229_v52 = vld [vmem:[#allocation7 + $0x608] sm:$0xf]  ;;  %v8974_v62 = vor.u32 %v10104_v49, %v8973_v6  ;;  %v9359_v44 = vld [vmem:[#allocation7 + $0x728] sm:$0xf0]  ;;  %v10225_v43 = vld [vmem:[#allocation7 + $0x7ec] sm:$0xf0] }
 0x52d   :  { %v10168_v11 = vld [vmem:[#allocation7 + $0x624] sm:$0xf0]  ;;  %6139 = vmatpush.bf16.msrb.mxu2 %v8462_v50  ;;  %6152 = vmatpush.bf16.msrb.mxu3 %v8718_v61  ;;  %v9996_v51 = vld [vmem:[#allocation7 + $0xcc] sm:$0xf]  ;;  %v9362_v35 = vor.u32 %v10196_v17, %v9359_v44 }
 0x52e   :  { %v9230_v8 = vor.u32 %v10168_v11, %v9229_v52  ;;  %6165 = vmatpush.bf16.msra.mxu0 %v8974_v62  ;;  %v8559_v19 = vld [vmem:[#allocation7 + $0xe8] sm:$0xf0] }
 0x52f   :  { %v10060_v42 = vld [vmem:[#allocation7 + $0x2cc] sm:$0xf]  ;;  %v8562_v48 = vor.u32 %v9996_v51, %v8559_v19  ;;  %v8661_v51 = vld [vmem:[#allocation7 + $0x190] sm:$0xf] }
 0x530   :  { %6178 = vmatpush.bf16.msra.mxu1 %v9230_v8  ;;  %6140 = vmatmul.bf16.vlgmr.msrb.gmra.mxu2 %v10911_v34  ;;  %v8815_v4 = vld [vmem:[#allocation7 + $0x2e8] sm:$0xf0]  ;;  %v10025_v19 = vld [vmem:[#allocation7 + $0x1ac] sm:$0xf0] }
 0x531   :  { %6184 = vmatpush.bf16.msra.mxu2 %v8690_v14  ;;  %6197 = vmatpush.bf16.msra.mxu3 %v8946_v27  ;;  %v10124_v6 = vld [vmem:[#allocation7 + $0x4cc] sm:$0xf]  ;;  %v8818_v53 = vor.u32 %v10060_v42, %v8815_v4  ;;  %v8917_v42 = vld [vmem:[#allocation7 + $0x390] sm:$0xf] }
 0x532   :  { %6210 = vmatpush.bf16.msrb.mxu0 %v9202_v5  ;;  %6153 = vmatmul.bf16.vlgmr.msrb.gmra.mxu3 %v10913_v59  ;;  %v9071_v49 = vld [vmem:[#allocation7 + $0x4e8] sm:$0xf0]  ;;  %v10089_v4 = vld [vmem:[#allocation7 + $0x3ac] sm:$0xf0] }
 0x533   :  { %6166 = vmatmul.bf16.vlgmr.msra.gmra.mxu0 %v10915_v38  ;;  %6179 = vmatmul.bf16.vlgmr.msra.gmra.mxu1 %v10917_v24  ;;  %v10188_v52 = vld [vmem:[#allocation7 + $0x6cc] sm:$0xf]  ;;  %v9074_v56 = vor.u32 %v10124_v6, %v9071_v49  ;;  %v9173_v6 = vld [vmem:[#allocation7 + $0x590] sm:$0xf] }
 0x534   :  { %6223 = vmatpush.bf16.msrb.mxu1 %v9458_v9  ;;  %v9327_v11 = vld [vmem:[#allocation7 + $0x6e8] sm:$0xf0]  ;;  %v10153_v49 = vld [vmem:[#allocation7 + $0x5ac] sm:$0xf0] }
 0x535   :  { %6185 = vmatpush.bf16.msra.mxu2 %v8658_v25  ;;  %6198 = vmatpush.bf16.msra.mxu3 %v8914_v57  ;;  %v9988_v54 = vld [vmem:[#allocation7 + $0x8c] sm:$0xf]  ;;  %v9330_v50 = vor.u32 %v10188_v52, %v9327_v11  ;;  %v9429_v52 = vld [vmem:[#allocation7 + $0x790] sm:$0xf] }
 0x536   :  { %6211 = vmatpush.bf16.msrb.mxu0 %v9170_v28  ;;  %v8527_v55 = vld [vmem:[#allocation7 + $0xa8] sm:$0xf0]  ;;  %v10217_v11 = vld [vmem:[#allocation7 + $0x7ac] sm:$0xf0] }
 0x537   :  { %v10052_v61 = vld [vmem:[#allocation7 + $0x28c] sm:$0xf]  ;;  %v8530_v14 = vor.u32 %v9988_v54, %v8527_v55  ;;  %v8629_v54 = vld [vmem:[#allocation7 + $0x150] sm:$0xf] }
 0x538   :  { %6224 = vmatpush.bf16.msrb.mxu1 %v9426_v47  ;;  %v8783_v0 = vld [vmem:[#allocation7 + $0x2a8] sm:$0xf0]  ;;  %v10017_v55 = vld [vmem:[#allocation7 + $0x16c] sm:$0xf0] }
 0x539   :  { %6186 = vmatpush.bf16.msra.mxu2 %v8626_v30  ;;  %6199 = vmatpush.bf16.msra.mxu3 %v8882_v33  ;;  %v10116_v58 = vld [vmem:[#allocation7 + $0x48c] sm:$0xf]  ;;  %v8786_v27 = vor.u32 %v10052_v61, %v8783_v0  ;;  %v8693_v30 = vld [vmem:[#allocation7 + $0x1d0] sm:$0xf] }
 0x53a   :  { %6212 = vmatpush.bf16.msrb.mxu0 %v9138_v23  ;;  %v9039_v3 = vld [vmem:[#allocation7 + $0x4a8] sm:$0xf0]  ;;  %v10033_v33 = vld [vmem:[#allocation7 + $0x1ec] sm:$0xf0] }
 0x53b   :  { %v10180_v62 = vld [vmem:[#allocation7 + $0x68c] sm:$0xf]  ;;  %v9042_v5 = vor.u32 %v10116_v58, %v9039_v3  ;;  %v9205_v23 = vld [vmem:[#allocation7 + $0x5d0] sm:$0xf] }
 0x53c   :  { %6225 = vmatpush.bf16.msrb.mxu1 %v9394_v21  ;;  %v9295_v8 = vld [vmem:[#allocation7 + $0x6a8] sm:$0xf0]  ;;  %v8885_v61 = vld [vmem:[#allocation7 + $0x350] sm:$0xf] }
 0x53d   :  { %6187 = vmatpush.bf16.msra.mxu2 %v8594_v45  ;;  %6200 = vmatpush.bf16.msra.mxu3 %v8850_v22  ;;  %v9980_v15 = vld [vmem:[#allocation7 + $0x4c] sm:$0xf]  ;;  %v9298_v9 = vor.u32 %v10180_v62, %v9295_v8  ;;  %v8694_v45 = vor.u32 %v10033_v33, %v8693_v30  ;;  %v8950_v22 = vor.u32 %v10097_v1, %v8949_v18  ;;  %v10081_v0 = vld [vmem:[#allocation7 + $0x36c] sm:$0xf0] }
 0x53e   :  { %6213 = vmatpush.bf16.msrb.mxu0 %v9106_v26  ;;  %v8495_v63 = vld [vmem:[#allocation7 + $0x68] sm:$0xf0]  ;;  %v9206_v26 = vor.u32 %v10161_v41, %v9205_v23  ;;  %v9141_v58 = vld [vmem:[#allocation7 + $0x550] sm:$0xf] }
 0x53f   :  { %v10044_v32 = vld [vmem:[#allocation7 + $0x24c] sm:$0xf]  ;;  %v8498_v57 = vor.u32 %v9980_v15, %v8495_v63  ;;  %v10145_v3 = vld [vmem:[#allocation7 + $0x56c] sm:$0xf0] }
 0x540   :  { %6226 = vmatpush.bf16.msrb.mxu1 %v9362_v35  ;;  %v8751_v10 = vld [vmem:[#allocation7 + $0x268] sm:$0xf0]  ;;  %v9462_v35 = vor.u32 %v10225_v43, %v9461_v36  ;;  %v9397_v62 = vld [vmem:[#allocation7 + $0x750] sm:$0xf] }
 0x541   :  { %6188 = vmatpush.bf16.msra.mxu2 %v8562_v48  ;;  %6201 = vmatpush.bf16.msra.mxu3 %v8818_v53  ;;  %v10108_v39 = vld [vmem:[#allocation7 + $0x44c] sm:$0xf]  ;;  %v8754_v46 = vor.u32 %v10044_v32, %v8751_v10  ;;  %v8662_v48 = vor.u32 %v10025_v19, %v8661_v51  ;;  %v8918_v53 = vor.u32 %v10089_v4, %v8917_v42  ;;  %v10209_v8 = vld [vmem:[#allocation7 + $0x76c] sm:$0xf0] }
 0x542   :  { %6214 = vmatpush.bf16.msrb.mxu0 %v9074_v56  ;;  %v9007_v7 = vld [vmem:[#allocation7 + $0x468] sm:$0xf0]  ;;  %v9174_v56 = vor.u32 %v10153_v49, %v9173_v6  ;;  %v8597_v15 = vld [vmem:[#allocation7 + $0x110] sm:$0xf] }
 0x543   :  { %v10172_v12 = vld [vmem:[#allocation7 + $0x64c] sm:$0xf]  ;;  %v9010_v29 = vor.u32 %v10108_v39, %v9007_v7  ;;  %v10009_v63 = vld [vmem:[#allocation7 + $0x12c] sm:$0xf0] }
 0x544   :  { %6227 = vmatpush.bf16.msrb.mxu1 %v9330_v50  ;;  %v9263_v20 = vld [vmem:[#allocation7 + $0x668] sm:$0xf0]  ;;  %v9430_v50 = vor.u32 %v10217_v11, %v9429_v52  ;;  %v8853_v32 = vld [vmem:[#allocation7 + $0x310] sm:$0xf] }
 0x545   :  { %v9972_v25 = vld [vmem:[#allocation7 + $0xc] sm:$0xf]  ;;  %6189 = vmatpush.bf16.msra.mxu2 %v8530_v14  ;;  %6202 = vmatpush.bf16.msra.mxu3 %v8786_v27  ;;  %v9266_v13 = vor.u32 %v10172_v12, %v9263_v20  ;;  %v8630_v14 = vor.u32 %v10017_v55, %v8629_v54  ;;  %v8886_v27 = vor.u32 %v10081_v0, %v8885_v61  ;;  %v10073_v10 = vld [vmem:[#allocation7 + $0x32c] sm:$0xf0] }
 0x546   :  { %v8463_v2 = vld [vmem:[#allocation7 + $0x28] sm:$0xf0]  ;;  %6215 = vmatpush.bf16.msrb.mxu0 %v9042_v5  ;;  %v9142_v5 = vor.u32 %v10145_v3, %v9141_v58  ;;  %v9109_v39 = vld [vmem:[#allocation7 + $0x510] sm:$0xf] }
 0x547   :  { %v10036_v28 = vld [vmem:[#allocation7 + $0x20c] sm:$0xf]  ;;  %v8466_v21 = vor.u32 %v9972_v25, %v8463_v2  ;;  %v10137_v7 = vld [vmem:[#allocation7 + $0x52c] sm:$0xf0]  ;;  %v8598_v25 = vor.u32 %v10009_v63, %v8597_v15  ;;  %v10093_v15 = vld [vmem:[#allocation7 + $0x3d4] sm:$0xf] }
 0x548   :  { %v8719_v47 = vld [vmem:[#allocation7 + $0x228] sm:$0xf0]  ;;  %6228 = vmatpush.bf16.msrb.mxu1 %v9298_v9  ;;  %v9398_v9 = vor.u32 %v10209_v8, %v9397_v62  ;;  %v9365_v12 = vld [vmem:[#allocation7 + $0x710] sm:$0xf]  ;;  %v8951_v63 = vld [vmem:[#allocation7 + $0x3f0] sm:$0xf0] }
 0x549   :  { %v10100_v16 = vld [vmem:[#allocation7 + $0x40c] sm:$0xf]  ;;  %6190 = vmatpush.bf16.msra.mxu2 %v8498_v57  ;;  %6203 = vmatpush.bf16.msra.mxu3 %v8754_v46  ;;  %v8722_v40 = vor.u32 %v10036_v28, %v8719_v47  ;;  %v10201_v20 = vld [vmem:[#allocation7 + $0x72c] sm:$0xf0]  ;;  %v8854_v57 = vor.u32 %v10073_v10, %v8853_v32  ;;  %v9110_v28 = vor.u32 %v10137_v7, %v9109_v39  ;;  %v9207_v10 = vld [vmem:[#allocation7 + $0x5f0] sm:$0xf0] }
 0x54a   :  { %v8975_v31 = vld [vmem:[#allocation7 + $0x428] sm:$0xf0]  ;;  %6216 = vmatpush.bf16.msrb.mxu0 %v9010_v29  ;;  %v8565_v46 = vld [vmem:[#allocation7 + $0xd0] sm:$0xf]  ;;  %v9366_v47 = vor.u32 %v10201_v20, %v9365_v12  ;;  %v10221_v39 = vld [vmem:[#allocation7 + $0x7d4] sm:$0xf] }
 0x54b   :  { %v10164_v37 = vld [vmem:[#allocation7 + $0x60c] sm:$0xf]  ;;  %v8978_v17 = vor.u32 %v10100_v16, %v8975_v31  ;;  %v10001_v2 = vld [vmem:[#allocation7 + $0xec] sm:$0xf0]  ;;  %v9463_v7 = vld [vmem:[#allocation7 + $0x7f0] sm:$0xf0] }
 0x54c   :  { %v9231_v60 = vld [vmem:[#allocation7 + $0x628] sm:$0xf0]  ;;  %6229 = vmatpush.bf16.msrb.mxu1 %v9266_v13  ;;  %v8821_v29 = vld [vmem:[#allocation7 + $0x2d0] sm:$0xf]  ;;  %v8566_v30 = vor.u32 %v10001_v2, %v8565_v46  ;;  %v10021_v46 = vld [vmem:[#allocation7 + $0x194] sm:$0xf] }
 0x54d   :  { %v9234_v44 = vor.u32 %v10164_v37, %v9231_v60  ;;  %6191 = vmatpush.bf16.msra.mxu2 %v8466_v21  ;;  %6204 = vmatpush.bf16.msra.mxu3 %v8722_v40  ;;  %v10065_v13 = vld [vmem:[#allocation7 + $0x2ec] sm:$0xf0]  ;;  %v8663_v2 = vld [vmem:[#allocation7 + $0x1b0] sm:$0xf0] }
 0x54e   :  { %6217 = vmatpush.bf16.msrb.mxu0 %v8978_v17  ;;  %v9077_v16 = vld [vmem:[#allocation7 + $0x4d0] sm:$0xf]  ;;  %v8822_v33 = vor.u32 %v10065_v13, %v8821_v29  ;;  %v10085_v29 = vld [vmem:[#allocation7 + $0x394] sm:$0xf] }
 0x54f   :  { %v10129_v31 = vld [vmem:[#allocation7 + $0x4ec] sm:$0xf0]  ;;  %v8919_v13 = vld [vmem:[#allocation7 + $0x3b0] sm:$0xf0] }
 0x550   :  { %6230 = vmatpush.bf16.msrb.mxu1 %v9234_v44  ;;  %6192 = vmatmul.bf16.vlgmr.msra.gmra.mxu2 %v10911_v34  ;;  %v9333_v37 = vld [vmem:[#allocation7 + $0x6d0] sm:$0xf]  ;;  %v9078_v23 = vor.u32 %v10129_v31, %v9077_v16  ;;  %v10149_v16 = vld [vmem:[#allocation7 + $0x594] sm:$0xf] }
 0x551   :  { %6236 = vmatpush.bf16.msrb.mxu2 %v8694_v45  ;;  %6249 = vmatpush.bf16.msrb.mxu3 %v8950_v22  ;;  %v10193_v60 = vld [vmem:[#allocation7 + $0x6ec] sm:$0xf0]  ;;  %v9175_v31 = vld [vmem:[#allocation7 + $0x5b0] sm:$0xf0] }
 0x552   :  { %6262 = vmatpush.bf16.msra.mxu0 %v9206_v26  ;;  %6205 = vmatmul.bf16.vlgmr.msra.gmra.mxu3 %v10913_v59  ;;  %v8533_v18 = vld [vmem:[#allocation7 + $0x90] sm:$0xf]  ;;  %v9334_v21 = vor.u32 %v10193_v60, %v9333_v37  ;;  %v10213_v37 = vld [vmem:[#allocation7 + $0x794] sm:$0xf] }
 0x553   :  { %6218 = vmatmul.bf16.vlgmr.msrb.gmra.mxu0 %v10915_v38  ;;  %6231 = vmatmul.bf16.vlgmr.msrb.gmra.mxu1 %v10917_v24  ;;  %v9993_v1 = vld [vmem:[#allocation7 + $0xac] sm:$0xf0]  ;;  %v9431_v60 = vld [vmem:[#allocation7 + $0x7b0] sm:$0xf0] }
 0x554   :  { %6275 = vmatpush.bf16.msra.mxu1 %v9462_v35  ;;  %v8789_v40 = vld [vmem:[#allocation7 + $0x290] sm:$0xf]  ;;  %v8534_v45 = vor.u32 %v9993_v1, %v8533_v18  ;;  %v10013_v18 = vld [vmem:[#allocation7 + $0x154] sm:$0xf] }
 0x555   :  { %6237 = vmatpush.bf16.msrb.mxu2 %v8662_v48  ;;  %6250 = vmatpush.bf16.msrb.mxu3 %v8918_v53  ;;  %v10057_v41 = vld [vmem:[#allocation7 + $0x2ac] sm:$0xf0]  ;;  %v8631_v1 = vld [vmem:[#allocation7 + $0x170] sm:$0xf0] }
 0x556   :  { %6263 = vmatpush.bf16.msra.mxu0 %v9174_v56  ;;  %v9045_v36 = vld [vmem:[#allocation7 + $0x490] sm:$0xf]  ;;  %v8790_v22 = vor.u32 %v10057_v41, %v8789_v40  ;;  %v10077_v40 = vld [vmem:[#allocation7 + $0x354] sm:$0xf] }
 0x557   :  { %v10121_v43 = vld [vmem:[#allocation7 + $0x4ac] sm:$0xf0]  ;;  %v8887_v41 = vld [vmem:[#allocation7 + $0x370] sm:$0xf0] }
 0x558   :  { %6276 = vmatpush.bf16.msra.mxu1 %v9430_v50  ;;  %v9301_v17 = vld [vmem:[#allocation7 + $0x690] sm:$0xf]  ;;  %v9046_v26 = vor.u32 %v10121_v43, %v9045_v36  ;;  %v10141_v36 = vld [vmem:[#allocation7 + $0x554] sm:$0xf] }
 0x559   :  { %6238 = vmatpush.bf16.msrb.mxu2 %v8630_v14  ;;  %6251 = vmatpush.bf16.msrb.mxu3 %v8886_v27  ;;  %v10185_v44 = vld [vmem:[#allocation7 + $0x6ac] sm:$0xf0]  ;;  %v10029_v14 = vld [vmem:[#allocation7 + $0x1d4] sm:$0xf] }
 0x55a   :  { %6264 = vmatpush.bf16.msra.mxu0 %v9142_v5  ;;  %v8501_v51 = vld [vmem:[#allocation7 + $0x50] sm:$0xf]  ;;  %v9302_v35 = vor.u32 %v10185_v44, %v9301_v17  ;;  %v8695_v27 = vld [vmem:[#allocation7 + $0x1f0] sm:$0xf0] }
 0x55b   :  { %v9985_v19 = vld [vmem:[#allocation7 + $0x6c] sm:$0xf0]  ;;  %v10157_v5 = vld [vmem:[#allocation7 + $0x5d4] sm:$0xf] }
 0x55c   :  { %6277 = vmatpush.bf16.msra.mxu1 %v9398_v9  ;;  %v8757_v42 = vld [vmem:[#allocation7 + $0x250] sm:$0xf]  ;;  %v8502_v53 = vor.u32 %v9985_v19, %v8501_v51  ;;  %v9143_v43 = vld [vmem:[#allocation7 + $0x570] sm:$0xf0] }
 0x55d   :  { %6239 = vmatpush.bf16.msrb.mxu2 %v8598_v25  ;;  %6252 = vmatpush.bf16.msrb.mxu3 %v8854_v57  ;;  %v10049_v4 = vld [vmem:[#allocation7 + $0x26c] sm:$0xf0]  ;;  %v8698_v25 = vor.u32 %v10029_v14, %v8695_v27  ;;  %v8954_v57 = vor.u32 %v10093_v15, %v8951_v63  ;;  %v10205_v17 = vld [vmem:[#allocation7 + $0x754] sm:$0xf] }
 0x55e   :  { %6265 = vmatpush.bf16.msra.mxu0 %v9110_v28  ;;  %v9013_v6 = vld [vmem:[#allocation7 + $0x450] sm:$0xf]  ;;  %v8758_v54 = vor.u32 %v10049_v4, %v8757_v42  ;;  %v9210_v28 = vor.u32 %v10157_v5, %v9207_v10  ;;  %v9399_v44 = vld [vmem:[#allocation7 + $0x770] sm:$0xf0] }
 0x55f   :  { %v10113_v49 = vld [vmem:[#allocation7 + $0x46c] sm:$0xf0]  ;;  %v10005_v51 = vld [vmem:[#allocation7 + $0x114] sm:$0xf] }
 0x560   :  { %6278 = vmatpush.bf16.msra.mxu1 %v9366_v47  ;;  %v9269_v52 = vld [vmem:[#allocation7 + $0x650] sm:$0xf]  ;;  %v9014_v61 = vor.u32 %v10113_v49, %v9013_v6  ;;  %v9466_v47 = vor.u32 %v10221_v39, %v9463_v7  ;;  %v8599_v19 = vld [vmem:[#allocation7 + $0x130] sm:$0xf0] }
 0x561   :  { %6240 = vmatpush.bf16.msrb.mxu2 %v8566_v30  ;;  %6253 = vmatpush.bf16.msrb.mxu3 %v8822_v33  ;;  %v10177_v11 = vld [vmem:[#allocation7 + $0x66c] sm:$0xf0]  ;;  %v8666_v30 = vor.u32 %v10021_v46, %v8663_v2  ;;  %v8922_v33 = vor.u32 %v10085_v29, %v8919_v13  ;;  %v10069_v42 = vld [vmem:[#allocation7 + $0x314] sm:$0xf] }
 0x562   :  { %6266 = vmatpush.bf16.msra.mxu0 %v9078_v23  ;;  %v8469_v48 = vld [vmem:[#allocation7 + $0x10] sm:$0xf]  ;;  %v9270_v0 = vor.u32 %v10177_v11, %v9269_v52  ;;  %v9178_v23 = vor.u32 %v10149_v16, %v9175_v31  ;;  %v8855_v4 = vld [vmem:[#allocation7 + $0x330] sm:$0xf0] }
 0x563   :  { %v9977_v55 = vld [vmem:[#allocation7 + $0x2c] sm:$0xf0]  ;;  %v10133_v6 = vld [vmem:[#allocation7 + $0x514] sm:$0xf] }
 0x564   :  { %6279 = vmatpush.bf16.msra.mxu1 %v9334_v21  ;;  %v8725_v56 = vld [vmem:[#allocation7 + $0x210] sm:$0xf]  ;;  %v8470_v9 = vor.u32 %v9977_v55, %v8469_v48  ;;  %v9434_v21 = vor.u32 %v10213_v37, %v9431_v60  ;;  %v9111_v49 = vld [vmem:[#allocation7 + $0x530] sm:$0xf0]  ;;  %v8602_v48 = vor.u32 %v10005_v51, %v8599_v19  ;;  %v8957_v51 = vld [vmem:[#allocation7 + $0x3d8] sm:$0xf] }
 0x565   :  { %6241 = vmatpush.bf16.msrb.mxu2 %v8534_v45  ;;  %6254 = vmatpush.bf16.msrb.mxu3 %v8790_v22  ;;  %v10041_v50 = vld [vmem:[#allocation7 + $0x22c] sm:$0xf0]  ;;  %v8634_v45 = vor.u32 %v10013_v18, %v8631_v1  ;;  %v8890_v22 = vor.u32 %v10077_v40, %v8887_v41  ;;  %v10197_v52 = vld [vmem:[#allocation7 + $0x714] sm:$0xf]  ;;  %v10098_v19 = vld [vmem:[#allocation7 + $0x3f4] sm:$0xf0] }
 0x566   :  { %6267 = vmatpush.bf16.msra.mxu0 %v9046_v26  ;;  %v8981_v58 = vld [vmem:[#allocation7 + $0x410] sm:$0xf]  ;;  %v8726_v32 = vor.u32 %v10041_v50, %v8725_v56  ;;  %v9146_v26 = vor.u32 %v10141_v36, %v9143_v43  ;;  %v9367_v11 = vld [vmem:[#allocation7 + $0x730] sm:$0xf0]  ;;  %v9114_v56 = vor.u32 %v10133_v6, %v9111_v49  ;;  %v9469_v6 = vld [vmem:[#allocation7 + $0x7d8] sm:$0xf] }
 0x567   :  { %v10105_v3 = vld [vmem:[#allocation7 + $0x42c] sm:$0xf0]  ;;  %v8567_v55 = vld [vmem:[#allocation7 + $0xf0] sm:$0xf0]  ;;  %v9370_v50 = vor.u32 %v10197_v52, %v9367_v11  ;;  %v10226_v49 = vld [vmem:[#allocation7 + $0x7f4] sm:$0xf0] }
 0x568   :  { %6280 = vmatpush.bf16.msra.mxu1 %v9302_v35  ;;  %v9237_v62 = vld [vmem:[#allocation7 + $0x610] sm:$0xf]  ;;  %v8982_v12 = vor.u32 %v10105_v3, %v8981_v58  ;;  %v9402_v35 = vor.u32 %v10205_v17, %v9399_v44  ;;  %v10125_v58 = vld [vmem:[#allocation7 + $0x4d4] sm:$0xf] }
 0x569   :  { %v10169_v8 = vld [vmem:[#allocation7 + $0x62c] sm:$0xf0]  ;;  %6242 = vmatpush.bf16.msrb.mxu2 %v8502_v53  ;;  %6255 = vmatpush.bf16.msrb.mxu3 %v8758_v54  ;;  %v8858_v53 = vor.u32 %v10069_v42, %v8855_v4  ;;  %v9997_v54 = vld [vmem:[#allocation7 + $0xd4] sm:$0xf]  ;;  %v10162_v4 = vld [vmem:[#allocation7 + $0x5f4] sm:$0xf0] }
 0x56a   :  { %6268 = vmatpush.bf16.msra.mxu0 %v9014_v61  ;;  %v9238_v20 = vor.u32 %v10169_v8, %v9237_v62  ;;  %v10061_v61 = vld [vmem:[#allocation7 + $0x2d4] sm:$0xf]  ;;  %v8570_v14 = vor.u32 %v9997_v54, %v8567_v55  ;;  %v8669_v54 = vld [vmem:[#allocation7 + $0x198] sm:$0xf] }
 0x56b   :  { %v9079_v3 = vld [vmem:[#allocation7 + $0x4f0] sm:$0xf0]  ;;  %v10026_v55 = vld [vmem:[#allocation7 + $0x1b4] sm:$0xf0] }
 0x56c   :  { %6281 = vmatpush.bf16.msra.mxu1 %v9270_v0  ;;  %v8823_v0 = vld [vmem:[#allocation7 + $0x2f0] sm:$0xf0]  ;;  %v9082_v5 = vor.u32 %v10125_v58, %v9079_v3  ;;  %v9181_v58 = vld [vmem:[#allocation7 + $0x598] sm:$0xf] }
 0x56d   :  { %6243 = vmatpush.bf16.msrb.mxu2 %v8470_v9  ;;  %6256 = vmatpush.bf16.msrb.mxu3 %v8726_v32  ;;  %v10189_v62 = vld [vmem:[#allocation7 + $0x6d4] sm:$0xf]  ;;  %v8826_v27 = vor.u32 %v10061_v61, %v8823_v0  ;;  %v8925_v61 = vld [vmem:[#allocation7 + $0x398] sm:$0xf] }
 0x56e   :  { %6269 = vmatpush.bf16.msra.mxu0 %v8982_v12  ;;  %v9335_v8 = vld [vmem:[#allocation7 + $0x6f0] sm:$0xf0]  ;;  %v10090_v0 = vld [vmem:[#allocation7 + $0x3b4] sm:$0xf0] }
 0x56f   :  { %v9989_v15 = vld [vmem:[#allocation7 + $0x94] sm:$0xf]  ;;  %v9338_v9 = vor.u32 %v10189_v62, %v9335_v8  ;;  %v10154_v3 = vld [vmem:[#allocation7 + $0x5b4] sm:$0xf0] }
 0x570   :  { %6282 = vmatpush.bf16.msra.mxu1 %v9238_v20  ;;  %6244 = vmatmul.bf16.vlgmr.msrb.gmra.mxu2 %v10911_v34  ;;  %v8535_v63 = vld [vmem:[#allocation7 + $0xb0] sm:$0xf0]  ;;  %v9437_v62 = vld [vmem:[#allocation7 + $0x798] sm:$0xf] }
 0x571   :  { %6288 = vmatpush.bf16.msra.mxu2 %v8698_v25  ;;  %6301 = vmatpush.bf16.msra.mxu3 %v8954_v57  ;;  %v10053_v32 = vld [vmem:[#allocation7 + $0x294] sm:$0xf]  ;;  %v8538_v25 = vor.u32 %v9989_v15, %v8535_v63  ;;  %v10218_v8 = vld [vmem:[#allocation7 + $0x7b4] sm:$0xf0] }
 0x572   :  { %6314 = vmatpush.bf16.msrb.mxu0 %v9210_v28  ;;  %6257 = vmatmul.bf16.vlgmr.msrb.gmra.mxu3 %v10913_v59  ;;  %v8791_v10 = vld [vmem:[#allocation7 + $0x2b0] sm:$0xf0]  ;;  %v8637_v15 = vld [vmem:[#allocation7 + $0x158] sm:$0xf] }
 0x573   :  { %6270 = vmatmul.bf16.vlgmr.msra.gmra.mxu0 %v10915_v38  ;;  %6283 = vmatmul.bf16.vlgmr.msra.gmra.mxu1 %v10917_v24  ;;  %v10117_v39 = vld [vmem:[#allocation7 + $0x494] sm:$0xf]  ;;  %v8794_v57 = vor.u32 %v10053_v32, %v8791_v10  ;;  %v10018_v63 = vld [vmem:[#allocation7 + $0x174] sm:$0xf0] }
 0x574   :  { %6327 = vmatpush.bf16.msrb.mxu1 %v9466_v47  ;;  %v9047_v7 = vld [vmem:[#allocation7 + $0x4b0] sm:$0xf0]  ;;  %v8893_v32 = vld [vmem:[#allocation7 + $0x358] sm:$0xf] }
 0x575   :  { %6289 = vmatpush.bf16.msra.mxu2 %v8666_v30  ;;  %6302 = vmatpush.bf16.msra.mxu3 %v8922_v33  ;;  %v10181_v12 = vld [vmem:[#allocation7 + $0x694] sm:$0xf]  ;;  %v9050_v28 = vor.u32 %v10117_v39, %v9047_v7  ;;  %v10082_v10 = vld [vmem:[#allocation7 + $0x374] sm:$0xf0] }
 0x576   :  { %6315 = vmatpush.bf16.msrb.mxu0 %v9178_v23  ;;  %v9303_v20 = vld [vmem:[#allocation7 + $0x6b0] sm:$0xf0]  ;;  %v9149_v39 = vld [vmem:[#allocation7 + $0x558] sm:$0xf] }
 0x577   :  { %v9981_v46 = vld [vmem:[#allocation7 + $0x54] sm:$0xf]  ;;  %v9306_v47 = vor.u32 %v10181_v12, %v9303_v20  ;;  %v10146_v7 = vld [vmem:[#allocation7 + $0x574] sm:$0xf0] }
 0x578   :  { %6328 = vmatpush.bf16.msrb.mxu1 %v9434_v21  ;;  %v8503_v2 = vld [vmem:[#allocation7 + $0x70] sm:$0xf0]  ;;  %v9405_v12 = vld [vmem:[#allocation7 + $0x758] sm:$0xf] }
 0x579   :  { %6290 = vmatpush.bf16.msra.mxu2 %v8634_v45  ;;  %6303 = vmatpush.bf16.msra.mxu3 %v8890_v22  ;;  %v10045_v29 = vld [vmem:[#allocation7 + $0x254] sm:$0xf]  ;;  %v8506_v33 = vor.u32 %v9981_v46, %v8503_v2  ;;  %v8701_v45 = vld [vmem:[#allocation7 + $0x1d8] sm:$0xf] }
 0x57a   :  { %6316 = vmatpush.bf16.msrb.mxu0 %v9146_v26  ;;  %v8759_v13 = vld [vmem:[#allocation7 + $0x270] sm:$0xf0]  ;;  %v10034_v22 = vld [vmem:[#allocation7 + $0x1f4] sm:$0xf0] }
 0x57b   :  { %v10109_v16 = vld [vmem:[#allocation7 + $0x454] sm:$0xf]  ;;  %v8762_v18 = vor.u32 %v10045_v29, %v8759_v13  ;;  %v9213_v26 = vld [vmem:[#allocation7 + $0x5d8] sm:$0xf]  ;;  %v9150_v29 = vor.u32 %v10146_v7, %v9149_v39 }
 0x57c   :  { %6329 = vmatpush.bf16.msrb.mxu1 %v9402_v35  ;;  %v9015_v31 = vld [vmem:[#allocation7 + $0x470] sm:$0xf0]  ;;  %v10210_v20 = vld [vmem:[#allocation7 + $0x774] sm:$0xf0] }
 0x57d   :  { %6291 = vmatpush.bf16.msra.mxu2 %v8602_v48  ;;  %6304 = vmatpush.bf16.msra.mxu3 %v8858_v53  ;;  %v10173_v37 = vld [vmem:[#allocation7 + $0x654] sm:$0xf]  ;;  %v9018_v40 = vor.u32 %v10109_v16, %v9015_v31  ;;  %v8702_v48 = vor.u32 %v10034_v22, %v8701_v45  ;;  %v8958_v53 = vor.u32 %v10098_v19, %v8957_v51  ;;  %v8861_v16 = vld [vmem:[#allocation7 + $0x318] sm:$0xf] }
 0x57e   :  { %6317 = vmatpush.bf16.msrb.mxu0 %v9114_v56  ;;  %v9271_v60 = vld [vmem:[#allocation7 + $0x670] sm:$0xf0]  ;;  %v9214_v56 = vor.u32 %v10162_v4, %v9213_v26  ;;  %v9406_v13 = vor.u32 %v10210_v20, %v9405_v12  ;;  %v10074_v31 = vld [vmem:[#allocation7 + $0x334] sm:$0xf0] }
 0x57f   :  { %v9973_v30 = vld [vmem:[#allocation7 + $0x14] sm:$0xf]  ;;  %v9274_v41 = vor.u32 %v10173_v37, %v9271_v60  ;;  %v9117_v37 = vld [vmem:[#allocation7 + $0x518] sm:$0xf] }
 0x580   :  { %6330 = vmatpush.bf16.msrb.mxu1 %v9370_v50  ;;  %v8471_v1 = vld [vmem:[#allocation7 + $0x30] sm:$0xf0]  ;;  %v9470_v50 = vor.u32 %v10226_v49, %v9469_v6  ;;  %v10138_v60 = vld [vmem:[#allocation7 + $0x534] sm:$0xf0] }
 0x581   :  { %6292 = vmatpush.bf16.msra.mxu2 %v8570_v14  ;;  %6305 = vmatpush.bf16.msra.mxu3 %v8826_v27  ;;  %v10037_v23 = vld [vmem:[#allocation7 + $0x214] sm:$0xf]  ;;  %v8474_v35 = vor.u32 %v9973_v30, %v8471_v1  ;;  %v8670_v14 = vor.u32 %v10026_v55, %v8669_v54  ;;  %v8926_v27 = vor.u32 %v10090_v0, %v8925_v61  ;;  %v9373_v30 = vld [vmem:[#allocation7 + $0x718] sm:$0xf] }
 0x582   :  { %6318 = vmatpush.bf16.msrb.mxu0 %v9082_v5  ;;  %v8727_v21 = vld [vmem:[#allocation7 + $0x230] sm:$0xf0]  ;;  %v9182_v5 = vor.u32 %v10154_v3, %v9181_v58  ;;  %v8862_v1 = vor.u32 %v10074_v31, %v8861_v16  ;;  %v9085_v45 = vld [vmem:[#allocation7 + $0x4d8] sm:$0xf] }
 0x583   :  { %v10101_v36 = vld [vmem:[#allocation7 + $0x414] sm:$0xf]  ;;  %v8730_v42 = vor.u32 %v10037_v23, %v8727_v21  ;;  %v8573_v23 = vld [vmem:[#allocation7 + $0xd8] sm:$0xf] }
 0x584   :  { %6331 = vmatpush.bf16.msrb.mxu1 %v9338_v9  ;;  %v8983_v43 = vld [vmem:[#allocation7 + $0x430] sm:$0xf0]  ;;  %v9438_v9 = vor.u32 %v10218_v8, %v9437_v62  ;;  %v10002_v21 = vld [vmem:[#allocation7 + $0xf4] sm:$0xf0] }
 0x585   :  { %6293 = vmatpush.bf16.msra.mxu2 %v8538_v25  ;;  %6306 = vmatpush.bf16.msra.mxu3 %v8794_v57  ;;  %v10165_v17 = vld [vmem:[#allocation7 + $0x614] sm:$0xf]  ;;  %v8986_v52 = vor.u32 %v10101_v36, %v8983_v43  ;;  %v8638_v25 = vor.u32 %v10018_v63, %v8637_v15  ;;  %v8894_v57 = vor.u32 %v10082_v10, %v8893_v32  ;;  %v10130_v51 = vld [vmem:[#allocation7 + $0x4f4] sm:$0xf0] }
 0x586   :  { %6319 = vmatpush.bf16.msrb.mxu0 %v9050_v28  ;;  %v9239_v44 = vld [vmem:[#allocation7 + $0x630] sm:$0xf0]  ;;  %v8605_v28 = vld [vmem:[#allocation7 + $0x118] sm:$0xf] }
 0x587   :  { %v9242_v11 = vor.u32 %v10165_v17, %v9239_v44  ;;  %v8829_v17 = vld [vmem:[#allocation7 + $0x2d8] sm:$0xf] }
 0x588   :  { %6332 = vmatpush.bf16.msrb.mxu1 %v9306_v47  ;;  %v10010_v47 = vld [vmem:[#allocation7 + $0x134] sm:$0xf0] }
 0x589   :  { %6294 = vmatpush.bf16.msra.mxu2 %v8506_v33  ;;  %6307 = vmatpush.bf16.msra.mxu3 %v8762_v18  ;;  %v10202_v33 = vld [vmem:[#allocation7 + $0x734] sm:$0xf0]  ;;  %v8606_v18 = vor.u32 %v10010_v47, %v8605_v28 }
 0x58a   :  { %6320 = vmatpush.bf16.msrb.mxu0 %v9018_v40  ;;  %v9118_v40 = vor.u32 %v10138_v60, %v9117_v37  ;;  %v10066_v44 = vld [vmem:[#allocation7 + $0x2f4] sm:$0xf0] }
 0x58b   :  { %v9341_v19 = vld [vmem:[#allocation7 + $0x6d8] sm:$0xf]  ;;  %v8830_v4 = vor.u32 %v10066_v44, %v8829_v17  ;;  %v10222_v17 = vld [vmem:[#allocation7 + $0x7dc] sm:$0xf] }
 0x58c   :  { %6333 = vmatpush.bf16.msrb.mxu1 %v9274_v41  ;;  %v9374_v41 = vor.u32 %v10202_v33, %v9373_v30  ;;  %v10194_v26 = vld [vmem:[#allocation7 + $0x6f4] sm:$0xf0]  ;;  %v9471_v44 = vld [vmem:[#allocation7 + $0x7f8] sm:$0xf0] }
 0x58d   :  { %6295 = vmatpush.bf16.msra.mxu2 %v8474_v35  ;;  %6308 = vmatpush.bf16.msra.mxu3 %v8730_v42  ;;  %v6063_v46 = vpop.f32.mrf.mxu0  ;;  %v6076_v2 = vpop.f32.mrf.mxu1  ;;  %v8574_v42 = vor.u32 %v10002_v21, %v8573_v23  ;;  %v8797_v54 = vld [vmem:[#allocation7 + $0x298] sm:$0xf]  ;;  %v10094_v23 = vld [vmem:[#allocation7 + $0x3dc] sm:$0xf] }
 0x58e   :  { %6321 = vmatpush.bf16.msrb.mxu0 %v8986_v52  ;;  %v8541_v52 = vld [vmem:[#allocation7 + $0x98] sm:$0xf]  ;;  %v8959_v21 = vld [vmem:[#allocation7 + $0x3f8] sm:$0xf0] }
 0x58f   :  { %v10058_v55 = vld [vmem:[#allocation7 + $0x2b4] sm:$0xf0] }
 0x590   :  { %6334 = vmatpush.bf16.msrb.mxu1 %v9242_v11  ;;  %6296 = vmatmul.bf16.vlgmr.msra.gmra.mxu2 %v10911_v34  ;;  %v9994_v11 = vld [vmem:[#allocation7 + $0xb4] sm:$0xf0]  ;;  %v8798_v62 = vor.u32 %v10058_v55, %v8797_v54 }
 0x591   :  { %6340 = vmatpush.bf16.msrb.mxu2 %v8702_v48  ;;  %6353 = vmatpush.bf16.msrb.mxu3 %v8958_v53  ;;  %v9086_v48 = vor.u32 %v10130_v51, %v9085_v45  ;;  %v9342_v53 = vor.u32 %v10194_v26, %v9341_v19  ;;  %v10122_v61 = vld [vmem:[#allocation7 + $0x4b4] sm:$0xf0]  ;;  %v8542_v3 = vor.u32 %v9994_v11, %v8541_v52  ;;  %v10086_v11 = vld [vmem:[#allocation7 + $0x39c] sm:$0xf] }
 0x592   :  { %6366 = vmatpush.bf16.msra.mxu0 %v9214_v56  ;;  %6309 = vmatmul.bf16.vlgmr.msra.gmra.mxu3 %v10913_v59  ;;  %v6037_v36 = vpop.f32.mrf.mxu2  ;;  %v6050_v43 = vpop.f32.mrf.mxu3  ;;  %v9053_v56 = vld [vmem:[#allocation7 + $0x498] sm:$0xf]  ;;  %v9474_v52 = vor.u32 %v10222_v17, %v9471_v44  ;;  %v10126_v17 = vld [vmem:[#allocation7 + $0x4dc] sm:$0xf] }
 0x593   :  { %6322 = vmatmul.bf16.vlgmr.msrb.gmra.mxu0 %v10915_v38  ;;  %6335 = vmatmul.bf16.vlgmr.msrb.gmra.mxu1 %v10917_v24  ;;  %v6051_v22 = vadd.f32 %v6050_v43, %v6037_v36  ;;  %v9309_v0 = vld [vmem:[#allocation7 + $0x698] sm:$0xf]  ;;  %v9215_v43 = vld [vmem:[#allocation7 + $0x5f8] sm:$0xf0] }
 0x594   :  { %6379 = vmatpush.bf16.msra.mxu1 %v9470_v50  ;;  %v10186_v58 = vld [vmem:[#allocation7 + $0x6b4] sm:$0xf0]  ;;  %v9087_v44 = vld [vmem:[#allocation7 + $0x4f8] sm:$0xf0] }
 0x595   :  { %6341 = vmatpush.bf16.msrb.mxu2 %v8670_v14  ;;  %6354 = vmatpush.bf16.msrb.mxu3 %v8926_v27  ;;  %v6064_v35 = vadd.f32 %v6063_v46, %v6051_v22  ;;  %v6065_v6 = vpop.f32.mrf.mxu0  ;;  %v6078_v49 = vpop.f32.mrf.mxu1  ;;  %v8509_v8 = vld [vmem:[#allocation7 + $0x58] sm:$0xf]  ;;  %v9054_v27 = vor.u32 %v10122_v61, %v9053_v56  ;;  %v9310_v15 = vor.u32 %v10186_v58, %v9309_v0  ;;  %v10214_v61 = vld [vmem:[#allocation7 + $0x79c] sm:$0xf] }
 0x596   :  { %6367 = vmatpush.bf16.msra.mxu0 %v9182_v5  ;;  %v9986_v14 = vld [vmem:[#allocation7 + $0x74] sm:$0xf0]  ;;  %v8671_v6 = vld [vmem:[#allocation7 + $0x1b8] sm:$0xf0] }
 0x597   :  { %v6077_v50 = vadd.f32 %v6076_v2, %v6064_v35  ;;  %v10050_v32 = vld [vmem:[#allocation7 + $0x274] sm:$0xf0]  ;;  %v8962_v35 = vor.u32 %v10094_v23, %v8959_v21  ;;  %v9439_v0 = vld [vmem:[#allocation7 + $0x7b8] sm:$0xf0] }
 0x598   :  { %6380 = vmatpush.bf16.msra.mxu1 %v9438_v9  ;;  %v8765_v9 = vld [vmem:[#allocation7 + $0x258] sm:$0xf]  ;;  %v9998_v23 = vld [vmem:[#allocation7 + $0xdc] sm:$0xf] }
 0x599   :  { %6342 = vmatpush.bf16.msrb.mxu2 %v8638_v25  ;;  %6355 = vmatpush.bf16.msrb.mxu3 %v8894_v57  ;;  %10257 = vtanh.f32 %v6077_v50  ;;  %v9021_v10 = vld [vmem:[#allocation7 + $0x458] sm:$0xf]  ;;  %v8510_v25 = vor.u32 %v9986_v14, %v8509_v8  ;;  %v8766_v57 = vor.u32 %v10050_v32, %v8765_v9  ;;  %v9183_v50 = vld [vmem:[#allocation7 + $0x5b8] sm:$0xf0] }
 0x59a   :  { %6368 = vmatpush.bf16.msra.mxu0 %v9150_v29  ;;  %v6039_v63 = vpop.f32.mrf.mxu2  ;;  %v6052_v5 = vpop.f32.mrf.mxu3  ;;  %v10114_v39 = vld [vmem:[#allocation7 + $0x474] sm:$0xf0]  ;;  %v10014_v8 = vld [vmem:[#allocation7 + $0x15c] sm:$0xf] }
 0x59b   :  { %v9277_v7 = vld [vmem:[#allocation7 + $0x658] sm:$0xf]  ;;  %v8639_v14 = vld [vmem:[#allocation7 + $0x178] sm:$0xf0] }
 0x59c   :  { %6381 = vmatpush.bf16.msra.mxu1 %v9406_v13  ;;  %v10178_v12 = vld [vmem:[#allocation7 + $0x674] sm:$0xf0]  ;;  %v9022_v13 = vor.u32 %v10114_v39, %v9021_v10  ;;  %v10078_v63 = vld [vmem:[#allocation7 + $0x35c] sm:$0xf] }
 0x59d   :  { %6343 = vmatpush.bf16.msrb.mxu2 %v8606_v18  ;;  %6356 = vmatpush.bf16.msrb.mxu3 %v8862_v1  ;;  %v8477_v20 = vld [vmem:[#allocation7 + $0x18] sm:$0xf]  ;;  %v6115_v46 = vpop.f32.mrf.mxu0  ;;  %v6128_v2 = vpop.f32.mrf.mxu1  ;;  %v9278_v16 = vor.u32 %v10178_v12, %v9277_v7  ;;  %v10030_v18 = vld [vmem:[#allocation7 + $0x1dc] sm:$0xf] }
 0x59e   :  { %6369 = vmatpush.bf16.msra.mxu0 %v9118_v40  ;;  %v9978_v28 = vld [vmem:[#allocation7 + $0x34] sm:$0xf0]  ;;  %v8703_v1 = vld [vmem:[#allocation7 + $0x1f8] sm:$0xf0] }
 0x59f   :  { %v8733_v47 = vld [vmem:[#allocation7 + $0x218] sm:$0xf]  ;;  %v10258_v30 = vpop.eup %10257  ;;  %v10158_v40 = vld [vmem:[#allocation7 + $0x5dc] sm:$0xf]  ;;  %v8706_v26 = vor.u32 %v10030_v18, %v8703_v1 }
 0x5a0   :  { %6382 = vmatpush.bf16.msra.mxu1 %v9374_v41  ;;  %v10042_v29 = vld [vmem:[#allocation7 + $0x234] sm:$0xf0]  ;;  %6452 = vst [vmem:[%s10982_s7] sm:$0xff] %v10258_v30  ;;  %v8478_v41 = vor.u32 %v9978_v28, %v8477_v20  ;;  %v9218_v49 = vor.u32 %v10158_v40, %v9215_v43  ;;  %v8895_v5 = vld [vmem:[#allocation7 + $0x378] sm:$0xf0]  ;;  %v8642_v20 = vor.u32 %v10014_v8, %v8639_v14 }
 0x5a1   :  { %6344 = vmatpush.bf16.msrb.mxu2 %v8574_v42  ;;  %6357 = vmatpush.bf16.msrb.mxu3 %v8830_v4  ;;  %v8989_v31 = vld [vmem:[#allocation7 + $0x418] sm:$0xf]  ;;  %v8734_v36 = vor.u32 %v10042_v29, %v8733_v47  ;;  %v10022_v4 = vld [vmem:[#allocation7 + $0x19c] sm:$0xf] }
 0x5a2   :  { %6370 = vmatpush.bf16.msra.mxu0 %v9086_v48  ;;  %v10106_v37 = vld [vmem:[#allocation7 + $0x434] sm:$0xf0]  ;;  %v6089_v51 = vpop.f32.mrf.mxu2  ;;  %v6102_v19 = vpop.f32.mrf.mxu3  ;;  %v8927_v48 = vld [vmem:[#allocation7 + $0x3b8] sm:$0xf0] }
 0x5a3   :  { %v9245_v60 = vld [vmem:[#allocation7 + $0x618] sm:$0xf]  ;;  %v8990_v45 = vor.u32 %v10106_v37, %v8989_v31  ;;  %v6103_v42 = vadd.f32 %v6102_v19, %v6089_v51  ;;  %v10142_v9 = vld [vmem:[#allocation7 + $0x55c] sm:$0xf] }
 0x5a4   :  { %6383 = vmatpush.bf16.msra.mxu1 %v9342_v53  ;;  %v10170_v33 = vld [vmem:[#allocation7 + $0x634] sm:$0xf0]  ;;  %v10150_v53 = vld [vmem:[#allocation7 + $0x59c] sm:$0xf] }
 0x5a5   :  { %6345 = vmatpush.bf16.msrb.mxu2 %v8542_v3  ;;  %6358 = vmatpush.bf16.msrb.mxu3 %v8798_v62  ;;  %v9246_v22 = vor.u32 %v10170_v33, %v9245_v60  ;;  %v6116_v54 = vadd.f32 %v6115_v46, %v6103_v42  ;;  %v6117_v55 = vpop.f32.mrf.mxu0  ;;  %v6130_v56 = vpop.f32.mrf.mxu1  ;;  %v8674_v3 = vor.u32 %v10022_v4, %v8671_v6  ;;  %v9151_v32 = vld [vmem:[#allocation7 + $0x578] sm:$0xf0] }
 0x5a6   :  { %6371 = vmatpush.bf16.msra.mxu0 %v9054_v27  ;;  %v8930_v62 = vor.u32 %v10086_v11, %v8927_v48  ;;  %v9186_v27 = vor.u32 %v10150_v53, %v9183_v50  ;;  %v10206_v10 = vld [vmem:[#allocation7 + $0x75c] sm:$0xf]  ;;  %v9090_v42 = vor.u32 %v10126_v17, %v9087_v44 }
 0x5a7   :  { %v6129_v58 = vadd.f32 %v6128_v2, %v6116_v54  ;;  %v9407_v39 = vld [vmem:[#allocation7 + $0x778] sm:$0xf0]  ;;  %v9154_v2 = vor.u32 %v10142_v9, %v9151_v32 }
 0x5a8   :  { %6384 = vmatpush.bf16.msra.mxu1 %v9310_v15  ;;  %v9442_v15 = vor.u32 %v10214_v61, %v9439_v0  ;;  %v8607_v46 = vld [vmem:[#allocation7 + $0x138] sm:$0xf0]  ;;  %v9410_v28 = vor.u32 %v10206_v10, %v9407_v39 }
 0x5a9   :  { %6346 = vmatpush.bf16.msrb.mxu2 %v8510_v25  ;;  %6359 = vmatpush.bf16.msrb.mxu3 %v8766_v57  ;;  %10259 = vtanh.f32 %v6129_v58  ;;  %v8898_v25 = vor.u32 %v10078_v63, %v8895_v5  ;;  %v10006_v57 = vld [vmem:[#allocation7 + $0x11c] sm:$0xf] }
 0x5aa   :  { %6372 = vmatpush.bf16.msra.mxu0 %v9022_v13  ;;  %v6091_v7 = vpop.f32.mrf.mxu2  ;;  %v6104_v12 = vpop.f32.mrf.mxu3  ;;  %v10070_v47 = vld [vmem:[#allocation7 + $0x31c] sm:$0xf]  ;;  %v8610_v18 = vor.u32 %v10006_v57, %v8607_v46 }
 0x5ab   :  { %v8863_v29 = vld [vmem:[#allocation7 + $0x338] sm:$0xf0] }
 0x5ac   :  { %6385 = vmatpush.bf16.msra.mxu1 %v9278_v16  ;;  %v10134_v13 = vld [vmem:[#allocation7 + $0x51c] sm:$0xf]  ;;  %v8866_v1 = vor.u32 %v10070_v47, %v8863_v29 }
 0x5ad   :  { %6347 = vmatpush.bf16.msrb.mxu2 %v8478_v41  ;;  %6360 = vmatpush.bf16.msrb.mxu3 %v8734_v36  ;;  %v9119_v16 = vld [vmem:[#allocation7 + $0x538] sm:$0xf0] }
 0x5ae   :  { %6373 = vmatpush.bf16.msra.mxu0 %v8990_v45  ;;  %v10198_v31 = vld [vmem:[#allocation7 + $0x71c] sm:$0xf]  ;;  %v9122_v41 = vor.u32 %v10134_v13, %v9119_v16 }
 0x5af   :  { %v9375_v37 = vld [vmem:[#allocation7 + $0x738] sm:$0xf0]  ;;  %v10260_v60 = vpop.eup %10259 }
 0x5b0   :  { %6386 = vmatpush.bf16.msra.mxu1 %v9246_v22  ;;  %6348 = vmatmul.bf16.vlgmr.msrb.gmra.mxu2 %v10911_v34  ;;  %v6167_v30 = vpop.f32.mrf.mxu0  ;;  %v6180_v33 = vpop.f32.mrf.mxu1  ;;  %v8575_v21 = vld [vmem:[#allocation7 + $0xf8] sm:$0xf0]  ;;  %6453 = vst [vmem:[%s10982_s7 + $0x8] sm:$0xff] %v10260_v60  ;;  %v9378_v36 = vor.u32 %v10198_v31, %v9375_v37 }
 0x5b1   :  { %6392 = vmatpush.bf16.msra.mxu2 %v8706_v26  ;;  %6405 = vmatpush.bf16.msra.mxu3 %v8962_v35  ;;  %v10062_v40 = vld [vmem:[#allocation7 + $0x2dc] sm:$0xf]  ;;  %v8578_v51 = vor.u32 %v9998_v23, %v8575_v21 }
 0x5b2   :  { %6418 = vmatpush.bf16.msrb.mxu0 %v9218_v49  ;;  %6361 = vmatmul.bf16.vlgmr.msrb.gmra.mxu3 %v10913_v59  ;;  %v8831_v43 = vld [vmem:[#allocation7 + $0x2f8] sm:$0xf0] }
 0x5b3   :  { %6374 = vmatmul.bf16.vlgmr.msra.gmra.mxu0 %v10915_v38  ;;  %6387 = vmatmul.bf16.vlgmr.msra.gmra.mxu1 %v10917_v24  ;;  %v10190_v45 = vld [vmem:[#allocation7 + $0x6dc] sm:$0xf]  ;;  %v8834_v19 = vor.u32 %v10062_v40, %v8831_v43  ;;  %v6141_v6 = vpop.f32.mrf.mxu2 }
 0x5b4   :  { %6431 = vmatpush.bf16.msrb.mxu1 %v9474_v52  ;;  %v9343_v22 = vld [vmem:[#allocation7 + $0x6f8] sm:$0xf0] }
 0x5b5   :  { %6393 = vmatpush.bf16.msra.mxu2 %v8674_v3  ;;  %6406 = vmatpush.bf16.msra.mxu3 %v8930_v62  ;;  %v9990_v26 = vld [vmem:[#allocation7 + $0x9c] sm:$0xf]  ;;  %v9346_v4 = vor.u32 %v10190_v45, %v9343_v22  ;;  %v6154_v49 = vpop.f32.mrf.mxu3 }
 0x5b6   :  { %6419 = vmatpush.bf16.msrb.mxu0 %v9186_v27  ;;  %v8543_v35 = vld [vmem:[#allocation7 + $0xb8] sm:$0xf0]  ;;  %v6155_v53 = vadd.f32 %v6154_v49, %v6141_v6 }
 0x5b7   :  { %v10054_v52 = vld [vmem:[#allocation7 + $0x29c] sm:$0xf]  ;;  %v8546_v58 = vor.u32 %v9990_v26, %v8543_v35 }
 0x5b8   :  { %6432 = vmatpush.bf16.msrb.mxu1 %v9442_v15  ;;  %v8799_v11 = vld [vmem:[#allocation7 + $0x2b8] sm:$0xf0]  ;;  %v6168_v50 = vadd.f32 %v6167_v30, %v6155_v53  ;;  %v6169_v61 = vpop.f32.mrf.mxu0  ;;  %v6182_v0 = vpop.f32.mrf.mxu1 }
 0x5b9   :  { %6394 = vmatpush.bf16.msra.mxu2 %v8642_v20  ;;  %6407 = vmatpush.bf16.msra.mxu3 %v8898_v25  ;;  %v10118_v48 = vld [vmem:[#allocation7 + $0x49c] sm:$0xf]  ;;  %v8802_v3 = vor.u32 %v10054_v52, %v8799_v11 }
 0x5ba   :  { %6420 = vmatpush.bf16.msrb.mxu0 %v9154_v2  ;;  %v9055_v54 = vld [vmem:[#allocation7 + $0x4b8] sm:$0xf0]  ;;  %v6181_v9 = vadd.f32 %v6180_v33, %v6168_v50 }
 0x5bb   :  { %v10182_v55 = vld [vmem:[#allocation7 + $0x69c] sm:$0xf]  ;;  %v9058_v14 = vor.u32 %v10118_v48, %v9055_v54  ;;  %v6143_v2 = vpop.f32.mrf.mxu2 }
 0x5bc   :  { %6433 = vmatpush.bf16.msrb.mxu1 %v9410_v28  ;;  %v9311_v56 = vld [vmem:[#allocation7 + $0x6b8] sm:$0xf0]  ;;  %10261 = vtanh.f32 %v6181_v9 }
 0x5bd   :  { %6395 = vmatpush.bf16.msra.mxu2 %v8610_v18  ;;  %6408 = vmatpush.bf16.msra.mxu3 %v8866_v1  ;;  %v9982_v62 = vld [vmem:[#allocation7 + $0x5c] sm:$0xf]  ;;  %v9314_v27 = vor.u32 %v10182_v55, %v9311_v56  ;;  %v6156_v28 = vpop.f32.mrf.mxu3 }
 0x5be   :  { %6421 = vmatpush.bf16.msrb.mxu0 %v9122_v41  ;;  %v8511_v8 = vld [vmem:[#allocation7 + $0x78] sm:$0xf0] }
 0x5bf   :  { %v10046_v15 = vld [vmem:[#allocation7 + $0x25c] sm:$0xf]  ;;  %v8514_v7 = vor.u32 %v9982_v62, %v8511_v8 }
 0x5c0   :  { %6434 = vmatpush.bf16.msrb.mxu1 %v9378_v36  ;;  %v8767_v63 = vld [vmem:[#allocation7 + $0x278] sm:$0xf0] }
 0x5c1   :  { %6396 = vmatpush.bf16.msra.mxu2 %v8578_v51  ;;  %6409 = vmatpush.bf16.msra.mxu3 %v8834_v19  ;;  %v10110_v5 = vld [vmem:[#allocation7 + $0x45c] sm:$0xf]  ;;  %v8770_v12 = vor.u32 %v10046_v15, %v8767_v63 }
 0x5c2   :  { %6422 = vmatpush.bf16.msrb.mxu0 %v9090_v42  ;;  %v9023_v32 = vld [vmem:[#allocation7 + $0x478] sm:$0xf0]  ;;  %v10262_v1 = vpop.eup %10261 }
 0x5c3   :  { %v10174_v10 = vld [vmem:[#allocation7 + $0x65c] sm:$0xf]  ;;  %v9026_v57 = vor.u32 %v10110_v5, %v9023_v32  ;;  %6454 = vst [vmem:[%s10982_s7 + $0x10] sm:$0xff] %v10262_v1 }
 0x5c4   :  { %6435 = vmatpush.bf16.msrb.mxu1 %v9346_v4  ;;  %v9279_v39 = vld [vmem:[#allocation7 + $0x678] sm:$0xf0] }
 0x5c5   :  { %6397 = vmatpush.bf16.msra.mxu2 %v8546_v58  ;;  %6410 = vmatpush.bf16.msra.mxu3 %v8802_v3  ;;  %v9974_v20 = vld [vmem:[#allocation7 + $0x1c] sm:$0xf]  ;;  %v9282_v46 = vor.u32 %v10174_v10, %v9279_v39 }
 0x5c6   :  { %v8479_v25 = vld [vmem:[#allocation7 + $0x38] sm:$0xf0]  ;;  %6423 = vmatpush.bf16.msrb.mxu0 %v9058_v14 }
 0x5c7   :  { %v10038_v47 = vld [vmem:[#allocation7 + $0x21c] sm:$0xf]  ;;  %v8482_v60 = vor.u32 %v9974_v20, %v8479_v25 }
 0x5c8   :  { %6436 = vmatpush.bf16.msrb.mxu1 %v9314_v27  ;;  %v8735_v29 = vld [vmem:[#allocation7 + $0x238] sm:$0xf0] }
 0x5c9   :  { %v10102_v13 = vld [vmem:[#allocation7 + $0x41c] sm:$0xf]  ;;  %6398 = vmatpush.bf16.msra.mxu2 %v8514_v7  ;;  %6411 = vmatpush.bf16.msra.mxu3 %v8770_v12  ;;  %v8738_v30 = vor.u32 %v10038_v47, %v8735_v29 }
 0x5ca   :  { %v8991_v16 = vld [vmem:[#allocation7 + $0x438] sm:$0xf0]  ;;  %6424 = vmatpush.bf16.msrb.mxu0 %v9026_v57 }
 0x5cb   :  { %v10166_v31 = vld [vmem:[#allocation7 + $0x61c] sm:$0xf]  ;;  %v8994_v33 = vor.u32 %v10102_v13, %v8991_v16 }
 0x5cc   :  { %v9247_v37 = vld [vmem:[#allocation7 + $0x638] sm:$0xf0]  ;;  %6437 = vmatpush.bf16.msrb.mxu1 %v9282_v46 }
 0x5cd   :  { %v9250_v18 = vor.u32 %v10166_v31, %v9247_v37  ;;  %6399 = vmatpush.bf16.msra.mxu2 %v8482_v60  ;;  %6412 = vmatpush.bf16.msra.mxu3 %v8738_v30 }
 0x5ce   :  { %6425 = vmatpush.bf16.msrb.mxu0 %v8994_v33 }
 0x5d0   :  { %6438 = vmatpush.bf16.msrb.mxu1 %v9250_v18  ;;  %6400 = vmatmul.bf16.vlgmr.msra.gmra.mxu2 %v10911_v34  ;;  %v6219_v23 = vpop.f32.mrf.mxu0  ;;  %v6232_v21 = vpop.f32.mrf.mxu1 }
 0x5d1   :  { %6413 = vmatmul.bf16.vlgmr.msra.gmra.mxu3 %v10913_v59  ;;  %6426 = vmatmul.bf16.vlgmr.msrb.gmra.mxu0 %v10915_v38 }
 0x5d3   :  { %6439 = vmatmul.bf16.vlgmr.msrb.gmra.mxu1 %v10917_v24  ;;  %v6193_v40 = vpop.f32.mrf.mxu2 }
 0x5d5   :  { %v6206_v41 = vpop.f32.mrf.mxu3 }
 0x5d6   :  { %v6207_v36 = vadd.f32 %v6206_v41, %v6193_v40 }
 0x5d8   :  { %v6220_v43 = vadd.f32 %v6219_v23, %v6207_v36  ;;  %v6221_v17 = vpop.f32.mrf.mxu0  ;;  %v6234_v44 = vpop.f32.mrf.mxu1 }
 0x5da   :  { %v6233_v45 = vadd.f32 %v6232_v21, %v6220_v43 }
 0x5db   :  { %v6195_v22 = vpop.f32.mrf.mxu2 }
 0x5dc   :  { %10263 = vtanh.f32 %v6233_v45 }
 0x5dd   :  { %v6208_v51 = vpop.f32.mrf.mxu3 }
 0x5e2   :  { %v10264_v19 = vpop.eup %10263 }
 0x5e3   :  { %6455 = vst [vmem:[%s10982_s7 + $0x18] sm:$0xff] %v10264_v19 }
 0x5f0   :  { %v6271_v34 = vpop.f32.mrf.mxu0  ;;  %v6284_v59 = vpop.f32.mrf.mxu1 }
 0x5f3   :  { %v6245_v38 = vpop.f32.mrf.mxu2 }
 0x5f5   :  { %v6258_v24 = vpop.f32.mrf.mxu3 }
 0x5f6   :  { %v6259_v26 = vadd.f32 %v6258_v24, %v6245_v38 }
 0x5f8   :  { %v6272_v35 = vadd.f32 %v6271_v34, %v6259_v26  ;;  %v6273_v42 = vpop.f32.mrf.mxu0  ;;  %v6286_v4 = vpop.f32.mrf.mxu1 }
 0x5fa   :  { %v6285_v6 = vadd.f32 %v6284_v59, %v6272_v35 }
 0x5fb   :  { %v6247_v49 = vpop.f32.mrf.mxu2 }
 0x5fc   :  { %10265 = vtanh.f32 %v6285_v6 }
 0x5fd   :  { %v6260_v52 = vpop.f32.mrf.mxu3 }
 0x602   :  { %v10266_v11 = vpop.eup %10265 }
 0x603   :  { %6456 = vst [vmem:[%s10982_s7 + $0x20] sm:$0xff] %v10266_v11 }
 0x610   :  { %v6323_v48 = vpop.f32.mrf.mxu0  ;;  %v6336_v53 = vpop.f32.mrf.mxu1 }
 0x613   :  { %v6297_v54 = vpop.f32.mrf.mxu2 }
 0x615   :  { %v6310_v55 = vpop.f32.mrf.mxu3 }
 0x616   :  { %v6311_v56 = vadd.f32 %v6310_v55, %v6297_v54 }
 0x618   :  { %v6324_v50 = vadd.f32 %v6323_v48, %v6311_v56  ;;  %v6325_v61 = vpop.f32.mrf.mxu0  ;;  %v6338_v0 = vpop.f32.mrf.mxu1 }
 0x61a   :  { %v6337_v58 = vadd.f32 %v6336_v53, %v6324_v50 }
 0x61b   :  { %v6299_v3 = vpop.f32.mrf.mxu2 }
 0x61c   :  { %10267 = vtanh.f32 %v6337_v58 }
 0x61d   :  { %v6312_v62 = vpop.f32.mrf.mxu3 }
 0x622   :  { %v10268_v8 = vpop.eup %10267 }
 0x623   :  { %6457 = vst [vmem:[%s10982_s7 + $0x28] sm:$0xff] %v10268_v8 }
 0x630   :  { %v6375_v14 = vpop.f32.mrf.mxu0  ;;  %v6388_v27 = vpop.f32.mrf.mxu1 }
 0x633   :  { %v6349_v15 = vpop.f32.mrf.mxu2 }
 0x635   :  { %v6362_v63 = vpop.f32.mrf.mxu3 }
 0x636   :  { %v6363_v5 = vadd.f32 %v6362_v63, %v6349_v15 }
 0x638   :  { %v6376_v9 = vadd.f32 %v6375_v14, %v6363_v5  ;;  %v6377_v32 = vpop.f32.mrf.mxu0  ;;  %v6390_v10 = vpop.f32.mrf.mxu1 }
 0x63a   :  { %v6389_v39 = vadd.f32 %v6388_v27, %v6376_v9 }
 0x63b   :  { %v6351_v7 = vpop.f32.mrf.mxu2 }
 0x63c   :  { %10269 = vtanh.f32 %v6389_v39 }
 0x63d   :  { %v6364_v12 = vpop.f32.mrf.mxu3 }
 0x642   :  { %v10270_v20 = vpop.eup %10269 }
 0x643   :  { %6458 = vst [vmem:[%s10982_s7 + $0x30] sm:$0xff] %v10270_v20 }
 0x64e   :  { %v6427_v25 = vpop.f32.mrf.mxu0 }
 0x650   :  { %v6440_v57 = vpop.f32.mrf.mxu1 }
 0x653   :  { %v6401_v46 = vpop.f32.mrf.mxu2 }
 0x654   :  { %v6414_v2 = vpop.f32.mrf.mxu3 }
 0x655   :  { %v6415_v28 = vadd.f32 %v6414_v2, %v6401_v46 }
 0x656   :  { %v6429_v29 = vpop.f32.mrf.mxu0 }
 0x657   :  { %v6428_v47 = vadd.f32 %v6427_v25, %v6415_v28 }
 0x658   :  { %v6442_v13 = vpop.f32.mrf.mxu1 }
 0x659   :  { %v6441_v16 = vadd.f32 %v6440_v57, %v6428_v47 }
 0x65b   :  { %10271 = vtanh.f32 %v6441_v16  ;;  %v6403_v31 = vpop.f32.mrf.mxu2 }
 0x65c   :  { %v6416_v37 = vpop.f32.mrf.mxu3 }
 0x661   :  { %v10272_v60 = vpop.eup %10271 }
 0x662   :  { %6459 = vst [vmem:[%s10982_s7 + $0x38] sm:$0xff] %v10272_v60 }
 0x663   :  { %6464 = vsyncpa [#allocation3], 1 }
 0x664   :  { %6465 = vsyncpa [#allocation5], 1 }
 0x665   :  { %6466 = vsyncpa [#allocation8], 1 }

</bundles_post_ra>
